<compile_context>
chip_gen: v6e
topology: v6e:2x2x1
jax: 0.10.0
libtpu: 0.0.40
codegen_flags: <defaults>
</compile_context>

<pallas_src>
import functools

import numpy as np
import jax
import jax.numpy as jnp
from jax.experimental import pallas as pl


# --------------------------- in-kernel helpers ------------------------------ #

def _mm(a, b):
    """MXU matmul, fp32 operands / fp32 accumulation (backend-portable)."""
    return jnp.dot(a, b, preferred_element_type=jnp.float32)


def _shift_lanes(x, s):
    """out[:, i] = x[:, i + s]; zero fill outside [0, M)."""
    c, m = x.shape
    if s == 0:
        return x
    if s > 0:
        return jnp.concatenate([x[:, s:], jnp.zeros((c, s), x.dtype)], axis=1)
    return jnp.concatenate([jnp.zeros((c, -s), x.dtype), x[:, :m + s]], axis=1)


def _coords(m, h, w):
    """(h, w) coordinates of each flattened (n, h, w) index; shape (1, M)."""
    i = jax.lax.broadcasted_iota(jnp.int32, (1, m), 1)
    if (w & (w - 1)) == 0 and (h & (h - 1)) == 0:     # powers of two: shift/mask
        wcoord = i & (w - 1)
        hcoord = (i >> (w.bit_length() - 1)) & (h - 1)
    else:
        wcoord = i % w
        hcoord = (i // w) % h
    return hcoord, wcoord


def _tap_masks(m, h, w):
    """Validity masks for the 8 non-center 3x3 taps, computed once per level."""
    hc, wc = _coords(m, h, w)
    masks = {}
    for kh in range(3):
        for kw in range(3):
            dh, dw = kh - 1, kw - 1
            if dh == 0 and dw == 0:
                continue
            masks[(dh, dw)] = ((hc + dh >= 0) & (hc + dh < h) &
                               (wc + dw >= 0) & (wc + dw < w))
    return masks


def _conv3x3(x, w_r, masks, w):
    """3x3 conv, stride 1, pad 1, no bias, as one im2col matmul.

    x:     (Cin, M), M = N*h*w flattened (n, h, w) row-major
    w_r:   (Cout, 9*Cin), tap-major rows ((kh*3+kw)*Cin + c)
    masks: precomputed per-level tap validity masks (hoisted out of the conv)
    """
    taps = []
    for kh in range(3):
        for kw in range(3):
            dh, dw = kh - 1, kw - 1
            if dh == 0 and dw == 0:
                taps.append(x)
                continue
            shifted = _shift_lanes(x, dh * w + dw)
            taps.append(jnp.where(masks[(dh, dw)], shifted, 0.0))
    patches = jnp.concatenate(taps, axis=0)            # (9*Cin, M)
    return _mm(w_r, patches)                           # (Cout, M)


def _bn_relu(y, gamma, beta, eps=1e-5):
    """Training-mode BatchNorm + ReLU; ONE stacked lane reduction for stats."""
    c, m = y.shape
    stats = jnp.sum(jnp.concatenate([y, y * y], axis=0),
                    axis=1, keepdims=True) * (1.0 / m)          # (2C, 1)
    mean, mean_sq = stats[:c], stats[c:]
    var = jnp.maximum(mean_sq - mean * mean, 0.0)
    inv = gamma * jax.lax.rsqrt(var + eps)
    return jnp.maximum((y - mean) * inv + beta, 0.0)


def _conv_block(x, w_r, gamma, beta, masks, w):
    return _bn_relu(_conv3x3(x, w_r, masks, w), gamma, beta)


def _maxpool2(x, sel, w):
    """2x2 / stride-2 max pool: max of 4 lane-shifted copies + selection matmul."""
    m = jnp.maximum(jnp.maximum(x, _shift_lanes(x, 1)),
                    jnp.maximum(_shift_lanes(x, w), _shift_lanes(x, w + 1)))
    return _mm(m, sel)


def _attn_gate(skip, g, wtg, wpsi_col, bpsi):
    """Additive attention gate, fused projections.

    f    = relu([Wt | Wg] @ [skip; g])          -- ONE matmul, K = Cs + Cg
    psi  = <wpsi, f> + b                        -- VPU multiply + sublane reduce
    out  = skip * sigmoid(psi)
    """
    f = jnp.maximum(_mm(wtg, jnp.concatenate([skip, g], axis=0)), 0.0)   # (Fi, M)
    psi = jnp.sum(wpsi_col * f, axis=0, keepdims=True) + bpsi            # (1, M)
    return skip * jax.nn.sigmoid(psi)


# ------------------------------ fused kernel -------------------------------- #

def _unet_kernel(x_ref, w_ref, v_ref, s01_ref, s12_ref, u21_ref, u10_ref,
                 o_ref, *, H, W, lay):
    H0, W0 = H, W
    H1, W1 = H // 2, W // 2
    H2, W2 = H // 4, W // 4

    x = x_ref[...]                                     # (Cin, M0)
    Wm = w_ref[...]                                    # packed matmul weights
    Vm = v_ref[...]                                    # packed per-channel vectors
    s01 = s01_ref[...]
    s12 = s12_ref[...]
    u21 = u21_ref[...]
    u10 = u10_ref[...]

    m0 = x.shape[1]
    m1 = m0 // 4
    m2 = m0 // 16

    # Hoisted: per-level tap masks computed once and shared by all convs.
    masks0 = _tap_masks(m0, H0, W0)
    masks1 = _tap_masks(m1, H1, W1)
    masks2 = _tap_masks(m2, H2, W2)

    def conv(name, inp, masks, wdim):
        r0, co, k, gc, bc = lay["conv"][name]
        return _conv_block(inp, Wm[r0:r0 + co, :k],
                           Vm[:co, gc:gc + 1], Vm[:co, bc:bc + 1], masks, wdim)

    def attn(name, skip, g):
        r0, fi, k, pc, bc = lay["attn"][name]
        return _attn_gate(skip, g, Wm[r0:r0 + fi, :k],
                          Vm[:fi, pc:pc + 1], Vm[0:1, bc:bc + 1])

    # ----- encoder -----
    b0 = conv("enc0", x, masks0, W0)                   # (8 , M0)
    x1 = _maxpool2(b0, s01, W0)                        # (8 , M1)
    b1 = conv("enc1", x1, masks1, W1)                  # (16, M1)
    x2 = _maxpool2(b1, s12, W1)                        # (16, M2)
    c = conv("center", x2, masks2, W2)                 # (32, M2)

    # ----- gating -----
    g = conv("gating", c, masks2, W2)                  # (32, M2)

    # ----- decoder, level 1 (deepest skip) -----
    g1 = _mm(g, u21)                                   # (32, M1)
    a1 = attn("attn1", b1, g1)                         # (16, M1)
    c_up = _mm(c, u21)                                 # (32, M1)
    u1 = conv("up1", c_up, masks1, W1)                 # (16, M1)
    d1 = conv("dec1", jnp.concatenate([u1, a1], axis=0), masks1, W1)   # (16, M1)

    # ----- decoder, level 0 -----
    g0 = _mm(g1, u10)                                  # (32, M0)
    a0 = attn("attn0", b0, g0)                         # (8 , M0)
    d1_up = _mm(d1, u10)                               # (16, M0)
    u0 = conv("up0", d1_up, masks0, W0)                # (8 , M0)
    d0 = conv("dec0", jnp.concatenate([u0, a0], axis=0), masks0, W0)   # (8 , M0)

    # ----- final 1x1 conv, lane-dense (nclasses, M0) store -----
    r0, ncls, kf, bcol = lay["final"]
    o_ref[...] = _mm(Wm[r0:r0 + ncls, :kf], d0) + Vm[:ncls, bcol:bcol + 1]


# --------------------- host-side constants & packing ------------------------ #

def _pool_matrix(n, h, w):
    """0/1 matrix (N*h*w, N*(h/2)*(w/2)) selecting the top-left of each 2x2."""
    ho, wo = h // 2, w // 2
    q = np.arange(n * ho * wo)
    nn, r = q // (ho * wo), q % (ho * wo)
    i, j = r // wo, r % wo
    p = nn * h * w + (2 * i) * w + (2 * j)
    s = np.zeros((n * h * w, n * ho * wo), np.float32)
    s[p, q] = 1.0
    return jnp.asarray(s)


def _upsample_matrix(n, hc, wc):
    """0/1 matrix (N*hc*wc, N*2hc*2wc) replicating each coarse pixel 2x2."""
    hf, wf = 2 * hc, 2 * wc
    q = np.arange(n * hf * wf)
    nn, r = q // (hf * wf), q % (hf * wf)
    i, j = r // wf, r % wf
    p = nn * hc * wc + (i // 2) * wc + (j // 2)
    u = np.zeros((n * hc * wc, n * hf * wf), np.float32)
    u[p, q] = 1.0
    return jnp.asarray(u)


def _conv_w(w):
    """(3,3,Cin,Cout) -> (Cout, 9*Cin) im2col weight (tap-major rows)."""
    cout = w.shape[-1]
    return jnp.transpose(w, (3, 0, 1, 2)).reshape(cout, -1)


def _round8(r):
    return ((r + 7) // 8) * 8


def _pack_params(p):
    """Pack all weights into one matrix slab + one vector slab (2 DMAs total).

    Matrix slab: every matmul weight stacked on the sublane axis, each block
    padded to a multiple of 8 rows and to a common lane width.
    Vector slab:  every per-channel vector (gamma/beta/wpsi/bpsi/bias) as one
    column, so the kernel's static column slice yields a (C, 1) broadcaster.
    """
    conv_names = ("enc0", "enc1", "center", "gating", "up1", "dec1", "up0", "dec0")

    mats, vecs = [], []
    lay = {"conv": {}, "attn": {}}

    def add_mat(w2d):
        row_off = sum(_round8(m.shape[0]) for m in mats)
        mats.append(w2d.astype(jnp.float32))
        return row_off, w2d.shape[0], w2d.shape[1]

    def add_vec(v1d):
        vecs.append(v1d.astype(jnp.float32).reshape(-1))
        return len(vecs) - 1

    for name in conv_names:
        blk = p[name]
        r0, co, k = add_mat(_conv_w(blk["w"]))
        gc = add_vec(blk["gamma"])
        bc = add_vec(blk["beta"])
        lay["conv"][name] = (r0, co, k, gc, bc)

    for name in ("attn1", "attn0"):
        a = p[name]
        wtg = jnp.concatenate([a["wt"].T, a["wg"].T], axis=1)    # (Fi, Cs+Cg)
        r0, fi, k = add_mat(wtg)
        pc = add_vec(a["wpsi"])
        bc = add_vec(a["bpsi"])
        lay["attn"][name] = (r0, fi, k, pc, bc)

    r0, ncls, kf = add_mat(p["final_w"].T)                       # (nclasses, base)
    bcol = add_vec(p["final_b"])
    lay["final"] = (r0, ncls, kf, bcol)

    kmax = max(m.shape[1] for m in mats)
    w_slab = jnp.concatenate(
        [jnp.pad(m, ((0, _round8(m.shape[0]) - m.shape[0]), (0, kmax - m.shape[1])))
         for m in mats], axis=0)

    vmax = _round8(max(v.shape[0] for v in vecs))
    v_slab = jnp.stack([jnp.pad(v, (0, vmax - v.shape[0])) for v in vecs], axis=1)

    return w_slab, v_slab, lay


# --------------------------------- wrapper ----------------------------------- #

def unet_forward(x_nchw, p):
    n, cin, h, w = x_nchw.shape
    m0 = n * h * w

    # Boundary glue only: NCHW -> channels-major, flattened-spatial slab.
    x2d = jnp.transpose(x_nchw, (1, 0, 2, 3)).reshape(cin, m0)

    w_slab, v_slab, lay = _pack_params(p)
    nclasses = p["final_w"].shape[1]

    # TODO(synk): at realistic UNet resolutions replace these O(M^2) selection
    # matrices with strided scratch reads / lane replication (v7x VMEM budget).
    s01 = _pool_matrix(n, h, w)                        # L0 -> L1 pool select
    s12 = _pool_matrix(n, h // 2, w // 2)              # L1 -> L2 pool select
    u21 = _upsample_matrix(n, h // 4, w // 4)          # L2 -> L1 upsample
    u10 = _upsample_matrix(n, h // 2, w // 2)          # L1 -> L0 upsample

    out2d = pl.pallas_call(
        functools.partial(_unet_kernel, H=h, W=w, lay=lay),
        out_shape=jax.ShapeDtypeStruct((nclasses, m0), jnp.float32),
    )(x2d, w_slab, v_slab, s01, s12, u21, u10)

    # Boundary glue: (nclasses, N*H*W) -> NCHW
    return jnp.transpose(out2d.reshape(nclasses, n, h, w), (1, 0, 2, 3))


# ------------------------------ parameter init ------------------------------ #

def init_params(key, in_ch=4, base=8, nclasses=3):
    keys = iter(jax.random.split(key, 32))

    def he(shape, fan_in):
        return jax.random.normal(next(keys), shape, jnp.float32) * jnp.sqrt(2.0 / fan_in)

    def cb(cin, cout):
        return {"w": he((3, 3, cin, cout), 9 * cin),
                "gamma": jnp.ones((cout,), jnp.float32),
                "beta": jnp.zeros((cout,), jnp.float32)}

    def ag(cs, cg, fi):
        return {"wt": he((cs, fi), cs),
                "wg": he((cg, fi), cg),
                "wpsi": he((1, fi), fi),
                "bpsi": jnp.zeros((1, 1), jnp.float32)}

    return {
        "enc0": cb(in_ch, base),               # 4  -> 8
        "enc1": cb(base, 2 * base),            # 8  -> 16
        "center": cb(2 * base, 4 * base),      # 16 -> 32
        "gating": cb(4 * base, 4 * base),      # 32 -> 32
        "attn1": ag(2 * base, 4 * base, base),
        "up1": cb(4 * base, 2 * base),
        "dec1": cb(4 * base, 2 * base),
        "attn0": ag(base, 4 * base, max(base // 2, 1)),
        "up0": cb(2 * base, base),
        "dec0": cb(2 * base, base),
        "final_w": he((base, nclasses), base),
        "final_b": jnp.zeros((nclasses,), jnp.float32),
    }


# ----------------------------------- main ----------------------------------- #

if __name__ == "__main__":
    key = jax.random.PRNGKey(0)
    pkey, xkey = jax.random.split(key)
    params = init_params(pkey)

    # PyTorch-style NCHW input (batch=2, channels=4, spatial=16x16)
    x = jax.random.normal(xkey, (2, 4, 16, 16), jnp.float32)

    fwd = jax.jit(unet_forward)
    y = fwd(x, params)
    y = jax.block_until_ready(y)

    assert y.shape == (2, 3, 16, 16), y.shape
    assert bool(jnp.all(jnp.isfinite(y)))
    print("KERNEL_OK")
</pallas_src>

<mosaic_0001>
module attributes {stable_mosaic.version = 11 : i64} {
  func.func @_unet_kernel(%arg0: memref<4x512xf32, #tpu.memory_space<vmem>>, %arg1: memref<160x288xf32, #tpu.memory_space<vmem>>, %arg2: memref<32x21xf32, #tpu.memory_space<vmem>>, %arg3: memref<512x128xf32, #tpu.memory_space<vmem>>, %arg4: memref<128x32xf32, #tpu.memory_space<vmem>>, %arg5: memref<32x128xf32, #tpu.memory_space<vmem>>, %arg6: memref<128x512xf32, #tpu.memory_space<vmem>>, %arg7: memref<3x512xf32, #tpu.memory_space<vmem>>) attributes {dimension_semantics = [], scalar_prefetch = 0 : i64, scratch_operands = 0 : i64, tpu.core_type = #tpu.core_type<tc>} {
    %c0 = arith.constant 0 : index
    %c0_0 = arith.constant 0 : index
    %0 = vector.load %arg0[%c0, %c0_0] : memref<4x512xf32, #tpu.memory_space<vmem>>, vector<4x512xf32>
    %c0_1 = arith.constant 0 : index
    %c0_2 = arith.constant 0 : index
    %1 = vector.load %arg1[%c0_1, %c0_2] : memref<160x288xf32, #tpu.memory_space<vmem>>, vector<160x288xf32>
    %c0_3 = arith.constant 0 : index
    %c0_4 = arith.constant 0 : index
    %2 = vector.load %arg2[%c0_3, %c0_4] : memref<32x21xf32, #tpu.memory_space<vmem>>, vector<32x21xf32>
    %c0_5 = arith.constant 0 : index
    %c0_6 = arith.constant 0 : index
    %3 = vector.load %arg3[%c0_5, %c0_6] : memref<512x128xf32, #tpu.memory_space<vmem>>, vector<512x128xf32>
    %c0_7 = arith.constant 0 : index
    %c0_8 = arith.constant 0 : index
    %4 = vector.load %arg4[%c0_7, %c0_8] : memref<128x32xf32, #tpu.memory_space<vmem>>, vector<128x32xf32>
    %c0_9 = arith.constant 0 : index
    %c0_10 = arith.constant 0 : index
    %5 = vector.load %arg5[%c0_9, %c0_10] : memref<32x128xf32, #tpu.memory_space<vmem>>, vector<32x128xf32>
    %c0_11 = arith.constant 0 : index
    %c0_12 = arith.constant 0 : index
    %6 = vector.load %arg6[%c0_11, %c0_12] : memref<128x512xf32, #tpu.memory_space<vmem>>, vector<128x512xf32>
    %7 = tpu.iota {dimensions = array<i32: 1>} : vector<1x512xi32>
    %c15_i32 = arith.constant 15 : i32
    %8 = vector.broadcast %c15_i32 : i32 to vector<1x512xi32>
    %9 = arith.andi %7, %8 : vector<1x512xi32>
    %c4_i32 = arith.constant 4 : i32
    %10 = vector.broadcast %c4_i32 : i32 to vector<1x512xi32>
    %11 = arith.shrsi %7, %10 : vector<1x512xi32>
    %c15_i32_13 = arith.constant 15 : i32
    %12 = vector.broadcast %c15_i32_13 : i32 to vector<1x512xi32>
    %13 = arith.andi %11, %12 : vector<1x512xi32>
    %c-1_i32 = arith.constant -1 : i32
    %14 = vector.broadcast %c-1_i32 : i32 to vector<1x512xi32>
    %15 = arith.addi %13, %14 : vector<1x512xi32>
    %c0_i32 = arith.constant 0 : i32
    %16 = vector.broadcast %c0_i32 : i32 to vector<1x512xi32>
    %17 = arith.cmpi sge, %15, %16 : vector<1x512xi32>
    %c-1_i32_14 = arith.constant -1 : i32
    %18 = vector.broadcast %c-1_i32_14 : i32 to vector<1x512xi32>
    %19 = arith.addi %13, %18 : vector<1x512xi32>
    %c16_i32 = arith.constant 16 : i32
    %20 = vector.broadcast %c16_i32 : i32 to vector<1x512xi32>
    %21 = arith.cmpi slt, %19, %20 : vector<1x512xi32>
    %22 = arith.andi %17, %21 : vector<1x512xi1>
    %c-1_i32_15 = arith.constant -1 : i32
    %23 = vector.broadcast %c-1_i32_15 : i32 to vector<1x512xi32>
    %24 = arith.addi %9, %23 : vector<1x512xi32>
    %c0_i32_16 = arith.constant 0 : i32
    %25 = vector.broadcast %c0_i32_16 : i32 to vector<1x512xi32>
    %26 = arith.cmpi sge, %24, %25 : vector<1x512xi32>
    %27 = arith.andi %22, %26 : vector<1x512xi1>
    %c-1_i32_17 = arith.constant -1 : i32
    %28 = vector.broadcast %c-1_i32_17 : i32 to vector<1x512xi32>
    %29 = arith.addi %9, %28 : vector<1x512xi32>
    %c16_i32_18 = arith.constant 16 : i32
    %30 = vector.broadcast %c16_i32_18 : i32 to vector<1x512xi32>
    %31 = arith.cmpi slt, %29, %30 : vector<1x512xi32>
    %32 = arith.andi %27, %31 : vector<1x512xi1>
    %c-1_i32_19 = arith.constant -1 : i32
    %33 = vector.broadcast %c-1_i32_19 : i32 to vector<1x512xi32>
    %34 = arith.addi %13, %33 : vector<1x512xi32>
    %c0_i32_20 = arith.constant 0 : i32
    %35 = vector.broadcast %c0_i32_20 : i32 to vector<1x512xi32>
    %36 = arith.cmpi sge, %34, %35 : vector<1x512xi32>
    %c-1_i32_21 = arith.constant -1 : i32
    %37 = vector.broadcast %c-1_i32_21 : i32 to vector<1x512xi32>
    %38 = arith.addi %13, %37 : vector<1x512xi32>
    %c16_i32_22 = arith.constant 16 : i32
    %39 = vector.broadcast %c16_i32_22 : i32 to vector<1x512xi32>
    %40 = arith.cmpi slt, %38, %39 : vector<1x512xi32>
    %41 = arith.andi %36, %40 : vector<1x512xi1>
    %c0_i32_23 = arith.constant 0 : i32
    %42 = vector.broadcast %c0_i32_23 : i32 to vector<1x512xi32>
    %43 = arith.addi %9, %42 : vector<1x512xi32>
    %c0_i32_24 = arith.constant 0 : i32
    %44 = vector.broadcast %c0_i32_24 : i32 to vector<1x512xi32>
    %45 = arith.cmpi sge, %43, %44 : vector<1x512xi32>
    %46 = arith.andi %41, %45 : vector<1x512xi1>
    %c0_i32_25 = arith.constant 0 : i32
    %47 = vector.broadcast %c0_i32_25 : i32 to vector<1x512xi32>
    %48 = arith.addi %9, %47 : vector<1x512xi32>
    %c16_i32_26 = arith.constant 16 : i32
    %49 = vector.broadcast %c16_i32_26 : i32 to vector<1x512xi32>
    %50 = arith.cmpi slt, %48, %49 : vector<1x512xi32>
    %51 = arith.andi %46, %50 : vector<1x512xi1>
    %c-1_i32_27 = arith.constant -1 : i32
    %52 = vector.broadcast %c-1_i32_27 : i32 to vector<1x512xi32>
    %53 = arith.addi %13, %52 : vector<1x512xi32>
    %c0_i32_28 = arith.constant 0 : i32
    %54 = vector.broadcast %c0_i32_28 : i32 to vector<1x512xi32>
    %55 = arith.cmpi sge, %53, %54 : vector<1x512xi32>
    %c-1_i32_29 = arith.constant -1 : i32
    %56 = vector.broadcast %c-1_i32_29 : i32 to vector<1x512xi32>
    %57 = arith.addi %13, %56 : vector<1x512xi32>
    %c16_i32_30 = arith.constant 16 : i32
    %58 = vector.broadcast %c16_i32_30 : i32 to vector<1x512xi32>
    %59 = arith.cmpi slt, %57, %58 : vector<1x512xi32>
    %60 = arith.andi %55, %59 : vector<1x512xi1>
    %c1_i32 = arith.constant 1 : i32
    %61 = vector.broadcast %c1_i32 : i32 to vector<1x512xi32>
    %62 = arith.addi %9, %61 : vector<1x512xi32>
    %c0_i32_31 = arith.constant 0 : i32
    %63 = vector.broadcast %c0_i32_31 : i32 to vector<1x512xi32>
    %64 = arith.cmpi sge, %62, %63 : vector<1x512xi32>
    %65 = arith.andi %60, %64 : vector<1x512xi1>
    %c1_i32_32 = arith.constant 1 : i32
    %66 = vector.broadcast %c1_i32_32 : i32 to vector<1x512xi32>
    %67 = arith.addi %9, %66 : vector<1x512xi32>
    %c16_i32_33 = arith.constant 16 : i32
    %68 = vector.broadcast %c16_i32_33 : i32 to vector<1x512xi32>
    %69 = arith.cmpi slt, %67, %68 : vector<1x512xi32>
    %70 = arith.andi %65, %69 : vector<1x512xi1>
    %c0_i32_34 = arith.constant 0 : i32
    %71 = vector.broadcast %c0_i32_34 : i32 to vector<1x512xi32>
    %72 = arith.addi %13, %71 : vector<1x512xi32>
    %c0_i32_35 = arith.constant 0 : i32
    %73 = vector.broadcast %c0_i32_35 : i32 to vector<1x512xi32>
    %74 = arith.cmpi sge, %72, %73 : vector<1x512xi32>
    %c0_i32_36 = arith.constant 0 : i32
    %75 = vector.broadcast %c0_i32_36 : i32 to vector<1x512xi32>
    %76 = arith.addi %13, %75 : vector<1x512xi32>
    %c16_i32_37 = arith.constant 16 : i32
    %77 = vector.broadcast %c16_i32_37 : i32 to vector<1x512xi32>
    %78 = arith.cmpi slt, %76, %77 : vector<1x512xi32>
    %79 = arith.andi %74, %78 : vector<1x512xi1>
    %c-1_i32_38 = arith.constant -1 : i32
    %80 = vector.broadcast %c-1_i32_38 : i32 to vector<1x512xi32>
    %81 = arith.addi %9, %80 : vector<1x512xi32>
    %c0_i32_39 = arith.constant 0 : i32
    %82 = vector.broadcast %c0_i32_39 : i32 to vector<1x512xi32>
    %83 = arith.cmpi sge, %81, %82 : vector<1x512xi32>
    %84 = arith.andi %79, %83 : vector<1x512xi1>
    %c-1_i32_40 = arith.constant -1 : i32
    %85 = vector.broadcast %c-1_i32_40 : i32 to vector<1x512xi32>
    %86 = arith.addi %9, %85 : vector<1x512xi32>
    %c16_i32_41 = arith.constant 16 : i32
    %87 = vector.broadcast %c16_i32_41 : i32 to vector<1x512xi32>
    %88 = arith.cmpi slt, %86, %87 : vector<1x512xi32>
    %89 = arith.andi %84, %88 : vector<1x512xi1>
    %c0_i32_42 = arith.constant 0 : i32
    %90 = vector.broadcast %c0_i32_42 : i32 to vector<1x512xi32>
    %91 = arith.addi %13, %90 : vector<1x512xi32>
    %c0_i32_43 = arith.constant 0 : i32
    %92 = vector.broadcast %c0_i32_43 : i32 to vector<1x512xi32>
    %93 = arith.cmpi sge, %91, %92 : vector<1x512xi32>
    %c0_i32_44 = arith.constant 0 : i32
    %94 = vector.broadcast %c0_i32_44 : i32 to vector<1x512xi32>
    %95 = arith.addi %13, %94 : vector<1x512xi32>
    %c16_i32_45 = arith.constant 16 : i32
    %96 = vector.broadcast %c16_i32_45 : i32 to vector<1x512xi32>
    %97 = arith.cmpi slt, %95, %96 : vector<1x512xi32>
    %98 = arith.andi %93, %97 : vector<1x512xi1>
    %c1_i32_46 = arith.constant 1 : i32
    %99 = vector.broadcast %c1_i32_46 : i32 to vector<1x512xi32>
    %100 = arith.addi %9, %99 : vector<1x512xi32>
    %c0_i32_47 = arith.constant 0 : i32
    %101 = vector.broadcast %c0_i32_47 : i32 to vector<1x512xi32>
    %102 = arith.cmpi sge, %100, %101 : vector<1x512xi32>
    %103 = arith.andi %98, %102 : vector<1x512xi1>
    %c1_i32_48 = arith.constant 1 : i32
    %104 = vector.broadcast %c1_i32_48 : i32 to vector<1x512xi32>
    %105 = arith.addi %9, %104 : vector<1x512xi32>
    %c16_i32_49 = arith.constant 16 : i32
    %106 = vector.broadcast %c16_i32_49 : i32 to vector<1x512xi32>
    %107 = arith.cmpi slt, %105, %106 : vector<1x512xi32>
    %108 = arith.andi %103, %107 : vector<1x512xi1>
    %c1_i32_50 = arith.constant 1 : i32
    %109 = vector.broadcast %c1_i32_50 : i32 to vector<1x512xi32>
    %110 = arith.addi %13, %109 : vector<1x512xi32>
    %c0_i32_51 = arith.constant 0 : i32
    %111 = vector.broadcast %c0_i32_51 : i32 to vector<1x512xi32>
    %112 = arith.cmpi sge, %110, %111 : vector<1x512xi32>
    %c1_i32_52 = arith.constant 1 : i32
    %113 = vector.broadcast %c1_i32_52 : i32 to vector<1x512xi32>
    %114 = arith.addi %13, %113 : vector<1x512xi32>
    %c16_i32_53 = arith.constant 16 : i32
    %115 = vector.broadcast %c16_i32_53 : i32 to vector<1x512xi32>
    %116 = arith.cmpi slt, %114, %115 : vector<1x512xi32>
    %117 = arith.andi %112, %116 : vector<1x512xi1>
    %c-1_i32_54 = arith.constant -1 : i32
    %118 = vector.broadcast %c-1_i32_54 : i32 to vector<1x512xi32>
    %119 = arith.addi %9, %118 : vector<1x512xi32>
    %c0_i32_55 = arith.constant 0 : i32
    %120 = vector.broadcast %c0_i32_55 : i32 to vector<1x512xi32>
    %121 = arith.cmpi sge, %119, %120 : vector<1x512xi32>
    %122 = arith.andi %117, %121 : vector<1x512xi1>
    %c-1_i32_56 = arith.constant -1 : i32
    %123 = vector.broadcast %c-1_i32_56 : i32 to vector<1x512xi32>
    %124 = arith.addi %9, %123 : vector<1x512xi32>
    %c16_i32_57 = arith.constant 16 : i32
    %125 = vector.broadcast %c16_i32_57 : i32 to vector<1x512xi32>
    %126 = arith.cmpi slt, %124, %125 : vector<1x512xi32>
    %127 = arith.andi %122, %126 : vector<1x512xi1>
    %c1_i32_58 = arith.constant 1 : i32
    %128 = vector.broadcast %c1_i32_58 : i32 to vector<1x512xi32>
    %129 = arith.addi %13, %128 : vector<1x512xi32>
    %c0_i32_59 = arith.constant 0 : i32
    %130 = vector.broadcast %c0_i32_59 : i32 to vector<1x512xi32>
    %131 = arith.cmpi sge, %129, %130 : vector<1x512xi32>
    %c1_i32_60 = arith.constant 1 : i32
    %132 = vector.broadcast %c1_i32_60 : i32 to vector<1x512xi32>
    %133 = arith.addi %13, %132 : vector<1x512xi32>
    %c16_i32_61 = arith.constant 16 : i32
    %134 = vector.broadcast %c16_i32_61 : i32 to vector<1x512xi32>
    %135 = arith.cmpi slt, %133, %134 : vector<1x512xi32>
    %136 = arith.andi %131, %135 : vector<1x512xi1>
    %c0_i32_62 = arith.constant 0 : i32
    %137 = vector.broadcast %c0_i32_62 : i32 to vector<1x512xi32>
    %138 = arith.addi %9, %137 : vector<1x512xi32>
    %c0_i32_63 = arith.constant 0 : i32
    %139 = vector.broadcast %c0_i32_63 : i32 to vector<1x512xi32>
    %140 = arith.cmpi sge, %138, %139 : vector<1x512xi32>
    %141 = arith.andi %136, %140 : vector<1x512xi1>
    %c0_i32_64 = arith.constant 0 : i32
    %142 = vector.broadcast %c0_i32_64 : i32 to vector<1x512xi32>
    %143 = arith.addi %9, %142 : vector<1x512xi32>
    %c16_i32_65 = arith.constant 16 : i32
    %144 = vector.broadcast %c16_i32_65 : i32 to vector<1x512xi32>
    %145 = arith.cmpi slt, %143, %144 : vector<1x512xi32>
    %146 = arith.andi %141, %145 : vector<1x512xi1>
    %c1_i32_66 = arith.constant 1 : i32
    %147 = vector.broadcast %c1_i32_66 : i32 to vector<1x512xi32>
    %148 = arith.addi %13, %147 : vector<1x512xi32>
    %c0_i32_67 = arith.constant 0 : i32
    %149 = vector.broadcast %c0_i32_67 : i32 to vector<1x512xi32>
    %150 = arith.cmpi sge, %148, %149 : vector<1x512xi32>
    %c1_i32_68 = arith.constant 1 : i32
    %151 = vector.broadcast %c1_i32_68 : i32 to vector<1x512xi32>
    %152 = arith.addi %13, %151 : vector<1x512xi32>
    %c16_i32_69 = arith.constant 16 : i32
    %153 = vector.broadcast %c16_i32_69 : i32 to vector<1x512xi32>
    %154 = arith.cmpi slt, %152, %153 : vector<1x512xi32>
    %155 = arith.andi %150, %154 : vector<1x512xi1>
    %c1_i32_70 = arith.constant 1 : i32
    %156 = vector.broadcast %c1_i32_70 : i32 to vector<1x512xi32>
    %157 = arith.addi %9, %156 : vector<1x512xi32>
    %c0_i32_71 = arith.constant 0 : i32
    %158 = vector.broadcast %c0_i32_71 : i32 to vector<1x512xi32>
    %159 = arith.cmpi sge, %157, %158 : vector<1x512xi32>
    %160 = arith.andi %155, %159 : vector<1x512xi1>
    %c1_i32_72 = arith.constant 1 : i32
    %161 = vector.broadcast %c1_i32_72 : i32 to vector<1x512xi32>
    %162 = arith.addi %9, %161 : vector<1x512xi32>
    %c16_i32_73 = arith.constant 16 : i32
    %163 = vector.broadcast %c16_i32_73 : i32 to vector<1x512xi32>
    %164 = arith.cmpi slt, %162, %163 : vector<1x512xi32>
    %165 = arith.andi %160, %164 : vector<1x512xi1>
    %166 = tpu.iota {dimensions = array<i32: 1>} : vector<1x128xi32>
    %c7_i32 = arith.constant 7 : i32
    %167 = vector.broadcast %c7_i32 : i32 to vector<1x128xi32>
    %168 = arith.andi %166, %167 : vector<1x128xi32>
    %c3_i32 = arith.constant 3 : i32
    %169 = vector.broadcast %c3_i32 : i32 to vector<1x128xi32>
    %170 = arith.shrsi %166, %169 : vector<1x128xi32>
    %c7_i32_74 = arith.constant 7 : i32
    %171 = vector.broadcast %c7_i32_74 : i32 to vector<1x128xi32>
    %172 = arith.andi %170, %171 : vector<1x128xi32>
    %c-1_i32_75 = arith.constant -1 : i32
    %173 = vector.broadcast %c-1_i32_75 : i32 to vector<1x128xi32>
    %174 = arith.addi %172, %173 : vector<1x128xi32>
    %c0_i32_76 = arith.constant 0 : i32
    %175 = vector.broadcast %c0_i32_76 : i32 to vector<1x128xi32>
    %176 = arith.cmpi sge, %174, %175 : vector<1x128xi32>
    %c-1_i32_77 = arith.constant -1 : i32
    %177 = vector.broadcast %c-1_i32_77 : i32 to vector<1x128xi32>
    %178 = arith.addi %172, %177 : vector<1x128xi32>
    %c8_i32 = arith.constant 8 : i32
    %179 = vector.broadcast %c8_i32 : i32 to vector<1x128xi32>
    %180 = arith.cmpi slt, %178, %179 : vector<1x128xi32>
    %181 = arith.andi %176, %180 : vector<1x128xi1>
    %c-1_i32_78 = arith.constant -1 : i32
    %182 = vector.broadcast %c-1_i32_78 : i32 to vector<1x128xi32>
    %183 = arith.addi %168, %182 : vector<1x128xi32>
    %c0_i32_79 = arith.constant 0 : i32
    %184 = vector.broadcast %c0_i32_79 : i32 to vector<1x128xi32>
    %185 = arith.cmpi sge, %183, %184 : vector<1x128xi32>
    %186 = arith.andi %181, %185 : vector<1x128xi1>
    %c-1_i32_80 = arith.constant -1 : i32
    %187 = vector.broadcast %c-1_i32_80 : i32 to vector<1x128xi32>
    %188 = arith.addi %168, %187 : vector<1x128xi32>
    %c8_i32_81 = arith.constant 8 : i32
    %189 = vector.broadcast %c8_i32_81 : i32 to vector<1x128xi32>
    %190 = arith.cmpi slt, %188, %189 : vector<1x128xi32>
    %191 = arith.andi %186, %190 : vector<1x128xi1>
    %c-1_i32_82 = arith.constant -1 : i32
    %192 = vector.broadcast %c-1_i32_82 : i32 to vector<1x128xi32>
    %193 = arith.addi %172, %192 : vector<1x128xi32>
    %c0_i32_83 = arith.constant 0 : i32
    %194 = vector.broadcast %c0_i32_83 : i32 to vector<1x128xi32>
    %195 = arith.cmpi sge, %193, %194 : vector<1x128xi32>
    %c-1_i32_84 = arith.constant -1 : i32
    %196 = vector.broadcast %c-1_i32_84 : i32 to vector<1x128xi32>
    %197 = arith.addi %172, %196 : vector<1x128xi32>
    %c8_i32_85 = arith.constant 8 : i32
    %198 = vector.broadcast %c8_i32_85 : i32 to vector<1x128xi32>
    %199 = arith.cmpi slt, %197, %198 : vector<1x128xi32>
    %200 = arith.andi %195, %199 : vector<1x128xi1>
    %c0_i32_86 = arith.constant 0 : i32
    %201 = vector.broadcast %c0_i32_86 : i32 to vector<1x128xi32>
    %202 = arith.addi %168, %201 : vector<1x128xi32>
    %c0_i32_87 = arith.constant 0 : i32
    %203 = vector.broadcast %c0_i32_87 : i32 to vector<1x128xi32>
    %204 = arith.cmpi sge, %202, %203 : vector<1x128xi32>
    %205 = arith.andi %200, %204 : vector<1x128xi1>
    %c0_i32_88 = arith.constant 0 : i32
    %206 = vector.broadcast %c0_i32_88 : i32 to vector<1x128xi32>
    %207 = arith.addi %168, %206 : vector<1x128xi32>
    %c8_i32_89 = arith.constant 8 : i32
    %208 = vector.broadcast %c8_i32_89 : i32 to vector<1x128xi32>
    %209 = arith.cmpi slt, %207, %208 : vector<1x128xi32>
    %210 = arith.andi %205, %209 : vector<1x128xi1>
    %c-1_i32_90 = arith.constant -1 : i32
    %211 = vector.broadcast %c-1_i32_90 : i32 to vector<1x128xi32>
    %212 = arith.addi %172, %211 : vector<1x128xi32>
    %c0_i32_91 = arith.constant 0 : i32
    %213 = vector.broadcast %c0_i32_91 : i32 to vector<1x128xi32>
    %214 = arith.cmpi sge, %212, %213 : vector<1x128xi32>
    %c-1_i32_92 = arith.constant -1 : i32
    %215 = vector.broadcast %c-1_i32_92 : i32 to vector<1x128xi32>
    %216 = arith.addi %172, %215 : vector<1x128xi32>
    %c8_i32_93 = arith.constant 8 : i32
    %217 = vector.broadcast %c8_i32_93 : i32 to vector<1x128xi32>
    %218 = arith.cmpi slt, %216, %217 : vector<1x128xi32>
    %219 = arith.andi %214, %218 : vector<1x128xi1>
    %c1_i32_94 = arith.constant 1 : i32
    %220 = vector.broadcast %c1_i32_94 : i32 to vector<1x128xi32>
    %221 = arith.addi %168, %220 : vector<1x128xi32>
    %c0_i32_95 = arith.constant 0 : i32
    %222 = vector.broadcast %c0_i32_95 : i32 to vector<1x128xi32>
    %223 = arith.cmpi sge, %221, %222 : vector<1x128xi32>
    %224 = arith.andi %219, %223 : vector<1x128xi1>
    %c1_i32_96 = arith.constant 1 : i32
    %225 = vector.broadcast %c1_i32_96 : i32 to vector<1x128xi32>
    %226 = arith.addi %168, %225 : vector<1x128xi32>
    %c8_i32_97 = arith.constant 8 : i32
    %227 = vector.broadcast %c8_i32_97 : i32 to vector<1x128xi32>
    %228 = arith.cmpi slt, %226, %227 : vector<1x128xi32>
    %229 = arith.andi %224, %228 : vector<1x128xi1>
    %c0_i32_98 = arith.constant 0 : i32
    %230 = vector.broadcast %c0_i32_98 : i32 to vector<1x128xi32>
    %231 = arith.addi %172, %230 : vector<1x128xi32>
    %c0_i32_99 = arith.constant 0 : i32
    %232 = vector.broadcast %c0_i32_99 : i32 to vector<1x128xi32>
    %233 = arith.cmpi sge, %231, %232 : vector<1x128xi32>
    %c0_i32_100 = arith.constant 0 : i32
    %234 = vector.broadcast %c0_i32_100 : i32 to vector<1x128xi32>
    %235 = arith.addi %172, %234 : vector<1x128xi32>
    %c8_i32_101 = arith.constant 8 : i32
    %236 = vector.broadcast %c8_i32_101 : i32 to vector<1x128xi32>
    %237 = arith.cmpi slt, %235, %236 : vector<1x128xi32>
    %238 = arith.andi %233, %237 : vector<1x128xi1>
    %c-1_i32_102 = arith.constant -1 : i32
    %239 = vector.broadcast %c-1_i32_102 : i32 to vector<1x128xi32>
    %240 = arith.addi %168, %239 : vector<1x128xi32>
    %c0_i32_103 = arith.constant 0 : i32
    %241 = vector.broadcast %c0_i32_103 : i32 to vector<1x128xi32>
    %242 = arith.cmpi sge, %240, %241 : vector<1x128xi32>
    %243 = arith.andi %238, %242 : vector<1x128xi1>
    %c-1_i32_104 = arith.constant -1 : i32
    %244 = vector.broadcast %c-1_i32_104 : i32 to vector<1x128xi32>
    %245 = arith.addi %168, %244 : vector<1x128xi32>
    %c8_i32_105 = arith.constant 8 : i32
    %246 = vector.broadcast %c8_i32_105 : i32 to vector<1x128xi32>
    %247 = arith.cmpi slt, %245, %246 : vector<1x128xi32>
    %248 = arith.andi %243, %247 : vector<1x128xi1>
    %c0_i32_106 = arith.constant 0 : i32
    %249 = vector.broadcast %c0_i32_106 : i32 to vector<1x128xi32>
    %250 = arith.addi %172, %249 : vector<1x128xi32>
    %c0_i32_107 = arith.constant 0 : i32
    %251 = vector.broadcast %c0_i32_107 : i32 to vector<1x128xi32>
    %252 = arith.cmpi sge, %250, %251 : vector<1x128xi32>
    %c0_i32_108 = arith.constant 0 : i32
    %253 = vector.broadcast %c0_i32_108 : i32 to vector<1x128xi32>
    %254 = arith.addi %172, %253 : vector<1x128xi32>
    %c8_i32_109 = arith.constant 8 : i32
    %255 = vector.broadcast %c8_i32_109 : i32 to vector<1x128xi32>
    %256 = arith.cmpi slt, %254, %255 : vector<1x128xi32>
    %257 = arith.andi %252, %256 : vector<1x128xi1>
    %c1_i32_110 = arith.constant 1 : i32
    %258 = vector.broadcast %c1_i32_110 : i32 to vector<1x128xi32>
    %259 = arith.addi %168, %258 : vector<1x128xi32>
    %c0_i32_111 = arith.constant 0 : i32
    %260 = vector.broadcast %c0_i32_111 : i32 to vector<1x128xi32>
    %261 = arith.cmpi sge, %259, %260 : vector<1x128xi32>
    %262 = arith.andi %257, %261 : vector<1x128xi1>
    %c1_i32_112 = arith.constant 1 : i32
    %263 = vector.broadcast %c1_i32_112 : i32 to vector<1x128xi32>
    %264 = arith.addi %168, %263 : vector<1x128xi32>
    %c8_i32_113 = arith.constant 8 : i32
    %265 = vector.broadcast %c8_i32_113 : i32 to vector<1x128xi32>
    %266 = arith.cmpi slt, %264, %265 : vector<1x128xi32>
    %267 = arith.andi %262, %266 : vector<1x128xi1>
    %c1_i32_114 = arith.constant 1 : i32
    %268 = vector.broadcast %c1_i32_114 : i32 to vector<1x128xi32>
    %269 = arith.addi %172, %268 : vector<1x128xi32>
    %c0_i32_115 = arith.constant 0 : i32
    %270 = vector.broadcast %c0_i32_115 : i32 to vector<1x128xi32>
    %271 = arith.cmpi sge, %269, %270 : vector<1x128xi32>
    %c1_i32_116 = arith.constant 1 : i32
    %272 = vector.broadcast %c1_i32_116 : i32 to vector<1x128xi32>
    %273 = arith.addi %172, %272 : vector<1x128xi32>
    %c8_i32_117 = arith.constant 8 : i32
    %274 = vector.broadcast %c8_i32_117 : i32 to vector<1x128xi32>
    %275 = arith.cmpi slt, %273, %274 : vector<1x128xi32>
    %276 = arith.andi %271, %275 : vector<1x128xi1>
    %c-1_i32_118 = arith.constant -1 : i32
    %277 = vector.broadcast %c-1_i32_118 : i32 to vector<1x128xi32>
    %278 = arith.addi %168, %277 : vector<1x128xi32>
    %c0_i32_119 = arith.constant 0 : i32
    %279 = vector.broadcast %c0_i32_119 : i32 to vector<1x128xi32>
    %280 = arith.cmpi sge, %278, %279 : vector<1x128xi32>
    %281 = arith.andi %276, %280 : vector<1x128xi1>
    %c-1_i32_120 = arith.constant -1 : i32
    %282 = vector.broadcast %c-1_i32_120 : i32 to vector<1x128xi32>
    %283 = arith.addi %168, %282 : vector<1x128xi32>
    %c8_i32_121 = arith.constant 8 : i32
    %284 = vector.broadcast %c8_i32_121 : i32 to vector<1x128xi32>
    %285 = arith.cmpi slt, %283, %284 : vector<1x128xi32>
    %286 = arith.andi %281, %285 : vector<1x128xi1>
    %c1_i32_122 = arith.constant 1 : i32
    %287 = vector.broadcast %c1_i32_122 : i32 to vector<1x128xi32>
    %288 = arith.addi %172, %287 : vector<1x128xi32>
    %c0_i32_123 = arith.constant 0 : i32
    %289 = vector.broadcast %c0_i32_123 : i32 to vector<1x128xi32>
    %290 = arith.cmpi sge, %288, %289 : vector<1x128xi32>
    %c1_i32_124 = arith.constant 1 : i32
    %291 = vector.broadcast %c1_i32_124 : i32 to vector<1x128xi32>
    %292 = arith.addi %172, %291 : vector<1x128xi32>
    %c8_i32_125 = arith.constant 8 : i32
    %293 = vector.broadcast %c8_i32_125 : i32 to vector<1x128xi32>
    %294 = arith.cmpi slt, %292, %293 : vector<1x128xi32>
    %295 = arith.andi %290, %294 : vector<1x128xi1>
    %c0_i32_126 = arith.constant 0 : i32
    %296 = vector.broadcast %c0_i32_126 : i32 to vector<1x128xi32>
    %297 = arith.addi %168, %296 : vector<1x128xi32>
    %c0_i32_127 = arith.constant 0 : i32
    %298 = vector.broadcast %c0_i32_127 : i32 to vector<1x128xi32>
    %299 = arith.cmpi sge, %297, %298 : vector<1x128xi32>
    %300 = arith.andi %295, %299 : vector<1x128xi1>
    %c0_i32_128 = arith.constant 0 : i32
    %301 = vector.broadcast %c0_i32_128 : i32 to vector<1x128xi32>
    %302 = arith.addi %168, %301 : vector<1x128xi32>
    %c8_i32_129 = arith.constant 8 : i32
    %303 = vector.broadcast %c8_i32_129 : i32 to vector<1x128xi32>
    %304 = arith.cmpi slt, %302, %303 : vector<1x128xi32>
    %305 = arith.andi %300, %304 : vector<1x128xi1>
    %c1_i32_130 = arith.constant 1 : i32
    %306 = vector.broadcast %c1_i32_130 : i32 to vector<1x128xi32>
    %307 = arith.addi %172, %306 : vector<1x128xi32>
    %c0_i32_131 = arith.constant 0 : i32
    %308 = vector.broadcast %c0_i32_131 : i32 to vector<1x128xi32>
    %309 = arith.cmpi sge, %307, %308 : vector<1x128xi32>
    %c1_i32_132 = arith.constant 1 : i32
    %310 = vector.broadcast %c1_i32_132 : i32 to vector<1x128xi32>
    %311 = arith.addi %172, %310 : vector<1x128xi32>
    %c8_i32_133 = arith.constant 8 : i32
    %312 = vector.broadcast %c8_i32_133 : i32 to vector<1x128xi32>
    %313 = arith.cmpi slt, %311, %312 : vector<1x128xi32>
    %314 = arith.andi %309, %313 : vector<1x128xi1>
    %c1_i32_134 = arith.constant 1 : i32
    %315 = vector.broadcast %c1_i32_134 : i32 to vector<1x128xi32>
    %316 = arith.addi %168, %315 : vector<1x128xi32>
    %c0_i32_135 = arith.constant 0 : i32
    %317 = vector.broadcast %c0_i32_135 : i32 to vector<1x128xi32>
    %318 = arith.cmpi sge, %316, %317 : vector<1x128xi32>
    %319 = arith.andi %314, %318 : vector<1x128xi1>
    %c1_i32_136 = arith.constant 1 : i32
    %320 = vector.broadcast %c1_i32_136 : i32 to vector<1x128xi32>
    %321 = arith.addi %168, %320 : vector<1x128xi32>
    %c8_i32_137 = arith.constant 8 : i32
    %322 = vector.broadcast %c8_i32_137 : i32 to vector<1x128xi32>
    %323 = arith.cmpi slt, %321, %322 : vector<1x128xi32>
    %324 = arith.andi %319, %323 : vector<1x128xi1>
    %325 = tpu.iota {dimensions = array<i32: 1>} : vector<1x32xi32>
    %c3_i32_138 = arith.constant 3 : i32
    %326 = vector.broadcast %c3_i32_138 : i32 to vector<1x32xi32>
    %327 = arith.andi %325, %326 : vector<1x32xi32>
    %c2_i32 = arith.constant 2 : i32
    %328 = vector.broadcast %c2_i32 : i32 to vector<1x32xi32>
    %329 = arith.shrsi %325, %328 : vector<1x32xi32>
    %c3_i32_139 = arith.constant 3 : i32
    %330 = vector.broadcast %c3_i32_139 : i32 to vector<1x32xi32>
    %331 = arith.andi %329, %330 : vector<1x32xi32>
    %c-1_i32_140 = arith.constant -1 : i32
    %332 = vector.broadcast %c-1_i32_140 : i32 to vector<1x32xi32>
    %333 = arith.addi %331, %332 : vector<1x32xi32>
    %c0_i32_141 = arith.constant 0 : i32
    %334 = vector.broadcast %c0_i32_141 : i32 to vector<1x32xi32>
    %335 = arith.cmpi sge, %333, %334 : vector<1x32xi32>
    %c-1_i32_142 = arith.constant -1 : i32
    %336 = vector.broadcast %c-1_i32_142 : i32 to vector<1x32xi32>
    %337 = arith.addi %331, %336 : vector<1x32xi32>
    %c4_i32_143 = arith.constant 4 : i32
    %338 = vector.broadcast %c4_i32_143 : i32 to vector<1x32xi32>
    %339 = arith.cmpi slt, %337, %338 : vector<1x32xi32>
    %340 = arith.andi %335, %339 : vector<1x32xi1>
    %c-1_i32_144 = arith.constant -1 : i32
    %341 = vector.broadcast %c-1_i32_144 : i32 to vector<1x32xi32>
    %342 = arith.addi %327, %341 : vector<1x32xi32>
    %c0_i32_145 = arith.constant 0 : i32
    %343 = vector.broadcast %c0_i32_145 : i32 to vector<1x32xi32>
    %344 = arith.cmpi sge, %342, %343 : vector<1x32xi32>
    %345 = arith.andi %340, %344 : vector<1x32xi1>
    %c-1_i32_146 = arith.constant -1 : i32
    %346 = vector.broadcast %c-1_i32_146 : i32 to vector<1x32xi32>
    %347 = arith.addi %327, %346 : vector<1x32xi32>
    %c4_i32_147 = arith.constant 4 : i32
    %348 = vector.broadcast %c4_i32_147 : i32 to vector<1x32xi32>
    %349 = arith.cmpi slt, %347, %348 : vector<1x32xi32>
    %350 = arith.andi %345, %349 : vector<1x32xi1>
    %c-1_i32_148 = arith.constant -1 : i32
    %351 = vector.broadcast %c-1_i32_148 : i32 to vector<1x32xi32>
    %352 = arith.addi %331, %351 : vector<1x32xi32>
    %c0_i32_149 = arith.constant 0 : i32
    %353 = vector.broadcast %c0_i32_149 : i32 to vector<1x32xi32>
    %354 = arith.cmpi sge, %352, %353 : vector<1x32xi32>
    %c-1_i32_150 = arith.constant -1 : i32
    %355 = vector.broadcast %c-1_i32_150 : i32 to vector<1x32xi32>
    %356 = arith.addi %331, %355 : vector<1x32xi32>
    %c4_i32_151 = arith.constant 4 : i32
    %357 = vector.broadcast %c4_i32_151 : i32 to vector<1x32xi32>
    %358 = arith.cmpi slt, %356, %357 : vector<1x32xi32>
    %359 = arith.andi %354, %358 : vector<1x32xi1>
    %c0_i32_152 = arith.constant 0 : i32
    %360 = vector.broadcast %c0_i32_152 : i32 to vector<1x32xi32>
    %361 = arith.addi %327, %360 : vector<1x32xi32>
    %c0_i32_153 = arith.constant 0 : i32
    %362 = vector.broadcast %c0_i32_153 : i32 to vector<1x32xi32>
    %363 = arith.cmpi sge, %361, %362 : vector<1x32xi32>
    %364 = arith.andi %359, %363 : vector<1x32xi1>
    %c0_i32_154 = arith.constant 0 : i32
    %365 = vector.broadcast %c0_i32_154 : i32 to vector<1x32xi32>
    %366 = arith.addi %327, %365 : vector<1x32xi32>
    %c4_i32_155 = arith.constant 4 : i32
    %367 = vector.broadcast %c4_i32_155 : i32 to vector<1x32xi32>
    %368 = arith.cmpi slt, %366, %367 : vector<1x32xi32>
    %369 = arith.andi %364, %368 : vector<1x32xi1>
    %c-1_i32_156 = arith.constant -1 : i32
    %370 = vector.broadcast %c-1_i32_156 : i32 to vector<1x32xi32>
    %371 = arith.addi %331, %370 : vector<1x32xi32>
    %c0_i32_157 = arith.constant 0 : i32
    %372 = vector.broadcast %c0_i32_157 : i32 to vector<1x32xi32>
    %373 = arith.cmpi sge, %371, %372 : vector<1x32xi32>
    %c-1_i32_158 = arith.constant -1 : i32
    %374 = vector.broadcast %c-1_i32_158 : i32 to vector<1x32xi32>
    %375 = arith.addi %331, %374 : vector<1x32xi32>
    %c4_i32_159 = arith.constant 4 : i32
    %376 = vector.broadcast %c4_i32_159 : i32 to vector<1x32xi32>
    %377 = arith.cmpi slt, %375, %376 : vector<1x32xi32>
    %378 = arith.andi %373, %377 : vector<1x32xi1>
    %c1_i32_160 = arith.constant 1 : i32
    %379 = vector.broadcast %c1_i32_160 : i32 to vector<1x32xi32>
    %380 = arith.addi %327, %379 : vector<1x32xi32>
    %c0_i32_161 = arith.constant 0 : i32
    %381 = vector.broadcast %c0_i32_161 : i32 to vector<1x32xi32>
    %382 = arith.cmpi sge, %380, %381 : vector<1x32xi32>
    %383 = arith.andi %378, %382 : vector<1x32xi1>
    %c1_i32_162 = arith.constant 1 : i32
    %384 = vector.broadcast %c1_i32_162 : i32 to vector<1x32xi32>
    %385 = arith.addi %327, %384 : vector<1x32xi32>
    %c4_i32_163 = arith.constant 4 : i32
    %386 = vector.broadcast %c4_i32_163 : i32 to vector<1x32xi32>
    %387 = arith.cmpi slt, %385, %386 : vector<1x32xi32>
    %388 = arith.andi %383, %387 : vector<1x32xi1>
    %c0_i32_164 = arith.constant 0 : i32
    %389 = vector.broadcast %c0_i32_164 : i32 to vector<1x32xi32>
    %390 = arith.addi %331, %389 : vector<1x32xi32>
    %c0_i32_165 = arith.constant 0 : i32
    %391 = vector.broadcast %c0_i32_165 : i32 to vector<1x32xi32>
    %392 = arith.cmpi sge, %390, %391 : vector<1x32xi32>
    %c0_i32_166 = arith.constant 0 : i32
    %393 = vector.broadcast %c0_i32_166 : i32 to vector<1x32xi32>
    %394 = arith.addi %331, %393 : vector<1x32xi32>
    %c4_i32_167 = arith.constant 4 : i32
    %395 = vector.broadcast %c4_i32_167 : i32 to vector<1x32xi32>
    %396 = arith.cmpi slt, %394, %395 : vector<1x32xi32>
    %397 = arith.andi %392, %396 : vector<1x32xi1>
    %c-1_i32_168 = arith.constant -1 : i32
    %398 = vector.broadcast %c-1_i32_168 : i32 to vector<1x32xi32>
    %399 = arith.addi %327, %398 : vector<1x32xi32>
    %c0_i32_169 = arith.constant 0 : i32
    %400 = vector.broadcast %c0_i32_169 : i32 to vector<1x32xi32>
    %401 = arith.cmpi sge, %399, %400 : vector<1x32xi32>
    %402 = arith.andi %397, %401 : vector<1x32xi1>
    %c-1_i32_170 = arith.constant -1 : i32
    %403 = vector.broadcast %c-1_i32_170 : i32 to vector<1x32xi32>
    %404 = arith.addi %327, %403 : vector<1x32xi32>
    %c4_i32_171 = arith.constant 4 : i32
    %405 = vector.broadcast %c4_i32_171 : i32 to vector<1x32xi32>
    %406 = arith.cmpi slt, %404, %405 : vector<1x32xi32>
    %407 = arith.andi %402, %406 : vector<1x32xi1>
    %c0_i32_172 = arith.constant 0 : i32
    %408 = vector.broadcast %c0_i32_172 : i32 to vector<1x32xi32>
    %409 = arith.addi %331, %408 : vector<1x32xi32>
    %c0_i32_173 = arith.constant 0 : i32
    %410 = vector.broadcast %c0_i32_173 : i32 to vector<1x32xi32>
    %411 = arith.cmpi sge, %409, %410 : vector<1x32xi32>
    %c0_i32_174 = arith.constant 0 : i32
    %412 = vector.broadcast %c0_i32_174 : i32 to vector<1x32xi32>
    %413 = arith.addi %331, %412 : vector<1x32xi32>
    %c4_i32_175 = arith.constant 4 : i32
    %414 = vector.broadcast %c4_i32_175 : i32 to vector<1x32xi32>
    %415 = arith.cmpi slt, %413, %414 : vector<1x32xi32>
    %416 = arith.andi %411, %415 : vector<1x32xi1>
    %c1_i32_176 = arith.constant 1 : i32
    %417 = vector.broadcast %c1_i32_176 : i32 to vector<1x32xi32>
    %418 = arith.addi %327, %417 : vector<1x32xi32>
    %c0_i32_177 = arith.constant 0 : i32
    %419 = vector.broadcast %c0_i32_177 : i32 to vector<1x32xi32>
    %420 = arith.cmpi sge, %418, %419 : vector<1x32xi32>
    %421 = arith.andi %416, %420 : vector<1x32xi1>
    %c1_i32_178 = arith.constant 1 : i32
    %422 = vector.broadcast %c1_i32_178 : i32 to vector<1x32xi32>
    %423 = arith.addi %327, %422 : vector<1x32xi32>
    %c4_i32_179 = arith.constant 4 : i32
    %424 = vector.broadcast %c4_i32_179 : i32 to vector<1x32xi32>
    %425 = arith.cmpi slt, %423, %424 : vector<1x32xi32>
    %426 = arith.andi %421, %425 : vector<1x32xi1>
    %c1_i32_180 = arith.constant 1 : i32
    %427 = vector.broadcast %c1_i32_180 : i32 to vector<1x32xi32>
    %428 = arith.addi %331, %427 : vector<1x32xi32>
    %c0_i32_181 = arith.constant 0 : i32
    %429 = vector.broadcast %c0_i32_181 : i32 to vector<1x32xi32>
    %430 = arith.cmpi sge, %428, %429 : vector<1x32xi32>
    %c1_i32_182 = arith.constant 1 : i32
    %431 = vector.broadcast %c1_i32_182 : i32 to vector<1x32xi32>
    %432 = arith.addi %331, %431 : vector<1x32xi32>
    %c4_i32_183 = arith.constant 4 : i32
    %433 = vector.broadcast %c4_i32_183 : i32 to vector<1x32xi32>
    %434 = arith.cmpi slt, %432, %433 : vector<1x32xi32>
    %435 = arith.andi %430, %434 : vector<1x32xi1>
    %c-1_i32_184 = arith.constant -1 : i32
    %436 = vector.broadcast %c-1_i32_184 : i32 to vector<1x32xi32>
    %437 = arith.addi %327, %436 : vector<1x32xi32>
    %c0_i32_185 = arith.constant 0 : i32
    %438 = vector.broadcast %c0_i32_185 : i32 to vector<1x32xi32>
    %439 = arith.cmpi sge, %437, %438 : vector<1x32xi32>
    %440 = arith.andi %435, %439 : vector<1x32xi1>
    %c-1_i32_186 = arith.constant -1 : i32
    %441 = vector.broadcast %c-1_i32_186 : i32 to vector<1x32xi32>
    %442 = arith.addi %327, %441 : vector<1x32xi32>
    %c4_i32_187 = arith.constant 4 : i32
    %443 = vector.broadcast %c4_i32_187 : i32 to vector<1x32xi32>
    %444 = arith.cmpi slt, %442, %443 : vector<1x32xi32>
    %445 = arith.andi %440, %444 : vector<1x32xi1>
    %c1_i32_188 = arith.constant 1 : i32
    %446 = vector.broadcast %c1_i32_188 : i32 to vector<1x32xi32>
    %447 = arith.addi %331, %446 : vector<1x32xi32>
    %c0_i32_189 = arith.constant 0 : i32
    %448 = vector.broadcast %c0_i32_189 : i32 to vector<1x32xi32>
    %449 = arith.cmpi sge, %447, %448 : vector<1x32xi32>
    %c1_i32_190 = arith.constant 1 : i32
    %450 = vector.broadcast %c1_i32_190 : i32 to vector<1x32xi32>
    %451 = arith.addi %331, %450 : vector<1x32xi32>
    %c4_i32_191 = arith.constant 4 : i32
    %452 = vector.broadcast %c4_i32_191 : i32 to vector<1x32xi32>
    %453 = arith.cmpi slt, %451, %452 : vector<1x32xi32>
    %454 = arith.andi %449, %453 : vector<1x32xi1>
    %c0_i32_192 = arith.constant 0 : i32
    %455 = vector.broadcast %c0_i32_192 : i32 to vector<1x32xi32>
    %456 = arith.addi %327, %455 : vector<1x32xi32>
    %c0_i32_193 = arith.constant 0 : i32
    %457 = vector.broadcast %c0_i32_193 : i32 to vector<1x32xi32>
    %458 = arith.cmpi sge, %456, %457 : vector<1x32xi32>
    %459 = arith.andi %454, %458 : vector<1x32xi1>
    %c0_i32_194 = arith.constant 0 : i32
    %460 = vector.broadcast %c0_i32_194 : i32 to vector<1x32xi32>
    %461 = arith.addi %327, %460 : vector<1x32xi32>
    %c4_i32_195 = arith.constant 4 : i32
    %462 = vector.broadcast %c4_i32_195 : i32 to vector<1x32xi32>
    %463 = arith.cmpi slt, %461, %462 : vector<1x32xi32>
    %464 = arith.andi %459, %463 : vector<1x32xi1>
    %c1_i32_196 = arith.constant 1 : i32
    %465 = vector.broadcast %c1_i32_196 : i32 to vector<1x32xi32>
    %466 = arith.addi %331, %465 : vector<1x32xi32>
    %c0_i32_197 = arith.constant 0 : i32
    %467 = vector.broadcast %c0_i32_197 : i32 to vector<1x32xi32>
    %468 = arith.cmpi sge, %466, %467 : vector<1x32xi32>
    %c1_i32_198 = arith.constant 1 : i32
    %469 = vector.broadcast %c1_i32_198 : i32 to vector<1x32xi32>
    %470 = arith.addi %331, %469 : vector<1x32xi32>
    %c4_i32_199 = arith.constant 4 : i32
    %471 = vector.broadcast %c4_i32_199 : i32 to vector<1x32xi32>
    %472 = arith.cmpi slt, %470, %471 : vector<1x32xi32>
    %473 = arith.andi %468, %472 : vector<1x32xi1>
    %c1_i32_200 = arith.constant 1 : i32
    %474 = vector.broadcast %c1_i32_200 : i32 to vector<1x32xi32>
    %475 = arith.addi %327, %474 : vector<1x32xi32>
    %c0_i32_201 = arith.constant 0 : i32
    %476 = vector.broadcast %c0_i32_201 : i32 to vector<1x32xi32>
    %477 = arith.cmpi sge, %475, %476 : vector<1x32xi32>
    %478 = arith.andi %473, %477 : vector<1x32xi1>
    %c1_i32_202 = arith.constant 1 : i32
    %479 = vector.broadcast %c1_i32_202 : i32 to vector<1x32xi32>
    %480 = arith.addi %327, %479 : vector<1x32xi32>
    %c4_i32_203 = arith.constant 4 : i32
    %481 = vector.broadcast %c4_i32_203 : i32 to vector<1x32xi32>
    %482 = arith.cmpi slt, %480, %481 : vector<1x32xi32>
    %483 = arith.andi %478, %482 : vector<1x32xi1>
    %484 = vector.extract_strided_slice %1 {offsets = [0, 0], sizes = [8, 36], strides = [1, 1]} : vector<160x288xf32> to vector<8x36xf32>
    %485 = vector.extract_strided_slice %2 {offsets = [0, 0], sizes = [8, 1], strides = [1, 1]} : vector<32x21xf32> to vector<8x1xf32>
    %486 = vector.extract_strided_slice %2 {offsets = [0, 1], sizes = [8, 1], strides = [1, 1]} : vector<32x21xf32> to vector<8x1xf32>
    %cst = arith.constant 0.000000e+00 : f32
    %487 = vector.broadcast %cst : f32 to vector<4x17xf32>
    %488 = vector.extract_strided_slice %0 {offsets = [0, 0], sizes = [4, 495], strides = [1, 1]} : vector<4x512xf32> to vector<4x495xf32>
    %489 = tpu.concatenate %487, %488 in 1 : vector<4x17xf32>, vector<4x495xf32> -> vector<4x512xf32>
    %cst_204 = arith.constant 0.000000e+00 : f32
    %490 = vector.shape_cast %32 : vector<1x512xi1> to vector<1x512xi1>
    %491 = vector.broadcast %490 : vector<1x512xi1> to vector<4x512xi1>
    %492 = vector.broadcast %cst_204 : f32 to vector<4x512xf32>
    %493 = arith.select %491, %489, %492 : vector<4x512xi1>, vector<4x512xf32>
    %cst_205 = arith.constant 0.000000e+00 : f32
    %494 = vector.broadcast %cst_205 : f32 to vector<4x16xf32>
    %495 = vector.extract_strided_slice %0 {offsets = [0, 0], sizes = [4, 496], strides = [1, 1]} : vector<4x512xf32> to vector<4x496xf32>
    %496 = tpu.concatenate %494, %495 in 1 : vector<4x16xf32>, vector<4x496xf32> -> vector<4x512xf32>
    %cst_206 = arith.constant 0.000000e+00 : f32
    %497 = vector.shape_cast %51 : vector<1x512xi1> to vector<1x512xi1>
    %498 = vector.broadcast %497 : vector<1x512xi1> to vector<4x512xi1>
    %499 = vector.broadcast %cst_206 : f32 to vector<4x512xf32>
    %500 = arith.select %498, %496, %499 : vector<4x512xi1>, vector<4x512xf32>
    %cst_207 = arith.constant 0.000000e+00 : f32
    %501 = vector.broadcast %cst_207 : f32 to vector<4x15xf32>
    %502 = vector.extract_strided_slice %0 {offsets = [0, 0], sizes = [4, 497], strides = [1, 1]} : vector<4x512xf32> to vector<4x497xf32>
    %503 = tpu.concatenate %501, %502 in 1 : vector<4x15xf32>, vector<4x497xf32> -> vector<4x512xf32>
    %cst_208 = arith.constant 0.000000e+00 : f32
    %504 = vector.shape_cast %70 : vector<1x512xi1> to vector<1x512xi1>
    %505 = vector.broadcast %504 : vector<1x512xi1> to vector<4x512xi1>
    %506 = vector.broadcast %cst_208 : f32 to vector<4x512xf32>
    %507 = arith.select %505, %503, %506 : vector<4x512xi1>, vector<4x512xf32>
    %cst_209 = arith.constant 0.000000e+00 : f32
    %508 = vector.broadcast %cst_209 : f32 to vector<4x1xf32>
    %509 = vector.extract_strided_slice %0 {offsets = [0, 0], sizes = [4, 511], strides = [1, 1]} : vector<4x512xf32> to vector<4x511xf32>
    %510 = tpu.concatenate %508, %509 in 1 : vector<4x1xf32>, vector<4x511xf32> -> vector<4x512xf32>
    %cst_210 = arith.constant 0.000000e+00 : f32
    %511 = vector.shape_cast %89 : vector<1x512xi1> to vector<1x512xi1>
    %512 = vector.broadcast %511 : vector<1x512xi1> to vector<4x512xi1>
    %513 = vector.broadcast %cst_210 : f32 to vector<4x512xf32>
    %514 = arith.select %512, %510, %513 : vector<4x512xi1>, vector<4x512xf32>
    %515 = vector.extract_strided_slice %0 {offsets = [0, 1], sizes = [4, 511], strides = [1, 1]} : vector<4x512xf32> to vector<4x511xf32>
    %cst_211 = arith.constant 0.000000e+00 : f32
    %516 = vector.broadcast %cst_211 : f32 to vector<4x1xf32>
    %517 = tpu.concatenate %515, %516 in 1 : vector<4x511xf32>, vector<4x1xf32> -> vector<4x512xf32>
    %cst_212 = arith.constant 0.000000e+00 : f32
    %518 = vector.shape_cast %108 : vector<1x512xi1> to vector<1x512xi1>
    %519 = vector.broadcast %518 : vector<1x512xi1> to vector<4x512xi1>
    %520 = vector.broadcast %cst_212 : f32 to vector<4x512xf32>
    %521 = arith.select %519, %517, %520 : vector<4x512xi1>, vector<4x512xf32>
    %522 = vector.extract_strided_slice %0 {offsets = [0, 15], sizes = [4, 497], strides = [1, 1]} : vector<4x512xf32> to vector<4x497xf32>
    %cst_213 = arith.constant 0.000000e+00 : f32
    %523 = vector.broadcast %cst_213 : f32 to vector<4x15xf32>
    %524 = tpu.concatenate %522, %523 in 1 : vector<4x497xf32>, vector<4x15xf32> -> vector<4x512xf32>
    %cst_214 = arith.constant 0.000000e+00 : f32
    %525 = vector.shape_cast %127 : vector<1x512xi1> to vector<1x512xi1>
    %526 = vector.broadcast %525 : vector<1x512xi1> to vector<4x512xi1>
    %527 = vector.broadcast %cst_214 : f32 to vector<4x512xf32>
    %528 = arith.select %526, %524, %527 : vector<4x512xi1>, vector<4x512xf32>
    %529 = vector.extract_strided_slice %0 {offsets = [0, 16], sizes = [4, 496], strides = [1, 1]} : vector<4x512xf32> to vector<4x496xf32>
    %cst_215 = arith.constant 0.000000e+00 : f32
    %530 = vector.broadcast %cst_215 : f32 to vector<4x16xf32>
    %531 = tpu.concatenate %529, %530 in 1 : vector<4x496xf32>, vector<4x16xf32> -> vector<4x512xf32>
    %cst_216 = arith.constant 0.000000e+00 : f32
    %532 = vector.shape_cast %146 : vector<1x512xi1> to vector<1x512xi1>
    %533 = vector.broadcast %532 : vector<1x512xi1> to vector<4x512xi1>
    %534 = vector.broadcast %cst_216 : f32 to vector<4x512xf32>
    %535 = arith.select %533, %531, %534 : vector<4x512xi1>, vector<4x512xf32>
    %536 = vector.extract_strided_slice %0 {offsets = [0, 17], sizes = [4, 495], strides = [1, 1]} : vector<4x512xf32> to vector<4x495xf32>
    %cst_217 = arith.constant 0.000000e+00 : f32
    %537 = vector.broadcast %cst_217 : f32 to vector<4x17xf32>
    %538 = tpu.concatenate %536, %537 in 1 : vector<4x495xf32>, vector<4x17xf32> -> vector<4x512xf32>
    %cst_218 = arith.constant 0.000000e+00 : f32
    %539 = vector.shape_cast %165 : vector<1x512xi1> to vector<1x512xi1>
    %540 = vector.broadcast %539 : vector<1x512xi1> to vector<4x512xi1>
    %541 = vector.broadcast %cst_218 : f32 to vector<4x512xf32>
    %542 = arith.select %540, %538, %541 : vector<4x512xi1>, vector<4x512xf32>
    %543 = tpu.concatenate %493, %500, %507, %514, %0, %521, %528, %535, %542 in 0 : vector<4x512xf32>, vector<4x512xf32>, vector<4x512xf32>, vector<4x512xf32>, vector<4x512xf32>, vector<4x512xf32>, vector<4x512xf32>, vector<4x512xf32>, vector<4x512xf32> -> vector<36x512xf32>
    %cst_219 = arith.constant dense<0.000000e+00> : vector<8x512xf32>
    %544 = tpu.matmul %484, %543, %cst_219 {dimension_numbers = #tpu.dot_dimension_numbers<[1], [0], [0], [1], [0, 0, 1, 1], [], []>} : vector<8x36xf32>, vector<36x512xf32>, vector<8x512xf32> -> vector<8x512xf32>
    %545 = arith.mulf %544, %544 : vector<8x512xf32>
    %546 = tpu.concatenate %544, %545 in 0 : vector<8x512xf32>, vector<8x512xf32> -> vector<16x512xf32>
    %cst_220 = arith.constant dense<0.000000e+00> : vector<16xf32>
    %547 = vector.multi_reduction <add>, %546, %cst_220 [1] : vector<16x512xf32> to vector<16xf32>
    %548 = vector.shape_cast %547 : vector<16xf32> to vector<16x1xf32>
    %cst_221 = arith.constant 0.001953125 : f32
    %549 = vector.broadcast %cst_221 : f32 to vector<16x1xf32>
    %550 = arith.mulf %548, %549 : vector<16x1xf32>
    %551 = vector.extract_strided_slice %550 {offsets = [0, 0], sizes = [8, 1], strides = [1, 1]} : vector<16x1xf32> to vector<8x1xf32>
    %552 = vector.extract_strided_slice %550 {offsets = [8, 0], sizes = [8, 1], strides = [1, 1]} : vector<16x1xf32> to vector<8x1xf32>
    %553 = arith.mulf %551, %551 : vector<8x1xf32>
    %554 = arith.subf %552, %553 : vector<8x1xf32>
    %cst_222 = arith.constant 0.000000e+00 : f32
    %555 = vector.broadcast %cst_222 : f32 to vector<8x1xf32>
    %556 = arith.maximumf %554, %555 : vector<8x1xf32>
    %cst_223 = arith.constant 9.99999974E-6 : f32
    %557 = vector.broadcast %cst_223 : f32 to vector<8x1xf32>
    %558 = arith.addf %556, %557 : vector<8x1xf32>
    %559 = math.rsqrt %558 : vector<8x1xf32>
    %560 = arith.mulf %485, %559 : vector<8x1xf32>
    %561 = vector.broadcast %551 : vector<8x1xf32> to vector<8x512xf32>
    %562 = arith.subf %544, %561 : vector<8x512xf32>
    %563 = vector.broadcast %560 : vector<8x1xf32> to vector<8x512xf32>
    %564 = arith.mulf %562, %563 : vector<8x512xf32>
    %565 = vector.broadcast %486 : vector<8x1xf32> to vector<8x512xf32>
    %566 = arith.addf %564, %565 : vector<8x512xf32>
    %cst_224 = arith.constant 0.000000e+00 : f32
    %567 = vector.broadcast %cst_224 : f32 to vector<8x512xf32>
    %568 = arith.maximumf %566, %567 : vector<8x512xf32>
    %569 = vector.extract_strided_slice %568 {offsets = [0, 1], sizes = [8, 511], strides = [1, 1]} : vector<8x512xf32> to vector<8x511xf32>
    %cst_225 = arith.constant 0.000000e+00 : f32
    %570 = vector.broadcast %cst_225 : f32 to vector<8x1xf32>
    %571 = tpu.concatenate %569, %570 in 1 : vector<8x511xf32>, vector<8x1xf32> -> vector<8x512xf32>
    %572 = arith.maximumf %568, %571 : vector<8x512xf32>
    %573 = vector.extract_strided_slice %568 {offsets = [0, 16], sizes = [8, 496], strides = [1, 1]} : vector<8x512xf32> to vector<8x496xf32>
    %cst_226 = arith.constant 0.000000e+00 : f32
    %574 = vector.broadcast %cst_226 : f32 to vector<8x16xf32>
    %575 = tpu.concatenate %573, %574 in 1 : vector<8x496xf32>, vector<8x16xf32> -> vector<8x512xf32>
    %576 = vector.extract_strided_slice %568 {offsets = [0, 17], sizes = [8, 495], strides = [1, 1]} : vector<8x512xf32> to vector<8x495xf32>
    %cst_227 = arith.constant 0.000000e+00 : f32
    %577 = vector.broadcast %cst_227 : f32 to vector<8x17xf32>
    %578 = tpu.concatenate %576, %577 in 1 : vector<8x495xf32>, vector<8x17xf32> -> vector<8x512xf32>
    %579 = arith.maximumf %575, %578 : vector<8x512xf32>
    %580 = arith.maximumf %572, %579 : vector<8x512xf32>
    %cst_228 = arith.constant dense<0.000000e+00> : vector<8x128xf32>
    %581 = tpu.matmul %580, %3, %cst_228 {dimension_numbers = #tpu.dot_dimension_numbers<[1], [0], [0], [1], [0, 0, 1, 1], [], []>} : vector<8x512xf32>, vector<512x128xf32>, vector<8x128xf32> -> vector<8x128xf32>
    %582 = vector.extract_strided_slice %1 {offsets = [8, 0], sizes = [16, 72], strides = [1, 1]} : vector<160x288xf32> to vector<16x72xf32>
    %583 = vector.extract_strided_slice %2 {offsets = [0, 2], sizes = [16, 1], strides = [1, 1]} : vector<32x21xf32> to vector<16x1xf32>
    %584 = vector.extract_strided_slice %2 {offsets = [0, 3], sizes = [16, 1], strides = [1, 1]} : vector<32x21xf32> to vector<16x1xf32>
    %cst_229 = arith.constant 0.000000e+00 : f32
    %585 = vector.broadcast %cst_229 : f32 to vector<8x9xf32>
    %586 = vector.extract_strided_slice %581 {offsets = [0, 0], sizes = [8, 119], strides = [1, 1]} : vector<8x128xf32> to vector<8x119xf32>
    %587 = tpu.concatenate %585, %586 in 1 : vector<8x9xf32>, vector<8x119xf32> -> vector<8x128xf32>
    %cst_230 = arith.constant 0.000000e+00 : f32
    %588 = vector.shape_cast %191 : vector<1x128xi1> to vector<1x128xi1>
    %589 = vector.broadcast %588 : vector<1x128xi1> to vector<8x128xi1>
    %590 = vector.broadcast %cst_230 : f32 to vector<8x128xf32>
    %591 = arith.select %589, %587, %590 : vector<8x128xi1>, vector<8x128xf32>
    %cst_231 = arith.constant 0.000000e+00 : f32
    %592 = vector.broadcast %cst_231 : f32 to vector<8x8xf32>
    %593 = vector.extract_strided_slice %581 {offsets = [0, 0], sizes = [8, 120], strides = [1, 1]} : vector<8x128xf32> to vector<8x120xf32>
    %594 = tpu.concatenate %592, %593 in 1 : vector<8x8xf32>, vector<8x120xf32> -> vector<8x128xf32>
    %cst_232 = arith.constant 0.000000e+00 : f32
    %595 = vector.shape_cast %210 : vector<1x128xi1> to vector<1x128xi1>
    %596 = vector.broadcast %595 : vector<1x128xi1> to vector<8x128xi1>
    %597 = vector.broadcast %cst_232 : f32 to vector<8x128xf32>
    %598 = arith.select %596, %594, %597 : vector<8x128xi1>, vector<8x128xf32>
    %cst_233 = arith.constant 0.000000e+00 : f32
    %599 = vector.broadcast %cst_233 : f32 to vector<8x7xf32>
    %600 = vector.extract_strided_slice %581 {offsets = [0, 0], sizes = [8, 121], strides = [1, 1]} : vector<8x128xf32> to vector<8x121xf32>
    %601 = tpu.concatenate %599, %600 in 1 : vector<8x7xf32>, vector<8x121xf32> -> vector<8x128xf32>
    %cst_234 = arith.constant 0.000000e+00 : f32
    %602 = vector.shape_cast %229 : vector<1x128xi1> to vector<1x128xi1>
    %603 = vector.broadcast %602 : vector<1x128xi1> to vector<8x128xi1>
    %604 = vector.broadcast %cst_234 : f32 to vector<8x128xf32>
    %605 = arith.select %603, %601, %604 : vector<8x128xi1>, vector<8x128xf32>
    %cst_235 = arith.constant 0.000000e+00 : f32
    %606 = vector.broadcast %cst_235 : f32 to vector<8x1xf32>
    %607 = vector.extract_strided_slice %581 {offsets = [0, 0], sizes = [8, 127], strides = [1, 1]} : vector<8x128xf32> to vector<8x127xf32>
    %608 = tpu.concatenate %606, %607 in 1 : vector<8x1xf32>, vector<8x127xf32> -> vector<8x128xf32>
    %cst_236 = arith.constant 0.000000e+00 : f32
    %609 = vector.shape_cast %248 : vector<1x128xi1> to vector<1x128xi1>
    %610 = vector.broadcast %609 : vector<1x128xi1> to vector<8x128xi1>
    %611 = vector.broadcast %cst_236 : f32 to vector<8x128xf32>
    %612 = arith.select %610, %608, %611 : vector<8x128xi1>, vector<8x128xf32>
    %613 = vector.extract_strided_slice %581 {offsets = [0, 1], sizes = [8, 127], strides = [1, 1]} : vector<8x128xf32> to vector<8x127xf32>
    %cst_237 = arith.constant 0.000000e+00 : f32
    %614 = vector.broadcast %cst_237 : f32 to vector<8x1xf32>
    %615 = tpu.concatenate %613, %614 in 1 : vector<8x127xf32>, vector<8x1xf32> -> vector<8x128xf32>
    %cst_238 = arith.constant 0.000000e+00 : f32
    %616 = vector.shape_cast %267 : vector<1x128xi1> to vector<1x128xi1>
    %617 = vector.broadcast %616 : vector<1x128xi1> to vector<8x128xi1>
    %618 = vector.broadcast %cst_238 : f32 to vector<8x128xf32>
    %619 = arith.select %617, %615, %618 : vector<8x128xi1>, vector<8x128xf32>
    %620 = vector.extract_strided_slice %581 {offsets = [0, 7], sizes = [8, 121], strides = [1, 1]} : vector<8x128xf32> to vector<8x121xf32>
    %cst_239 = arith.constant 0.000000e+00 : f32
    %621 = vector.broadcast %cst_239 : f32 to vector<8x7xf32>
    %622 = tpu.concatenate %620, %621 in 1 : vector<8x121xf32>, vector<8x7xf32> -> vector<8x128xf32>
    %cst_240 = arith.constant 0.000000e+00 : f32
    %623 = vector.shape_cast %286 : vector<1x128xi1> to vector<1x128xi1>
    %624 = vector.broadcast %623 : vector<1x128xi1> to vector<8x128xi1>
    %625 = vector.broadcast %cst_240 : f32 to vector<8x128xf32>
    %626 = arith.select %624, %622, %625 : vector<8x128xi1>, vector<8x128xf32>
    %627 = vector.extract_strided_slice %581 {offsets = [0, 8], sizes = [8, 120], strides = [1, 1]} : vector<8x128xf32> to vector<8x120xf32>
    %cst_241 = arith.constant 0.000000e+00 : f32
    %628 = vector.broadcast %cst_241 : f32 to vector<8x8xf32>
    %629 = tpu.concatenate %627, %628 in 1 : vector<8x120xf32>, vector<8x8xf32> -> vector<8x128xf32>
    %cst_242 = arith.constant 0.000000e+00 : f32
    %630 = vector.shape_cast %305 : vector<1x128xi1> to vector<1x128xi1>
    %631 = vector.broadcast %630 : vector<1x128xi1> to vector<8x128xi1>
    %632 = vector.broadcast %cst_242 : f32 to vector<8x128xf32>
    %633 = arith.select %631, %629, %632 : vector<8x128xi1>, vector<8x128xf32>
    %634 = vector.extract_strided_slice %581 {offsets = [0, 9], sizes = [8, 119], strides = [1, 1]} : vector<8x128xf32> to vector<8x119xf32>
    %cst_243 = arith.constant 0.000000e+00 : f32
    %635 = vector.broadcast %cst_243 : f32 to vector<8x9xf32>
    %636 = tpu.concatenate %634, %635 in 1 : vector<8x119xf32>, vector<8x9xf32> -> vector<8x128xf32>
    %cst_244 = arith.constant 0.000000e+00 : f32
    %637 = vector.shape_cast %324 : vector<1x128xi1> to vector<1x128xi1>
    %638 = vector.broadcast %637 : vector<1x128xi1> to vector<8x128xi1>
    %639 = vector.broadcast %cst_244 : f32 to vector<8x128xf32>
    %640 = arith.select %638, %636, %639 : vector<8x128xi1>, vector<8x128xf32>
    %641 = tpu.concatenate %591, %598, %605, %612, %581, %619, %626, %633, %640 in 0 : vector<8x128xf32>, vector<8x128xf32>, vector<8x128xf32>, vector<8x128xf32>, vector<8x128xf32>, vector<8x128xf32>, vector<8x128xf32>, vector<8x128xf32>, vector<8x128xf32> -> vector<72x128xf32>
    %cst_245 = arith.constant dense<0.000000e+00> : vector<16x128xf32>
    %642 = tpu.matmul %582, %641, %cst_245 {dimension_numbers = #tpu.dot_dimension_numbers<[1], [0], [0], [1], [0, 0, 1, 1], [], []>} : vector<16x72xf32>, vector<72x128xf32>, vector<16x128xf32> -> vector<16x128xf32>
    %643 = arith.mulf %642, %642 : vector<16x128xf32>
    %644 = tpu.concatenate %642, %643 in 0 : vector<16x128xf32>, vector<16x128xf32> -> vector<32x128xf32>
    %cst_246 = arith.constant dense<0.000000e+00> : vector<32xf32>
    %645 = vector.multi_reduction <add>, %644, %cst_246 [1] : vector<32x128xf32> to vector<32xf32>
    %646 = vector.shape_cast %645 : vector<32xf32> to vector<32x1xf32>
    %cst_247 = arith.constant 7.812500e-03 : f32
    %647 = vector.broadcast %cst_247 : f32 to vector<32x1xf32>
    %648 = arith.mulf %646, %647 : vector<32x1xf32>
    %649 = vector.extract_strided_slice %648 {offsets = [0, 0], sizes = [16, 1], strides = [1, 1]} : vector<32x1xf32> to vector<16x1xf32>
    %650 = vector.extract_strided_slice %648 {offsets = [16, 0], sizes = [16, 1], strides = [1, 1]} : vector<32x1xf32> to vector<16x1xf32>
    %651 = arith.mulf %649, %649 : vector<16x1xf32>
    %652 = arith.subf %650, %651 : vector<16x1xf32>
    %cst_248 = arith.constant 0.000000e+00 : f32
    %653 = vector.broadcast %cst_248 : f32 to vector<16x1xf32>
    %654 = arith.maximumf %652, %653 : vector<16x1xf32>
    %cst_249 = arith.constant 9.99999974E-6 : f32
    %655 = vector.broadcast %cst_249 : f32 to vector<16x1xf32>
    %656 = arith.addf %654, %655 : vector<16x1xf32>
    %657 = math.rsqrt %656 : vector<16x1xf32>
    %658 = arith.mulf %583, %657 : vector<16x1xf32>
    %659 = vector.broadcast %649 : vector<16x1xf32> to vector<16x128xf32>
    %660 = arith.subf %642, %659 : vector<16x128xf32>
    %661 = vector.broadcast %658 : vector<16x1xf32> to vector<16x128xf32>
    %662 = arith.mulf %660, %661 : vector<16x128xf32>
    %663 = vector.broadcast %584 : vector<16x1xf32> to vector<16x128xf32>
    %664 = arith.addf %662, %663 : vector<16x128xf32>
    %cst_250 = arith.constant 0.000000e+00 : f32
    %665 = vector.broadcast %cst_250 : f32 to vector<16x128xf32>
    %666 = arith.maximumf %664, %665 : vector<16x128xf32>
    %667 = vector.extract_strided_slice %666 {offsets = [0, 1], sizes = [16, 127], strides = [1, 1]} : vector<16x128xf32> to vector<16x127xf32>
    %cst_251 = arith.constant 0.000000e+00 : f32
    %668 = vector.broadcast %cst_251 : f32 to vector<16x1xf32>
    %669 = tpu.concatenate %667, %668 in 1 : vector<16x127xf32>, vector<16x1xf32> -> vector<16x128xf32>
    %670 = arith.maximumf %666, %669 : vector<16x128xf32>
    %671 = vector.extract_strided_slice %666 {offsets = [0, 8], sizes = [16, 120], strides = [1, 1]} : vector<16x128xf32> to vector<16x120xf32>
    %cst_252 = arith.constant 0.000000e+00 : f32
    %672 = vector.broadcast %cst_252 : f32 to vector<16x8xf32>
    %673 = tpu.concatenate %671, %672 in 1 : vector<16x120xf32>, vector<16x8xf32> -> vector<16x128xf32>
    %674 = vector.extract_strided_slice %666 {offsets = [0, 9], sizes = [16, 119], strides = [1, 1]} : vector<16x128xf32> to vector<16x119xf32>
    %cst_253 = arith.constant 0.000000e+00 : f32
    %675 = vector.broadcast %cst_253 : f32 to vector<16x9xf32>
    %676 = tpu.concatenate %674, %675 in 1 : vector<16x119xf32>, vector<16x9xf32> -> vector<16x128xf32>
    %677 = arith.maximumf %673, %676 : vector<16x128xf32>
    %678 = arith.maximumf %670, %677 : vector<16x128xf32>
    %cst_254 = arith.constant dense<0.000000e+00> : vector<16x32xf32>
    %679 = tpu.matmul %678, %4, %cst_254 {dimension_numbers = #tpu.dot_dimension_numbers<[1], [0], [0], [1], [0, 0, 1, 1], [], []>} : vector<16x128xf32>, vector<128x32xf32>, vector<16x32xf32> -> vector<16x32xf32>
    %680 = vector.extract_strided_slice %1 {offsets = [24, 0], sizes = [32, 144], strides = [1, 1]} : vector<160x288xf32> to vector<32x144xf32>
    %681 = vector.extract_strided_slice %2 {offsets = [0, 4], sizes = [32, 1], strides = [1, 1]} : vector<32x21xf32> to vector<32x1xf32>
    %682 = vector.extract_strided_slice %2 {offsets = [0, 5], sizes = [32, 1], strides = [1, 1]} : vector<32x21xf32> to vector<32x1xf32>
    %cst_255 = arith.constant 0.000000e+00 : f32
    %683 = vector.broadcast %cst_255 : f32 to vector<16x5xf32>
    %684 = vector.extract_strided_slice %679 {offsets = [0, 0], sizes = [16, 27], strides = [1, 1]} : vector<16x32xf32> to vector<16x27xf32>
    %685 = tpu.concatenate %683, %684 in 1 : vector<16x5xf32>, vector<16x27xf32> -> vector<16x32xf32>
    %cst_256 = arith.constant 0.000000e+00 : f32
    %686 = vector.shape_cast %350 : vector<1x32xi1> to vector<1x32xi1>
    %687 = vector.broadcast %686 : vector<1x32xi1> to vector<16x32xi1>
    %688 = vector.broadcast %cst_256 : f32 to vector<16x32xf32>
    %689 = arith.select %687, %685, %688 : vector<16x32xi1>, vector<16x32xf32>
    %cst_257 = arith.constant 0.000000e+00 : f32
    %690 = vector.broadcast %cst_257 : f32 to vector<16x4xf32>
    %691 = vector.extract_strided_slice %679 {offsets = [0, 0], sizes = [16, 28], strides = [1, 1]} : vector<16x32xf32> to vector<16x28xf32>
    %692 = tpu.concatenate %690, %691 in 1 : vector<16x4xf32>, vector<16x28xf32> -> vector<16x32xf32>
    %cst_258 = arith.constant 0.000000e+00 : f32
    %693 = vector.shape_cast %369 : vector<1x32xi1> to vector<1x32xi1>
    %694 = vector.broadcast %693 : vector<1x32xi1> to vector<16x32xi1>
    %695 = vector.broadcast %cst_258 : f32 to vector<16x32xf32>
    %696 = arith.select %694, %692, %695 : vector<16x32xi1>, vector<16x32xf32>
    %cst_259 = arith.constant 0.000000e+00 : f32
    %697 = vector.broadcast %cst_259 : f32 to vector<16x3xf32>
    %698 = vector.extract_strided_slice %679 {offsets = [0, 0], sizes = [16, 29], strides = [1, 1]} : vector<16x32xf32> to vector<16x29xf32>
    %699 = tpu.concatenate %697, %698 in 1 : vector<16x3xf32>, vector<16x29xf32> -> vector<16x32xf32>
    %cst_260 = arith.constant 0.000000e+00 : f32
    %700 = vector.shape_cast %388 : vector<1x32xi1> to vector<1x32xi1>
    %701 = vector.broadcast %700 : vector<1x32xi1> to vector<16x32xi1>
    %702 = vector.broadcast %cst_260 : f32 to vector<16x32xf32>
    %703 = arith.select %701, %699, %702 : vector<16x32xi1>, vector<16x32xf32>
    %cst_261 = arith.constant 0.000000e+00 : f32
    %704 = vector.broadcast %cst_261 : f32 to vector<16x1xf32>
    %705 = vector.extract_strided_slice %679 {offsets = [0, 0], sizes = [16, 31], strides = [1, 1]} : vector<16x32xf32> to vector<16x31xf32>
    %706 = tpu.concatenate %704, %705 in 1 : vector<16x1xf32>, vector<16x31xf32> -> vector<16x32xf32>
    %cst_262 = arith.constant 0.000000e+00 : f32
    %707 = vector.shape_cast %407 : vector<1x32xi1> to vector<1x32xi1>
    %708 = vector.broadcast %707 : vector<1x32xi1> to vector<16x32xi1>
    %709 = vector.broadcast %cst_262 : f32 to vector<16x32xf32>
    %710 = arith.select %708, %706, %709 : vector<16x32xi1>, vector<16x32xf32>
    %711 = vector.extract_strided_slice %679 {offsets = [0, 1], sizes = [16, 31], strides = [1, 1]} : vector<16x32xf32> to vector<16x31xf32>
    %cst_263 = arith.constant 0.000000e+00 : f32
    %712 = vector.broadcast %cst_263 : f32 to vector<16x1xf32>
    %713 = tpu.concatenate %711, %712 in 1 : vector<16x31xf32>, vector<16x1xf32> -> vector<16x32xf32>
    %cst_264 = arith.constant 0.000000e+00 : f32
    %714 = vector.shape_cast %426 : vector<1x32xi1> to vector<1x32xi1>
    %715 = vector.broadcast %714 : vector<1x32xi1> to vector<16x32xi1>
    %716 = vector.broadcast %cst_264 : f32 to vector<16x32xf32>
    %717 = arith.select %715, %713, %716 : vector<16x32xi1>, vector<16x32xf32>
    %718 = vector.extract_strided_slice %679 {offsets = [0, 3], sizes = [16, 29], strides = [1, 1]} : vector<16x32xf32> to vector<16x29xf32>
    %cst_265 = arith.constant 0.000000e+00 : f32
    %719 = vector.broadcast %cst_265 : f32 to vector<16x3xf32>
    %720 = tpu.concatenate %718, %719 in 1 : vector<16x29xf32>, vector<16x3xf32> -> vector<16x32xf32>
    %cst_266 = arith.constant 0.000000e+00 : f32
    %721 = vector.shape_cast %445 : vector<1x32xi1> to vector<1x32xi1>
    %722 = vector.broadcast %721 : vector<1x32xi1> to vector<16x32xi1>
    %723 = vector.broadcast %cst_266 : f32 to vector<16x32xf32>
    %724 = arith.select %722, %720, %723 : vector<16x32xi1>, vector<16x32xf32>
    %725 = vector.extract_strided_slice %679 {offsets = [0, 4], sizes = [16, 28], strides = [1, 1]} : vector<16x32xf32> to vector<16x28xf32>
    %cst_267 = arith.constant 0.000000e+00 : f32
    %726 = vector.broadcast %cst_267 : f32 to vector<16x4xf32>
    %727 = tpu.concatenate %725, %726 in 1 : vector<16x28xf32>, vector<16x4xf32> -> vector<16x32xf32>
    %cst_268 = arith.constant 0.000000e+00 : f32
    %728 = vector.shape_cast %464 : vector<1x32xi1> to vector<1x32xi1>
    %729 = vector.broadcast %728 : vector<1x32xi1> to vector<16x32xi1>
    %730 = vector.broadcast %cst_268 : f32 to vector<16x32xf32>
    %731 = arith.select %729, %727, %730 : vector<16x32xi1>, vector<16x32xf32>
    %732 = vector.extract_strided_slice %679 {offsets = [0, 5], sizes = [16, 27], strides = [1, 1]} : vector<16x32xf32> to vector<16x27xf32>
    %cst_269 = arith.constant 0.000000e+00 : f32
    %733 = vector.broadcast %cst_269 : f32 to vector<16x5xf32>
    %734 = tpu.concatenate %732, %733 in 1 : vector<16x27xf32>, vector<16x5xf32> -> vector<16x32xf32>
    %cst_270 = arith.constant 0.000000e+00 : f32
    %735 = vector.shape_cast %483 : vector<1x32xi1> to vector<1x32xi1>
    %736 = vector.broadcast %735 : vector<1x32xi1> to vector<16x32xi1>
    %737 = vector.broadcast %cst_270 : f32 to vector<16x32xf32>
    %738 = arith.select %736, %734, %737 : vector<16x32xi1>, vector<16x32xf32>
    %739 = tpu.concatenate %689, %696, %703, %710, %679, %717, %724, %731, %738 in 0 : vector<16x32xf32>, vector<16x32xf32>, vector<16x32xf32>, vector<16x32xf32>, vector<16x32xf32>, vector<16x32xf32>, vector<16x32xf32>, vector<16x32xf32>, vector<16x32xf32> -> vector<144x32xf32>
    %cst_271 = arith.constant dense<0.000000e+00> : vector<32x32xf32>
    %740 = tpu.matmul %680, %739, %cst_271 {dimension_numbers = #tpu.dot_dimension_numbers<[1], [0], [0], [1], [0, 0, 1, 1], [], []>} : vector<32x144xf32>, vector<144x32xf32>, vector<32x32xf32> -> vector<32x32xf32>
    %741 = arith.mulf %740, %740 : vector<32x32xf32>
    %742 = tpu.concatenate %740, %741 in 0 : vector<32x32xf32>, vector<32x32xf32> -> vector<64x32xf32>
    %cst_272 = arith.constant dense<0.000000e+00> : vector<64xf32>
    %743 = vector.multi_reduction <add>, %742, %cst_272 [1] : vector<64x32xf32> to vector<64xf32>
    %744 = vector.shape_cast %743 : vector<64xf32> to vector<64x1xf32>
    %cst_273 = arith.constant 3.125000e-02 : f32
    %745 = vector.broadcast %cst_273 : f32 to vector<64x1xf32>
    %746 = arith.mulf %744, %745 : vector<64x1xf32>
    %747 = vector.extract_strided_slice %746 {offsets = [0, 0], sizes = [32, 1], strides = [1, 1]} : vector<64x1xf32> to vector<32x1xf32>
    %748 = vector.extract_strided_slice %746 {offsets = [32, 0], sizes = [32, 1], strides = [1, 1]} : vector<64x1xf32> to vector<32x1xf32>
    %749 = arith.mulf %747, %747 : vector<32x1xf32>
    %750 = arith.subf %748, %749 : vector<32x1xf32>
    %cst_274 = arith.constant 0.000000e+00 : f32
    %751 = vector.broadcast %cst_274 : f32 to vector<32x1xf32>
    %752 = arith.maximumf %750, %751 : vector<32x1xf32>
    %cst_275 = arith.constant 9.99999974E-6 : f32
    %753 = vector.broadcast %cst_275 : f32 to vector<32x1xf32>
    %754 = arith.addf %752, %753 : vector<32x1xf32>
    %755 = math.rsqrt %754 : vector<32x1xf32>
    %756 = arith.mulf %681, %755 : vector<32x1xf32>
    %757 = vector.broadcast %747 : vector<32x1xf32> to vector<32x32xf32>
    %758 = arith.subf %740, %757 : vector<32x32xf32>
    %759 = vector.broadcast %756 : vector<32x1xf32> to vector<32x32xf32>
    %760 = arith.mulf %758, %759 : vector<32x32xf32>
    %761 = vector.broadcast %682 : vector<32x1xf32> to vector<32x32xf32>
    %762 = arith.addf %760, %761 : vector<32x32xf32>
    %cst_276 = arith.constant 0.000000e+00 : f32
    %763 = vector.broadcast %cst_276 : f32 to vector<32x32xf32>
    %764 = arith.maximumf %762, %763 : vector<32x32xf32>
    %765 = vector.extract_strided_slice %1 {offsets = [56, 0], sizes = [32, 288], strides = [1, 1]} : vector<160x288xf32> to vector<32x288xf32>
    %766 = vector.extract_strided_slice %2 {offsets = [0, 6], sizes = [32, 1], strides = [1, 1]} : vector<32x21xf32> to vector<32x1xf32>
    %767 = vector.extract_strided_slice %2 {offsets = [0, 7], sizes = [32, 1], strides = [1, 1]} : vector<32x21xf32> to vector<32x1xf32>
    %cst_277 = arith.constant 0.000000e+00 : f32
    %768 = vector.broadcast %cst_277 : f32 to vector<32x5xf32>
    %769 = vector.extract_strided_slice %764 {offsets = [0, 0], sizes = [32, 27], strides = [1, 1]} : vector<32x32xf32> to vector<32x27xf32>
    %770 = tpu.concatenate %768, %769 in 1 : vector<32x5xf32>, vector<32x27xf32> -> vector<32x32xf32>
    %cst_278 = arith.constant 0.000000e+00 : f32
    %771 = vector.shape_cast %350 : vector<1x32xi1> to vector<1x32xi1>
    %772 = vector.broadcast %771 : vector<1x32xi1> to vector<32x32xi1>
    %773 = vector.broadcast %cst_278 : f32 to vector<32x32xf32>
    %774 = arith.select %772, %770, %773 : vector<32x32xi1>, vector<32x32xf32>
    %cst_279 = arith.constant 0.000000e+00 : f32
    %775 = vector.broadcast %cst_279 : f32 to vector<32x4xf32>
    %776 = vector.extract_strided_slice %764 {offsets = [0, 0], sizes = [32, 28], strides = [1, 1]} : vector<32x32xf32> to vector<32x28xf32>
    %777 = tpu.concatenate %775, %776 in 1 : vector<32x4xf32>, vector<32x28xf32> -> vector<32x32xf32>
    %cst_280 = arith.constant 0.000000e+00 : f32
    %778 = vector.shape_cast %369 : vector<1x32xi1> to vector<1x32xi1>
    %779 = vector.broadcast %778 : vector<1x32xi1> to vector<32x32xi1>
    %780 = vector.broadcast %cst_280 : f32 to vector<32x32xf32>
    %781 = arith.select %779, %777, %780 : vector<32x32xi1>, vector<32x32xf32>
    %cst_281 = arith.constant 0.000000e+00 : f32
    %782 = vector.broadcast %cst_281 : f32 to vector<32x3xf32>
    %783 = vector.extract_strided_slice %764 {offsets = [0, 0], sizes = [32, 29], strides = [1, 1]} : vector<32x32xf32> to vector<32x29xf32>
    %784 = tpu.concatenate %782, %783 in 1 : vector<32x3xf32>, vector<32x29xf32> -> vector<32x32xf32>
    %cst_282 = arith.constant 0.000000e+00 : f32
    %785 = vector.shape_cast %388 : vector<1x32xi1> to vector<1x32xi1>
    %786 = vector.broadcast %785 : vector<1x32xi1> to vector<32x32xi1>
    %787 = vector.broadcast %cst_282 : f32 to vector<32x32xf32>
    %788 = arith.select %786, %784, %787 : vector<32x32xi1>, vector<32x32xf32>
    %cst_283 = arith.constant 0.000000e+00 : f32
    %789 = vector.broadcast %cst_283 : f32 to vector<32x1xf32>
    %790 = vector.extract_strided_slice %764 {offsets = [0, 0], sizes = [32, 31], strides = [1, 1]} : vector<32x32xf32> to vector<32x31xf32>
    %791 = tpu.concatenate %789, %790 in 1 : vector<32x1xf32>, vector<32x31xf32> -> vector<32x32xf32>
    %cst_284 = arith.constant 0.000000e+00 : f32
    %792 = vector.shape_cast %407 : vector<1x32xi1> to vector<1x32xi1>
    %793 = vector.broadcast %792 : vector<1x32xi1> to vector<32x32xi1>
    %794 = vector.broadcast %cst_284 : f32 to vector<32x32xf32>
    %795 = arith.select %793, %791, %794 : vector<32x32xi1>, vector<32x32xf32>
    %796 = vector.extract_strided_slice %764 {offsets = [0, 1], sizes = [32, 31], strides = [1, 1]} : vector<32x32xf32> to vector<32x31xf32>
    %cst_285 = arith.constant 0.000000e+00 : f32
    %797 = vector.broadcast %cst_285 : f32 to vector<32x1xf32>
    %798 = tpu.concatenate %796, %797 in 1 : vector<32x31xf32>, vector<32x1xf32> -> vector<32x32xf32>
    %cst_286 = arith.constant 0.000000e+00 : f32
    %799 = vector.shape_cast %426 : vector<1x32xi1> to vector<1x32xi1>
    %800 = vector.broadcast %799 : vector<1x32xi1> to vector<32x32xi1>
    %801 = vector.broadcast %cst_286 : f32 to vector<32x32xf32>
    %802 = arith.select %800, %798, %801 : vector<32x32xi1>, vector<32x32xf32>
    %803 = vector.extract_strided_slice %764 {offsets = [0, 3], sizes = [32, 29], strides = [1, 1]} : vector<32x32xf32> to vector<32x29xf32>
    %cst_287 = arith.constant 0.000000e+00 : f32
    %804 = vector.broadcast %cst_287 : f32 to vector<32x3xf32>
    %805 = tpu.concatenate %803, %804 in 1 : vector<32x29xf32>, vector<32x3xf32> -> vector<32x32xf32>
    %cst_288 = arith.constant 0.000000e+00 : f32
    %806 = vector.shape_cast %445 : vector<1x32xi1> to vector<1x32xi1>
    %807 = vector.broadcast %806 : vector<1x32xi1> to vector<32x32xi1>
    %808 = vector.broadcast %cst_288 : f32 to vector<32x32xf32>
    %809 = arith.select %807, %805, %808 : vector<32x32xi1>, vector<32x32xf32>
    %810 = vector.extract_strided_slice %764 {offsets = [0, 4], sizes = [32, 28], strides = [1, 1]} : vector<32x32xf32> to vector<32x28xf32>
    %cst_289 = arith.constant 0.000000e+00 : f32
    %811 = vector.broadcast %cst_289 : f32 to vector<32x4xf32>
    %812 = tpu.concatenate %810, %811 in 1 : vector<32x28xf32>, vector<32x4xf32> -> vector<32x32xf32>
    %cst_290 = arith.constant 0.000000e+00 : f32
    %813 = vector.shape_cast %464 : vector<1x32xi1> to vector<1x32xi1>
    %814 = vector.broadcast %813 : vector<1x32xi1> to vector<32x32xi1>
    %815 = vector.broadcast %cst_290 : f32 to vector<32x32xf32>
    %816 = arith.select %814, %812, %815 : vector<32x32xi1>, vector<32x32xf32>
    %817 = vector.extract_strided_slice %764 {offsets = [0, 5], sizes = [32, 27], strides = [1, 1]} : vector<32x32xf32> to vector<32x27xf32>
    %cst_291 = arith.constant 0.000000e+00 : f32
    %818 = vector.broadcast %cst_291 : f32 to vector<32x5xf32>
    %819 = tpu.concatenate %817, %818 in 1 : vector<32x27xf32>, vector<32x5xf32> -> vector<32x32xf32>
    %cst_292 = arith.constant 0.000000e+00 : f32
    %820 = vector.shape_cast %483 : vector<1x32xi1> to vector<1x32xi1>
    %821 = vector.broadcast %820 : vector<1x32xi1> to vector<32x32xi1>
    %822 = vector.broadcast %cst_292 : f32 to vector<32x32xf32>
    %823 = arith.select %821, %819, %822 : vector<32x32xi1>, vector<32x32xf32>
    %824 = tpu.concatenate %774, %781, %788, %795, %764, %802, %809, %816, %823 in 0 : vector<32x32xf32>, vector<32x32xf32>, vector<32x32xf32>, vector<32x32xf32>, vector<32x32xf32>, vector<32x32xf32>, vector<32x32xf32>, vector<32x32xf32>, vector<32x32xf32> -> vector<288x32xf32>
    %cst_293 = arith.constant dense<0.000000e+00> : vector<32x32xf32>
    %825 = tpu.matmul %765, %824, %cst_293 {dimension_numbers = #tpu.dot_dimension_numbers<[1], [0], [0], [1], [0, 0, 1, 1], [], []>} : vector<32x288xf32>, vector<288x32xf32>, vector<32x32xf32> -> vector<32x32xf32>
    %826 = arith.mulf %825, %825 : vector<32x32xf32>
    %827 = tpu.concatenate %825, %826 in 0 : vector<32x32xf32>, vector<32x32xf32> -> vector<64x32xf32>
    %cst_294 = arith.constant dense<0.000000e+00> : vector<64xf32>
    %828 = vector.multi_reduction <add>, %827, %cst_294 [1] : vector<64x32xf32> to vector<64xf32>
    %829 = vector.shape_cast %828 : vector<64xf32> to vector<64x1xf32>
    %cst_295 = arith.constant 3.125000e-02 : f32
    %830 = vector.broadcast %cst_295 : f32 to vector<64x1xf32>
    %831 = arith.mulf %829, %830 : vector<64x1xf32>
    %832 = vector.extract_strided_slice %831 {offsets = [0, 0], sizes = [32, 1], strides = [1, 1]} : vector<64x1xf32> to vector<32x1xf32>
    %833 = vector.extract_strided_slice %831 {offsets = [32, 0], sizes = [32, 1], strides = [1, 1]} : vector<64x1xf32> to vector<32x1xf32>
    %834 = arith.mulf %832, %832 : vector<32x1xf32>
    %835 = arith.subf %833, %834 : vector<32x1xf32>
    %cst_296 = arith.constant 0.000000e+00 : f32
    %836 = vector.broadcast %cst_296 : f32 to vector<32x1xf32>
    %837 = arith.maximumf %835, %836 : vector<32x1xf32>
    %cst_297 = arith.constant 9.99999974E-6 : f32
    %838 = vector.broadcast %cst_297 : f32 to vector<32x1xf32>
    %839 = arith.addf %837, %838 : vector<32x1xf32>
    %840 = math.rsqrt %839 : vector<32x1xf32>
    %841 = arith.mulf %766, %840 : vector<32x1xf32>
    %842 = vector.broadcast %832 : vector<32x1xf32> to vector<32x32xf32>
    %843 = arith.subf %825, %842 : vector<32x32xf32>
    %844 = vector.broadcast %841 : vector<32x1xf32> to vector<32x32xf32>
    %845 = arith.mulf %843, %844 : vector<32x32xf32>
    %846 = vector.broadcast %767 : vector<32x1xf32> to vector<32x32xf32>
    %847 = arith.addf %845, %846 : vector<32x32xf32>
    %cst_298 = arith.constant 0.000000e+00 : f32
    %848 = vector.broadcast %cst_298 : f32 to vector<32x32xf32>
    %849 = arith.maximumf %847, %848 : vector<32x32xf32>
    %cst_299 = arith.constant dense<0.000000e+00> : vector<32x128xf32>
    %850 = tpu.matmul %849, %5, %cst_299 {dimension_numbers = #tpu.dot_dimension_numbers<[1], [0], [0], [1], [0, 0, 1, 1], [], []>} : vector<32x32xf32>, vector<32x128xf32>, vector<32x128xf32> -> vector<32x128xf32>
    %851 = vector.extract_strided_slice %1 {offsets = [136, 0], sizes = [8, 48], strides = [1, 1]} : vector<160x288xf32> to vector<8x48xf32>
    %852 = vector.extract_strided_slice %2 {offsets = [0, 16], sizes = [8, 1], strides = [1, 1]} : vector<32x21xf32> to vector<8x1xf32>
    %853 = vector.extract_strided_slice %2 {offsets = [0, 17], sizes = [1, 1], strides = [1, 1]} : vector<32x21xf32> to vector<1x1xf32>
    %854 = tpu.concatenate %666, %850 in 0 : vector<16x128xf32>, vector<32x128xf32> -> vector<48x128xf32>
    %cst_300 = arith.constant dense<0.000000e+00> : vector<8x128xf32>
    %855 = tpu.matmul %851, %854, %cst_300 {dimension_numbers = #tpu.dot_dimension_numbers<[1], [0], [0], [1], [0, 0, 1, 1], [], []>} : vector<8x48xf32>, vector<48x128xf32>, vector<8x128xf32> -> vector<8x128xf32>
    %cst_301 = arith.constant 0.000000e+00 : f32
    %856 = vector.broadcast %cst_301 : f32 to vector<8x128xf32>
    %857 = arith.maximumf %855, %856 : vector<8x128xf32>
    %858 = vector.broadcast %852 : vector<8x1xf32> to vector<8x128xf32>
    %859 = arith.mulf %858, %857 : vector<8x128xf32>
    %cst_302 = arith.constant dense<0.000000e+00> : vector<128xf32>
    %860 = vector.multi_reduction <add>, %859, %cst_302 [0] : vector<8x128xf32> to vector<128xf32>
    %861 = vector.shape_cast %860 : vector<128xf32> to vector<1x128xf32>
    %862 = vector.broadcast %853 : vector<1x1xf32> to vector<1x128xf32>
    %863 = arith.addf %861, %862 : vector<1x128xf32>
    %864 = arith.negf %863 : vector<1x128xf32>
    %865 = math.exp %864 : vector<1x128xf32>
    %cst_303 = arith.constant 1.000000e+00 : f32
    %866 = vector.broadcast %cst_303 : f32 to vector<1x128xf32>
    %867 = arith.addf %866, %865 : vector<1x128xf32>
    %868 = arith.divf %866, %867 : vector<1x128xf32>
    %869 = vector.broadcast %868 : vector<1x128xf32> to vector<16x128xf32>
    %870 = arith.mulf %666, %869 : vector<16x128xf32>
    %cst_304 = arith.constant dense<0.000000e+00> : vector<32x128xf32>
    %871 = tpu.matmul %764, %5, %cst_304 {dimension_numbers = #tpu.dot_dimension_numbers<[1], [0], [0], [1], [0, 0, 1, 1], [], []>} : vector<32x32xf32>, vector<32x128xf32>, vector<32x128xf32> -> vector<32x128xf32>
    %872 = vector.extract_strided_slice %1 {offsets = [88, 0], sizes = [16, 288], strides = [1, 1]} : vector<160x288xf32> to vector<16x288xf32>
    %873 = vector.extract_strided_slice %2 {offsets = [0, 8], sizes = [16, 1], strides = [1, 1]} : vector<32x21xf32> to vector<16x1xf32>
    %874 = vector.extract_strided_slice %2 {offsets = [0, 9], sizes = [16, 1], strides = [1, 1]} : vector<32x21xf32> to vector<16x1xf32>
    %cst_305 = arith.constant 0.000000e+00 : f32
    %875 = vector.broadcast %cst_305 : f32 to vector<32x9xf32>
    %876 = vector.extract_strided_slice %871 {offsets = [0, 0], sizes = [32, 119], strides = [1, 1]} : vector<32x128xf32> to vector<32x119xf32>
    %877 = tpu.concatenate %875, %876 in 1 : vector<32x9xf32>, vector<32x119xf32> -> vector<32x128xf32>
    %cst_306 = arith.constant 0.000000e+00 : f32
    %878 = vector.shape_cast %191 : vector<1x128xi1> to vector<1x128xi1>
    %879 = vector.broadcast %878 : vector<1x128xi1> to vector<32x128xi1>
    %880 = vector.broadcast %cst_306 : f32 to vector<32x128xf32>
    %881 = arith.select %879, %877, %880 : vector<32x128xi1>, vector<32x128xf32>
    %cst_307 = arith.constant 0.000000e+00 : f32
    %882 = vector.broadcast %cst_307 : f32 to vector<32x8xf32>
    %883 = vector.extract_strided_slice %871 {offsets = [0, 0], sizes = [32, 120], strides = [1, 1]} : vector<32x128xf32> to vector<32x120xf32>
    %884 = tpu.concatenate %882, %883 in 1 : vector<32x8xf32>, vector<32x120xf32> -> vector<32x128xf32>
    %cst_308 = arith.constant 0.000000e+00 : f32
    %885 = vector.shape_cast %210 : vector<1x128xi1> to vector<1x128xi1>
    %886 = vector.broadcast %885 : vector<1x128xi1> to vector<32x128xi1>
    %887 = vector.broadcast %cst_308 : f32 to vector<32x128xf32>
    %888 = arith.select %886, %884, %887 : vector<32x128xi1>, vector<32x128xf32>
    %cst_309 = arith.constant 0.000000e+00 : f32
    %889 = vector.broadcast %cst_309 : f32 to vector<32x7xf32>
    %890 = vector.extract_strided_slice %871 {offsets = [0, 0], sizes = [32, 121], strides = [1, 1]} : vector<32x128xf32> to vector<32x121xf32>
    %891 = tpu.concatenate %889, %890 in 1 : vector<32x7xf32>, vector<32x121xf32> -> vector<32x128xf32>
    %cst_310 = arith.constant 0.000000e+00 : f32
    %892 = vector.shape_cast %229 : vector<1x128xi1> to vector<1x128xi1>
    %893 = vector.broadcast %892 : vector<1x128xi1> to vector<32x128xi1>
    %894 = vector.broadcast %cst_310 : f32 to vector<32x128xf32>
    %895 = arith.select %893, %891, %894 : vector<32x128xi1>, vector<32x128xf32>
    %cst_311 = arith.constant 0.000000e+00 : f32
    %896 = vector.broadcast %cst_311 : f32 to vector<32x1xf32>
    %897 = vector.extract_strided_slice %871 {offsets = [0, 0], sizes = [32, 127], strides = [1, 1]} : vector<32x128xf32> to vector<32x127xf32>
    %898 = tpu.concatenate %896, %897 in 1 : vector<32x1xf32>, vector<32x127xf32> -> vector<32x128xf32>
    %cst_312 = arith.constant 0.000000e+00 : f32
    %899 = vector.shape_cast %248 : vector<1x128xi1> to vector<1x128xi1>
    %900 = vector.broadcast %899 : vector<1x128xi1> to vector<32x128xi1>
    %901 = vector.broadcast %cst_312 : f32 to vector<32x128xf32>
    %902 = arith.select %900, %898, %901 : vector<32x128xi1>, vector<32x128xf32>
    %903 = vector.extract_strided_slice %871 {offsets = [0, 1], sizes = [32, 127], strides = [1, 1]} : vector<32x128xf32> to vector<32x127xf32>
    %cst_313 = arith.constant 0.000000e+00 : f32
    %904 = vector.broadcast %cst_313 : f32 to vector<32x1xf32>
    %905 = tpu.concatenate %903, %904 in 1 : vector<32x127xf32>, vector<32x1xf32> -> vector<32x128xf32>
    %cst_314 = arith.constant 0.000000e+00 : f32
    %906 = vector.shape_cast %267 : vector<1x128xi1> to vector<1x128xi1>
    %907 = vector.broadcast %906 : vector<1x128xi1> to vector<32x128xi1>
    %908 = vector.broadcast %cst_314 : f32 to vector<32x128xf32>
    %909 = arith.select %907, %905, %908 : vector<32x128xi1>, vector<32x128xf32>
    %910 = vector.extract_strided_slice %871 {offsets = [0, 7], sizes = [32, 121], strides = [1, 1]} : vector<32x128xf32> to vector<32x121xf32>
    %cst_315 = arith.constant 0.000000e+00 : f32
    %911 = vector.broadcast %cst_315 : f32 to vector<32x7xf32>
    %912 = tpu.concatenate %910, %911 in 1 : vector<32x121xf32>, vector<32x7xf32> -> vector<32x128xf32>
    %cst_316 = arith.constant 0.000000e+00 : f32
    %913 = vector.shape_cast %286 : vector<1x128xi1> to vector<1x128xi1>
    %914 = vector.broadcast %913 : vector<1x128xi1> to vector<32x128xi1>
    %915 = vector.broadcast %cst_316 : f32 to vector<32x128xf32>
    %916 = arith.select %914, %912, %915 : vector<32x128xi1>, vector<32x128xf32>
    %917 = vector.extract_strided_slice %871 {offsets = [0, 8], sizes = [32, 120], strides = [1, 1]} : vector<32x128xf32> to vector<32x120xf32>
    %cst_317 = arith.constant 0.000000e+00 : f32
    %918 = vector.broadcast %cst_317 : f32 to vector<32x8xf32>
    %919 = tpu.concatenate %917, %918 in 1 : vector<32x120xf32>, vector<32x8xf32> -> vector<32x128xf32>
    %cst_318 = arith.constant 0.000000e+00 : f32
    %920 = vector.shape_cast %305 : vector<1x128xi1> to vector<1x128xi1>
    %921 = vector.broadcast %920 : vector<1x128xi1> to vector<32x128xi1>
    %922 = vector.broadcast %cst_318 : f32 to vector<32x128xf32>
    %923 = arith.select %921, %919, %922 : vector<32x128xi1>, vector<32x128xf32>
    %924 = vector.extract_strided_slice %871 {offsets = [0, 9], sizes = [32, 119], strides = [1, 1]} : vector<32x128xf32> to vector<32x119xf32>
    %cst_319 = arith.constant 0.000000e+00 : f32
    %925 = vector.broadcast %cst_319 : f32 to vector<32x9xf32>
    %926 = tpu.concatenate %924, %925 in 1 : vector<32x119xf32>, vector<32x9xf32> -> vector<32x128xf32>
    %cst_320 = arith.constant 0.000000e+00 : f32
    %927 = vector.shape_cast %324 : vector<1x128xi1> to vector<1x128xi1>
    %928 = vector.broadcast %927 : vector<1x128xi1> to vector<32x128xi1>
    %929 = vector.broadcast %cst_320 : f32 to vector<32x128xf32>
    %930 = arith.select %928, %926, %929 : vector<32x128xi1>, vector<32x128xf32>
    %931 = tpu.concatenate %881, %888, %895, %902, %871, %909, %916, %923, %930 in 0 : vector<32x128xf32>, vector<32x128xf32>, vector<32x128xf32>, vector<32x128xf32>, vector<32x128xf32>, vector<32x128xf32>, vector<32x128xf32>, vector<32x128xf32>, vector<32x128xf32> -> vector<288x128xf32>
    %cst_321 = arith.constant dense<0.000000e+00> : vector<16x128xf32>
    %932 = tpu.matmul %872, %931, %cst_321 {dimension_numbers = #tpu.dot_dimension_numbers<[1], [0], [0], [1], [0, 0, 1, 1], [], []>} : vector<16x288xf32>, vector<288x128xf32>, vector<16x128xf32> -> vector<16x128xf32>
    %933 = arith.mulf %932, %932 : vector<16x128xf32>
    %934 = tpu.concatenate %932, %933 in 0 : vector<16x128xf32>, vector<16x128xf32> -> vector<32x128xf32>
    %cst_322 = arith.constant dense<0.000000e+00> : vector<32xf32>
    %935 = vector.multi_reduction <add>, %934, %cst_322 [1] : vector<32x128xf32> to vector<32xf32>
    %936 = vector.shape_cast %935 : vector<32xf32> to vector<32x1xf32>
    %cst_323 = arith.constant 7.812500e-03 : f32
    %937 = vector.broadcast %cst_323 : f32 to vector<32x1xf32>
    %938 = arith.mulf %936, %937 : vector<32x1xf32>
    %939 = vector.extract_strided_slice %938 {offsets = [0, 0], sizes = [16, 1], strides = [1, 1]} : vector<32x1xf32> to vector<16x1xf32>
    %940 = vector.extract_strided_slice %938 {offsets = [16, 0], sizes = [16, 1], strides = [1, 1]} : vector<32x1xf32> to vector<16x1xf32>
    %941 = arith.mulf %939, %939 : vector<16x1xf32>
    %942 = arith.subf %940, %941 : vector<16x1xf32>
    %cst_324 = arith.constant 0.000000e+00 : f32
    %943 = vector.broadcast %cst_324 : f32 to vector<16x1xf32>
    %944 = arith.maximumf %942, %943 : vector<16x1xf32>
    %cst_325 = arith.constant 9.99999974E-6 : f32
    %945 = vector.broadcast %cst_325 : f32 to vector<16x1xf32>
    %946 = arith.addf %944, %945 : vector<16x1xf32>
    %947 = math.rsqrt %946 : vector<16x1xf32>
    %948 = arith.mulf %873, %947 : vector<16x1xf32>
    %949 = vector.broadcast %939 : vector<16x1xf32> to vector<16x128xf32>
    %950 = arith.subf %932, %949 : vector<16x128xf32>
    %951 = vector.broadcast %948 : vector<16x1xf32> to vector<16x128xf32>
    %952 = arith.mulf %950, %951 : vector<16x128xf32>
    %953 = vector.broadcast %874 : vector<16x1xf32> to vector<16x128xf32>
    %954 = arith.addf %952, %953 : vector<16x128xf32>
    %cst_326 = arith.constant 0.000000e+00 : f32
    %955 = vector.broadcast %cst_326 : f32 to vector<16x128xf32>
    %956 = arith.maximumf %954, %955 : vector<16x128xf32>
    %957 = tpu.concatenate %956, %870 in 0 : vector<16x128xf32>, vector<16x128xf32> -> vector<32x128xf32>
    %958 = vector.extract_strided_slice %1 {offsets = [104, 0], sizes = [16, 288], strides = [1, 1]} : vector<160x288xf32> to vector<16x288xf32>
    %959 = vector.extract_strided_slice %2 {offsets = [0, 10], sizes = [16, 1], strides = [1, 1]} : vector<32x21xf32> to vector<16x1xf32>
    %960 = vector.extract_strided_slice %2 {offsets = [0, 11], sizes = [16, 1], strides = [1, 1]} : vector<32x21xf32> to vector<16x1xf32>
    %cst_327 = arith.constant 0.000000e+00 : f32
    %961 = vector.broadcast %cst_327 : f32 to vector<32x9xf32>
    %962 = vector.extract_strided_slice %957 {offsets = [0, 0], sizes = [32, 119], strides = [1, 1]} : vector<32x128xf32> to vector<32x119xf32>
    %963 = tpu.concatenate %961, %962 in 1 : vector<32x9xf32>, vector<32x119xf32> -> vector<32x128xf32>
    %cst_328 = arith.constant 0.000000e+00 : f32
    %964 = vector.shape_cast %191 : vector<1x128xi1> to vector<1x128xi1>
    %965 = vector.broadcast %964 : vector<1x128xi1> to vector<32x128xi1>
    %966 = vector.broadcast %cst_328 : f32 to vector<32x128xf32>
    %967 = arith.select %965, %963, %966 : vector<32x128xi1>, vector<32x128xf32>
    %cst_329 = arith.constant 0.000000e+00 : f32
    %968 = vector.broadcast %cst_329 : f32 to vector<32x8xf32>
    %969 = vector.extract_strided_slice %957 {offsets = [0, 0], sizes = [32, 120], strides = [1, 1]} : vector<32x128xf32> to vector<32x120xf32>
    %970 = tpu.concatenate %968, %969 in 1 : vector<32x8xf32>, vector<32x120xf32> -> vector<32x128xf32>
    %cst_330 = arith.constant 0.000000e+00 : f32
    %971 = vector.shape_cast %210 : vector<1x128xi1> to vector<1x128xi1>
    %972 = vector.broadcast %971 : vector<1x128xi1> to vector<32x128xi1>
    %973 = vector.broadcast %cst_330 : f32 to vector<32x128xf32>
    %974 = arith.select %972, %970, %973 : vector<32x128xi1>, vector<32x128xf32>
    %cst_331 = arith.constant 0.000000e+00 : f32
    %975 = vector.broadcast %cst_331 : f32 to vector<32x7xf32>
    %976 = vector.extract_strided_slice %957 {offsets = [0, 0], sizes = [32, 121], strides = [1, 1]} : vector<32x128xf32> to vector<32x121xf32>
    %977 = tpu.concatenate %975, %976 in 1 : vector<32x7xf32>, vector<32x121xf32> -> vector<32x128xf32>
    %cst_332 = arith.constant 0.000000e+00 : f32
    %978 = vector.shape_cast %229 : vector<1x128xi1> to vector<1x128xi1>
    %979 = vector.broadcast %978 : vector<1x128xi1> to vector<32x128xi1>
    %980 = vector.broadcast %cst_332 : f32 to vector<32x128xf32>
    %981 = arith.select %979, %977, %980 : vector<32x128xi1>, vector<32x128xf32>
    %cst_333 = arith.constant 0.000000e+00 : f32
    %982 = vector.broadcast %cst_333 : f32 to vector<32x1xf32>
    %983 = vector.extract_strided_slice %957 {offsets = [0, 0], sizes = [32, 127], strides = [1, 1]} : vector<32x128xf32> to vector<32x127xf32>
    %984 = tpu.concatenate %982, %983 in 1 : vector<32x1xf32>, vector<32x127xf32> -> vector<32x128xf32>
    %cst_334 = arith.constant 0.000000e+00 : f32
    %985 = vector.shape_cast %248 : vector<1x128xi1> to vector<1x128xi1>
    %986 = vector.broadcast %985 : vector<1x128xi1> to vector<32x128xi1>
    %987 = vector.broadcast %cst_334 : f32 to vector<32x128xf32>
    %988 = arith.select %986, %984, %987 : vector<32x128xi1>, vector<32x128xf32>
    %989 = vector.extract_strided_slice %957 {offsets = [0, 1], sizes = [32, 127], strides = [1, 1]} : vector<32x128xf32> to vector<32x127xf32>
    %cst_335 = arith.constant 0.000000e+00 : f32
    %990 = vector.broadcast %cst_335 : f32 to vector<32x1xf32>
    %991 = tpu.concatenate %989, %990 in 1 : vector<32x127xf32>, vector<32x1xf32> -> vector<32x128xf32>
    %cst_336 = arith.constant 0.000000e+00 : f32
    %992 = vector.shape_cast %267 : vector<1x128xi1> to vector<1x128xi1>
    %993 = vector.broadcast %992 : vector<1x128xi1> to vector<32x128xi1>
    %994 = vector.broadcast %cst_336 : f32 to vector<32x128xf32>
    %995 = arith.select %993, %991, %994 : vector<32x128xi1>, vector<32x128xf32>
    %996 = vector.extract_strided_slice %957 {offsets = [0, 7], sizes = [32, 121], strides = [1, 1]} : vector<32x128xf32> to vector<32x121xf32>
    %cst_337 = arith.constant 0.000000e+00 : f32
    %997 = vector.broadcast %cst_337 : f32 to vector<32x7xf32>
    %998 = tpu.concatenate %996, %997 in 1 : vector<32x121xf32>, vector<32x7xf32> -> vector<32x128xf32>
    %cst_338 = arith.constant 0.000000e+00 : f32
    %999 = vector.shape_cast %286 : vector<1x128xi1> to vector<1x128xi1>
    %1000 = vector.broadcast %999 : vector<1x128xi1> to vector<32x128xi1>
    %1001 = vector.broadcast %cst_338 : f32 to vector<32x128xf32>
    %1002 = arith.select %1000, %998, %1001 : vector<32x128xi1>, vector<32x128xf32>
    %1003 = vector.extract_strided_slice %957 {offsets = [0, 8], sizes = [32, 120], strides = [1, 1]} : vector<32x128xf32> to vector<32x120xf32>
    %cst_339 = arith.constant 0.000000e+00 : f32
    %1004 = vector.broadcast %cst_339 : f32 to vector<32x8xf32>
    %1005 = tpu.concatenate %1003, %1004 in 1 : vector<32x120xf32>, vector<32x8xf32> -> vector<32x128xf32>
    %cst_340 = arith.constant 0.000000e+00 : f32
    %1006 = vector.shape_cast %305 : vector<1x128xi1> to vector<1x128xi1>
    %1007 = vector.broadcast %1006 : vector<1x128xi1> to vector<32x128xi1>
    %1008 = vector.broadcast %cst_340 : f32 to vector<32x128xf32>
    %1009 = arith.select %1007, %1005, %1008 : vector<32x128xi1>, vector<32x128xf32>
    %1010 = vector.extract_strided_slice %957 {offsets = [0, 9], sizes = [32, 119], strides = [1, 1]} : vector<32x128xf32> to vector<32x119xf32>
    %cst_341 = arith.constant 0.000000e+00 : f32
    %1011 = vector.broadcast %cst_341 : f32 to vector<32x9xf32>
    %1012 = tpu.concatenate %1010, %1011 in 1 : vector<32x119xf32>, vector<32x9xf32> -> vector<32x128xf32>
    %cst_342 = arith.constant 0.000000e+00 : f32
    %1013 = vector.shape_cast %324 : vector<1x128xi1> to vector<1x128xi1>
    %1014 = vector.broadcast %1013 : vector<1x128xi1> to vector<32x128xi1>
    %1015 = vector.broadcast %cst_342 : f32 to vector<32x128xf32>
    %1016 = arith.select %1014, %1012, %1015 : vector<32x128xi1>, vector<32x128xf32>
    %1017 = tpu.concatenate %967, %974, %981, %988, %957, %995, %1002, %1009, %1016 in 0 : vector<32x128xf32>, vector<32x128xf32>, vector<32x128xf32>, vector<32x128xf32>, vector<32x128xf32>, vector<32x128xf32>, vector<32x128xf32>, vector<32x128xf32>, vector<32x128xf32> -> vector<288x128xf32>
    %cst_343 = arith.constant dense<0.000000e+00> : vector<16x128xf32>
    %1018 = tpu.matmul %958, %1017, %cst_343 {dimension_numbers = #tpu.dot_dimension_numbers<[1], [0], [0], [1], [0, 0, 1, 1], [], []>} : vector<16x288xf32>, vector<288x128xf32>, vector<16x128xf32> -> vector<16x128xf32>
    %1019 = arith.mulf %1018, %1018 : vector<16x128xf32>
    %1020 = tpu.concatenate %1018, %1019 in 0 : vector<16x128xf32>, vector<16x128xf32> -> vector<32x128xf32>
    %cst_344 = arith.constant dense<0.000000e+00> : vector<32xf32>
    %1021 = vector.multi_reduction <add>, %1020, %cst_344 [1] : vector<32x128xf32> to vector<32xf32>
    %1022 = vector.shape_cast %1021 : vector<32xf32> to vector<32x1xf32>
    %cst_345 = arith.constant 7.812500e-03 : f32
    %1023 = vector.broadcast %cst_345 : f32 to vector<32x1xf32>
    %1024 = arith.mulf %1022, %1023 : vector<32x1xf32>
    %1025 = vector.extract_strided_slice %1024 {offsets = [0, 0], sizes = [16, 1], strides = [1, 1]} : vector<32x1xf32> to vector<16x1xf32>
    %1026 = vector.extract_strided_slice %1024 {offsets = [16, 0], sizes = [16, 1], strides = [1, 1]} : vector<32x1xf32> to vector<16x1xf32>
    %1027 = arith.mulf %1025, %1025 : vector<16x1xf32>
    %1028 = arith.subf %1026, %1027 : vector<16x1xf32>
    %cst_346 = arith.constant 0.000000e+00 : f32
    %1029 = vector.broadcast %cst_346 : f32 to vector<16x1xf32>
    %1030 = arith.maximumf %1028, %1029 : vector<16x1xf32>
    %cst_347 = arith.constant 9.99999974E-6 : f32
    %1031 = vector.broadcast %cst_347 : f32 to vector<16x1xf32>
    %1032 = arith.addf %1030, %1031 : vector<16x1xf32>
    %1033 = math.rsqrt %1032 : vector<16x1xf32>
    %1034 = arith.mulf %959, %1033 : vector<16x1xf32>
    %1035 = vector.broadcast %1025 : vector<16x1xf32> to vector<16x128xf32>
    %1036 = arith.subf %1018, %1035 : vector<16x128xf32>
    %1037 = vector.broadcast %1034 : vector<16x1xf32> to vector<16x128xf32>
    %1038 = arith.mulf %1036, %1037 : vector<16x128xf32>
    %1039 = vector.broadcast %960 : vector<16x1xf32> to vector<16x128xf32>
    %1040 = arith.addf %1038, %1039 : vector<16x128xf32>
    %cst_348 = arith.constant 0.000000e+00 : f32
    %1041 = vector.broadcast %cst_348 : f32 to vector<16x128xf32>
    %1042 = arith.maximumf %1040, %1041 : vector<16x128xf32>
    %cst_349 = arith.constant dense<0.000000e+00> : vector<32x512xf32>
    %1043 = tpu.matmul %850, %6, %cst_349 {dimension_numbers = #tpu.dot_dimension_numbers<[1], [0], [0], [1], [0, 0, 1, 1], [], []>} : vector<32x128xf32>, vector<128x512xf32>, vector<32x512xf32> -> vector<32x512xf32>
    %1044 = vector.extract_strided_slice %1 {offsets = [144, 0], sizes = [4, 40], strides = [1, 1]} : vector<160x288xf32> to vector<4x40xf32>
    %1045 = vector.extract_strided_slice %2 {offsets = [0, 18], sizes = [4, 1], strides = [1, 1]} : vector<32x21xf32> to vector<4x1xf32>
    %1046 = vector.extract_strided_slice %2 {offsets = [0, 19], sizes = [1, 1], strides = [1, 1]} : vector<32x21xf32> to vector<1x1xf32>
    %1047 = tpu.concatenate %568, %1043 in 0 : vector<8x512xf32>, vector<32x512xf32> -> vector<40x512xf32>
    %cst_350 = arith.constant dense<0.000000e+00> : vector<4x512xf32>
    %1048 = tpu.matmul %1044, %1047, %cst_350 {dimension_numbers = #tpu.dot_dimension_numbers<[1], [0], [0], [1], [0, 0, 1, 1], [], []>} : vector<4x40xf32>, vector<40x512xf32>, vector<4x512xf32> -> vector<4x512xf32>
    %cst_351 = arith.constant 0.000000e+00 : f32
    %1049 = vector.broadcast %cst_351 : f32 to vector<4x512xf32>
    %1050 = arith.maximumf %1048, %1049 : vector<4x512xf32>
    %1051 = vector.broadcast %1045 : vector<4x1xf32> to vector<4x512xf32>
    %1052 = arith.mulf %1051, %1050 : vector<4x512xf32>
    %cst_352 = arith.constant dense<0.000000e+00> : vector<512xf32>
    %1053 = vector.multi_reduction <add>, %1052, %cst_352 [0] : vector<4x512xf32> to vector<512xf32>
    %1054 = vector.shape_cast %1053 : vector<512xf32> to vector<1x512xf32>
    %1055 = vector.broadcast %1046 : vector<1x1xf32> to vector<1x512xf32>
    %1056 = arith.addf %1054, %1055 : vector<1x512xf32>
    %1057 = arith.negf %1056 : vector<1x512xf32>
    %1058 = math.exp %1057 : vector<1x512xf32>
    %cst_353 = arith.constant 1.000000e+00 : f32
    %1059 = vector.broadcast %cst_353 : f32 to vector<1x512xf32>
    %1060 = arith.addf %1059, %1058 : vector<1x512xf32>
    %1061 = arith.divf %1059, %1060 : vector<1x512xf32>
    %1062 = vector.broadcast %1061 : vector<1x512xf32> to vector<8x512xf32>
    %1063 = arith.mulf %568, %1062 : vector<8x512xf32>
    %cst_354 = arith.constant dense<0.000000e+00> : vector<16x512xf32>
    %1064 = tpu.matmul %1042, %6, %cst_354 {dimension_numbers = #tpu.dot_dimension_numbers<[1], [0], [0], [1], [0, 0, 1, 1], [], []>} : vector<16x128xf32>, vector<128x512xf32>, vector<16x512xf32> -> vector<16x512xf32>
    %1065 = vector.extract_strided_slice %1 {offsets = [120, 0], sizes = [8, 144], strides = [1, 1]} : vector<160x288xf32> to vector<8x144xf32>
    %1066 = vector.extract_strided_slice %2 {offsets = [0, 12], sizes = [8, 1], strides = [1, 1]} : vector<32x21xf32> to vector<8x1xf32>
    %1067 = vector.extract_strided_slice %2 {offsets = [0, 13], sizes = [8, 1], strides = [1, 1]} : vector<32x21xf32> to vector<8x1xf32>
    %cst_355 = arith.constant 0.000000e+00 : f32
    %1068 = vector.broadcast %cst_355 : f32 to vector<16x17xf32>
    %1069 = vector.extract_strided_slice %1064 {offsets = [0, 0], sizes = [16, 495], strides = [1, 1]} : vector<16x512xf32> to vector<16x495xf32>
    %1070 = tpu.concatenate %1068, %1069 in 1 : vector<16x17xf32>, vector<16x495xf32> -> vector<16x512xf32>
    %cst_356 = arith.constant 0.000000e+00 : f32
    %1071 = vector.shape_cast %32 : vector<1x512xi1> to vector<1x512xi1>
    %1072 = vector.broadcast %1071 : vector<1x512xi1> to vector<16x512xi1>
    %1073 = vector.broadcast %cst_356 : f32 to vector<16x512xf32>
    %1074 = arith.select %1072, %1070, %1073 : vector<16x512xi1>, vector<16x512xf32>
    %cst_357 = arith.constant 0.000000e+00 : f32
    %1075 = vector.broadcast %cst_357 : f32 to vector<16x16xf32>
    %1076 = vector.extract_strided_slice %1064 {offsets = [0, 0], sizes = [16, 496], strides = [1, 1]} : vector<16x512xf32> to vector<16x496xf32>
    %1077 = tpu.concatenate %1075, %1076 in 1 : vector<16x16xf32>, vector<16x496xf32> -> vector<16x512xf32>
    %cst_358 = arith.constant 0.000000e+00 : f32
    %1078 = vector.shape_cast %51 : vector<1x512xi1> to vector<1x512xi1>
    %1079 = vector.broadcast %1078 : vector<1x512xi1> to vector<16x512xi1>
    %1080 = vector.broadcast %cst_358 : f32 to vector<16x512xf32>
    %1081 = arith.select %1079, %1077, %1080 : vector<16x512xi1>, vector<16x512xf32>
    %cst_359 = arith.constant 0.000000e+00 : f32
    %1082 = vector.broadcast %cst_359 : f32 to vector<16x15xf32>
    %1083 = vector.extract_strided_slice %1064 {offsets = [0, 0], sizes = [16, 497], strides = [1, 1]} : vector<16x512xf32> to vector<16x497xf32>
    %1084 = tpu.concatenate %1082, %1083 in 1 : vector<16x15xf32>, vector<16x497xf32> -> vector<16x512xf32>
    %cst_360 = arith.constant 0.000000e+00 : f32
    %1085 = vector.shape_cast %70 : vector<1x512xi1> to vector<1x512xi1>
    %1086 = vector.broadcast %1085 : vector<1x512xi1> to vector<16x512xi1>
    %1087 = vector.broadcast %cst_360 : f32 to vector<16x512xf32>
    %1088 = arith.select %1086, %1084, %1087 : vector<16x512xi1>, vector<16x512xf32>
    %cst_361 = arith.constant 0.000000e+00 : f32
    %1089 = vector.broadcast %cst_361 : f32 to vector<16x1xf32>
    %1090 = vector.extract_strided_slice %1064 {offsets = [0, 0], sizes = [16, 511], strides = [1, 1]} : vector<16x512xf32> to vector<16x511xf32>
    %1091 = tpu.concatenate %1089, %1090 in 1 : vector<16x1xf32>, vector<16x511xf32> -> vector<16x512xf32>
    %cst_362 = arith.constant 0.000000e+00 : f32
    %1092 = vector.shape_cast %89 : vector<1x512xi1> to vector<1x512xi1>
    %1093 = vector.broadcast %1092 : vector<1x512xi1> to vector<16x512xi1>
    %1094 = vector.broadcast %cst_362 : f32 to vector<16x512xf32>
    %1095 = arith.select %1093, %1091, %1094 : vector<16x512xi1>, vector<16x512xf32>
    %1096 = vector.extract_strided_slice %1064 {offsets = [0, 1], sizes = [16, 511], strides = [1, 1]} : vector<16x512xf32> to vector<16x511xf32>
    %cst_363 = arith.constant 0.000000e+00 : f32
    %1097 = vector.broadcast %cst_363 : f32 to vector<16x1xf32>
    %1098 = tpu.concatenate %1096, %1097 in 1 : vector<16x511xf32>, vector<16x1xf32> -> vector<16x512xf32>
    %cst_364 = arith.constant 0.000000e+00 : f32
    %1099 = vector.shape_cast %108 : vector<1x512xi1> to vector<1x512xi1>
    %1100 = vector.broadcast %1099 : vector<1x512xi1> to vector<16x512xi1>
    %1101 = vector.broadcast %cst_364 : f32 to vector<16x512xf32>
    %1102 = arith.select %1100, %1098, %1101 : vector<16x512xi1>, vector<16x512xf32>
    %1103 = vector.extract_strided_slice %1064 {offsets = [0, 15], sizes = [16, 497], strides = [1, 1]} : vector<16x512xf32> to vector<16x497xf32>
    %cst_365 = arith.constant 0.000000e+00 : f32
    %1104 = vector.broadcast %cst_365 : f32 to vector<16x15xf32>
    %1105 = tpu.concatenate %1103, %1104 in 1 : vector<16x497xf32>, vector<16x15xf32> -> vector<16x512xf32>
    %cst_366 = arith.constant 0.000000e+00 : f32
    %1106 = vector.shape_cast %127 : vector<1x512xi1> to vector<1x512xi1>
    %1107 = vector.broadcast %1106 : vector<1x512xi1> to vector<16x512xi1>
    %1108 = vector.broadcast %cst_366 : f32 to vector<16x512xf32>
    %1109 = arith.select %1107, %1105, %1108 : vector<16x512xi1>, vector<16x512xf32>
    %1110 = vector.extract_strided_slice %1064 {offsets = [0, 16], sizes = [16, 496], strides = [1, 1]} : vector<16x512xf32> to vector<16x496xf32>
    %cst_367 = arith.constant 0.000000e+00 : f32
    %1111 = vector.broadcast %cst_367 : f32 to vector<16x16xf32>
    %1112 = tpu.concatenate %1110, %1111 in 1 : vector<16x496xf32>, vector<16x16xf32> -> vector<16x512xf32>
    %cst_368 = arith.constant 0.000000e+00 : f32
    %1113 = vector.shape_cast %146 : vector<1x512xi1> to vector<1x512xi1>
    %1114 = vector.broadcast %1113 : vector<1x512xi1> to vector<16x512xi1>
    %1115 = vector.broadcast %cst_368 : f32 to vector<16x512xf32>
    %1116 = arith.select %1114, %1112, %1115 : vector<16x512xi1>, vector<16x512xf32>
    %1117 = vector.extract_strided_slice %1064 {offsets = [0, 17], sizes = [16, 495], strides = [1, 1]} : vector<16x512xf32> to vector<16x495xf32>
    %cst_369 = arith.constant 0.000000e+00 : f32
    %1118 = vector.broadcast %cst_369 : f32 to vector<16x17xf32>
    %1119 = tpu.concatenate %1117, %1118 in 1 : vector<16x495xf32>, vector<16x17xf32> -> vector<16x512xf32>
    %cst_370 = arith.constant 0.000000e+00 : f32
    %1120 = vector.shape_cast %165 : vector<1x512xi1> to vector<1x512xi1>
    %1121 = vector.broadcast %1120 : vector<1x512xi1> to vector<16x512xi1>
    %1122 = vector.broadcast %cst_370 : f32 to vector<16x512xf32>
    %1123 = arith.select %1121, %1119, %1122 : vector<16x512xi1>, vector<16x512xf32>
    %1124 = tpu.concatenate %1074, %1081, %1088, %1095, %1064, %1102, %1109, %1116, %1123 in 0 : vector<16x512xf32>, vector<16x512xf32>, vector<16x512xf32>, vector<16x512xf32>, vector<16x512xf32>, vector<16x512xf32>, vector<16x512xf32>, vector<16x512xf32>, vector<16x512xf32> -> vector<144x512xf32>
    %cst_371 = arith.constant dense<0.000000e+00> : vector<8x512xf32>
    %1125 = tpu.matmul %1065, %1124, %cst_371 {dimension_numbers = #tpu.dot_dimension_numbers<[1], [0], [0], [1], [0, 0, 1, 1], [], []>} : vector<8x144xf32>, vector<144x512xf32>, vector<8x512xf32> -> vector<8x512xf32>
    %1126 = arith.mulf %1125, %1125 : vector<8x512xf32>
    %1127 = tpu.concatenate %1125, %1126 in 0 : vector<8x512xf32>, vector<8x512xf32> -> vector<16x512xf32>
    %cst_372 = arith.constant dense<0.000000e+00> : vector<16xf32>
    %1128 = vector.multi_reduction <add>, %1127, %cst_372 [1] : vector<16x512xf32> to vector<16xf32>
    %1129 = vector.shape_cast %1128 : vector<16xf32> to vector<16x1xf32>
    %cst_373 = arith.constant 0.001953125 : f32
    %1130 = vector.broadcast %cst_373 : f32 to vector<16x1xf32>
    %1131 = arith.mulf %1129, %1130 : vector<16x1xf32>
    %1132 = vector.extract_strided_slice %1131 {offsets = [0, 0], sizes = [8, 1], strides = [1, 1]} : vector<16x1xf32> to vector<8x1xf32>
    %1133 = vector.extract_strided_slice %1131 {offsets = [8, 0], sizes = [8, 1], strides = [1, 1]} : vector<16x1xf32> to vector<8x1xf32>
    %1134 = arith.mulf %1132, %1132 : vector<8x1xf32>
    %1135 = arith.subf %1133, %1134 : vector<8x1xf32>
    %cst_374 = arith.constant 0.000000e+00 : f32
    %1136 = vector.broadcast %cst_374 : f32 to vector<8x1xf32>
    %1137 = arith.maximumf %1135, %1136 : vector<8x1xf32>
    %cst_375 = arith.constant 9.99999974E-6 : f32
    %1138 = vector.broadcast %cst_375 : f32 to vector<8x1xf32>
    %1139 = arith.addf %1137, %1138 : vector<8x1xf32>
    %1140 = math.rsqrt %1139 : vector<8x1xf32>
    %1141 = arith.mulf %1066, %1140 : vector<8x1xf32>
    %1142 = vector.broadcast %1132 : vector<8x1xf32> to vector<8x512xf32>
    %1143 = arith.subf %1125, %1142 : vector<8x512xf32>
    %1144 = vector.broadcast %1141 : vector<8x1xf32> to vector<8x512xf32>
    %1145 = arith.mulf %1143, %1144 : vector<8x512xf32>
    %1146 = vector.broadcast %1067 : vector<8x1xf32> to vector<8x512xf32>
    %1147 = arith.addf %1145, %1146 : vector<8x512xf32>
    %cst_376 = arith.constant 0.000000e+00 : f32
    %1148 = vector.broadcast %cst_376 : f32 to vector<8x512xf32>
    %1149 = arith.maximumf %1147, %1148 : vector<8x512xf32>
    %1150 = tpu.concatenate %1149, %1063 in 0 : vector<8x512xf32>, vector<8x512xf32> -> vector<16x512xf32>
    %1151 = vector.extract_strided_slice %1 {offsets = [128, 0], sizes = [8, 144], strides = [1, 1]} : vector<160x288xf32> to vector<8x144xf32>
    %1152 = vector.extract_strided_slice %2 {offsets = [0, 14], sizes = [8, 1], strides = [1, 1]} : vector<32x21xf32> to vector<8x1xf32>
    %1153 = vector.extract_strided_slice %2 {offsets = [0, 15], sizes = [8, 1], strides = [1, 1]} : vector<32x21xf32> to vector<8x1xf32>
    %cst_377 = arith.constant 0.000000e+00 : f32
    %1154 = vector.broadcast %cst_377 : f32 to vector<16x17xf32>
    %1155 = vector.extract_strided_slice %1150 {offsets = [0, 0], sizes = [16, 495], strides = [1, 1]} : vector<16x512xf32> to vector<16x495xf32>
    %1156 = tpu.concatenate %1154, %1155 in 1 : vector<16x17xf32>, vector<16x495xf32> -> vector<16x512xf32>
    %cst_378 = arith.constant 0.000000e+00 : f32
    %1157 = vector.shape_cast %32 : vector<1x512xi1> to vector<1x512xi1>
    %1158 = vector.broadcast %1157 : vector<1x512xi1> to vector<16x512xi1>
    %1159 = vector.broadcast %cst_378 : f32 to vector<16x512xf32>
    %1160 = arith.select %1158, %1156, %1159 : vector<16x512xi1>, vector<16x512xf32>
    %cst_379 = arith.constant 0.000000e+00 : f32
    %1161 = vector.broadcast %cst_379 : f32 to vector<16x16xf32>
    %1162 = vector.extract_strided_slice %1150 {offsets = [0, 0], sizes = [16, 496], strides = [1, 1]} : vector<16x512xf32> to vector<16x496xf32>
    %1163 = tpu.concatenate %1161, %1162 in 1 : vector<16x16xf32>, vector<16x496xf32> -> vector<16x512xf32>
    %cst_380 = arith.constant 0.000000e+00 : f32
    %1164 = vector.shape_cast %51 : vector<1x512xi1> to vector<1x512xi1>
    %1165 = vector.broadcast %1164 : vector<1x512xi1> to vector<16x512xi1>
    %1166 = vector.broadcast %cst_380 : f32 to vector<16x512xf32>
    %1167 = arith.select %1165, %1163, %1166 : vector<16x512xi1>, vector<16x512xf32>
    %cst_381 = arith.constant 0.000000e+00 : f32
    %1168 = vector.broadcast %cst_381 : f32 to vector<16x15xf32>
    %1169 = vector.extract_strided_slice %1150 {offsets = [0, 0], sizes = [16, 497], strides = [1, 1]} : vector<16x512xf32> to vector<16x497xf32>
    %1170 = tpu.concatenate %1168, %1169 in 1 : vector<16x15xf32>, vector<16x497xf32> -> vector<16x512xf32>
    %cst_382 = arith.constant 0.000000e+00 : f32
    %1171 = vector.shape_cast %70 : vector<1x512xi1> to vector<1x512xi1>
    %1172 = vector.broadcast %1171 : vector<1x512xi1> to vector<16x512xi1>
    %1173 = vector.broadcast %cst_382 : f32 to vector<16x512xf32>
    %1174 = arith.select %1172, %1170, %1173 : vector<16x512xi1>, vector<16x512xf32>
    %cst_383 = arith.constant 0.000000e+00 : f32
    %1175 = vector.broadcast %cst_383 : f32 to vector<16x1xf32>
    %1176 = vector.extract_strided_slice %1150 {offsets = [0, 0], sizes = [16, 511], strides = [1, 1]} : vector<16x512xf32> to vector<16x511xf32>
    %1177 = tpu.concatenate %1175, %1176 in 1 : vector<16x1xf32>, vector<16x511xf32> -> vector<16x512xf32>
    %cst_384 = arith.constant 0.000000e+00 : f32
    %1178 = vector.shape_cast %89 : vector<1x512xi1> to vector<1x512xi1>
    %1179 = vector.broadcast %1178 : vector<1x512xi1> to vector<16x512xi1>
    %1180 = vector.broadcast %cst_384 : f32 to vector<16x512xf32>
    %1181 = arith.select %1179, %1177, %1180 : vector<16x512xi1>, vector<16x512xf32>
    %1182 = vector.extract_strided_slice %1150 {offsets = [0, 1], sizes = [16, 511], strides = [1, 1]} : vector<16x512xf32> to vector<16x511xf32>
    %cst_385 = arith.constant 0.000000e+00 : f32
    %1183 = vector.broadcast %cst_385 : f32 to vector<16x1xf32>
    %1184 = tpu.concatenate %1182, %1183 in 1 : vector<16x511xf32>, vector<16x1xf32> -> vector<16x512xf32>
    %cst_386 = arith.constant 0.000000e+00 : f32
    %1185 = vector.shape_cast %108 : vector<1x512xi1> to vector<1x512xi1>
    %1186 = vector.broadcast %1185 : vector<1x512xi1> to vector<16x512xi1>
    %1187 = vector.broadcast %cst_386 : f32 to vector<16x512xf32>
    %1188 = arith.select %1186, %1184, %1187 : vector<16x512xi1>, vector<16x512xf32>
    %1189 = vector.extract_strided_slice %1150 {offsets = [0, 15], sizes = [16, 497], strides = [1, 1]} : vector<16x512xf32> to vector<16x497xf32>
    %cst_387 = arith.constant 0.000000e+00 : f32
    %1190 = vector.broadcast %cst_387 : f32 to vector<16x15xf32>
    %1191 = tpu.concatenate %1189, %1190 in 1 : vector<16x497xf32>, vector<16x15xf32> -> vector<16x512xf32>
    %cst_388 = arith.constant 0.000000e+00 : f32
    %1192 = vector.shape_cast %127 : vector<1x512xi1> to vector<1x512xi1>
    %1193 = vector.broadcast %1192 : vector<1x512xi1> to vector<16x512xi1>
    %1194 = vector.broadcast %cst_388 : f32 to vector<16x512xf32>
    %1195 = arith.select %1193, %1191, %1194 : vector<16x512xi1>, vector<16x512xf32>
    %1196 = vector.extract_strided_slice %1150 {offsets = [0, 16], sizes = [16, 496], strides = [1, 1]} : vector<16x512xf32> to vector<16x496xf32>
    %cst_389 = arith.constant 0.000000e+00 : f32
    %1197 = vector.broadcast %cst_389 : f32 to vector<16x16xf32>
    %1198 = tpu.concatenate %1196, %1197 in 1 : vector<16x496xf32>, vector<16x16xf32> -> vector<16x512xf32>
    %cst_390 = arith.constant 0.000000e+00 : f32
    %1199 = vector.shape_cast %146 : vector<1x512xi1> to vector<1x512xi1>
    %1200 = vector.broadcast %1199 : vector<1x512xi1> to vector<16x512xi1>
    %1201 = vector.broadcast %cst_390 : f32 to vector<16x512xf32>
    %1202 = arith.select %1200, %1198, %1201 : vector<16x512xi1>, vector<16x512xf32>
    %1203 = vector.extract_strided_slice %1150 {offsets = [0, 17], sizes = [16, 495], strides = [1, 1]} : vector<16x512xf32> to vector<16x495xf32>
    %cst_391 = arith.constant 0.000000e+00 : f32
    %1204 = vector.broadcast %cst_391 : f32 to vector<16x17xf32>
    %1205 = tpu.concatenate %1203, %1204 in 1 : vector<16x495xf32>, vector<16x17xf32> -> vector<16x512xf32>
    %cst_392 = arith.constant 0.000000e+00 : f32
    %1206 = vector.shape_cast %165 : vector<1x512xi1> to vector<1x512xi1>
    %1207 = vector.broadcast %1206 : vector<1x512xi1> to vector<16x512xi1>
    %1208 = vector.broadcast %cst_392 : f32 to vector<16x512xf32>
    %1209 = arith.select %1207, %1205, %1208 : vector<16x512xi1>, vector<16x512xf32>
    %1210 = tpu.concatenate %1160, %1167, %1174, %1181, %1150, %1188, %1195, %1202, %1209 in 0 : vector<16x512xf32>, vector<16x512xf32>, vector<16x512xf32>, vector<16x512xf32>, vector<16x512xf32>, vector<16x512xf32>, vector<16x512xf32>, vector<16x512xf32>, vector<16x512xf32> -> vector<144x512xf32>
    %cst_393 = arith.constant dense<0.000000e+00> : vector<8x512xf32>
    %1211 = tpu.matmul %1151, %1210, %cst_393 {dimension_numbers = #tpu.dot_dimension_numbers<[1], [0], [0], [1], [0, 0, 1, 1], [], []>} : vector<8x144xf32>, vector<144x512xf32>, vector<8x512xf32> -> vector<8x512xf32>
    %1212 = arith.mulf %1211, %1211 : vector<8x512xf32>
    %1213 = tpu.concatenate %1211, %1212 in 0 : vector<8x512xf32>, vector<8x512xf32> -> vector<16x512xf32>
    %cst_394 = arith.constant dense<0.000000e+00> : vector<16xf32>
    %1214 = vector.multi_reduction <add>, %1213, %cst_394 [1] : vector<16x512xf32> to vector<16xf32>
    %1215 = vector.shape_cast %1214 : vector<16xf32> to vector<16x1xf32>
    %cst_395 = arith.constant 0.001953125 : f32
    %1216 = vector.broadcast %cst_395 : f32 to vector<16x1xf32>
    %1217 = arith.mulf %1215, %1216 : vector<16x1xf32>
    %1218 = vector.extract_strided_slice %1217 {offsets = [0, 0], sizes = [8, 1], strides = [1, 1]} : vector<16x1xf32> to vector<8x1xf32>
    %1219 = vector.extract_strided_slice %1217 {offsets = [8, 0], sizes = [8, 1], strides = [1, 1]} : vector<16x1xf32> to vector<8x1xf32>
    %1220 = arith.mulf %1218, %1218 : vector<8x1xf32>
    %1221 = arith.subf %1219, %1220 : vector<8x1xf32>
    %cst_396 = arith.constant 0.000000e+00 : f32
    %1222 = vector.broadcast %cst_396 : f32 to vector<8x1xf32>
    %1223 = arith.maximumf %1221, %1222 : vector<8x1xf32>
    %cst_397 = arith.constant 9.99999974E-6 : f32
    %1224 = vector.broadcast %cst_397 : f32 to vector<8x1xf32>
    %1225 = arith.addf %1223, %1224 : vector<8x1xf32>
    %1226 = math.rsqrt %1225 : vector<8x1xf32>
    %1227 = arith.mulf %1152, %1226 : vector<8x1xf32>
    %1228 = vector.broadcast %1218 : vector<8x1xf32> to vector<8x512xf32>
    %1229 = arith.subf %1211, %1228 : vector<8x512xf32>
    %1230 = vector.broadcast %1227 : vector<8x1xf32> to vector<8x512xf32>
    %1231 = arith.mulf %1229, %1230 : vector<8x512xf32>
    %1232 = vector.broadcast %1153 : vector<8x1xf32> to vector<8x512xf32>
    %1233 = arith.addf %1231, %1232 : vector<8x512xf32>
    %cst_398 = arith.constant 0.000000e+00 : f32
    %1234 = vector.broadcast %cst_398 : f32 to vector<8x512xf32>
    %1235 = arith.maximumf %1233, %1234 : vector<8x512xf32>
    %1236 = vector.extract_strided_slice %1 {offsets = [152, 0], sizes = [3, 8], strides = [1, 1]} : vector<160x288xf32> to vector<3x8xf32>
    %cst_399 = arith.constant dense<0.000000e+00> : vector<3x512xf32>
    %1237 = tpu.matmul %1236, %1235, %cst_399 {dimension_numbers = #tpu.dot_dimension_numbers<[1], [0], [0], [1], [0, 0, 1, 1], [], []>} : vector<3x8xf32>, vector<8x512xf32>, vector<3x512xf32> -> vector<3x512xf32>
    %1238 = vector.extract_strided_slice %2 {offsets = [0, 20], sizes = [3, 1], strides = [1, 1]} : vector<32x21xf32> to vector<3x1xf32>
    %1239 = vector.broadcast %1238 : vector<3x1xf32> to vector<3x512xf32>
    %1240 = arith.addf %1237, %1239 : vector<3x512xf32>
    %c0_400 = arith.constant 0 : index
    %c0_401 = arith.constant 0 : index
    %1241 = vector.load %arg7[%c0_400, %c0_401] : memref<3x512xf32, #tpu.memory_space<vmem>>, vector<3x512xf32>
    tpu.vector_store %arg7[%c0_400, %c0_401], %1240 {strides = array<i32>} : memref<3x512xf32, #tpu.memory_space<vmem>>, vector<3x512xf32>,
    return
  }
}

</mosaic_0001>

<bundles_post_ra>
// kernel: unet_forward.1
= control target key start
LH: loop header
LB: loop body
LE: loop exit
PB: predicated region body
PF: predicated region fallthrough
CT: control target
= control target key end

     0   :  { %s5928_s28 = smov 112   ;;  %s9705_s29 = smov 111   ;;  %v9656_v4 = vmov 0.0   ;;  %v9653_v5 = vlaneseq  ;;  %v9837_v23 = vmov 0  ;;  %vm9598_vm4 = vcmask 908288   ;;  %s9586_s0 = inlined_call_operand.vmem [shape: f32[4,512], index: 0, kind: input, shape index: {}]   ;;  %s9587_s1 = inlined_call_operand.vmem [shape: f32[160,288], index: 1, kind: input, shape index: {}]   ;;  %s9588_s2 = inlined_call_operand.vmem [shape: f32[32,21], index: 2, kind: input, shape index: {}]   ;;  %s9589_s3 = inlined_call_operand.vmem [shape: f32[512,128], index: 3, kind: input, shape index: {}]   ;;  %s9590_s4 = inlined_call_operand.vmem [shape: f32[128,32], index: 4, kind: input, shape index: {}]   ;;  %s9591_s5 = inlined_call_operand.vmem [shape: f32[32,128], index: 5, kind: input, shape index: {}]   ;;  %s9592_s6 = inlined_call_operand.vmem [shape: f32[128,512], index: 6, kind: input, shape index: {}]   ;;  %s9593_s7 = inlined_call_operand.vmem [shape: f32[3,512], index: 7, kind: output, shape index: {}]  }
   0x1   :  { %v6014_v0 = vld [vmem:[%s9586_s0 + $0x8] sm:$0xff]  ;;  %v6019_v1 = vld [vmem:[%s9586_s0] sm:$0xff]  ;;  %s5930_s0 = smov 127   ;;  %s5931_s30 = smov 113   ;;  %838 = vmatprep.mubr.f32.mxu0 %v9656_v4  ;;  %909 = vmatprep.mubr.f32.mxu1 %v9656_v4  ;;  %vm9597_vm5 = vcmask 916480   ;;  %v9840_v24 = vmov 0 }
   0x2   :  { %637 = vrot.lane.b32.xlu0 %v6014_v0, %s5928_s28  ;;  %633 = vrot.lane.b32.xlu1 %v6019_v1, %s5928_s28  ;;  %v6027_v2 = vcombine.high %v6019_v1, %v6019_v1  ;;  %s5932_s8 = smov 1   ;;  %v6055_v3 = vcombine.high %v6014_v0, %v6014_v0  ;;  %s5933_s9 = smov 16   ;;  %v6096_v6 = vand.u32 127, %v9653_v5  ;;  %vm9595_vm9 = vcmask 1043456  }
   0x3   :  { %s5934_s10 = smov 15   ;;  %s9707_s11 = smov 17   ;;  %vm9596_vm13 = vcmask 1039360   ;;  %v9845_v36 = vmov 0  ;;  %v9848_v41 = vmov 0  ;;  %v9851_v44 = vmov 0 }
   0x4   :  { %v224_v7 = vadd.s32 128, %v6096_v6  ;;  %v231_v11 = vshra.s32 %v6096_v6, 4  ;;  %v227_v17 = vand.u32 15, %v6096_v6  ;;  %v6112_v20 = vadd.s32 256, %v6096_v6  ;;  %s5940_s16 = smov 119   ;;  %s5941_s17 = smov 121  }
   0x5   :  { %v6115_v21 = vadd.s32 384, %v6096_v6  ;;  %v9854_v46 = vmov 0  ;;  %v9859_v60 = vmov 0  ;;  %v9864_v63 = vmov 0  ;;  %s5942_s20 = smov 7   ;;  %s5943_s21 = smov 9  }
   0x6   :  { %664 = vrot.lane.b32.xlu1 %v6027_v2, %s9705_s29  ;;  %635 = vrot.lane.b32.xlu0 %v6027_v2, %s5928_s28  ;;  %v232_v8 = vshra.s32 %v224_v7, 4  ;;  %v228_v10 = vand.u32 15, %v224_v7  ;;  %v6107_v16 = vand.u32 15, %v231_v11  ;;  %v6132_v25 = vadd.s32 1, %v227_v17  ;;  %s5944_s22 = smov 8   ;;  %s5948_s26 = smov 124  }
   0x7   :  { %v233_v29 = vshra.s32 %v6112_v20, 4  ;;  %v234_v30 = vshra.s32 %v6115_v21, 4  ;;  %v6152_v35 = vadd.s32 4294967295, %v227_v17  ;;  %v230_v47 = vand.u32 15, %v6115_v21  ;;  %s5949_s27 = smov 3   ;;  %s5950_s12 = smov 4  }
   0x8   :  { %v6099_v9 = vand.u32 15, %v232_v8  ;;  %v6105_v15 = vadd.s32 1, %v228_v10  ;;  %v339_v22 = vadd.s32 1, %v6107_v16  ;;  %v6136_v28 = vadd.s32 4294967295, %v228_v10  ;;  %s5951_s13 = smov 5   ;;  %s5952_s14 = smov 123  }
   0x9   :  { %vm9600_vm14 = vcmp.lt.s32.totalorder %v6132_v25, 16  ;;  %v6161_v39 = vand.u32 15, %v233_v29  ;;  %v6163_v40 = vand.u32 15, %v234_v30  ;;  %v229_v48 = vand.u32 15, %v6112_v20  ;;  %s10246_s15 = smov 17  }
   0xa   :  { %577 = vrot.lane.b32.xlu1 %v6027_v2, %s5930_s0  ;;  %666 = vrot.lane.b32.xlu0 %v6014_v0, %s9705_s29  ;;  %v340_v12 = vadd.s32 1, %v6099_v9  ;;  %vm9594_vm2 = vcmp.lt.s32.totalorder %v6105_v15, 16  ;;  %vm312_vm7 = vcmp.ge.s32.totalorder %v6099_v9, 0  ;;  %vm316_vm8 = vcmp.lt.s32.totalorder %v6099_v9, 16 }
   0xb   :  { %vm343_vm10 = vcmp.ge.s32.totalorder %v339_v22, 0  ;;  %vm347_vm11 = vcmp.lt.s32.totalorder %v339_v22, 16  ;;  %vm6144_vm12 = vmand %vm312_vm7, %vm316_vm8  ;;  %vm311_vm7 = vcmp.ge.s32.totalorder %v6107_v16, 0  ;;  %vm315_vm8 = vcmp.lt.s32.totalorder %v6107_v16, 16 }
   0xc   :  { %vm344_vm0 = vcmp.ge.s32.totalorder %v340_v12, 0  ;;  %vm348_vm1 = vcmp.lt.s32.totalorder %v340_v12, 16  ;;  %vm6154_vm15 = vmand %vm343_vm10, %vm347_vm11  ;;  %vm9606_vm10 = vcmask 924672   ;;  %v341_v52 = vadd.s32 1, %v6161_v39 }
   0xd   :  { %vm6118_vm3 = vmand %vm344_vm0, %vm348_vm1  ;;  %v9846_v36 = vsel %vm6154_vm15, 4294967295, %v9845_v36  ;;  %vm9599_vm0 = vcmp.ge.s32.totalorder %v6136_v28, 0  ;;  %v342_v53 = vadd.s32 1, %v6163_v40  ;;  %v6238_v7 = vadd.s32 1, %v230_v47 }
   0xe   :  { %606 = vrot.lane.b32.xlu1 %v6027_v2, %s5931_s30  ;;  %579 = vrot.lane.b32.xlu0 %v6014_v0, %s5930_s0  ;;  %v9838_v23 = vsel %vm6118_vm3, 4294967295, %v9837_v23  ;;  %vm6126_vm6 = vmand %vm6118_vm3, %vm9594_vm2  ;;  %9847 = vst [vmem:[#allocation4_spill] sm:$0xff] %v9846_v36  ;;  %v6242_v8 = vadd.s32 1, %v229_v48  ;;  %v8386_v36 = vld [vmem:[%s9592_s6 + $0x60] sm:$0xff] }
   0xf   :  { %9839 = vst [vmem:[#allocation2_spill] sm:$0xff] %v9838_v23  ;;  %v9841_v24 = vsel %vm6126_vm6, 4294967295, %v9840_v24  ;;  %vm6169_vm1 = vmand %vm6144_vm12, %vm9594_vm2  ;;  %vm9601_vm2 = vcmp.ge.s32.totalorder %v6152_v35, 0  ;;  %v8398_v23 = vld [vmem:[%s9592_s6 + $0x48] sm:$0xff] }
  0x10   :  { %9842 = vst [vmem:[#allocation3_spill] sm:$0xff] %v9841_v24  ;;  %v9849_v41 = vsel %vm6169_vm1, 4294967295, %v9848_v41  ;;  %vm6183_vm11 = vmand %vm6154_vm15, %vm9600_vm14 }
  0x11   :  { %9850 = vst [vmem:[#allocation5_spill] sm:$0xff] %v9849_v41  ;;  %v9852_v44 = vsel %vm6183_vm11, 4294967295, %v9851_v44  ;;  %v8362_v41 = vld [vmem:[%s9592_s6 + $0x80] sm:$0xff]  ;;  %10205 = vst [vmem:[#allocation48_spill] sm:$0xff] %v8386_v36 }
  0x12   :  { %662 = vrot.lane.b32.xlu1 %v6019_v1, %s9705_s29  ;;  %608 = vrot.lane.b32.xlu0 %v6014_v0, %s5931_s30  ;;  %9853 = vst [vmem:[#allocation6_spill] sm:$0xff] %v9852_v44  ;;  %10201 = vst [vmem:[#allocation44_spill] sm:$0xff] %v8362_v41 }
  0x13   :  { %10207 = vst [vmem:[#allocation50_spill] sm:$0xff] %v8398_v23 }
  0x16   :  { %604 = vrot.lane.b32.xlu1 %v6019_v1, %s5931_s30  ;;  %575 = vrot.lane.b32.xlu0 %v6019_v1, %s5930_s0 }
  0x1a   :  { %548 = vrot.lane.b32.xlu1 %v6027_v2, %s5932_s8  ;;  %546 = vrot.lane.b32.xlu0 %v6019_v1, %s5932_s8 }
  0x1e   :  { %668 = vrot.lane.b32.xlu1 %v6055_v3, %s9705_s29  ;;  %639 = vrot.lane.b32.xlu0 %v6055_v3, %s5928_s28 }
  0x22   :  { %490 = vrot.lane.b32.xlu1 %v6027_v2, %s5933_s9  ;;  %488 = vrot.lane.b32.xlu0 %v6019_v1, %s5933_s9 }
  0x26   :  { %519 = vrot.lane.b32.xlu1 %v6027_v2, %s5934_s10  ;;  %517 = vrot.lane.b32.xlu0 %v6019_v1, %s5934_s10 }
  0x2a   :  { %610 = vrot.lane.b32.xlu1 %v6055_v3, %s5931_s30  ;;  %581 = vrot.lane.b32.xlu0 %v6055_v3, %s5930_s0 }
  0x2e   :  { %461 = vrot.lane.b32.xlu1 %v6027_v2, %s9707_s11  ;;  %459 = vrot.lane.b32.xlu0 %v6019_v1, %s9707_s11 }
  0x32   :  { %552 = vrot.lane.b32.xlu1 %v6055_v3, %s5932_s8  ;;  %550 = vrot.lane.b32.xlu0 %v6014_v0, %s5932_s8 }
  0x36   :  { %494 = vrot.lane.b32.xlu1 %v6055_v3, %s5933_s9  ;;  %492 = vrot.lane.b32.xlu0 %v6014_v0, %s5933_s9 }
  0x3a   :  { %523 = vrot.lane.b32.xlu1 %v6055_v3, %s5934_s10  ;;  %521 = vrot.lane.b32.xlu0 %v6014_v0, %s5934_s10 }
  0x3e   :  { %465 = vrot.lane.b32.xlu1 %v6055_v3, %s9707_s11  ;;  %463 = vrot.lane.b32.xlu0 %v6014_v0, %s9707_s11 }
  0x74   :  { %v6103_v13 = vpop.permute.xlu0 %637  ;;  %v634_v14 = vpop.permute.xlu1 %633 }
  0x78   :  { %v665_v18 = vpop.permute.xlu1 %664  ;;  %v636_v19 = vpop.permute.xlu0 %635 }
  0x79   :  { %v643_v34 = vsel %vm9597_vm5, %v636_v19, %v6103_v13  ;;  %v642_v45 = vsel %vm9597_vm5, %v634_v14, %v636_v19 }
  0x7a   :  { %v659_v42 = vsel %vm6118_vm3, %v643_v34, 0.0  ;;  %v658_v58 = vsel %vm6154_vm15, %v642_v45, 0.0 }
  0x7b   :  { %v734_v54 = vrot.slane %v659_v42, 4  ;;  %v733_v14 = vrot.slane %v658_v58, 4  ;;  %v9874_v42 = vmov 0  ;;  %v6329_v58 = vadd.s32 4294967295, %v230_v47 }
  0x7c   :  { %v578_v26 = vpop.permute.xlu1 %577  ;;  %v6134_v27 = vpop.permute.xlu0 %666 }
  0x7d   :  { %v672_v31 = vsel %vm9598_vm4, %v665_v18, %v6134_v27 }
  0x7e   :  { %v688_v32 = vsel %vm6126_vm6, %v672_v31, 0.0  ;;  %v9869_v31 = vmov 0 }
  0x7f   :  { %5058 = vmatprep.subr.msk.mxu0 %vm9595_vm9, %v688_v32  ;;  %vm6193_vm9 = vmand %vm6118_vm3, %vm9599_vm0  ;;  %vm350_vm0 = vcmp.lt.s32.totalorder %v342_v53, 16  ;;  %v239_v32 = vadd.s32 4294967295, %v6107_v16 }
  0x80   :  { %v607_v37 = vpop.permute.xlu1 %606  ;;  %v6158_v38 = vpop.permute.xlu0 %579  ;;  %v9855_v46 = vsel %vm6193_vm9, 4294967295, %v9854_v46 }
  0x81   :  { %v585_v43 = vsel %vm9596_vm13, %v578_v26, %v6158_v38  ;;  %9856 = vst [vmem:[#allocation7_spill] sm:$0xff] %v9855_v46  ;;  %vm6201_vm13 = vmand %vm311_vm7, %vm315_vm8  ;;  %vm9862_vm8 = vcmask 1043456   ;;  %v8374_v46 = vld [vmem:[%s9592_s6 + $0x68] sm:$0xff] }
  0x82   :  { %v601_v55 = vsel %vm6169_vm1, %v585_v43, 0.0  ;;  %vm6220_vm7 = vmand %vm6154_vm15, %vm9601_vm2  ;;  %vm349_vm2 = vcmp.lt.s32.totalorder %v341_v52, 16  ;;  %v240_v43 = vadd.s32 4294967295, %v6099_v9  ;;  %v9880_v9 = vmov 0  ;;  %10203 = vst [vmem:[#allocation46_spill] sm:$0xff] %v8374_v46 }
  0x83   :  { %v9860_v60 = vsel %vm6220_vm7, 4294967295, %v9859_v60  ;;  %vm9863_vm5 = vmmov %vm9862_vm8  ;;  %v722_v10 = vrot.slane %v601_v55, 4  ;;  %vm9883_vm1 = vcmp.ge.s32.totalorder %v6152_v35, 0  ;;  %vm9893_vm15 = vcmask 7168  }
  0x84   :  { %v663_v49 = vpop.permute.xlu1 %662  ;;  %v6199_v50 = vpop.permute.xlu0 %608  ;;  %9861 = vst [vmem:[#allocation8_spill] sm:$0xff] %v9860_v60  ;;  %vm9894_vm3 = vmmov %vm9893_vm15  ;;  %v8367_v60 = vld [vmem:[%s9592_s6 + $0x78] sm:$0xff] }
  0x85   :  { %v671_v56 = vsel %vm9598_vm4, %v663_v49, %v665_v18  ;;  %v614_v57 = vsel %vm9606_vm10, %v607_v37, %v6199_v50  ;;  %vm6232_vm4 = vmand %vm6201_vm13, %vm9600_vm14  ;;  %vm9867_vm14 = vcmask 1039360   ;;  %10202 = vst [vmem:[#allocation45_spill] sm:$0xff] %v8367_v60 }
  0x86   :  { %v687_v59 = vsel %vm6183_vm11, %v671_v56, 0.0  ;;  %v630_v61 = vsel %vm6193_vm9, %v614_v57, 0.0  ;;  %v9865_v63 = vsel %vm6232_vm4, 4294967295, %v9864_v63  ;;  %vm9868_vm11 = vmmov %vm9863_vm5  ;;  %vm9887_vm9 = vcmp.ge.s32.totalorder %v6136_v28, 0 }
  0x87   :  { %5059 = vmatpush1.msk.msra.mxu0 %vm9862_vm8, %v687_v59  ;;  %v755_v62 = vsel %vm9863_vm5, %v630_v61, %v734_v54  ;;  %9866 = vst [vmem:[#allocation9_spill] sm:$0xff] %v9865_v63  ;;  %vm346_vm8 = vcmp.ge.s32.totalorder %v342_v53, 0  ;;  %vm9613_vm5 = vcmp.lt.s32.totalorder %v6238_v7, 16  ;;  %v9897_v57 = vmov 0  ;;  %v8350_v63 = vld [vmem:[%s9592_s6 + $0x88] sm:$0xff] }
  0x88   :  { %v605_v11 = vpop.permute.xlu1 %604  ;;  %798 = vmatprep.subr.mxu0 %v755_v62  ;;  %v576_v12 = vpop.permute.xlu0 %575  ;;  %vm6251_vm6 = vmand %vm346_vm8, %vm350_vm0  ;;  %vm9616_vm0 = vcmp.lt.s32.totalorder %v6242_v8, 16  ;;  %v6333_v59 = vadd.s32 4294967295, %v229_v48  ;;  %10199 = vst [vmem:[#allocation42_spill] sm:$0xff] %v8350_v63 }
  0x89   :  { %v613_v17 = vsel %vm9606_vm10, %v605_v11, %v607_v37  ;;  %v584_v18 = vsel %vm9867_vm14, %v576_v12, %v578_v26  ;;  %v9870_v31 = vsel %vm6251_vm6, 4294967295, %v9869_v31  ;;  %vm9872_vm14 = vmmov %vm9868_vm11  ;;  %vm9873_vm10 = vcmp.ge.s32.totalorder %v341_v52, 0 }
  0x8a   :  { %v629_v19 = vsel %vm6220_vm7, %v613_v17, 0.0  ;;  %v600_v22 = vsel %vm6232_vm4, %v584_v18, 0.0  ;;  %9871 = vst [vmem:[#allocation10_spill] sm:$0xff] %v9870_v31  ;;  %v751_v37 = vsel %vm9872_vm14, %v6027_v2, %v722_v10  ;;  %vm6262_vm4 = vmand %vm9873_vm10, %vm349_vm2  ;;  %v9877_v2 = vmov 0  ;;  %v8391_v31 = vld [vmem:[%s9592_s6 + $0x58] sm:$0xff] }
  0x8b   :  { %v721_v29 = vrot.slane %v600_v22, 4  ;;  %v754_v30 = vsel %vm9868_vm11, %v629_v19, %v733_v14  ;;  %v9875_v42 = vsel %vm6262_vm4, 4294967295, %v9874_v42  ;;  %vm6274_vm8 = vmand %vm6251_vm6, %vm9613_vm5  ;;  %vm244_vm5 = vcmp.ge.s32.totalorder %v240_v43, 0  ;;  %10206 = vst [vmem:[#allocation49_spill] sm:$0xff] %v8391_v31 }
  0x8c   :  { %v6257_v34 = vpop.permute.xlu1 %548  ;;  %799 = vmatpush1.msra.mxu0 %v754_v30  ;;  %v547_v26 = vpop.permute.xlu0 %546  ;;  %9876 = vst [vmem:[#allocation11_spill] sm:$0xff] %v9875_v42  ;;  %v9878_v2 = vsel %vm6274_vm8, 4294967295, %v9877_v2  ;;  %vm6282_vm10 = vmand %vm6262_vm4, %vm9616_vm0  ;;  %vm248_vm2 = vcmp.lt.s32.totalorder %v240_v43, 16  ;;  %v9888_v52 = vmov 0  ;;  %vm9891_vm14 = vcmask 908288   ;;  %v8379_v42 = vld [vmem:[%s9592_s6 + $0x70] sm:$0xff] }
  0x8d   :  { %800 = vmatprep.subr.mxu0 %v751_v37  ;;  %v750_v16 = vsel %vm9868_vm11, %v6019_v1, %v721_v29  ;;  %9879 = vst [vmem:[#allocation12_spill] sm:$0xff] %v9878_v2  ;;  %v9881_v9 = vsel %vm6282_vm10, 4294967295, %v9880_v9  ;;  %vm6290_vm7 = vmand %vm6201_vm13, %vm9883_vm1  ;;  %v9884_v1 = vmov 0  ;;  %vm317_vm1 = vcmp.lt.s32.totalorder %v6161_v39, 16 }
  0x8e   :  { %801 = vmatpush1.msra.mxu0 %v750_v16  ;;  %9882 = vst [vmem:[#allocation13_spill] sm:$0xff] %v9881_v9  ;;  %v9885_v1 = vsel %vm6290_vm7, 4294967295, %v9884_v1  ;;  %vm6298_vm0 = vmand %vm6144_vm12, %vm9887_vm9  ;;  %v555_v54 = vsel %vm9893_vm15, %v547_v26, %v6257_v34  ;;  %v562_v55 = vsel %vm9894_vm3, 0.0, %v547_v26  ;;  %vm9895_vm9 = vcmp.lt.s32.totalorder %v239_v32, 16 }
  0x8f   :  { %9886 = vst [vmem:[#allocation14_spill] sm:$0xff] %v9885_v1  ;;  %v9889_v52 = vsel %vm6298_vm0, 4294967295, %v9888_v52  ;;  %vm9892_vm11 = vmmov %vm9891_vm14  ;;  %vm9896_vm12 = vcmp.ge.s32.totalorder %v239_v32, 0  ;;  %vm318_vm15 = vcmp.lt.s32.totalorder %v6163_v40, 16  ;;  %v9906_v10 = vmov 0 }
  0x90   :  { %v669_v45 = vpop.permute.xlu1 %668  ;;  %v640_v49 = vpop.permute.xlu0 %639  ;;  %9890 = vst [vmem:[#allocation15_spill] sm:$0xff] %v9889_v52  ;;  %vm6321_vm13 = vmand %vm244_vm5, %vm248_vm2  ;;  %vm9905_vm5 = vcmp.lt.s32.totalorder %v6105_v15, 16  ;;  %v571_v21 = vsel %vm6290_vm7, %v562_v55, 0.0  ;;  %v572_v20 = vsel %vm6298_vm0, %v555_v54, 0.0  ;;  %v9922_v22 = vmov 0 }
  0x91   :  { %v678_v53 = vsel %vm9891_vm14, %v669_v45, 0.0  ;;  %v673_v51 = vsel %vm9892_vm11, %v6134_v27, %v669_v45  ;;  %vm6316_vm14 = vmand %vm9896_vm12, %vm9895_vm9  ;;  %vm9900_vm11 = vcmask 1043456   ;;  %v9901_v27 = vmov 0  ;;  %10204 = vst [vmem:[#allocation47_spill] sm:$0xff] %v8379_v42 }
  0x92   :  { %v690_v33 = vsel %vm6274_vm8, %v678_v53, 0.0  ;;  %v689_v56 = vsel %vm6282_vm10, %v673_v51, 0.0  ;;  %v9898_v57 = vsel %vm6316_vm14, 4294967295, %v9897_v57  ;;  %v9902_v27 = vsel %vm6321_vm13, 4294967295, %v9901_v27  ;;  %vm9904_vm9 = vmmov %vm9900_vm11 }
  0x93   :  { %9899 = vst [vmem:[#allocation16_spill] sm:$0xff] %v9898_v57  ;;  %5061 = vmatprep.subr.msk.mxu1 %vm9900_vm11, %v690_v33  ;;  %9903 = vst [vmem:[#allocation17_spill] sm:$0xff] %v9902_v27  ;;  %vm9909_vm12 = vcmask 916480   ;;  %vm9627_vm10 = vcmask 121856   ;;  %vm9914_vm8 = vcmp.ge.s32.totalorder %v6163_v40, 0  ;;  %v707_v12 = vrot.slane %v571_v21, 4 }
  0x94   :  { %v6335_v61 = vpop.permute.xlu1 %490  ;;  %5062 = vmatpush1.msk.msra.mxu1 %vm9904_vm9, %v689_v56  ;;  %v489_v62 = vpop.permute.xlu0 %488  ;;  %vm6342_vm2 = vmand %vm6321_vm13, %vm9905_vm5  ;;  %v644_v47 = vsel %vm9909_vm12, %v6103_v13, %v640_v49  ;;  %vm9911_vm9 = vcmp.ge.s32.totalorder %v6161_v39, 0  ;;  %vm9628_vm5 = vcmask 130048   ;;  %v9918_v13 = vmov 0 }
  0x95   :  { %v9907_v10 = vsel %vm6342_vm2, 4294967295, %v9906_v10  ;;  %vm9910_vm11 = vmmov %vm9909_vm12  ;;  %vm9917_vm12 = vcmp.lt.s32.totalorder %v6132_v25, 16  ;;  %v708_v14 = vrot.slane %v572_v20, 4  ;;  %v660_v17 = vsel %vm6262_vm4, %v644_v47, 0.0 }
  0x96   :  { %9908 = vst [vmem:[#allocation18_spill] sm:$0xff] %v9907_v10  ;;  %v649_v48 = vsel %vm9910_vm11, %v640_v49, 0.0  ;;  %vm6357_vm3 = vmand %vm9911_vm9, %vm317_vm1  ;;  %vm9633_vm1 = vcmp.ge.s32.totalorder %v6329_v58, 0  ;;  %v497_v29 = vsel %vm9628_vm5, %v489_v62, %v6335_v61  ;;  %v504_v30 = vsel %vm9628_vm5, 0.0, %v489_v62 }
  0x97   :  { %vm6363_vm7 = vmand %vm9914_vm8, %vm318_vm15  ;;  %v661_v18 = vsel %vm6251_vm6, %v649_v48, 0.0  ;;  %vm9921_vm8 = vcmp.lt.s32.totalorder %v6242_v8, 16  ;;  %v9926_v37 = vmov 0  ;;  %v9929_v45 = vmov 0 }
  0x98   :  { %vm6371_vm11 = vmand %vm6316_vm14, %vm9917_vm12  ;;  %v6381_v19 = vpop.permute.xlu1 %519  ;;  %v518_v25 = vpop.permute.xlu0 %517  ;;  %vm9925_vm12 = vcmp.lt.s32.totalorder %v6238_v7, 16  ;;  %vm9934_vm0 = vcmp.ge.s32.totalorder %v6333_v59, 0  ;;  %v9935_v51 = vmov 0  ;;  %v735_v54 = vrot.slane %v660_v17, 4 }
  0x99   :  { %v9919_v13 = vsel %vm6371_vm11, 4294967295, %v9918_v13  ;;  %vm6387_vm15 = vmand %vm6357_vm3, %vm9921_vm8  ;;  %v526_v32 = vsel %vm9627_vm10, %v518_v25, %v6381_v19  ;;  %v533_v26 = vsel %vm9627_vm10, 0.0, %v518_v25  ;;  %vm9932_vm10 = vcmask 1043456  }
  0x9a   :  { %9920 = vst [vmem:[#allocation19_spill] sm:$0xff] %v9919_v13  ;;  %v9923_v22 = vsel %vm6387_vm15, 4294967295, %v9922_v22  ;;  %vm6401_vm9 = vmand %vm6363_vm7, %vm9925_vm12  ;;  %v543_v43 = vsel %vm6342_vm2, %v526_v32, 0.0  ;;  %v542_v16 = vsel %vm6371_vm11, %v533_v26, 0.0  ;;  %v736_v55 = vrot.slane %v661_v18, 4 }
  0x9b   :  { %9924 = vst [vmem:[#allocation20_spill] sm:$0xff] %v9923_v22  ;;  %v9927_v37 = vsel %vm6401_vm9, 4294967295, %v9926_v37  ;;  %vm6413_vm8 = vmand %vm6251_vm6, %vm9633_vm1  ;;  %v747_v49 = vsel %vm9932_vm10, %v543_v43, %v708_v14  ;;  %v513_v33 = vsel %vm6316_vm14, %v504_v30, 0.0  ;;  %v514_v56 = vsel %vm6321_vm13, %v497_v29, 0.0 }
  0x9c   :  { %9928 = vst [vmem:[#allocation21_spill] sm:$0xff] %v9927_v37  ;;  %v9930_v45 = vsel %vm6413_vm8, 4294967295, %v9929_v45  ;;  %vm9933_vm12 = vmmov %vm9932_vm10  ;;  %v611_v62 = vpop.permute.xlu1 %610  ;;  %802 = vmatprep.subr.mxu0 %v747_v49  ;;  %v582_v21 = vpop.permute.xlu0 %581  ;;  %vm9938_vm10 = vcmask 924672   ;;  %vm9948_vm5 = vcmp.ge.s32.totalorder %v6152_v35, 0  ;;  %v9949_v26 = vmov 0 }
  0x9d   :  { %9931 = vst [vmem:[#allocation22_spill] sm:$0xff] %v9930_v45  ;;  %v746_v53 = vsel %vm9933_vm12, %v542_v16, %v707_v12  ;;  %vm6423_vm2 = vmand %vm6262_vm4, %vm9934_vm0  ;;  %v615_v20 = vsel %vm9938_vm10, %v6199_v50, %v611_v62  ;;  %vm9940_vm0 = vcmask 1039360   ;;  %v696_v43 = vrot.slane %v514_v56, 4  ;;  %v8355_v45 = vld [vmem:[%s9592_s6 + $0x90] sm:$0xff] }
  0x9e   :  { %v9936_v51 = vsel %vm6423_vm2, 4294967295, %v9935_v51  ;;  %vm9939_vm12 = vmmov %vm9938_vm10  ;;  %v586_v48 = vsel %vm9940_vm0, %v6158_v38, %v582_v21  ;;  %803 = vmatpush1.msra.mxu0 %v746_v53  ;;  %v631_v50 = vsel %vm6423_vm2, %v615_v20, 0.0  ;;  %vm9942_vm10 = vcmp.ge.s32.totalorder %v6136_v28, 0  ;;  %10200 = vst [vmem:[#allocation43_spill] sm:$0xff] %v8355_v45 }
  0x9f   :  { %9937 = vst [vmem:[#allocation23_spill] sm:$0xff] %v9936_v51  ;;  %v620_v47 = vsel %vm9939_vm12, %v611_v62, 0.0  ;;  %vm9941_vm1 = vmmov %vm9940_vm0  ;;  %v602_v14 = vsel %vm6387_vm15, %v586_v48, 0.0  ;;  %v9943_v38 = vmov 0  ;;  %v695_v28 = vrot.slane %v513_v33, 4  ;;  %v8343_v51 = vld [vmem:[%s9592_s6 + $0x98] sm:$0xff] }
  0xa0   :  { %v591_v12 = vsel %vm9941_vm1, %v582_v21, 0.0  ;;  %v632_v18 = vsel %vm6413_vm8, %v620_v47, 0.0  ;;  %vm6449_vm12 = vmand %vm6321_vm13, %vm9942_vm10  ;;  %v723_v25 = vrot.slane %v602_v14, 4  ;;  %vm9946_vm1 = vcmask 1043456   ;;  %v462_v16 = vpop.permute.xlu1 %461  ;;  %v460_v49 = vpop.permute.xlu0 %459  ;;  %10198 = vst [vmem:[#allocation41_spill] sm:$0xff] %v8343_v51 }
  0xa1   :  { %v603_v17 = vsel %vm6401_vm9, %v591_v12, 0.0  ;;  %v9944_v38 = vsel %vm6449_vm12, 4294967295, %v9943_v38  ;;  %v757_v30 = vsel %vm9946_vm1, %v632_v18, %v736_v55  ;;  %vm9947_vm0 = vmmov %vm9946_vm1  ;;  %v241_v53 = vadd.s32 4294967295, %v6161_v39 }
  0xa2   :  { %9945 = vst [vmem:[#allocation24_spill] sm:$0xff] %v9944_v38  ;;  %v724_v29 = vrot.slane %v603_v17, 4  ;;  %v756_v32 = vsel %vm9947_vm0, %v631_v50, %v735_v54  ;;  %vm6459_vm11 = vmand %vm6316_vm14, %vm9948_vm5  ;;  %869 = vmatprep.subr.mxu1 %v757_v30  ;;  %vm9952_vm10 = vcmask 138240   ;;  %v242_v39 = vadd.s32 4294967295, %v6163_v40 }
  0xa3   :  { %v9950_v26 = vsel %vm6459_vm11, 4294967295, %v9949_v26  ;;  %v468_v62 = vsel %vm9952_vm10, %v460_v49, %v462_v16  ;;  %vm9953_vm1 = vmmov %vm9952_vm10  ;;  %870 = vmatpush1.msra.mxu1 %v756_v32  ;;  %v9958_v40 = vmov 0  ;;  %vm9961_vm13 = vcmp.ge.s32.totalorder %v6329_v58, 0 }
  0xa4   :  { %9951 = vst [vmem:[#allocation25_spill] sm:$0xff] %v9950_v26  ;;  %v475_v55 = vsel %vm9953_vm1, 0.0, %v460_v49  ;;  %v753_v35 = vsel %vm9947_vm0, %v6055_v3, %v724_v29  ;;  %vm9954_vm5 = vmmov %vm9947_vm0  ;;  %v485_v33 = vsel %vm6449_vm12, %v468_v62, 0.0  ;;  %v28_v3 = vld [vmem:[%s9587_s1] sm:$0xff]  ;;  %v551_v47 = vpop.permute.xlu0 %550  ;;  %vm249_vm12 = vcmp.lt.s32.totalorder %v241_v53, 16 }
  0xa5   :  { %v752_v54 = vsel %vm9954_vm5, %v6014_v0, %v723_v25  ;;  %871 = vmatprep.subr.mxu1 %v753_v35  ;;  %v484_v56 = vsel %vm6459_vm11, %v475_v55, 0.0  ;;  %vm9955_vm10 = vmmov %vm9947_vm0  ;;  %v553_v0 = vpop.permute.xlu1 %552  ;;  %vm245_vm5 = vcmp.ge.s32.totalorder %v241_v53, 0  ;;  %vm9957_vm11 = vcmp.ge.s32.totalorder %v6333_v59, 0 }
  0xa6   :  { %872 = vmatpush1.msra.mxu1 %v752_v54  ;;  %v743_v21 = vsel %vm9955_vm10, %v485_v33, %v696_v43  ;;  %vm9956_vm1 = vmmov %vm9947_vm0  ;;  %vm9650_vm0 = vcmask 293888   ;;  %vm246_vm10 = vcmp.ge.s32.totalorder %v242_v39, 0  ;;  %v9962_v48 = vmov 0 }
  0xa7   :  { %v742_v20 = vsel %vm9956_vm1, %v484_v56, %v695_v28  ;;  %804 = vmatprep.subr.mxu0 %v743_v21  ;;  %vm6484_vm14 = vmand %vm6357_vm3, %vm9957_vm11  ;;  %vm250_vm1 = vcmp.lt.s32.totalorder %v242_v39, 16  ;;  %vm9965_vm9 = vcmask 7168   ;;  %v9967_v17 = vmov 0 }
  0xa8   :  { %805 = vmatpush1.msra.mxu0 %v742_v20  ;;  %v9959_v40 = vsel %vm6484_vm14, 4294967295, %v9958_v40  ;;  %vm6493_vm15 = vmand %vm6363_vm7, %vm9961_vm13  ;;  %v556_v12 = vsel %vm9965_vm9, %v6257_v34, %v551_v47  ;;  %v493_v18 = vpop.permute.xlu0 %492  ;;  %v9970_v50 = vmov 0  ;;  %vm9973_vm7 = vcmp.lt.s32.totalorder %v6238_v7, 16 }
  0xa9   :  { %9960 = vst [vmem:[#allocation26_spill] sm:$0xff] %v9959_v40  ;;  %5060 = vmatmul.mubr.msk.f32.vlgmr.msra.gmra.mxu0 %vm9650_vm0, %v28_v3  ;;  %v9963_v48 = vsel %vm6493_vm15, 4294967295, %v9962_v48  ;;  %vm9966_vm2 = vmmov %vm9965_vm9  ;;  %v495_v14 = vpop.permute.xlu1 %494  ;;  %v573_v11 = vsel %vm6484_vm14, %v556_v12, 0.0  ;;  %v9974_v34 = vmov 0  ;;  %v9980_v32 = vmov 0 }
  0xaa   :  { %9964 = vst [vmem:[#allocation27_spill] sm:$0xff] %v9963_v48  ;;  %v557_v15 = vsel %vm9966_vm2, %v551_v47, %v553_v0  ;;  %vm6500_vm3 = vmand %vm245_vm5, %vm249_vm12  ;;  %vm9977_vm2 = vcmask 130048   ;;  %vm9979_vm12 = vcmp.lt.s32.totalorder %v6242_v8, 16  ;;  %v709_v43 = vrot.slane %v573_v11, 4 }
  0xab   :  { %v9968_v17 = vsel %vm6500_vm3, 4294967295, %v9967_v17  ;;  %vm6504_vm11 = vmand %vm246_vm10, %vm250_vm1  ;;  %v574_v25 = vsel %vm6493_vm15, %v557_v15, 0.0  ;;  %v498_v29 = vsel %vm9977_vm2, %v6335_v61, %v493_v18  ;;  %vm9983_vm10 = vcmask 121856  }
  0xac   :  { %9969 = vst [vmem:[#allocation28_spill] sm:$0xff] %v9968_v17  ;;  %v9971_v50 = vsel %vm6504_vm11, 4294967295, %v9970_v50  ;;  %vm6516_vm13 = vmand %vm6504_vm11, %vm9973_vm7  ;;  %v522_v28 = vpop.permute.xlu0 %521  ;;  %v710_v49 = vrot.slane %v574_v25, 4  ;;  %v515_v61 = vsel %vm6500_vm3, %v498_v29, 0.0  ;;  %vm9985_vm7 = vcmp.ge.s32.totalorder %v6329_v58, 0 }
  0xad   :  { %9972 = vst [vmem:[#allocation29_spill] sm:$0xff] %v9971_v50  ;;  %v9975_v34 = vsel %vm6516_vm13, 4294967295, %v9974_v34  ;;  %vm9978_vm9 = vmmov %vm9977_vm2  ;;  %v524_v7 = vpop.permute.xlu1 %523  ;;  %v527_v53 = vsel %vm9983_vm10, %v6381_v19, %v522_v28  ;;  %v9986_v19 = vmov 0  ;;  %v9992_v56 = vmov 0 }
  0xae   :  { %9976 = vst [vmem:[#allocation30_spill] sm:$0xff] %v9975_v34  ;;  %v499_v30 = vsel %vm9978_vm9, %v493_v18, %v495_v14  ;;  %vm6527_vm5 = vmand %vm6500_vm3, %vm9979_vm12  ;;  %vm9989_vm9 = vcmask 1043456   ;;  %v697_v21 = vrot.slane %v515_v61, 4  ;;  %vm10030_vm14 = vcmask 7168  }
  0xaf   :  { %v9981_v32 = vsel %vm6527_vm5, 4294967295, %v9980_v32  ;;  %vm9984_vm1 = vmmov %vm9983_vm10  ;;  %v516_v8 = vsel %vm6504_vm11, %v499_v30, 0.0  ;;  %v544_v35 = vsel %vm6527_vm5, %v527_v53, 0.0  ;;  %vm9991_vm10 = vcmp.ge.s32.totalorder %v6333_v59, 0 }
  0xb0   :  { %9982 = vst [vmem:[#allocation31_spill] sm:$0xff] %v9981_v32  ;;  %v528_v62 = vsel %vm9984_vm1, %v522_v28, %v524_v7  ;;  %vm6546_vm2 = vmand %vm6504_vm11, %vm9985_vm7  ;;  %v464_v58 = vpop.permute.xlu0 %463  ;;  %v698_v20 = vrot.slane %v516_v8, 4  ;;  %vm9995_vm7 = vcmask 138240   ;;  %v5937_v8 = vmov 0  }
  0xb1   :  { %v545_v55 = vsel %vm6516_vm13, %v528_v62, 0.0  ;;  %v9987_v19 = vsel %vm6546_vm2, 4294967295, %v9986_v19  ;;  %vm9990_vm12 = vmmov %vm9989_vm9  ;;  %v466_v39 = vpop.permute.xlu1 %465  ;;  %v469_v0 = vsel %vm9995_vm7, %v462_v16, %v464_v58  ;;  %5788 = vset.pattern.permute.xlu0 %v5937_v8  ;;  %v119_v8 = vld [vmem:[%s9589_s3 + $0x168] sm:$0xff]  ;;  %vm9667_vm11 = vcmask 982016  }
  0xb2   :  { %9988 = vst [vmem:[#allocation32_spill] sm:$0xff] %v9987_v19  ;;  %v749_v54 = vsel %vm9989_vm9, %v545_v55, %v710_v49  ;;  %v748_v33 = vsel %vm9990_vm12, %v544_v35, %v709_v43  ;;  %vm6556_vm1 = vmand %vm6500_vm3, %vm9991_vm10  ;;  %vm9998_vm10 = vcmask 293888   ;;  %v6592_v55 = vld [vmem:[%s9588_s2] sm:$0xff]  ;;  %v5938_v35 = vmov 1  }
  0xb3   :  { %v9993_v56 = vsel %vm6556_vm1, 4294967295, %v9992_v56  ;;  %873 = vmatprep.subr.mxu1 %v749_v54  ;;  %vm9996_vm0 = vmmov %vm9995_vm7  ;;  %v486_v59 = vsel %vm6556_vm1, %v469_v0, 0.0  ;;  %5789 = vset.pattern.permute.xlu1 %v5938_v35  ;;  %v86_v35 = vld [vmem:[%s9589_s3 + $0x60] sm:$0xff]  ;;  %vm10042_vm15 = vcmask 973824   ;;  %vm9694_vm6 = vcmask 236544  }
  0xb4   :  { %9994 = vst [vmem:[#allocation33_spill] sm:$0xff] %v9993_v56  ;;  %v470_v47 = vsel %vm9996_vm0, %v464_v58, %v466_v39  ;;  %874 = vmatpush1.msra.mxu1 %v748_v33  ;;  %vm9997_vm12 = vmmov %vm9989_vm9  ;;  %vm10002_vm0 = vcmask 1039360  }
  0xb5   :  { %v487_v12 = vsel %vm6546_vm2, %v470_v47, 0.0  ;;  %v744_v14 = vsel %vm9997_vm12, %v486_v59, %v697_v21  ;;  %vm10003_vm7 = vmmov %vm10002_vm0  ;;  %vm10005_vm12 = vcmask 916480  }
  0xb6   :  { %v745_v15 = vsel %vm9989_vm9, %v487_v12, %v698_v20  ;;  %vm10004_vm9 = vmmov %vm10002_vm0 }
  0xb7   :  { %875 = vmatprep.subr.mxu1 %v745_v15  ;;  %v105_v15 = vld [vmem:[%s9589_s3 + $0xf8] sm:$0xff]  ;;  %vm10007_vm1 = vmmov %vm10002_vm0 }
  0xb8   :  { %876 = vmatpush1.msra.mxu1 %v744_v14  ;;  %v89_v14 = vld [vmem:[%s9589_s3 + $0x78] sm:$0xff]  ;;  %5348 = vmatprep.subr.mxu0 %v105_v15  ;;  %vm10043_vm8 = vmmov %vm10042_vm15 }
  0xb9   :  { %5063 = vmatmul.mubr.msk.f32.vlgmr.msra.gmra.mxu1 %vm9998_vm10, %v28_v3  ;;  %5349 = vmatpush3.msra.mxu0 %v89_v14  ;;  %v133_v15 = vld [vmem:[%s9589_s3 + $0x1d8] sm:$0xff]  ;;  %vm10006_vm10 = vcmask 908288  }
  0xba   :  { %vm10012_vm2 = vmmov %vm10006_vm10 }
 0x169   :  { %v6569_v18 = vpop.f32.mrf.mxu0 }
 0x16a   :  { %v916_v11 = vmul.f32 %v6569_v18, %v6569_v18 }
 0x16b   :  { %v6571_v16 = vpop.f32.mrf.mxu0 }
 0x16c   :  { %v917_v25 = vmul.f32 %v6571_v16, %v6571_v16  ;;  %v920_v29 = vadd.f32 %v6571_v16, %v6569_v18 }
 0x16e   :  { %v925_v28 = vadd.f32 %v917_v25, %v916_v11  ;;  %v137_v11 = vld [vmem:[%s9589_s3 + $0x1f8] sm:$0xff]  ;;  %v104_v25 = vld [vmem:[%s9589_s3 + $0xf0] sm:$0xff] }
 0x16f   :  { %5383 = vmatprep.subr.mxu1 %v137_v11  ;;  %5350 = vmatprep.subr.mxu0 %v104_v25  ;;  %v84_v25 = vld [vmem:[%s9589_s3 + $0x50] sm:$0xff] }
 0x179   :  { %v6579_v30 = vpop.f32.mrf.mxu1 }
 0x17a   :  { %v918_v7 = vmul.f32 %v6579_v30, %v6579_v30  ;;  %v921_v3 = vadd.f32 %v920_v29, %v6579_v30  ;;  %v121_v29 = vld [vmem:[%s9589_s3 + $0x178] sm:$0xff] }
 0x17b   :  { %v6584_v43 = vpop.f32.mrf.mxu1  ;;  %5384 = vmatpush3.msra.mxu1 %v121_v29  ;;  %v132_v29 = vld [vmem:[%s9589_s3 + $0x1d0] sm:$0xff] }
 0x17c   :  { %v922_v49 = vadd.f32 %v921_v3, %v6584_v43  ;;  %v919_v53 = vmul.f32 %v6584_v43, %v6584_v43  ;;  %v926_v62 = vadd.f32 %v925_v28, %v918_v7  ;;  %v88_v7 = vld [vmem:[%s9589_s3 + $0x70] sm:$0xff]  ;;  %v103_v28 = vld [vmem:[%s9589_s3 + $0xe8] sm:$0xff] }
 0x17d   :  { %v136_v3 = vld [vmem:[%s9589_s3 + $0x1f0] sm:$0xff]  ;;  %5351 = vmatpush3.msra.mxu0 %v88_v7 }
 0x17e   :  { %923 = vadd.xlane.f32.xlu0 %v922_v49  ;;  %v927_v61 = vadd.f32 %v926_v62, %v919_v53  ;;  %v120_v49 = vld [vmem:[%s9589_s3 + $0x170] sm:$0xff]  ;;  %5385 = vmatprep.subr.mxu1 %v136_v3  ;;  %v87_v53 = vld [vmem:[%s9589_s3 + $0x68] sm:$0xff] }
 0x17f   :  { %5386 = vmatpush3.msra.mxu1 %v120_v49  ;;  %5352 = vmatprep.subr.mxu0 %v103_v28  ;;  %v135_v62 = vld [vmem:[%s9589_s3 + $0x1e8] sm:$0xff] }
 0x180   :  { %928 = vadd.xlane.f32.xlu1 %v927_v61  ;;  %v102_v61 = vld [vmem:[%s9589_s3 + $0xe0] sm:$0xff]  ;;  %5353 = vmatpush3.msra.mxu0 %v87_v53  ;;  %v99_v53 = vld [vmem:[%s9589_s3 + $0xc8] sm:$0xff] }
 0x181   :  { %5387 = vmatprep.subr.mxu1 %v135_v62  ;;  %5354 = vmatprep.subr.mxu0 %v102_v61  ;;  %v116_v62 = vld [vmem:[%s9589_s3 + $0x150] sm:$0xff]  ;;  %v83_v61 = vld [vmem:[%s9589_s3 + $0x48] sm:$0xff] }
 0x182   :  { %5388 = vmatpush3.msra.mxu1 %v119_v8  ;;  %5355 = vmatpush3.msra.mxu0 %v86_v35  ;;  %v131_v8 = vld [vmem:[%s9589_s3 + $0x1c8] sm:$0xff]  ;;  %v98_v35 = vld [vmem:[%s9589_s3 + $0xc0] sm:$0xff] }
 0x191   :  { %953 = vperm.xlu1 %5789, %v6592_v55  }
 0x207   :  { %v924_v54 = vpop.xlane.xlu0 %923 }
 0x208   :  { %v930_v33 = vmul.f32 0.001953125, %v924_v54  ;;  %v134_v54 = vld [vmem:[%s9589_s3 + $0x1e0] sm:$0xff] }
 0x209   :  { %v929_v39 = vpop.xlane.xlu1 %928  ;;  %5389 = vmatprep.subr.mxu1 %v134_v54 }
 0x20a   :  { %v932_v58 = vmul.f32 %v930_v33, %v930_v33  ;;  %v931_v21 = vmul.f32 0.001953125, %v929_v39  ;;  %v938_v39 = vsub.f32 %v6569_v18, %v930_v33 }
 0x20c   :  { %v933_v20 = vsub.f32 %v931_v21, %v932_v58  ;;  %v101_v58 = vld [vmem:[%s9589_s3 + $0xd8] sm:$0xff]  ;;  %v118_v21 = vld [vmem:[%s9589_s3 + $0x160] sm:$0xff] }
 0x20d   :  { %v954_v18 = vpop.permute.xlu1 %953  ;;  %5356 = vmatprep.subr.mxu0 %v101_v58  ;;  %5390 = vmatpush3.msra.mxu1 %v118_v21  ;;  %v115_v58 = vld [vmem:[%s9589_s3 + $0x148] sm:$0xff]  ;;  %v82_v21 = vld [vmem:[%s9589_s3 + $0x40] sm:$0xff] }
 0x20e   :  { %v934_v0 = vmax.f32 %v933_v20, 0.0  ;;  %v939_v20 = vsub.f32 %v6571_v16, %v930_v33  ;;  %5391 = vmatprep.subr.mxu1 %v133_v15  ;;  %v81_v15 = vld [vmem:[%s9589_s3 + $0x38] sm:$0xff] }
 0x210   :  { %v935_v47 = vadd.f32 1e-05, %v934_v0  ;;  %v940_v0 = vsub.f32 %v6579_v30, %v930_v33 }
 0x212   :  { %5869 = vrsqrt.f32 %v935_v47  ;;  %v941_v47 = vsub.f32 %v6584_v43, %v930_v33  ;;  %v100_v43 = vld [vmem:[%s9589_s3 + $0xd0] sm:$0xff]  ;;  %v117_v33 = vld [vmem:[%s9589_s3 + $0x158] sm:$0xff] }
 0x213   :  { %5392 = vmatpush3.msra.mxu1 %v117_v33  ;;  %v128_v33 = vld [vmem:[%s9589_s3 + $0x1b0] sm:$0xff] }
 0x214   :  { %5393 = vmatprep.subr.mxu1 %v132_v29  ;;  %v112_v29 = vld [vmem:[%s9589_s3 + $0x130] sm:$0xff] }
 0x215   :  { %5394 = vmatpush3.msra.mxu1 %v116_v62  ;;  %v126_v62 = vld [vmem:[%s9589_s3 + $0x1a0] sm:$0xff] }
 0x216   :  { %5395 = vmatprep.subr.mxu1 %v131_v8  ;;  %v110_v8 = vld [vmem:[%s9589_s3 + $0x120] sm:$0xff] }
 0x217   :  { %5396 = vmatpush3.msra.mxu1 %v115_v58  ;;  %v125_v58 = vld [vmem:[%s9589_s3 + $0x198] sm:$0xff] }
 0x21f   :  { %v5870_v12 = vpop.eup %5869 }
 0x220   :  { %v937_v59 = vmul.f32 %v5870_v12, %v6592_v55 }
 0x222   :  { %944 = vperm.xlu0 %5788, %v937_v59   ;;  %v85_v59 = vld [vmem:[%s9589_s3 + $0x58] sm:$0xff] }
 0x223   :  { %5357 = vmatpush3.msra.mxu0 %v85_v59  ;;  %v114_v59 = vld [vmem:[%s9589_s3 + $0x140] sm:$0xff] }
 0x224   :  { %5358 = vmatprep.subr.mxu0 %v100_v43 }
 0x225   :  { %5359 = vmatpush3.msra.mxu0 %v84_v25  ;;  %v95_v25 = vld [vmem:[%s9589_s3 + $0xa8] sm:$0xff] }
 0x226   :  { %5360 = vmatprep.subr.mxu0 %v99_v53  ;;  %v78_v53 = vld [vmem:[%s9589_s3 + $0x20] sm:$0xff] }
 0x227   :  { %5361 = vmatpush3.msra.mxu0 %v83_v61  ;;  %v93_v61 = vld [vmem:[%s9589_s3 + $0x98] sm:$0xff] }
 0x228   :  { %5362 = vmatprep.subr.mxu0 %v98_v35  ;;  %v77_v35 = vld [vmem:[%s9589_s3 + $0x18] sm:$0xff] }
 0x229   :  { %5363 = vmatpush3.msra.mxu0 %v82_v21  ;;  %v92_v21 = vld [vmem:[%s9589_s3 + $0x90] sm:$0xff] }
 0x29d   :  { %v945_v12 = vpop.permute.xlu0 %944 }
 0x29e   :  { %v947_v14 = vmul.f32 %v945_v12, %v938_v39  ;;  %v948_v16 = vmul.f32 %v945_v12, %v939_v20  ;;  %v949_v11 = vmul.f32 %v945_v12, %v940_v0  ;;  %v950_v30 = vmul.f32 %v945_v12, %v941_v47  ;;  %v130_v20 = vld [vmem:[%s9589_s3 + $0x1c0] sm:$0xff] }
 0x29f   :  { %5397 = vmatprep.subr.mxu1 %v130_v20  ;;  %v109_v20 = vld [vmem:[%s9589_s3 + $0x118] sm:$0xff] }
 0x2a0   :  { %v956_v7 = vadd.f32 %v954_v18, %v947_v14  ;;  %v957_v3 = vadd.f32 %v954_v18, %v948_v16  ;;  %v958_v28 = vadd.f32 %v954_v18, %v949_v11  ;;  %v959_v49 = vadd.f32 %v954_v18, %v950_v30  ;;  %v97_v18 = vld [vmem:[%s9589_s3 + $0xb8] sm:$0xff]  ;;  %v96_v16 = vld [vmem:[%s9589_s3 + $0xb0] sm:$0xff]  ;;  %5398 = vmatpush3.msra.mxu1 %v114_v59 }
 0x2a1   :  { %v129_v14 = vld [vmem:[%s9589_s3 + $0x1b8] sm:$0xff]  ;;  %5364 = vmatprep.subr.mxu0 %v97_v18  ;;  %v80_v30 = vld [vmem:[%s9589_s3 + $0x30] sm:$0xff] }
 0x2a2   :  { %v6684_v54 = vmax.f32 %v957_v3, 0.0  ;;  %v6686_v39 = vmax.f32 %v958_v28, 0.0  ;;  %v6697_v0 = vmax.f32 %v956_v7, 0.0  ;;  %v6699_v47 = vmax.f32 %v959_v49, 0.0  ;;  %v113_v11 = vld [vmem:[%s9589_s3 + $0x138] sm:$0xff]  ;;  %5365 = vmatpush3.msra.mxu0 %v81_v15  ;;  %5399 = vmatprep.subr.mxu1 %v129_v14  ;;  %v79_v7 = vld [vmem:[%s9589_s3 + $0x28] sm:$0xff] }
 0x2a3   :  { %5366 = vmatprep.subr.mxu0 %v96_v16  ;;  %5400 = vmatpush3.msra.mxu1 %v113_v11  ;;  %v127_v3 = vld [vmem:[%s9589_s3 + $0x1a8] sm:$0xff]  ;;  %v94_v28 = vld [vmem:[%s9589_s3 + $0xa0] sm:$0xff]  ;;  %v76_v18 = vld [vmem:[%s9589_s3 + $0x10] sm:$0xff] }
 0x2a4   :  { %9999 = vst [vmem:[#allocation34_spill] sm:$0xff] %v6686_v39  ;;  %10000 = vst [vmem:[#allocation35_spill] sm:$0xff] %v6697_v0  ;;  %v6703_v12 = vpack.i.bf16 %v6686_v39, %v6684_v54  ;;  %v5795_v43 = vpack.i.bf16 %v6697_v0, %v6699_v47  ;;  %5367 = vmatpush3.msra.mxu0 %v80_v30  ;;  %5401 = vmatprep.subr.mxu1 %v128_v33  ;;  %v111_v49 = vld [vmem:[%s9589_s3 + $0x128] sm:$0xff]  ;;  %v124_v59 = vld [vmem:[%s9589_s3 + $0x190] sm:$0xff] }
 0x2a5   :  { %10001 = vst [vmem:[#allocation36_spill] sm:$0xff] %v6699_v47  ;;  %5368 = vmatprep.subr.mxu0 %v95_v25  ;;  %5402 = vmatpush3.msra.mxu1 %v112_v29  ;;  %v91_v15 = vld [vmem:[%s9589_s3 + $0x88] sm:$0xff]  ;;  %v108_v14 = vld [vmem:[%s9589_s3 + $0x110] sm:$0xff]  ;;  %v90_v30 = vld [vmem:[%s9589_s3 + $0x80] sm:$0xff] }
 0x2a6   :  { %5791 = vrot.lane.b32.xlu1 %v6703_v12, %s5930_s0  ;;  %5369 = vmatpush3.msra.mxu0 %v79_v7  ;;  %v75_v16 = vld [vmem:[%s9589_s3 + $0x8] sm:$0xff]  ;;  %v74_v25 = vld [vmem:[%s9589_s3] sm:$0xff] }
 0x2a7   :  { %5403 = vmatprep.subr.mxu1 %v127_v3  ;;  %5370 = vmatprep.subr.mxu0 %v94_v28  ;;  %v123_v11 = vld [vmem:[%s9589_s3 + $0x188] sm:$0xff]  ;;  %v122_v29 = vld [vmem:[%s9589_s3 + $0x180] sm:$0xff] }
 0x2a8   :  { %5404 = vmatpush3.msra.mxu1 %v111_v49  ;;  %5371 = vmatpush3.msra.mxu0 %v78_v53  ;;  %v107_v33 = vld [vmem:[%s9589_s3 + $0x108] sm:$0xff]  ;;  %v106_v7 = vld [vmem:[%s9589_s3 + $0x100] sm:$0xff]  ;;  %s5939_s3 = smov 120  }
 0x2a9   :  { %5405 = vmatprep.subr.mxu1 %v126_v62  ;;  %5372 = vmatprep.subr.mxu0 %v93_v61 }
 0x2aa   :  { %5796 = vrot.lane.b32.xlu1 %v5795_v43, %s5930_s0  ;;  %5406 = vmatpush3.msra.mxu1 %v110_v8 }
 0x2ab   :  { %5373 = vmatpush3.msra.mxu0 %v77_v35  ;;  %5407 = vmatprep.subr.mxu1 %v125_v58 }
 0x2ac   :  { %5374 = vmatprep.subr.mxu0 %v92_v21  ;;  %5408 = vmatpush3.msra.mxu1 %v109_v20 }
 0x2ad   :  { %5375 = vmatpush3.msra.mxu0 %v76_v18  ;;  %5409 = vmatprep.subr.mxu1 %v124_v59 }
 0x2ae   :  { %5801 = vrot.lane.b32.xlu1 %v6703_v12, %s5928_s28  ;;  %5376 = vmatprep.subr.mxu0 %v91_v15 }
 0x2af   :  { %5410 = vmatpush3.msra.mxu1 %v108_v14  ;;  %5377 = vmatpush3.msra.mxu0 %v75_v16 }
 0x2b0   :  { %5411 = vmatprep.subr.mxu1 %v123_v11  ;;  %5378 = vmatprep.subr.mxu0 %v90_v30 }
 0x2b1   :  { %5412 = vmatpush3.msra.mxu1 %v107_v33  ;;  %5379 = vmatpush3.msra.mxu0 %v74_v25 }
 0x2b2   :  { %5806 = vrot.lane.b32.xlu1 %v5795_v43, %s5928_s28  ;;  %5413 = vmatprep.subr.mxu1 %v122_v29 }
 0x2b3   :  { %5414 = vmatpush3.msra.mxu1 %v106_v7 }
 0x2b6   :  { %5811 = vrot.lane.b32.xlu1 %v6703_v12, %s9705_s29 }
 0x2ba   :  { %5816 = vrot.lane.b32.xlu1 %v5795_v43, %s9705_s29 }
 0x318   :  { %v5792_v3 = vpop.permute.xlu1 %5791 }
 0x319   :  { %v5794_v62 = vunpack.i.h.bf16 %v5792_v3  ;;  %v5793_v61 = vunpack.i.l.bf16 %v5792_v3 }
 0x31b   :  { %v977_v59 = vsel %vm10002_vm0, %v5793_v61, %v5794_v62  ;;  %vm10008_vm0 = vmmov %vm10005_vm12 }
 0x31c   :  { %v5797_v28 = vpop.permute.xlu1 %5796  ;;  %v985_v25 = vmax.f32 %v6684_v54, %v977_v59 }
 0x31d   :  { %v5799_v8 = vunpack.i.h.bf16 %v5797_v28  ;;  %v5798_v12 = vunpack.i.l.bf16 %v5797_v28 }
 0x31f   :  { %v976_v15 = vsel %vm10003_vm7, %v5799_v8, %v5793_v61  ;;  %v978_v43 = vsel %vm10004_vm9, %v5794_v62, %v5798_v12  ;;  %v983_v3 = vsel %vm10007_vm1, %v5798_v12, 0.0  ;;  %vm10009_vm7 = vmmov %vm10008_vm0 }
 0x320   :  { %v5802_v49 = vpop.permute.xlu1 %5801  ;;  %v984_v7 = vmax.f32 %v6697_v0, %v976_v15  ;;  %v986_v61 = vmax.f32 %v6686_v39, %v978_v43  ;;  %vm10010_vm9 = vmmov %vm10008_vm0  ;;  %v987_v12 = vmax.f32 %v6699_v47, %v983_v3  ;;  %v379_v3 = vand.u32 7, %v6096_v6 }
 0x321   :  { %v5804_v35 = vunpack.i.h.bf16 %v5802_v49  ;;  %v5803_v58 = vunpack.i.l.bf16 %v5802_v49 }
 0x323   :  { %v997_v11 = vsel %vm10005_vm12, %v5803_v58, %v5804_v35  ;;  %vm10011_vm12 = vmmov %vm10006_vm10 }
 0x324   :  { %v5807_v53 = vpop.permute.xlu1 %5806 }
 0x325   :  { %v5809_v14 = vunpack.i.h.bf16 %v5807_v53  ;;  %v5808_v16 = vunpack.i.l.bf16 %v5807_v53 }
 0x327   :  { %v996_v53 = vsel %vm10008_vm0, %v5809_v14, %v5803_v58  ;;  %v998_v62 = vsel %vm10009_vm7, %v5804_v35, %v5808_v16 }
 0x328   :  { %v5812_v21 = vpop.permute.xlu1 %5811 }
 0x329   :  { %v5814_v20 = vunpack.i.h.bf16 %v5812_v21  ;;  %v5813_v18 = vunpack.i.l.bf16 %v5812_v21  ;;  %v1003_v21 = vsel %vm10010_vm9, %v5808_v16, 0.0 }
 0x32b   :  { %v1013_v30 = vsel %vm10006_vm10, %v5813_v18, %v5814_v20 }
 0x32c   :  { %v5817_v33 = vpop.permute.xlu1 %5816  ;;  %v1021_v29 = vmax.f32 %v997_v11, %v1013_v30 }
 0x32d   :  { %v5819_v28 = vunpack.i.h.bf16 %v5817_v33  ;;  %v5818_v49 = vunpack.i.l.bf16 %v5817_v33 }
 0x32e   :  { %v1025_v8 = vmax.f32 %v985_v25, %v1021_v29 }
 0x32f   :  { %v1012_v5 = vsel %vm10011_vm12, %v5819_v28, %v5813_v18  ;;  %v1014_v59 = vsel %vm10006_vm10, %v5814_v20, %v5818_v49  ;;  %v1019_v11 = vsel %vm10012_vm2, %v5818_v49, 0.0  ;;  %vm9658_vm2 = vcmask 588800  }
 0x330   :  { %v1020_v15 = vmax.f32 %v996_v53, %v1012_v5  ;;  %v1022_v30 = vmax.f32 %v998_v62, %v1014_v59  ;;  %1092 = vmatprep.mubr.f32.mxu0 %v1025_v8  ;;  %v1023_v33 = vmax.f32 %v1003_v21, %v1019_v11  ;;  %v380_v5 = vshra.s32 %v6096_v6, 3 }
 0x331   :  { %v395_v49 = vadd.s32 1, %v379_v3  ;;  %v386_v53 = vadd.s32 4294967295, %v379_v3  ;;  %vm9666_vm12 = vcmask 973824   ;;  %v10015_v62 = vmov 0 }
 0x332   :  { %v1024_v43 = vmax.f32 %v984_v7, %v1020_v15  ;;  %v1027_v4 = vmax.f32 %v987_v12, %v1023_v33  ;;  %v1026_v58 = vmax.f32 %v986_v61, %v1022_v30  ;;  %v381_v7 = vand.u32 7, %v380_v5 }
 0x333   :  { %vm9665_vm7 = vcmp.lt.s32.totalorder %v395_v49, 8  ;;  %vm9668_vm5 = vcmp.ge.s32.totalorder %v386_v53, 0  ;;  %v10032_v5 = vmov 0 }
 0x334   :  { %1093 = vmatmul.mubr.f32.vlgmr.msra.gmra.mxu0 %v1024_v43  ;;  %1162 = vmatprep.mubr.f32.mxu1 %v1027_v4  ;;  %v29_v4 = vld [vmem:[%s9587_s1 + $0x18] sm:$0xff]  ;;  %v407_v28 = vadd.s32 1, %v381_v7  ;;  %vm401_vm3 = vcmp.lt.s32.totalorder %v381_v7, 8  ;;  %v382_v11 = vadd.s32 4294967295, %v381_v7 }
 0x335   :  { %1163 = vmatmul.mubr.f32.vlgmr.msra.gmra.mxu1 %v1026_v58  ;;  %5628 = vmatprep.mubr.msk.f32.mxu0 %vm9658_vm2, %v29_v4  ;;  %vm400_vm2 = vcmp.ge.s32.totalorder %v381_v7, 0 }
 0x336   :  { %vm408_vm1 = vcmp.ge.s32.totalorder %v407_v28, 0  ;;  %vm409_vm0 = vcmp.lt.s32.totalorder %v407_v28, 8 }
 0x337   :  { %vm6855_vm9 = vmand %vm408_vm1, %vm409_vm0  ;;  %vm9669_vm1 = vcmask 990208  }
 0x338   :  { %vm6862_vm10 = vmand %vm6855_vm9, %vm9665_vm7 }
 0x339   :  { %v10016_v62 = vsel %vm6862_vm10, 4294967295, %v10015_v62  ;;  %vm6869_vm0 = vmand %vm400_vm2, %vm401_vm3  ;;  %vm10021_vm3 = vcmp.lt.s32.totalorder %v395_v49, 8 }
 0x33a   :  { %vm6879_vm7 = vmand %vm6855_vm9, %vm9668_vm5  ;;  %vm10024_vm5 = vcmask 1039360  }
 0x33b   :  { %vm6891_vm2 = vmand %vm6869_vm0, %vm10021_vm3  ;;  %vm10027_vm3 = vcmp.ge.s32.totalorder %v386_v53, 0  ;;  %v10037_v53 = vmov 0.0  }
 0x33c   :  { %vm6911_vm13 = vmand %vm6869_vm0, %vm10027_vm3  ;;  %vm9681_vm0 = vcmask 64512  }
 0x3f4   :  { %v5380_v35 = vpop.f32.mrf.mxu0 }
 0x3f5   :  { %v5415_v14 = vpop.f32.mrf.mxu1 }
 0x3f6   :  { %v5381_v16 = vpop.f32.mrf.mxu0 }
 0x3f7   :  { %v5382_v18 = vadd.f32 %v5381_v16, %v5380_v35  ;;  %v5416_v25 = vpop.f32.mrf.mxu1  ;;  %v10022_v35 = vmov 0 }
 0x3f8   :  { %v5417_v20 = vadd.f32 %v5416_v25, %v5415_v14  ;;  %v10023_v35 = vsel %vm6891_vm2, 4294967295, %v10022_v35  ;;  %v10025_v25 = vmov 0 }
 0x3fa   :  { %v6831_v29 = vadd.f32 %v5417_v20, %v5382_v18 }
 0x3fc   :  { %1215 = vrot.lane.b32.xlu1 %v6831_v29, %s5939_s3  ;;  %1223 = vrot.lane.b32.xlu0 %v6831_v29, %s5940_s16 }
 0x400   :  { %1200 = vrot.lane.b32.xlu1 %v6831_v29, %s5930_s0  ;;  %1207 = vrot.lane.b32.xlu0 %v6831_v29, %s5941_s17 }
 0x404   :  { %1185 = vrot.lane.b32.xlu1 %v6831_v29, %s5942_s20  ;;  %1193 = vrot.lane.b32.xlu0 %v6831_v29, %s5932_s8 }
 0x408   :  { %1169 = vrot.lane.b32.xlu1 %v6831_v29, %s5943_s21  ;;  %1177 = vrot.lane.b32.xlu0 %v6831_v29, %s5944_s22 }
 0x46e   :  { %v1216_v8 = vpop.permute.xlu1 %1215  ;;  %v1224_v21 = vpop.permute.xlu0 %1223 }
 0x46f   :  { %v1227_v59 = vsel %vm9666_vm12, %v1224_v21, 0.0  ;;  %v1219_v30 = vsel %vm9667_vm11, %v1216_v8, 0.0  ;;  %vm383_vm12 = vcmp.ge.s32.totalorder %v382_v11, 0  ;;  %vm384_vm11 = vcmp.lt.s32.totalorder %v382_v11, 8  ;;  %v30_v21 = vld [vmem:[%s9587_s1 + $0x30] sm:$0xff] }
 0x470   :  { %5610 = vmatprep.subr.msk.mxu0 %vm6862_vm10, %v1227_v59 }
 0x471   :  { %5611 = vmatpush3.msk.msra.mxu0 %vm6862_vm10, %v1227_v59 }
 0x472   :  { %v1201_v33 = vpop.permute.xlu1 %1200  ;;  %5612 = vmatprep.subr.msk.mxu0 %vm6855_vm9, %v1219_v30  ;;  %v1208_v43 = vpop.permute.xlu0 %1207 }
 0x473   :  { %v1211_v58 = vsel %vm9669_vm1, %v1208_v43, 0.0  ;;  %5613 = vmatpush3.msk.msra.mxu0 %vm6855_vm9, %v1219_v30  ;;  %v1203_v14 = vsel %vm10024_vm5, %v1201_v33, 0.0  ;;  %vm6902_vm1 = vmand %vm383_vm12, %vm384_vm11  ;;  %vm9682_vm5 = vcmask 56320   ;;  %vm10031_vm11 = vcmp.lt.s32.totalorder %v395_v49, 8 }
 0x474   :  { %5614 = vmatprep.subr.msk.mxu0 %vm6879_vm7, %v1211_v58  ;;  %v10026_v25 = vsel %vm6902_vm1, 4294967295, %v10025_v25  ;;  %vm6921_vm12 = vmand %vm6902_vm1, %vm10031_vm11  ;;  %v10034_v49 = vmov 0  ;;  %v5945_v33 = vmov 3   ;;  %v5946_v43 = vmov 2  }
 0x475   :  { %5615 = vmatpush3.msk.msra.mxu0 %vm6879_vm7, %v1211_v58  ;;  %v10033_v5 = vsel %vm6921_vm12, 4294967295, %v10032_v5  ;;  %vm6938_vm11 = vmand %vm6902_vm1, %vm10027_vm3  ;;  %vm10036_vm3 = vcmask 588800   ;;  %5821 = vset.pattern.permute.xlu1 %v5945_v33 }
 0x476   :  { %v1186_v16 = vpop.permute.xlu1 %1185  ;;  %5616 = vmatprep.subr.msk.mxu0 %vm6891_vm2, %v1203_v14  ;;  %v1194_v18 = vpop.permute.xlu0 %1193  ;;  %v10035_v49 = vsel %vm6938_vm11, 4294967295, %v10034_v49  ;;  %5820 = vset.pattern.permute.xlu0 %v5946_v43 }
 0x477   :  { %5617 = vmatpush3.msk.msra.mxu0 %vm6891_vm2, %v1203_v14  ;;  %v1196_v4 = vsel %vm10030_vm14, 0.0, %v1194_v18  ;;  %v1189_v3 = vsel %vm9682_vm5, 0.0, %v1186_v16  ;;  %vm9680_vm14 = vcmask 72704  }
 0x478   :  { %5618 = vmatprep.subr.mxu0 %v6831_v29 }
 0x479   :  { %5619 = vmatpush3.msra.mxu0 %v6831_v29 }
 0x47a   :  { %5620 = vmatprep.subr.msk.mxu0 %vm6911_vm13, %v1196_v4  ;;  %v1178_v7 = vpop.permute.xlu0 %1177  ;;  %v1170_v28 = vpop.permute.xlu1 %1169 }
 0x47b   :  { %5621 = vmatpush3.msk.msra.mxu0 %vm6911_vm13, %v1196_v4  ;;  %v1181_v29 = vsel %vm9681_vm0, 0.0, %v1178_v7  ;;  %v1173_v8 = vsel %vm9680_vm14, 0.0, %v1170_v28  ;;  %vm10040_vm0 = vcmask 982016  }
 0x47c   :  { %5622 = vmatprep.subr.msk.mxu0 %vm6921_vm12, %v1189_v3  ;;  %vm10041_vm5 = vmmov %vm10040_vm0 }
 0x47d   :  { %5623 = vmatpush3.msk.msra.mxu0 %vm6921_vm12, %v1189_v3 }
 0x47e   :  { %5624 = vmatprep.subr.msk.mxu0 %vm6902_vm1, %v1181_v29 }
 0x47f   :  { %5625 = vmatpush3.msk.msra.mxu0 %vm6902_vm1, %v1181_v29  ;;  %vm9702_vm1 = vcmask 23552  }
 0x480   :  { %5626 = vmatprep.subr.msk.mxu0 %vm6938_vm11, %v1173_v8 }
 0x481   :  { %5627 = vmatpush3.msk.msra.mxu0 %vm6938_vm11, %v1173_v8  ;;  %vm10057_vm11 = vcmask 7168  }
 0x482   :  { %5629 = vmatmul.mubr.msk.f32.vlgmr.msra.gmra.mxu0 %vm10036_vm3, %v30_v21  ;;  %1590 = vmatprep.subr.mxu0 %v10037_v53  ;;  %vm10038_vm3 = vcmask 1039360  }
 0x483   :  { %vm10039_vm14 = vmmov %vm10038_vm3 }
 0x542   :  { %v6956_v59 = vpop.f32.mrf.mxu0 }
 0x543   :  { %1317 = vadd.xlane.f32.xlu1 %v6956_v59  ;;  %v1314_v30 = vmul.f32 %v6956_v59, %v6956_v59 }
 0x544   :  { %v6959_v11 = vpop.f32.mrf.mxu0 }
 0x545   :  { %1315 = vadd.xlane.f32.xlu0 %v6959_v11  ;;  %v1313_v15 = vmul.f32 %v6959_v11, %v6959_v11 }
 0x549   :  { %1319 = vadd.xlane.f32.xlu0 %v1313_v15 }
 0x54d   :  { %1321 = vadd.xlane.f32.xlu0 %v1314_v30 }
 0x554   :  { %1354 = vperm.xlu1 %5821, %v6592_v55  }
 0x558   :  { %5822 = vset.pattern.permute.xlu1 %v5946_v43 }
 0x5cc   :  { %v1318_v16 = vpop.xlane.xlu1 %1317 }
 0x5cd   :  { %v6967_v4 = vmul.f32 0.0078125, %v1318_v16  ;;  %v6975_v16 = vld [vmem:[%s9588_s2 + $0x8] sm:$0xff] }
 0x5ce   :  { %v1316_v58 = vpop.xlane.xlu0 %1315 }
 0x5cf   :  { %v1323_v14 = vmul.f32 0.0078125, %v1316_v58  ;;  %v1328_v8 = vmul.f32 %v6967_v4, %v6967_v4 }
 0x5d1   :  { %v1327_v7 = vmul.f32 %v1323_v14, %v1323_v14 }
 0x5d2   :  { %v1320_v18 = vpop.xlane.xlu0 %1319 }
 0x5d3   :  { %v1325_v3 = vmul.f32 0.0078125, %v1320_v18 }
 0x5d5   :  { %v1329_v28 = vsub.f32 %v1325_v3, %v1327_v7  ;;  %v148_v3 = vld [vmem:[%s9590_s4 + $0x50] sm:$0xff] }
 0x5d6   :  { %v1322_v29 = vpop.xlane.xlu0 %1321 }
 0x5d7   :  { %v1331_v21 = vmax.f32 %v1329_v28, 0.0  ;;  %v1326_v15 = vmul.f32 0.0078125, %v1322_v29  ;;  %v147_v28 = vld [vmem:[%s9590_s4 + $0x48] sm:$0xff]  ;;  %v146_v29 = vld [vmem:[%s9590_s4 + $0x40] sm:$0xff] }
 0x5d9   :  { %v1333_v30 = vadd.f32 1e-05, %v1331_v21  ;;  %v1330_v9 = vsub.f32 %v1326_v15, %v1328_v8  ;;  %v1355_v8 = vpop.permute.xlu1 %1354  ;;  %v1339_v21 = vsub.f32 %v6959_v11, %v1323_v14  ;;  %v143_v11 = vld [vmem:[%s9590_s4 + $0x28] sm:$0xff] }
 0x5db   :  { %5871 = vrsqrt.f32 %v1333_v30  ;;  %v1332_v2 = vmax.f32 %v1330_v9, 0.0  ;;  %v152_v9 = vld [vmem:[%s9590_s4 + $0x70] sm:$0xff]  ;;  %v145_v30 = vld [vmem:[%s9590_s4 + $0x38] sm:$0xff] }
 0x5dd   :  { %v1334_v43 = vadd.f32 1e-05, %v1332_v2  ;;  %v153_v2 = vld [vmem:[%s9590_s4 + $0x78] sm:$0xff] }
 0x5de   :  { %5631 = vmatprep.subr.mxu1 %v153_v2 }
 0x5df   :  { %5873 = vrsqrt.f32 %v1334_v43  ;;  %5632 = vmatpush3.msra.mxu1 %v153_v2 }
 0x5e0   :  { %5633 = vmatprep.subr.mxu1 %v152_v9 }
 0x5e1   :  { %5634 = vmatpush3.msra.mxu1 %v152_v9 }
 0x5e8   :  { %v5872_v58 = vpop.eup %5871 }
 0x5e9   :  { %v1337_v56 = vmul.f32 %v5872_v58, %v6592_v55  ;;  %v150_v55 = vld [vmem:[%s9590_s4 + $0x60] sm:$0xff]  ;;  %v144_v58 = vld [vmem:[%s9590_s4 + $0x30] sm:$0xff] }
 0x5eb   :  { %1343 = vperm.xlu1 %5822, %v1337_v56   ;;  %v151_v56 = vld [vmem:[%s9590_s4 + $0x68] sm:$0xff] }
 0x5ec   :  { %v5874_v18 = vpop.eup %5873  ;;  %5635 = vmatprep.subr.mxu1 %v151_v56 }
 0x5ed   :  { %v1338_v7 = vmul.f32 %v5874_v18, %v6975_v16  ;;  %5636 = vmatpush3.msra.mxu1 %v151_v56  ;;  %v1340_v18 = vsub.f32 %v6956_v59, %v6967_v4  ;;  %v142_v56 = vld [vmem:[%s9590_s4 + $0x20] sm:$0xff]  ;;  %v141_v59 = vld [vmem:[%s9590_s4 + $0x18] sm:$0xff] }
 0x5ee   :  { %5637 = vmatprep.subr.mxu1 %v150_v55 }
 0x5ef   :  { %1348 = vperm.xlu0 %5820, %v1338_v7   ;;  %5823 = vset.pattern.permute.xlu1 %v5945_v33  ;;  %v149_v33 = vld [vmem:[%s9590_s4 + $0x58] sm:$0xff] }
 0x5f0   :  { %1359 = vperm.xlu1 %5823, %v6975_v16   ;;  %5638 = vmatpush3.msra.mxu1 %v150_v55 }
 0x5f1   :  { %5639 = vmatprep.subr.mxu1 %v149_v33 }
 0x5f2   :  { %5640 = vmatpush3.msra.mxu1 %v149_v33 }
 0x5f3   :  { %5641 = vmatprep.subr.mxu1 %v148_v3 }
 0x5f4   :  { %5642 = vmatpush3.msra.mxu1 %v148_v3  ;;  %v140_v3 = vld [vmem:[%s9590_s4 + $0x10] sm:$0xff] }
 0x5f5   :  { %5643 = vmatprep.subr.mxu1 %v147_v28 }
 0x5f6   :  { %5644 = vmatpush3.msra.mxu1 %v147_v28 }
 0x5f7   :  { %5645 = vmatprep.subr.mxu1 %v146_v29 }
 0x5f8   :  { %5646 = vmatpush3.msra.mxu1 %v146_v29  ;;  %v139_v29 = vld [vmem:[%s9590_s4 + $0x8] sm:$0xff] }
 0x5f9   :  { %5647 = vmatprep.subr.mxu1 %v145_v30 }
 0x5fa   :  { %5648 = vmatpush3.msra.mxu1 %v145_v30 }
 0x5fb   :  { %5649 = vmatprep.subr.mxu1 %v144_v58 }
 0x5fc   :  { %5650 = vmatpush3.msra.mxu1 %v144_v58 }
 0x5fd   :  { %5651 = vmatprep.subr.mxu1 %v143_v11 }
 0x5fe   :  { %5652 = vmatpush3.msra.mxu1 %v143_v11 }
 0x5ff   :  { %5653 = vmatprep.subr.mxu1 %v142_v56 }
 0x600   :  { %5654 = vmatpush3.msra.mxu1 %v142_v56 }
 0x601   :  { %5655 = vmatprep.subr.mxu1 %v141_v59 }
 0x602   :  { %5656 = vmatpush3.msra.mxu1 %v141_v59 }
 0x603   :  { %5657 = vmatprep.subr.mxu1 %v140_v3 }
 0x604   :  { %5658 = vmatpush3.msra.mxu1 %v140_v3 }
 0x605   :  { %5659 = vmatprep.subr.mxu1 %v139_v29 }
 0x606   :  { %5660 = vmatpush3.msra.mxu1 %v139_v29 }
 0x666   :  { %v1344_v15 = vpop.permute.xlu1 %1343 }
 0x667   :  { %v1351_v43 = vmul.f32 %v1344_v15, %v1339_v21 }
 0x669   :  { %v1362_v14 = vadd.f32 %v1355_v8, %v1351_v43  ;;  %v138_v8 = vld [vmem:[%s9590_s4] sm:$0xff]  ;;  %s5947_s4 = smov 125  }
 0x66a   :  { %v1349_v7 = vpop.permute.xlu0 %1348  ;;  %5661 = vmatprep.subr.mxu1 %v138_v8 }
 0x66b   :  { %v1352_v2 = vmul.f32 %v1349_v7, %v1340_v18  ;;  %v1360_v9 = vpop.permute.xlu1 %1359  ;;  %v7021_v4 = vmax.f32 %v1362_v14, 0.0  ;;  %5662 = vmatpush3.msra.mxu1 %v138_v8 }
 0x66d   :  { %v1363_v55 = vadd.f32 %v1360_v9, %v1352_v2 }
 0x66f   :  { %v7023_v33 = vmax.f32 %v1363_v55, 0.0 }
 0x671   :  { %v5824_v28 = vpack.i.bf16 %v7023_v33, %v7021_v4 }
 0x673   :  { %5825 = vrot.lane.b32.xlu1 %v5824_v28, %s5930_s0 }
 0x677   :  { %5830 = vrot.lane.b32.xlu1 %v5824_v28, %s5939_s3 }
 0x67b   :  { %5835 = vrot.lane.b32.xlu1 %v5824_v28, %s5940_s16 }
 0x6e5   :  { %v5826_v21 = vpop.permute.xlu1 %5825 }
 0x6e6   :  { %v5828_v30 = vunpack.i.h.bf16 %v5826_v21  ;;  %v5827_v43 = vunpack.i.l.bf16 %v5826_v21 }
 0x6e8   :  { %v1375_v11 = vsel %vm10038_vm3, %v5828_v30, 0.0  ;;  %v1374_v14 = vsel %vm10039_vm14, %v5827_v43, 0.0 }
 0x6e9   :  { %v5831_v15 = vpop.permute.xlu1 %5830  ;;  %v1377_v28 = vmax.f32 %v7023_v33, %v1375_v11  ;;  %v1376_v8 = vmax.f32 %v7021_v4, %v1374_v14 }
 0x6ea   :  { %v5833_v58 = vunpack.i.h.bf16 %v5831_v15  ;;  %v5832_v18 = vunpack.i.l.bf16 %v5831_v15 }
 0x6ec   :  { %v1385_v56 = vsel %vm10040_vm0, %v5833_v58, 0.0  ;;  %v1384_v55 = vsel %vm10041_vm5, %v5832_v18, 0.0  ;;  %v32_v18 = vld [vmem:[%s9587_s1 + $0x50] sm:$0xff]  ;;  %vm9693_vm0 = vcmask 228352  }
 0x6ed   :  { %v5836_v7 = vpop.permute.xlu1 %5835 }
 0x6ee   :  { %v5838_v2 = vunpack.i.h.bf16 %v5836_v7  ;;  %v5837_v9 = vunpack.i.l.bf16 %v5836_v7  ;;  %v418_v7 = vshra.s32 %v6096_v6, 2 }
 0x6f0   :  { %v1393_v59 = vsel %vm10042_vm15, %v5838_v2, 0.0  ;;  %v1392_v3 = vsel %vm10043_vm8, %v5837_v9, 0.0  ;;  %vm10044_vm15 = vcmask 130048   ;;  %v419_v11 = vand.u32 3, %v418_v7 }
 0x6f1   :  { %v1395_v29 = vmax.f32 %v1385_v56, %v1393_v59  ;;  %v1394_v21 = vmax.f32 %v1384_v55, %v1392_v3  ;;  %5090 = vmatprep.mubr.msk.f32.mxu0 %vm10044_vm15, %v32_v18  ;;  %v417_v2 = vand.u32 3, %v6096_v6 }
 0x6f2   :  { %v445_v14 = vadd.s32 1, %v419_v11  ;;  %vm438_vm15 = vcmp.ge.s32.totalorder %v419_v11, 0  ;;  %vm439_vm4 = vcmp.lt.s32.totalorder %v419_v11, 4 }
 0x6f3   :  { %v1396_v15 = vmax.f32 %v1376_v8, %v1394_v21  ;;  %v1397_v30 = vmax.f32 %v1377_v28, %v1395_v29  ;;  %v7089_v9 = vadd.s32 4294967295, %v417_v2  ;;  %v7099_v28 = vadd.s32 1, %v417_v2  ;;  %vm7114_vm10 = vmand %vm438_vm15, %vm439_vm4 }
 0x6f4   :  { %vm446_vm8 = vcmp.ge.s32.totalorder %v445_v14, 0  ;;  %vm447_vm5 = vcmp.lt.s32.totalorder %v445_v14, 4 }
 0x6f5   :  { %5663 = vmatprep.mubr.f32.mxu1 %v1396_v15  ;;  %vm7091_vm14 = vmand %vm446_vm8, %vm447_vm5  ;;  %vm9701_vm3 = vcmp.ge.s32.totalorder %v7089_v9, 0  ;;  %vm9696_vm5 = vcmp.lt.s32.totalorder %v7099_v28, 4 }
 0x6f6   :  { %5664 = vmatmul.mubr.f32.vlgmr.msra.gmra.mxu1 %v1397_v30  ;;  %vm7107_vm8 = vmand %vm7091_vm14, %vm9701_vm3 }
 0x6f7   :  { %vm7128_vm4 = vmand %vm7114_vm10, %vm9696_vm5 }
 0x7b6   :  { %v7047_v43 = vpop.f32.mrf.mxu1 }
 0x7b7   :  { %1541 = vrot.lane.b32.xlu0 %v7047_v43, %s5947_s4  ;;  %1554 = vrot.lane.b32.xlu1 %v7047_v43, %s5948_s26 }
 0x7b8   :  { %v7053_v58 = vpop.f32.mrf.mxu1 }
 0x7bb   :  { %1528 = vrot.lane.b32.xlu0 %v7047_v43, %s5930_s0  ;;  %1552 = vrot.lane.b32.xlu1 %v7053_v58, %s5948_s26 }
 0x7bf   :  { %1516 = vrot.lane.b32.xlu0 %v7047_v43, %s5932_s8  ;;  %1539 = vrot.lane.b32.xlu1 %v7053_v58, %s5947_s4 }
 0x7c3   :  { %1503 = vrot.lane.b32.xlu0 %v7047_v43, %s5949_s27  ;;  %1526 = vrot.lane.b32.xlu1 %v7053_v58, %s5930_s0 }
 0x7c7   :  { %1490 = vrot.lane.b32.xlu0 %v7047_v43, %s5950_s12  ;;  %1514 = vrot.lane.b32.xlu1 %v7053_v58, %s5932_s8 }
 0x7cb   :  { %1477 = vrot.lane.b32.xlu0 %v7047_v43, %s5951_s13  ;;  %1501 = vrot.lane.b32.xlu1 %v7053_v58, %s5949_s27 }
 0x7cf   :  { %1567 = vrot.lane.b32.xlu0 %v7047_v43, %s5952_s14  ;;  %1488 = vrot.lane.b32.xlu1 %v7053_v58, %s5950_s12 }
 0x7d3   :  { %1475 = vrot.lane.b32.xlu1 %v7053_v58, %s5951_s13 }
 0x7d7   :  { %1565 = vrot.lane.b32.xlu1 %v7053_v58, %s5952_s14 }
 0x829   :  { %v1542_v55 = vpop.permute.xlu0 %1541  ;;  %v1555_v59 = vpop.permute.xlu1 %1554 }
 0x82a   :  { %v1560_v3 = vsel %vm9693_vm0, %v1555_v59, 0.0  ;;  %v1547_v30 = vsel %vm9694_vm6, %v1542_v55, 0.0  ;;  %v420_v59 = vadd.s32 4294967295, %v419_v11 }
 0x82b   :  { %5074 = vmatpush1.msk.msra.mxu0 %vm7091_vm14, %v1560_v3 }
 0x82c   :  { %1592 = vmatprep.subr.mxu0 %v10037_v53  ;;  %vm421_vm15 = vcmp.ge.s32.totalorder %v420_v59, 0 }
 0x82d   :  { %v1529_v6 = vpop.permute.xlu0 %1528  ;;  %v1553_v29 = vpop.permute.xlu1 %1552 }
 0x82e   :  { %v1559_v8 = vsel %vm9693_vm0, %v1553_v29, 0.0  ;;  %vm9695_vm0 = vcmask 252928  }
 0x82f   :  { %5075 = vmatpush1.msk.msra.mxu0 %vm7091_vm14, %v1559_v8  ;;  %v1534_v55 = vsel %vm9695_vm0, %v1529_v6, 0.0 }
 0x830   :  { %1594 = vmatprep.subr.mxu0 %v10037_v53 }
 0x831   :  { %v1517_v18 = vpop.permute.xlu0 %1516  ;;  %5076 = vmatpush1.msk.msra.mxu0 %vm7107_vm8, %v1547_v30  ;;  %v1540_v7 = vpop.permute.xlu1 %1539 }
 0x832   :  { %v1546_v14 = vsel %vm9694_vm6, %v1540_v7, 0.0  ;;  %1596 = vmatprep.subr.mxu0 %v10037_v53  ;;  %vm422_vm6 = vcmp.lt.s32.totalorder %v420_v59, 4  ;;  %v1521_v7 = vsel %vm10057_vm11, 0.0, %v1517_v18 }
 0x833   :  { %5077 = vmatpush1.msk.msra.mxu0 %vm7107_vm8, %v1546_v14  ;;  %vm7154_vm5 = vmand %vm421_vm15, %vm422_vm6  ;;  %vm10062_vm15 = vcmp.ge.s32.totalorder %v7089_v9, 0 }
 0x834   :  { %1598 = vmatprep.subr.mxu0 %v10037_v53 }
 0x835   :  { %5078 = vmatpush1.msk.msra.mxu0 %vm7128_vm4, %v1534_v55  ;;  %v1527_v3 = vpop.permute.xlu1 %1526  ;;  %v1504_v8 = vpop.permute.xlu0 %1503 }
 0x836   :  { %v1533_v29 = vsel %vm9695_vm0, %v1527_v3, 0.0  ;;  %1600 = vmatprep.subr.mxu0 %v10037_v53  ;;  %vm7149_vm0 = vmand %vm7114_vm10, %vm9701_vm3  ;;  %vm10059_vm3 = vcmp.lt.s32.totalorder %v7099_v28, 4  ;;  %v1509_v18 = vsel %vm9702_vm1, 0.0, %v1504_v8 }
 0x837   :  { %5079 = vmatpush1.msk.msra.mxu0 %vm7128_vm4, %v1533_v29  ;;  %vm10058_vm10 = vmmov %vm10057_vm11  ;;  %vm9703_vm11 = vcmask 31744  }
 0x838   :  { %1602 = vmatprep.subr.mxu0 %v10037_v53  ;;  %vm7168_vm6 = vmand %vm7154_vm5, %vm10059_vm3  ;;  %vm9748_vm3 = vcmask 39936  }
 0x839   :  { %1603 = vmatpush1.msra.mxu0 %v7047_v43  ;;  %v1515_v6 = vpop.permute.xlu1 %1514  ;;  %v1491_v43 = vpop.permute.xlu0 %1490 }
 0x83a   :  { %1604 = vmatprep.subr.mxu0 %v10037_v53  ;;  %v1520_v14 = vsel %vm10058_vm10, 0.0, %v1515_v6  ;;  %v1496_v29 = vsel %vm9703_vm11, 0.0, %v1491_v43  ;;  %vm7192_vm10 = vmand %vm7154_vm5, %vm10062_vm15 }
 0x83b   :  { %1605 = vmatpush1.msra.mxu0 %v7053_v58 }
 0x83c   :  { %1606 = vmatprep.subr.mxu0 %v10037_v53 }
 0x83d   :  { %5080 = vmatpush1.msk.msra.mxu0 %vm7149_vm0, %v1521_v7  ;;  %v1502_v15 = vpop.permute.xlu1 %1501  ;;  %v1478_v3 = vpop.permute.xlu0 %1477 }
 0x83e   :  { %1608 = vmatprep.subr.mxu0 %v10037_v53  ;;  %v1508_v59 = vsel %vm9702_vm1, 0.0, %v1502_v15  ;;  %v1483_v43 = vsel %vm9748_vm3, 0.0, %v1478_v3  ;;  %vm9704_vm1 = vcmask 220160   ;;  %v34_v3 = vld [vmem:[%s9587_s1 + $0x68] sm:$0xff] }
 0x83f   :  { %5081 = vmatpush1.msk.msra.mxu0 %vm7149_vm0, %v1520_v14 }
 0x840   :  { %1610 = vmatprep.subr.mxu0 %v10037_v53 }
 0x841   :  { %5082 = vmatpush1.msk.msra.mxu0 %vm7168_vm6, %v1509_v18  ;;  %v1489_v55 = vpop.permute.xlu1 %1488  ;;  %v1568_v15 = vpop.permute.xlu0 %1567 }
 0x842   :  { %1612 = vmatprep.subr.mxu0 %v10037_v53  ;;  %v1495_v6 = vsel %vm9703_vm11, 0.0, %v1489_v55  ;;  %vm10065_vm11 = vcmp.lt.s32.totalorder %v7099_v28, 4  ;;  %v1573_v55 = vsel %vm9704_vm1, %v1568_v15, 0.0  ;;  %v31_v28 = vld [vmem:[%s9587_s1 + $0x48] sm:$0xff]  ;;  %v37_v15 = vld [vmem:[%s9587_s1 + $0x90] sm:$0xff] }
 0x843   :  { %5083 = vmatpush1.msk.msra.mxu0 %vm7168_vm6, %v1508_v59  ;;  %vm7206_vm15 = vmand %vm7091_vm14, %vm10065_vm11  ;;  %vm10068_vm11 = vcmask 130048  }
 0x844   :  { %1614 = vmatprep.subr.mxu0 %v10037_v53 }
 0x845   :  { %5084 = vmatpush1.msk.msra.mxu0 %vm7154_vm5, %v1496_v29  ;;  %v1476_v8 = vpop.permute.xlu1 %1475  ;;  %v33_v29 = vld [vmem:[%s9587_s1 + $0x60] sm:$0xff] }
 0x846   :  { %1616 = vmatprep.subr.mxu0 %v10037_v53  ;;  %v1482_v14 = vsel %vm9748_vm3, 0.0, %v1476_v8  ;;  %v36_v8 = vld [vmem:[%s9587_s1 + $0x80] sm:$0xff] }
 0x847   :  { %5085 = vmatpush1.msk.msra.mxu0 %vm7154_vm5, %v1495_v6  ;;  %v35_v6 = vld [vmem:[%s9587_s1 + $0x78] sm:$0xff] }
 0x848   :  { %1618 = vmatprep.subr.mxu0 %v10037_v53 }
 0x849   :  { %5086 = vmatpush1.msk.msra.mxu0 %vm7192_vm10, %v1483_v43  ;;  %v1566_v18 = vpop.permute.xlu1 %1565  ;;  %v38_v43 = vld [vmem:[%s9587_s1 + $0x98] sm:$0xff] }
 0x84a   :  { %1620 = vmatprep.subr.mxu0 %v10037_v53  ;;  %v1572_v59 = vsel %vm9704_vm1, %v1566_v18, 0.0  ;;  %vm10069_vm1 = vmmov %vm10068_vm11 }
 0x84b   :  { %5087 = vmatpush1.msk.msra.mxu0 %vm7192_vm10, %v1482_v14 }
 0x84c   :  { %1650 = vmatprep.subr.mxu0 %v10037_v53 }
 0x84d   :  { %5088 = vmatpush2.msk.msra.mxu0 %vm7206_vm15, %v1573_v55 }
 0x84e   :  { %1652 = vmatprep.subr.mxu0 %v10037_v53 }
 0x84f   :  { %5089 = vmatpush2.msk.msra.mxu0 %vm7206_vm15, %v1572_v59 }
 0x850   :  { %1655 = vmatmul.mubr.f32.vlgmr.msra.gmra.mxu0 %v31_v28 }
 0x851   :  { %5091 = vmatprep.mubr.msk.f32.mxu0 %vm10068_vm11, %v34_v3  ;;  %vm10070_vm11 = vmmov %vm10069_vm1 }
 0x854   :  { %1660 = vmatmul.mubr.f32.gmra.mxu0 %v33_v29 }
 0x855   :  { %5092 = vmatprep.mubr.msk.f32.mxu0 %vm10069_vm1, %v36_v8  ;;  %vm9747_vm1 = vcmask 261120  }
 0x858   :  { %1665 = vmatmul.mubr.f32.gmra.mxu0 %v35_v6 }
 0x859   :  { %5093 = vmatprep.mubr.msk.f32.mxu0 %vm10070_vm11, %v38_v43  ;;  %vm10071_vm11 = vcmask 228352  }
 0x85a   :  { %vm10073_vm3 = vmmov %vm10071_vm11 }
 0x85b   :  { %vm10075_vm12 = vmmov %vm10073_vm3 }
 0x85c   :  { %1670 = vmatmul.mubr.f32.gmra.mxu0 %v37_v15 }
 0x910   :  { %v7246_v14 = vpop.f32.mrf.mxu0 }
 0x912   :  { %v1658_v18 = vpop.f32.mrf.mxu0 }
 0x914   :  { %v7248_v55 = vpop.f32.mrf.mxu0 }
 0x915   :  { %v1683_v28 = vsel %vm9747_vm1, %v7248_v55, 0.0 }
 0x916   :  { %1684 = vadd.xlane.f32.xlu0 %v1683_v28  ;;  %v1663_v59 = vpop.f32.mrf.mxu0  ;;  %v1676_v28 = vmul.f32 %v7248_v55, %v7248_v55 }
 0x918   :  { %v7252_v3 = vpop.f32.mrf.mxu0 }
 0x919   :  { %v1686_v29 = vsel %vm9747_vm1, %v7252_v3, 0.0  ;;  %v1677_v8 = vmul.f32 %v7252_v3, %v7252_v3 }
 0x91a   :  { %1687 = vadd.xlane.f32.xlu1 %v1686_v29  ;;  %v1668_v6 = vpop.f32.mrf.mxu0  ;;  %v1695_v29 = vsel %vm9747_vm1, %v1676_v28, 0.0 }
 0x91b   :  { %v1698_v15 = vsel %vm9747_vm1, %v1677_v8, 0.0  ;;  %v1680_v8 = vsel %vm9747_vm1, %v7246_v14, 0.0  ;;  %v1675_v6 = vmul.f32 %v7246_v14, %v7246_v14 }
 0x91c   :  { %v7258_v43 = vpop.f32.mrf.mxu0 }
 0x91d   :  { %v1689_v18 = vsel %vm9747_vm1, %v7258_v43, 0.0  ;;  %v1678_v59 = vmul.f32 %v7258_v43, %v7258_v43  ;;  %v1692_v44 = vsel %vm9747_vm1, %v1675_v6, 0.0 }
 0x91e   :  { %1699 = vadd.xlane.f32.xlu1 %v1698_v15  ;;  %1690 = vadd.xlane.f32.xlu0 %v1689_v18  ;;  %v1673_v19 = vpop.f32.mrf.mxu0  ;;  %v5953_v15 = vmov 5   ;;  %v5954_v18 = vmov 4  }
 0x91f   :  { %v1701_v17 = vsel %vm9747_vm1, %v1678_v59, 0.0  ;;  %v7277_v19 = vld [vmem:[%s9588_s2 + $0x18] sm:$0xff]  ;;  %5840 = vset.pattern.permute.xlu1 %v5953_v15  ;;  %5839 = vset.pattern.permute.xlu0 %v5954_v18 }
 0x922   :  { %1696 = vadd.xlane.f32.xlu1 %v1695_v29  ;;  %1702 = vadd.xlane.f32.xlu0 %v1701_v17 }
 0x926   :  { %1681 = vadd.xlane.f32.xlu0 %v1680_v8 }
 0x92a   :  { %1693 = vadd.xlane.f32.xlu0 %v1692_v44 }
 0x933   :  { %1779 = vperm.xlu1 %5840, %v7277_v19  }
 0x937   :  { %5841 = vset.pattern.permute.xlu1 %v5954_v18 }
 0x99f   :  { %v1685_v17 = vpop.xlane.xlu0 %1684 }
 0x9a0   :  { %v1705_v6 = vmul.f32 0.03125, %v1685_v17 }
 0x9a2   :  { %v1713_v32 = vmul.f32 %v1705_v6, %v1705_v6 }
 0x9a3   :  { %v1688_v28 = vpop.xlane.xlu1 %1687 }
 0x9a4   :  { %v7280_v59 = vmul.f32 0.03125, %v1688_v28 }
 0x9a6   :  { %v1714_v44 = vmul.f32 %v7280_v59, %v7280_v59 }
 0x9a7   :  { %v1700_v29 = vpop.xlane.xlu1 %1699  ;;  %v1691_v8 = vpop.xlane.xlu0 %1690 }
 0x9a8   :  { %v1710_v50 = vmul.f32 0.03125, %v1700_v29  ;;  %v7284_v27 = vmul.f32 0.03125, %v1691_v8 }
 0x9aa   :  { %v1718_v24 = vsub.f32 %v1710_v50, %v1714_v44  ;;  %v1715_v28 = vmul.f32 %v7284_v27, %v7284_v27 }
 0x9ab   :  { %v1697_v26 = vpop.xlane.xlu1 %1696  ;;  %v1703_v38 = vpop.xlane.xlu0 %1702 }
 0x9ac   :  { %v1722_v34 = vmax.f32 %v1718_v24, 0.0  ;;  %v1709_v57 = vmul.f32 0.03125, %v1697_v26  ;;  %v1711_v10 = vmul.f32 0.03125, %v1703_v38  ;;  %v7299_v38 = vld [vmem:[%s9588_s2] sm:$0xff] }
 0x9ae   :  { %v1726_v40 = vadd.f32 1e-05, %v1722_v34  ;;  %v1717_v48 = vsub.f32 %v1709_v57, %v1713_v32  ;;  %v1719_v50 = vsub.f32 %v1711_v10, %v1715_v28  ;;  %v7291_v57 = vld [vmem:[%s9588_s2 + $0x10] sm:$0xff] }
 0x9af   :  { %v1682_v13 = vpop.xlane.xlu0 %1681  ;;  %v1780_v28 = vpop.permute.xlu1 %1779 }
 0x9b0   :  { %5875 = vrsqrt.f32 %v1726_v40  ;;  %v1721_v17 = vmax.f32 %v1717_v48, 0.0  ;;  %v1704_v1 = vmul.f32 0.03125, %v1682_v13  ;;  %v1723_v26 = vmax.f32 %v1719_v50, 0.0 }
 0x9b2   :  { %v1725_v52 = vadd.f32 1e-05, %v1721_v17  ;;  %v1712_v44 = vmul.f32 %v1704_v1, %v1704_v1  ;;  %v1727_v34 = vadd.f32 1e-05, %v1723_v26  ;;  %v1736_v26 = vsub.f32 %v7246_v14, %v1704_v1 }
 0x9b3   :  { %v1694_v29 = vpop.xlane.xlu0 %1693 }
 0x9b4   :  { %5877 = vrsqrt.f32 %v1725_v52  ;;  %v1708_v22 = vmul.f32 0.03125, %v1694_v29 }
 0x9b6   :  { %v1716_v24 = vsub.f32 %v1708_v22, %v1712_v44 }
 0x9b8   :  { %v1720_v8 = vmax.f32 %v1716_v24, 0.0 }
 0x9ba   :  { %v1724_v37 = vadd.f32 1e-05, %v1720_v8  ;;  %v1737_v8 = vsub.f32 %v7248_v55, %v1705_v6  ;;  %v1739_v6 = vsub.f32 %v7258_v43, %v7284_v27  ;;  %v40_v43 = vld [vmem:[%s9587_s1 + $0xb0] sm:$0xff] }
 0x9bb   :  { %2030 = vmatprep.mubr.f32.mxu1 %v40_v43 }
 0x9bc   :  { %5879 = vrsqrt.f32 %v1724_v37 }
 0x9bd   :  { %v5876_v40 = vpop.eup %5875  ;;  %5881 = vrsqrt.f32 %v1727_v34 }
 0x9be   :  { %v1734_v13 = vmul.f32 %v5876_v40, %v7291_v57 }
 0x9c0   :  { %1752 = vperm.xlu0 %5839, %v1734_v13  }
 0x9c1   :  { %v5878_v52 = vpop.eup %5877 }
 0x9c2   :  { %v1733_v10 = vmul.f32 %v5878_v52, %v6975_v16 }
 0x9c4   :  { %1747 = vperm.xlu1 %5841, %v1733_v10   ;;  %v1738_v10 = vsub.f32 %v7252_v3, %v7280_v59 }
 0x9c8   :  { %5842 = vset.pattern.permute.xlu1 %v5953_v15 }
 0x9c9   :  { %v5880_v22 = vpop.eup %5879  ;;  %1774 = vperm.xlu1 %5842, %v7291_v57  }
 0x9ca   :  { %v1732_v37 = vmul.f32 %v7299_v38, %v5880_v22  ;;  %v5882_v48 = vpop.eup %5881 }
 0x9cb   :  { %v1735_v32 = vmul.f32 %v5882_v48, %v7277_v19 }
 0x9cd   :  { %5843 = vset.pattern.permute.xlu1 %v5954_v18 }
 0x9ce   :  { %1742 = vperm.xlu1 %5843, %v1732_v37   ;;  %v41_v37 = vld [vmem:[%s9587_s1 + $0xb8] sm:$0xff] }
 0x9cf   :  { %5674 = vmatprep.mubr.msk.f32.mxu0 %vm9747_vm1, %v41_v37  ;;  %vm10072_vm1 = vcmask 7168  }
 0x9d0   :  { %vm10074_vm2 = vmmov %vm10072_vm1 }
 0x9d2   :  { %1757 = vperm.xlu1 %5843, %v1735_v32  }
 0x9d6   :  { %5844 = vset.pattern.permute.xlu1 %v5953_v15 }
 0x9d7   :  { %1769 = vperm.xlu1 %5844, %v6975_v16  }
 0x9db   :  { %1765 = vperm.xlu1 %5844, %v7299_v38  }
 0xa3b   :  { %v1753_v16 = vpop.permute.xlu0 %1752 }
 0xa3c   :  { %v1762_v14 = vmul.f32 %v1753_v16, %v1738_v10 }
 0xa3f   :  { %v1748_v17 = vpop.permute.xlu1 %1747 }
 0xa40   :  { %v1761_v40 = vmul.f32 %v1748_v17, %v1737_v8 }
 0xa44   :  { %v1775_v29 = vpop.permute.xlu1 %1774 }
 0xa45   :  { %v1784_v55 = vadd.f32 %v1775_v29, %v1762_v14 }
 0xa47   :  { %v7327_v3 = vmax.f32 %v1784_v55, 0.0 }
 0xa49   :  { %v1743_v50 = vpop.permute.xlu1 %1742 }
 0xa4a   :  { %v1760_v18 = vmul.f32 %v1743_v50, %v1736_v26 }
 0xa4d   :  { %v1758_v44 = vpop.permute.xlu1 %1757 }
 0xa4e   :  { %v1763_v59 = vmul.f32 %v1758_v44, %v1739_v6 }
 0xa50   :  { %v1785_v22 = vadd.f32 %v1780_v28, %v1763_v59 }
 0xa52   :  { %v1770_v24 = vpop.permute.xlu1 %1769  ;;  %v7337_v27 = vmax.f32 %v1785_v22, 0.0 }
 0xa53   :  { %v1783_v52 = vadd.f32 %v1770_v24, %v1761_v40 }
 0xa55   :  { %v7315_v1 = vmax.f32 %v1783_v52, 0.0 }
 0xa56   :  { %v1766_v34 = vpop.permute.xlu1 %1765 }
 0xa57   :  { %v1782_v13 = vadd.f32 %v1766_v34, %v1760_v18 }
 0xa59   :  { %v7307_v15 = vmax.f32 %v1782_v13, 0.0 }
 0xa5b   :  { %1854 = vrot.lane.b32.xlu1 %v7307_v15, %s5932_s8  ;;  %1914 = vrot.lane.b32.xlu0 %v7307_v15, %s5948_s26 }
 0xa5f   :  { %1856 = vrot.lane.b32.xlu1 %v7315_v1, %s5932_s8  ;;  %1894 = vrot.lane.b32.xlu0 %v7307_v15, %s5947_s4 }
 0xa63   :  { %1836 = vrot.lane.b32.xlu1 %v7315_v1, %s5949_s27  ;;  %1916 = vrot.lane.b32.xlu0 %v7315_v1, %s5948_s26 }
 0xa67   :  { %1896 = vrot.lane.b32.xlu0 %v7315_v1, %s5947_s4  ;;  %1858 = vrot.lane.b32.xlu1 %v7327_v3, %s5932_s8 }
 0xa6b   :  { %1838 = vrot.lane.b32.xlu1 %v7327_v3, %s5949_s27  ;;  %1918 = vrot.lane.b32.xlu0 %v7327_v3, %s5948_s26 }
 0xa6f   :  { %1920 = vrot.lane.b32.xlu1 %v7337_v27, %s5948_s26  ;;  %1898 = vrot.lane.b32.xlu0 %v7327_v3, %s5947_s4 }
 0xa73   :  { %1860 = vrot.lane.b32.xlu1 %v7337_v27, %s5932_s8  ;;  %1900 = vrot.lane.b32.xlu0 %v7337_v27, %s5947_s4 }
 0xa77   :  { %1834 = vrot.lane.b32.xlu1 %v7307_v15, %s5949_s27  ;;  %1878 = vrot.lane.b32.xlu0 %v7327_v3, %s5930_s0 }
 0xa7b   :  { %1840 = vrot.lane.b32.xlu1 %v7337_v27, %s5949_s27  ;;  %1880 = vrot.lane.b32.xlu0 %v7337_v27, %s5930_s0 }
 0xa7f   :  { %1818 = vrot.lane.b32.xlu1 %v7327_v3, %s5950_s12  ;;  %1876 = vrot.lane.b32.xlu0 %v7315_v1, %s5930_s0 }
 0xa83   :  { %1820 = vrot.lane.b32.xlu1 %v7337_v27, %s5950_s12  ;;  %1874 = vrot.lane.b32.xlu0 %v7307_v15, %s5930_s0 }
 0xa87   :  { %1816 = vrot.lane.b32.xlu1 %v7315_v1, %s5950_s12  ;;  %1800 = vrot.lane.b32.xlu0 %v7337_v27, %s5951_s13 }
 0xa8b   :  { %1814 = vrot.lane.b32.xlu1 %v7307_v15, %s5950_s12  ;;  %1796 = vrot.lane.b32.xlu0 %v7315_v1, %s5951_s13  ;;  %s10247_s12 = smov 111  }
 0xa8f   :  { %1798 = vrot.lane.b32.xlu1 %v7327_v3, %s5951_s13  ;;  %1940 = vrot.lane.b32.xlu0 %v7337_v27, %s5952_s14 }
 0xa93   :  { %1794 = vrot.lane.b32.xlu1 %v7307_v15, %s5951_s13  ;;  %1936 = vrot.lane.b32.xlu0 %v7315_v1, %s5952_s14 }
 0xa97   :  { %1938 = vrot.lane.b32.xlu1 %v7327_v3, %s5952_s14 }
 0xa9b   :  { %1934 = vrot.lane.b32.xlu1 %v7307_v15, %s5952_s14 }
 0xacd   :  { %v1855_v48 = vpop.permute.xlu1 %1854  ;;  %v1915_v32 = vpop.permute.xlu0 %1914 }
 0xace   :  { %v1926_v43 = vsel %vm10073_vm3, %v1915_v32, 0.0 }
 0xad1   :  { %v1857_v28 = vpop.permute.xlu1 %1856  ;;  %v1895_v17 = vpop.permute.xlu0 %1894 }
 0xad5   :  { %v1837_v29 = vpop.permute.xlu1 %1836  ;;  %v1917_v50 = vpop.permute.xlu0 %1916 }
 0xad6   :  { %v1927_v55 = vsel %vm10075_vm12, %v1917_v50, 0.0  ;;  %vm10078_vm12 = vcmask 236544  }
 0xad9   :  { %v1859_v44 = vpop.permute.xlu1 %1858  ;;  %v1897_v24 = vpop.permute.xlu0 %1896 }
 0xada   :  { %v1868_v14 = vsel %vm10074_vm2, 0.0, %v1859_v44  ;;  %vm10077_vm2 = vmmov %vm10072_vm1 }
 0xadb   :  { %v1866_v37 = vsel %vm10077_vm2, 0.0, %v1855_v48 }
 0xadd   :  { %v1839_v26 = vpop.permute.xlu1 %1838  ;;  %v1919_v8 = vpop.permute.xlu0 %1918 }
 0xade   :  { %v1928_v10 = vsel %vm10073_vm3, %v1919_v8, 0.0 }
 0xae1   :  { %v1921_v18 = vpop.permute.xlu1 %1920  ;;  %v1899_v34 = vpop.permute.xlu0 %1898 }
 0xae2   :  { %v1929_v40 = vsel %vm10071_vm11, %v1921_v18, 0.0  ;;  %vm10076_vm11 = vmmov %vm10072_vm1 }
 0xae3   :  { %5447 = vmatprep.subr.msk.mxu1 %vm7091_vm14, %v1929_v40  ;;  %v1867_v22 = vsel %vm10076_vm11, 0.0, %v1857_v28  ;;  %vm10080_vm11 = vmmov %vm10078_vm12 }
 0xae4   :  { %v1908_v32 = vsel %vm10080_vm11, %v1899_v34, 0.0  ;;  %vm10084_vm2 = vmmov %vm10080_vm11 }
 0xae5   :  { %v1861_v13 = vpop.permute.xlu1 %1860  ;;  %v1901_v52 = vpop.permute.xlu0 %1900  ;;  %v1906_v34 = vsel %vm10084_vm2, %v1895_v17, 0.0 }
 0xae6   :  { %v1869_v16 = vsel %vm10072_vm1, 0.0, %v1861_v13  ;;  %v1909_v50 = vsel %vm10078_vm12, %v1901_v52, 0.0  ;;  %vm10079_vm1 = vcmask 23552  }
 0xae7   :  { %5448 = vmatpush3.msk.msra.mxu1 %vm7149_vm0, %v1869_v16  ;;  %vm10081_vm3 = vmmov %vm10079_vm1 }
 0xae8   :  { %5449 = vmatprep.subr.msk.mxu1 %vm7091_vm14, %v1928_v10  ;;  %v1848_v56 = vsel %vm10081_vm3, 0.0, %v1839_v26 }
 0xae9   :  { %v1835_v6 = vpop.permute.xlu1 %1834  ;;  %5450 = vmatpush3.msk.msra.mxu1 %vm7149_vm0, %v1868_v14  ;;  %v1879_v59 = vpop.permute.xlu0 %1878 }
 0xaea   :  { %5451 = vmatprep.subr.msk.mxu1 %vm7091_vm14, %v1927_v55 }
 0xaeb   :  { %5452 = vmatpush3.msk.msra.mxu1 %vm7149_vm0, %v1867_v22 }
 0xaec   :  { %5453 = vmatprep.subr.msk.mxu1 %vm7091_vm14, %v1926_v43  ;;  %vm10082_vm14 = vmmov %vm10080_vm11  ;;  %vm10087_vm11 = vcmask 31744  }
 0xaed   :  { %v1841_v44 = vpop.permute.xlu1 %1840  ;;  %5454 = vmatpush3.msk.msra.mxu1 %vm7149_vm0, %v1866_v37  ;;  %v1881_v28 = vpop.permute.xlu0 %1880  ;;  %v1907_v48 = vsel %vm10082_vm14, %v1897_v24, 0.0  ;;  %vm10083_vm0 = vmmov %vm10079_vm1 }
 0xaee   :  { %v1849_v8 = vsel %vm10079_vm1, 0.0, %v1841_v44  ;;  %5455 = vmatprep.subr.msk.mxu1 %vm7107_vm8, %v1909_v50  ;;  %v1847_v40 = vsel %vm10083_vm0, 0.0, %v1837_v29  ;;  %vm10085_vm12 = vmmov %vm10083_vm0  ;;  %vm10086_vm1 = vcmask 252928  }
 0xaef   :  { %5456 = vmatpush3.msk.msra.mxu1 %vm7168_vm6, %v1849_v8  ;;  %v1846_v26 = vsel %vm10085_vm12, 0.0, %v1835_v6  ;;  %v1889_v24 = vsel %vm10086_vm1, %v1881_v28, 0.0  ;;  %vm10088_vm3 = vmmov %vm10086_vm1  ;;  %vm10094_vm12 = vcmask 39936   ;;  %v39_v8 = vld [vmem:[%s9587_s1 + $0xa8] sm:$0xff] }
 0xaf0   :  { %5457 = vmatprep.subr.msk.mxu1 %vm7107_vm8, %v1908_v32  ;;  %v1888_v17 = vsel %vm10088_vm3, %v1879_v59, 0.0  ;;  %vm10089_vm14 = vmmov %vm10087_vm11 }
 0xaf1   :  { %v1819_v11 = vpop.permute.xlu1 %1818  ;;  %5458 = vmatpush3.msk.msra.mxu1 %vm7168_vm6, %v1848_v56  ;;  %v1877_v18 = vpop.permute.xlu0 %1876  ;;  %vm10092_vm0 = vmmov %vm10086_vm1  ;;  %v43_v56 = vld [vmem:[%s9587_s1 + $0xc8] sm:$0xff] }
 0xaf2   :  { %5459 = vmatprep.subr.msk.mxu1 %vm7107_vm8, %v1907_v48  ;;  %v1828_v21 = vsel %vm10089_vm14, 0.0, %v1819_v11 }
 0xaf3   :  { %5460 = vmatpush3.msk.msra.mxu1 %vm7168_vm6, %v1847_v40 }
 0xaf4   :  { %5461 = vmatprep.subr.msk.mxu1 %vm7107_vm8, %v1906_v34  ;;  %vm10090_vm8 = vmmov %vm10086_vm1  ;;  %v46_v34 = vld [vmem:[%s9587_s1 + $0xe0] sm:$0xff] }
 0xaf5   :  { %v1821_v13 = vpop.permute.xlu1 %1820  ;;  %5462 = vmatpush3.msk.msra.mxu1 %vm7168_vm6, %v1846_v26  ;;  %v1875_v29 = vpop.permute.xlu0 %1874  ;;  %v1887_v16 = vsel %vm10090_vm8, %v1877_v18, 0.0  ;;  %vm10091_vm6 = vmmov %vm10087_vm11  ;;  %v42_v18 = vld [vmem:[%s9587_s1 + $0xc0] sm:$0xff]  ;;  %vm10102_vm8 = vcmask 261120  }
 0xaf6   :  { %v1829_v52 = vsel %vm10087_vm11, 0.0, %v1821_v13  ;;  %5463 = vmatprep.subr.msk.mxu1 %vm7128_vm4, %v1889_v24  ;;  %v1886_v55 = vsel %vm10092_vm0, %v1875_v29, 0.0  ;;  %vm10093_vm2 = vmmov %vm10091_vm6  ;;  %vm10096_vm11 = vcmask 220160   ;;  %v45_v24 = vld [vmem:[%s9587_s1 + $0xd8] sm:$0xff]  ;;  %v44_v29 = vld [vmem:[%s9587_s1 + $0xd0] sm:$0xff] }
 0xaf7   :  { %5464 = vmatpush3.msk.msra.mxu1 %vm7154_vm5, %v1829_v52  ;;  %vm10095_vm1 = vmmov %vm10094_vm12  ;;  %v49_v52 = vld [vmem:[%s9587_s1 + $0xf8] sm:$0xff] }
 0xaf8   :  { %5465 = vmatprep.subr.msk.mxu1 %vm7128_vm4, %v1888_v17  ;;  %vm10099_vm3 = vmmov %vm10096_vm11  ;;  %v47_v17 = vld [vmem:[%s9587_s1 + $0xe8] sm:$0xff] }
 0xaf9   :  { %v1817_v58 = vpop.permute.xlu1 %1816  ;;  %5466 = vmatpush3.msk.msra.mxu1 %vm7154_vm5, %v1828_v21  ;;  %v1801_v10 = vpop.permute.xlu0 %1800  ;;  %vm10101_vm14 = vmmov %vm10099_vm3  ;;  %v48_v21 = vld [vmem:[%s9587_s1 + $0xf0] sm:$0xff] }
 0xafa   :  { %v1827_v14 = vsel %vm10091_vm6, 0.0, %v1817_v58  ;;  %5467 = vmatprep.subr.msk.mxu1 %vm7128_vm4, %v1887_v16  ;;  %v1809_v43 = vsel %vm10094_vm12, 0.0, %v1801_v10  ;;  %vm10103_vm6 = vmmov %vm10102_vm8  ;;  %v50_v16 = vld [vmem:[%s9587_s1 + $0x100] sm:$0xff] }
 0xafb   :  { %5468 = vmatpush3.msk.msra.mxu1 %vm7154_vm5, %v1827_v14  ;;  %vm10104_vm0 = vmmov %vm10103_vm6 }
 0xafc   :  { %5469 = vmatprep.subr.msk.mxu1 %vm7128_vm4, %v1886_v55  ;;  %vm10098_vm4 = vmmov %vm10095_vm1 }
 0xafd   :  { %v1815_v6 = vpop.permute.xlu1 %1814  ;;  %v1797_v59 = vpop.permute.xlu0 %1796  ;;  %vm10107_vm12 = vmmov %vm10104_vm0 }
 0xafe   :  { %v1826_v22 = vsel %vm10093_vm2, 0.0, %v1815_v6  ;;  %vm10106_vm2 = vmmov %vm10104_vm0 }
 0xaff   :  { %5470 = vmatpush3.msk.msra.mxu1 %vm7154_vm5, %v1826_v22  ;;  %vm10097_vm5 = vmmov %vm10095_vm1 }
 0xb00   :  { %5471 = vmatprep.subr.mxu1 %v7337_v27  ;;  %v1807_v30 = vsel %vm10097_vm5, 0.0, %v1797_v59  ;;  %vm10110_vm5 = vmmov %vm10104_vm0 }
 0xb01   :  { %v1799_v37 = vpop.permute.xlu1 %1798  ;;  %5472 = vmatpush3.msk.msra.mxu1 %vm7192_vm10, %v1809_v43  ;;  %v1941_v50 = vpop.permute.xlu0 %1940 }
 0xb02   :  { %v1808_v44 = vsel %vm10095_vm1, 0.0, %v1799_v37  ;;  %v1949_v2 = vsel %vm10096_vm11, %v1941_v50, 0.0  ;;  %5473 = vmatprep.subr.mxu1 %v7327_v3  ;;  %vm10108_vm1 = vmmov %vm10104_vm0 }
 0xb03   :  { %5474 = vmatpush3.msk.msra.mxu1 %vm7192_vm10, %v1808_v44  ;;  %5666 = vmatprep.subr.msk.mxu0 %vm7206_vm15, %v1949_v2  ;;  %vm10109_vm11 = vmmov %vm10104_vm0 }
 0xb04   :  { %5475 = vmatprep.subr.mxu1 %v7315_v1  ;;  %5667 = vmatpush3.msk.msra.mxu0 %vm7206_vm15, %v1949_v2 }
 0xb05   :  { %v1795_v28 = vpop.permute.xlu1 %1794  ;;  %5476 = vmatpush3.msk.msra.mxu1 %vm7192_vm10, %v1807_v30  ;;  %v1937_v48 = vpop.permute.xlu0 %1936 }
 0xb06   :  { %v1806_v32 = vsel %vm10098_vm4, 0.0, %v1795_v28  ;;  %5477 = vmatprep.subr.mxu1 %v7307_v15  ;;  %vm10111_vm4 = vmmov %vm10104_vm0 }
 0xb07   :  { %5478 = vmatpush3.msk.msra.mxu1 %vm7192_vm10, %v1806_v32  ;;  %vm10100_vm10 = vmmov %vm10099_vm3 }
 0xb08   :  { %2031 = vmatmul.mubr.f32.vlgmr.msra.gmra.mxu1 %v39_v8  ;;  %5694 = vmatprep.subr.mxu1 %v10037_v53  ;;  %v1947_v7 = vsel %vm10100_vm10, %v1937_v48, 0.0  ;;  %vm10113_vm10 = vmmov %vm10104_vm0 }
 0xb09   :  { %v1939_v11 = vpop.permute.xlu1 %1938  ;;  %2035 = vmatprep.mubr.f32.mxu1 %v43_v56 }
 0xb0a   :  { %v1948_v40 = vsel %vm10099_vm3, %v1939_v11, 0.0  ;;  %vm10112_vm3 = vmmov %vm10104_vm0 }
 0xb0b   :  { %5668 = vmatprep.subr.msk.mxu0 %vm7206_vm15, %v1948_v40 }
 0xb0c   :  { %5669 = vmatpush3.msk.msra.mxu0 %vm7206_vm15, %v1948_v40  ;;  %2036 = vmatmul.mubr.f32.gmra.mxu1 %v42_v18 }
 0xb0d   :  { %v1935_v26 = vpop.permute.xlu1 %1934  ;;  %5670 = vmatprep.subr.msk.mxu0 %vm7206_vm15, %v1947_v7  ;;  %2040 = vmatprep.mubr.f32.mxu1 %v46_v34 }
 0xb0e   :  { %v1946_v13 = vsel %vm10101_vm14, %v1935_v26, 0.0  ;;  %5671 = vmatpush3.msk.msra.mxu0 %vm7206_vm15, %v1947_v7  ;;  %vm10114_vm14 = vmmov %vm10104_vm0 }
 0xb0f   :  { %5672 = vmatprep.subr.msk.mxu0 %vm7206_vm15, %v1946_v13 }
 0xb10   :  { %5673 = vmatpush3.msk.msra.mxu0 %vm7206_vm15, %v1946_v13  ;;  %2041 = vmatmul.mubr.f32.gmra.mxu1 %v45_v24  ;;  %vm10105_vm15 = vmmov %vm10104_vm0 }
 0xb11   :  { %5675 = vmatmul.mubr.msk.f32.vlgmr.msra.gmra.mxu0 %vm10102_vm8, %v44_v29  ;;  %2045 = vmatprep.mubr.f32.mxu1 %v49_v52  ;;  %vm10115_vm8 = vmmov %vm10104_vm0 }
 0xb12   :  { %5677 = vmatprep.mubr.msk.f32.mxu0 %vm10103_vm6, %v47_v17  ;;  %vm10116_vm6 = vmmov %vm10104_vm0 }
 0xb14   :  { %2046 = vmatmul.mubr.f32.gmra.mxu1 %v48_v21 }
 0xb15   :  { %5678 = vmatmul.mubr.msk.f32.gmra.mxu0 %vm10104_vm0, %v50_v16 }
 0xbc8   :  { %v5479_v58 = vpop.f32.mrf.mxu1 }
 0xbca   :  { %v5480_v9 = vpop.f32.mrf.mxu1 }
 0xbcb   :  { %v5481_v22 = vadd.f32 %v5480_v9, %v5479_v58  ;;  %v5955_v58 = vmov 6  }
 0xbcc   :  { %v5482_v10 = vpop.f32.mrf.mxu1  ;;  %5845 = vset.pattern.permute.xlu1 %v5955_v58  ;;  %5846 = vset.pattern.permute.xlu0 %v5955_v58 }
 0xbce   :  { %v5483_v14 = vpop.f32.mrf.mxu1 }
 0xbcf   :  { %v5484_v55 = vadd.f32 %v5483_v14, %v5482_v10 }
 0xbd0   :  { %v5485_v6 = vpop.f32.mrf.mxu1 }
 0xbd1   :  { %v5676_v59 = vpop.f32.mrf.mxu0 }
 0xbd2   :  { %v7532_v43 = vadd.f32 %v5676_v59, %v5484_v55  ;;  %v5486_v37 = vpop.f32.mrf.mxu1 }
 0xbd3   :  { %v2117_v50 = vpop.f32.mrf.mxu0  ;;  %v5487_v2 = vadd.f32 %v5486_v37, %v5485_v6 }
 0xbd4   :  { %v7534_v44 = vadd.f32 %v5481_v22, %v2117_v50  ;;  %v2143_v30 = vsel %vm10105_vm15, %v7532_v43, 0.0  ;;  %v5488_v28 = vpop.f32.mrf.mxu1  ;;  %v2137_v26 = vmul.f32 %v7532_v43, %v7532_v43  ;;  %vm10117_vm15 = vmmov %vm10104_vm0 }
 0xbd5   :  { %2144 = vadd.xlane.f32.xlu1 %v2143_v30  ;;  %v5679_v8 = vpop.f32.mrf.mxu0 }
 0xbd6   :  { %v2140_v32 = vsel %vm10106_vm2, %v7534_v44, 0.0  ;;  %v2136_v56 = vmul.f32 %v7534_v44, %v7534_v44  ;;  %v5489_v48 = vpop.f32.mrf.mxu1  ;;  %v2155_v52 = vsel %vm10110_vm5, %v2137_v26, 0.0  ;;  %vm10118_vm2 = vmmov %vm10104_vm0 }
 0xbd7   :  { %v2127_v11 = vpop.f32.mrf.mxu0  ;;  %2141 = vadd.xlane.f32.xlu0 %v2140_v32  ;;  %v5490_v40 = vadd.f32 %v5489_v48, %v5488_v28  ;;  %vm10120_vm5 = vmmov %vm10104_vm0 }
 0xbd8   :  { %v7542_v18 = vadd.f32 %v5487_v2, %v2127_v11  ;;  %v2152_v7 = vsel %vm10108_vm1, %v2136_v56, 0.0  ;;  %vm2345_vm1 = vcmask 392192  }
 0xbd9   :  { %v7551_v13 = vadd.f32 %v5679_v8, %v5490_v40 }
 0xbda   :  { %v2146_v34 = vsel %vm10107_vm12, %v7542_v18, 0.0  ;;  %v2138_v24 = vmul.f32 %v7542_v18, %v7542_v18  ;;  %vm10119_vm12 = vmmov %vm10104_vm0 }
 0xbdb   :  { %2147 = vadd.xlane.f32.xlu1 %v2146_v34  ;;  %2153 = vadd.xlane.f32.xlu0 %v2152_v7  ;;  %v2149_v17 = vsel %vm10111_vm4, %v7551_v13, 0.0  ;;  %v2139_v21 = vmul.f32 %v7551_v13, %v7551_v13  ;;  %vm10121_vm4 = vcmask 7168  }
 0xbdc   :  { %v2158_v29 = vsel %vm10109_vm11, %v2138_v24, 0.0  ;;  %vm5957_vm11 = vmmov 0  }
 0xbdd   :  { %v2161_v16 = vsel %vm10112_vm3, %v2139_v21, 0.0  ;;  %5706 = vmatprep.mubr.msk.f32.mxu1 %vm5957_vm11, %v10037_v53  ;;  %vm10122_vm3 = vcmask 982016  }
 0xbdf   :  { %2156 = vadd.xlane.f32.xlu0 %v2155_v52  ;;  %2159 = vadd.xlane.f32.xlu1 %v2158_v29 }
 0xbe3   :  { %2150 = vadd.xlane.f32.xlu0 %v2149_v17 }
 0xbe7   :  { %2162 = vadd.xlane.f32.xlu0 %v2161_v16 }
 0xc5e   :  { %v2145_v14 = vpop.xlane.xlu1 %2144 }
 0xc5f   :  { %v7564_v6 = vmul.f32 0.03125, %v2145_v14 }
 0xc60   :  { %v2142_v9 = vpop.xlane.xlu0 %2141 }
 0xc61   :  { %v7562_v10 = vmul.f32 0.03125, %v2142_v9  ;;  %v2173_v30 = vmul.f32 %v7564_v6, %v7564_v6 }
 0xc63   :  { %v2172_v59 = vmul.f32 %v7562_v10, %v7562_v10 }
 0xc64   :  { %v2154_v55 = vpop.xlane.xlu0 %2153  ;;  %v2148_v37 = vpop.xlane.xlu1 %2147 }
 0xc65   :  { %v2168_v22 = vmul.f32 0.03125, %v2154_v55  ;;  %v7570_v56 = vmul.f32 0.03125, %v2148_v37 }
 0xc67   :  { %v2176_v50 = vsub.f32 %v2168_v22, %v2172_v59  ;;  %v2174_v34 = vmul.f32 %v7570_v56, %v7570_v56 }
 0xc68   :  { %v2157_v2 = vpop.xlane.xlu0 %2156  ;;  %v2160_v32 = vpop.xlane.xlu1 %2159 }
 0xc69   :  { %v2180_v28 = vmax.f32 %v2176_v50, 0.0  ;;  %v2169_v8 = vmul.f32 0.03125, %v2157_v2  ;;  %v2170_v26 = vmul.f32 0.03125, %v2160_v32  ;;  %v156_v32 = vld [vmem:[%s9591_s5 + $0x10] sm:$0xff] }
 0xc6b   :  { %v2184_v48 = vadd.f32 1e-05, %v2180_v28  ;;  %v2177_v11 = vsub.f32 %v2169_v8, %v2173_v30  ;;  %v2178_v21 = vsub.f32 %v2170_v26, %v2174_v34  ;;  %v157_v30 = vld [vmem:[%s9591_s5 + $0x18] sm:$0xff]  ;;  %v7585_v28 = vld [vmem:[%s9588_s2 + $0x8] sm:$0xff] }
 0xc6c   :  { %v2151_v40 = vpop.xlane.xlu0 %2150  ;;  %5680 = vmatprep.subr.mxu0 %v157_v30 }
 0xc6d   :  { %5883 = vrsqrt.f32 %v2184_v48  ;;  %v2181_v7 = vmax.f32 %v2177_v11, 0.0  ;;  %v7574_v29 = vmul.f32 0.03125, %v2151_v40  ;;  %v2182_v9 = vmax.f32 %v2178_v21, 0.0  ;;  %5681 = vmatpush3.msra.mxu0 %v157_v30  ;;  %v155_v11 = vld [vmem:[%s9591_s5 + $0x8] sm:$0xff]  ;;  %v154_v40 = vld [vmem:[%s9591_s5] sm:$0xff] }
 0xc6e   :  { %v5956_v48 = vmov 7   ;;  %5682 = vmatprep.subr.mxu0 %v156_v32 }
 0xc6f   :  { %v2185_v24 = vadd.f32 1e-05, %v2181_v7  ;;  %v2175_v17 = vmul.f32 %v7574_v29, %v7574_v29  ;;  %v2186_v55 = vadd.f32 1e-05, %v2182_v9  ;;  %5683 = vmatpush3.msra.mxu0 %v156_v32 }
 0xc70   :  { %v2163_v52 = vpop.xlane.xlu0 %2162  ;;  %5684 = vmatprep.subr.mxu0 %v155_v11 }
 0xc71   :  { %5885 = vrsqrt.f32 %v2185_v24  ;;  %v2171_v16 = vmul.f32 0.03125, %v2163_v52  ;;  %5685 = vmatpush3.msra.mxu0 %v155_v11  ;;  %v2196_v52 = vsub.f32 %v7534_v44, %v7562_v10 }
 0xc72   :  { %5887 = vrsqrt.f32 %v2186_v55  ;;  %5686 = vmatprep.subr.mxu0 %v154_v40 }
 0xc73   :  { %v2179_v14 = vsub.f32 %v2171_v16, %v2175_v17  ;;  %5687 = vmatpush3.msra.mxu0 %v154_v40 }
 0xc74   :  { %5709 = vmatprep.subr.mxu0 %v157_v30 }
 0xc75   :  { %v2183_v59 = vmax.f32 %v2179_v14, 0.0 }
 0xc77   :  { %v2187_v50 = vadd.f32 1e-05, %v2183_v59 }
 0xc79   :  { %5889 = vrsqrt.f32 %v2187_v50 }
 0xc7a   :  { %v5884_v22 = vpop.eup %5883 }
 0xc7b   :  { %v2192_v37 = vmul.f32 %v7299_v38, %v5884_v22 }
 0xc7d   :  { %2202 = vperm.xlu1 %5845, %v2192_v37  }
 0xc7e   :  { %v5886_v2 = vpop.eup %5885 }
 0xc7f   :  { %v2193_v8 = vmul.f32 %v7585_v28, %v5886_v2  ;;  %v5888_v34 = vpop.eup %5887  ;;  %v2199_v2 = vsub.f32 %v7551_v13, %v7574_v29 }
 0xc81   :  { %5847 = vset.pattern.permute.xlu1 %v5956_v48  ;;  %2207 = vperm.xlu0 %5846, %v2193_v8  }
 0xc82   :  { %2225 = vperm.xlu1 %5847, %v7299_v38   ;;  %v2194_v38 = vmul.f32 %v5888_v34, %v7291_v57 }
 0xc86   :  { %2229 = vperm.xlu1 %5847, %v7585_v28   ;;  %v5890_v7 = vpop.eup %5889 }
 0xc87   :  { %v2195_v26 = vmul.f32 %v5890_v7, %v7277_v19 }
 0xc8a   :  { %2233 = vperm.xlu1 %5847, %v7291_v57   ;;  %v2197_v57 = vsub.f32 %v7532_v43, %v7564_v6 }
 0xc8e   :  { %5848 = vset.pattern.permute.xlu1 %v5955_v58 }
 0xc8f   :  { %2212 = vperm.xlu1 %5848, %v2194_v38  }
 0xc93   :  { %2217 = vperm.xlu1 %5848, %v2195_v26  }
 0xc97   :  { %5849 = vset.pattern.permute.xlu1 %v5956_v48 }
 0xc98   :  { %2237 = vperm.xlu1 %5849, %v7277_v19   ;;  %v2198_v19 = vsub.f32 %v7542_v18, %v7570_v56 }
 0xcf8   :  { %v2203_v24 = vpop.permute.xlu1 %2202 }
 0xcf9   :  { %v2220_v17 = vmul.f32 %v2203_v24, %v2196_v52 }
 0xcfc   :  { %v2208_v21 = vpop.permute.xlu0 %2207 }
 0xcfd   :  { %v2226_v16 = vpop.permute.xlu1 %2225  ;;  %v2221_v14 = vmul.f32 %v2208_v21, %v2197_v57 }
 0xcfe   :  { %v2240_v9 = vadd.f32 %v2226_v16, %v2220_v17 }
 0xd00   :  { %v2244_v58 = vmax.f32 %v2240_v9, 0.0 }
 0xd01   :  { %v2230_v55 = vpop.permute.xlu1 %2229 }
 0xd02   :  { %v2241_v59 = vadd.f32 %v2230_v55, %v2221_v14  ;;  %5688 = vmatprep.mubr.msk.f32.mxu0 %vm10113_vm10, %v2244_v58  ;;  %vm10123_vm10 = vmmov %vm10121_vm4 }
 0xd04   :  { %v2245_v22 = vmax.f32 %v2241_v59, 0.0 }
 0xd05   :  { %v2234_v37 = vpop.permute.xlu1 %2233 }
 0xd06   :  { %5689 = vmatmul.mubr.msk.f32.vlgmr.msra.gmra.mxu0 %vm10114_vm14, %v2245_v22  ;;  %vm10124_vm14 = vmmov %vm10122_vm3 }
 0xd07   :  { %5710 = vmatpush3.msra.mxu0 %v157_v30 }
 0xd08   :  { %5711 = vmatprep.subr.mxu0 %v156_v32 }
 0xd09   :  { %5712 = vmatpush3.msra.mxu0 %v156_v32 }
 0xd0a   :  { %v2213_v44 = vpop.permute.xlu1 %2212  ;;  %5713 = vmatprep.subr.mxu0 %v155_v11 }
 0xd0b   :  { %v2222_v43 = vmul.f32 %v2213_v44, %v2198_v19  ;;  %5714 = vmatpush3.msra.mxu0 %v155_v11  ;;  %v52_v11 = vld [vmem:[%s9587_s1 + $0x110] sm:$0xff] }
 0xd0c   :  { %5715 = vmatprep.subr.mxu0 %v154_v40 }
 0xd0d   :  { %v2242_v10 = vadd.f32 %v2234_v37, %v2222_v43  ;;  %5716 = vmatpush3.msra.mxu0 %v154_v40  ;;  %v53_v40 = vld [vmem:[%s9587_s1 + $0x118] sm:$0xff] }
 0xd0e   :  { %v2218_v6 = vpop.permute.xlu1 %2217 }
 0xd0f   :  { %v2246_v50 = vmax.f32 %v2242_v10, 0.0  ;;  %v2223_v30 = vmul.f32 %v2218_v6, %v2199_v2 }
 0xd11   :  { %5691 = vmatprep.mubr.msk.f32.mxu0 %vm10115_vm8, %v2246_v50  ;;  %vm10125_vm8 = vmmov %vm10122_vm3 }
 0xd13   :  { %v2238_v8 = vpop.permute.xlu1 %2237 }
 0xd14   :  { %v2243_v48 = vadd.f32 %v2238_v8, %v2223_v30 }
 0xd16   :  { %v2247_v34 = vmax.f32 %v2243_v48, 0.0 }
 0xd18   :  { %5692 = vmatmul.mubr.msk.f32.gmra.mxu0 %vm10116_vm6, %v2247_v34  ;;  %vm10126_vm6 = vmmov %vm10121_vm4 }
 0xd19   :  { %5717 = vmatprep.mubr.msk.f32.mxu0 %vm10104_vm0, %v7307_v15  ;;  %vm10127_vm0 = vmmov %vm10122_vm3 }
 0xd1c   :  { %5718 = vmatmul.mubr.msk.f32.vlgmr.msra.gmra.mxu0 %vm10117_vm15, %v7315_v1  ;;  %v67_v1 = vld [vmem:[%s9587_s1 + $0x198] sm:$0xff]  ;;  %vm10128_vm15 = vmmov %vm10121_vm4 }
 0xd1d   :  { %5720 = vmatprep.mubr.msk.f32.mxu0 %vm10118_vm2, %v7327_v3  ;;  %vm10129_vm2 = vcmask 990208  }
 0xd1e   :  { %vm10132_vm11 = vmmov %vm10129_vm2 }
 0xd20   :  { %5721 = vmatmul.mubr.msk.f32.gmra.mxu0 %vm10119_vm12, %v7337_v27  ;;  %vm10130_vm12 = vcmask 56320  }
 0xd21   :  { %5731 = vmatprep.mubr.msk.f32.mxu0 %vm10120_vm5, %v53_v40  ;;  %vm10133_vm5 = vnez %v10033_v5 }
 0xdc6   :  { %v7624_v18 = vpop.f32.mrf.mxu0 }
 0xdc8   :  { %v7626_v13 = vpop.f32.mrf.mxu0 }
 0xdd8   :  { %v7628_v56 = vpop.f32.mrf.mxu0 }
 0xdd9   :  { %5695 = vmatpush3.msra.mxu1 %v7628_v56 }
 0xdda   :  { %v7631_v29 = vpop.f32.mrf.mxu0  ;;  %5696 = vmatprep.subr.mxu1 %v10037_v53 }
 0xddb   :  { %5697 = vmatpush3.msra.mxu1 %v7631_v29 }
 0xddc   :  { %5698 = vmatprep.subr.mxu1 %v10037_v53  ;;  %v7636_v15 = vpop.f32.mrf.mxu0 }
 0xddd   :  { %2607 = vrot.lane.b32.xlu0 %v7636_v15, %s5932_s8  ;;  %2667 = vrot.lane.b32.xlu1 %v7636_v15, %s5939_s3 }
 0xdde   :  { %5699 = vmatpush3.msra.mxu1 %v7624_v18  ;;  %v7656_v3 = vpop.f32.mrf.mxu0 }
 0xddf   :  { %5700 = vmatprep.subr.mxu1 %v10037_v53 }
 0xde0   :  { %5701 = vmatpush3.msra.mxu1 %v7626_v13  ;;  %v7667_v27 = vpop.f32.mrf.mxu0 }
 0xde1   :  { %5702 = vmatprep.subr.mxu1 %v10037_v53  ;;  %2587 = vrot.lane.b32.xlu0 %v7636_v15, %s5942_s20 }
 0xde2   :  { %2647 = vrot.lane.b32.xlu1 %v7636_v15, %s5941_s17  ;;  %5703 = vmatpush3.msra.mxu1 %v7023_v33  ;;  %v7677_v32 = vpop.f32.mrf.mxu0 }
 0xde3   :  { %5704 = vmatprep.subr.mxu1 %v10037_v53 }
 0xde4   :  { %5705 = vmatpush3.msra.mxu1 %v7021_v4 }
 0xde5   :  { %2605 = vrot.lane.b32.xlu0 %v7656_v3, %s5932_s8  ;;  %5707 = vmatmul.mubr.msk.f32.vlgmr.msra.gmra.mxu1 %vm2345_vm1, %v67_v1  ;;  %vm10131_vm1 = vmmov %vm10130_vm12 }
 0xde6   :  { %2665 = vrot.lane.b32.xlu1 %v7656_v3, %s5939_s3  ;;  %2775 = vmatprep.mubr.f32.mxu1 %v52_v11 }
 0xde9   :  { %2585 = vrot.lane.b32.xlu0 %v7656_v3, %s5942_s20 }
 0xdea   :  { %2645 = vrot.lane.b32.xlu1 %v7656_v3, %s5941_s17 }
 0xded   :  { %2611 = vrot.lane.b32.xlu0 %v7667_v27, %s5932_s8 }
 0xdee   :  { %2671 = vrot.lane.b32.xlu1 %v7667_v27, %s5939_s3 }
 0xdf1   :  { %2591 = vrot.lane.b32.xlu0 %v7667_v27, %s5942_s20 }
 0xdf2   :  { %2651 = vrot.lane.b32.xlu1 %v7667_v27, %s5941_s17 }
 0xdf5   :  { %2609 = vrot.lane.b32.xlu0 %v7677_v32, %s5932_s8 }
 0xdf6   :  { %2669 = vrot.lane.b32.xlu1 %v7677_v32, %s5939_s3 }
 0xdf9   :  { %2571 = vrot.lane.b32.xlu0 %v7667_v27, %s5944_s22 }
 0xdfa   :  { %2631 = vrot.lane.b32.xlu1 %v7667_v27, %s5930_s0 }
 0xdfd   :  { %2589 = vrot.lane.b32.xlu0 %v7677_v32, %s5942_s20 }
 0xdfe   :  { %2649 = vrot.lane.b32.xlu1 %v7677_v32, %s5941_s17 }
 0xe01   :  { %2567 = vrot.lane.b32.xlu0 %v7636_v15, %s5944_s22 }
 0xe02   :  { %2627 = vrot.lane.b32.xlu1 %v7636_v15, %s5930_s0 }
 0xe05   :  { %2569 = vrot.lane.b32.xlu0 %v7677_v32, %s5944_s22 }
 0xe06   :  { %2629 = vrot.lane.b32.xlu1 %v7677_v32, %s5930_s0 }
 0xe09   :  { %2565 = vrot.lane.b32.xlu0 %v7656_v3, %s5944_s22 }
 0xe0a   :  { %2625 = vrot.lane.b32.xlu1 %v7656_v3, %s5930_s0 }
 0xe0d   :  { %2549 = vrot.lane.b32.xlu0 %v7677_v32, %s5943_s21 }
 0xe0e   :  { %2551 = vrot.lane.b32.xlu1 %v7667_v27, %s5943_s21 }
 0xe11   :  { %2545 = vrot.lane.b32.xlu0 %v7656_v3, %s5943_s21 }
 0xe12   :  { %2547 = vrot.lane.b32.xlu1 %v7636_v15, %s5943_s21 }
 0xe15   :  { %2689 = vrot.lane.b32.xlu0 %v7677_v32, %s5940_s16 }
 0xe16   :  { %2691 = vrot.lane.b32.xlu1 %v7667_v27, %s5940_s16 }
 0xe19   :  { %2685 = vrot.lane.b32.xlu0 %v7656_v3, %s5940_s16 }
 0xe1a   :  { %2687 = vrot.lane.b32.xlu1 %v7636_v15, %s5940_s16 }
 0xe4f   :  { %v2608_v38 = vpop.permute.xlu0 %2607  ;;  %v2668_v7 = vpop.permute.xlu1 %2667 }
 0xe50   :  { %v2678_v43 = vsel %vm10125_vm8, %v2668_v7, 0.0  ;;  %v2618_v6 = vsel %vm10126_vm6, 0.0, %v2608_v38  ;;  %vm10138_vm8 = vcmask 1039360   ;;  %vm10139_vm6 = vcmask 64512  }
 0xe53   :  { %v2588_v26 = vpop.permute.xlu0 %2587 }
 0xe54   :  { %v2648_v24 = vpop.permute.xlu1 %2647 }
 0xe57   :  { %v2606_v52 = vpop.permute.xlu0 %2605 }
 0xe58   :  { %v2666_v17 = vpop.permute.xlu1 %2665  ;;  %v2617_v30 = vsel %vm10128_vm15, 0.0, %v2606_v52  ;;  %vm10141_vm15 = vnez %v10023_v35 }
 0xe59   :  { %v2677_v2 = vsel %vm10127_vm0, %v2666_v17, 0.0  ;;  %vm10140_vm0 = vmmov %vm10139_vm6 }
 0xe5b   :  { %v2586_v21 = vpop.permute.xlu0 %2585 }
 0xe5c   :  { %v2646_v16 = vpop.permute.xlu1 %2645 }
 0xe5f   :  { %v2612_v57 = vpop.permute.xlu0 %2611 }
 0xe60   :  { %v2620_v9 = vsel %vm10121_vm4, 0.0, %v2612_v57  ;;  %v2672_v14 = vpop.permute.xlu1 %2671  ;;  %vm10134_vm4 = vmmov %vm10129_vm2 }
 0xe61   :  { %v2680_v58 = vsel %vm10122_vm3, %v2672_v14, 0.0  ;;  %v2658_v38 = vsel %vm10134_vm4, %v2648_v24, 0.0  ;;  %vm10135_vm3 = vmmov %vm10131_vm1 }
 0xe62   :  { %5522 = vmatprep.subr.msk.mxu1 %vm6855_vm9, %v2680_v58  ;;  %v2598_v52 = vsel %vm10135_vm3, 0.0, %v2588_v26  ;;  %vm10146_vm4 = vmmov %vm10140_vm0 }
 0xe63   :  { %5523 = vmatpush3.msk.msra.mxu1 %vm6911_vm13, %v2620_v9  ;;  %v2592_v55 = vpop.permute.xlu0 %2591 }
 0xe64   :  { %v2652_v59 = vpop.permute.xlu1 %2651  ;;  %v2600_v34 = vsel %vm10130_vm12, 0.0, %v2592_v55  ;;  %vm10143_vm12 = vnez %v10026_v25 }
 0xe65   :  { %v2660_v8 = vsel %vm10129_vm2, %v2652_v59, 0.0 }
 0xe67   :  { %v2610_v22 = vpop.permute.xlu0 %2609 }
 0xe68   :  { %v2619_v37 = vsel %vm10123_vm10, 0.0, %v2610_v22  ;;  %v2670_v19 = vpop.permute.xlu1 %2669  ;;  %vm10136_vm10 = vmmov %vm10129_vm2 }
 0xe69   :  { %v2679_v44 = vsel %vm10124_vm14, %v2670_v19, 0.0  ;;  %v2657_v57 = vsel %vm10136_vm10, %v2646_v16, 0.0  ;;  %vm10137_vm14 = vmmov %vm10131_vm1  ;;  %vm10148_vm10 = vcmask 72704  }
 0xe6a   :  { %5524 = vmatprep.subr.msk.mxu1 %vm6855_vm9, %v2679_v44  ;;  %v2597_v9 = vsel %vm10137_vm14, 0.0, %v2586_v21  ;;  %vm10142_vm2 = vmmov %vm10138_vm8  ;;  %vm10149_vm14 = vnez %v10035_v49  ;;  %v8092_v49 = vld [vmem:[%s9592_s6 + $0x1e0] sm:$0xff] }
 0xe6b   :  { %5525 = vmatpush3.msk.msra.mxu1 %vm6911_vm13, %v2619_v37  ;;  %v2572_v10 = vpop.permute.xlu0 %2571 }
 0xe6c   :  { %v2632_v50 = vpop.permute.xlu1 %2631  ;;  %5526 = vmatprep.subr.msk.mxu1 %vm6855_vm9, %v2678_v43  ;;  %v2580_v14 = vsel %vm10139_vm6, 0.0, %v2572_v10 }
 0xe6d   :  { %5527 = vmatpush3.msk.msra.mxu1 %vm6911_vm13, %v2618_v6  ;;  %v2640_v24 = vsel %vm10138_vm8, %v2632_v50, 0.0  ;;  %vm10150_vm8 = vmmov %vm10148_vm10 }
 0xe6e   :  { %5528 = vmatprep.subr.msk.mxu1 %vm6855_vm9, %v2677_v2  ;;  %vm10151_vm6 = vmmov %vm10150_vm8 }
 0xe6f   :  { %5529 = vmatpush3.msk.msra.mxu1 %vm6911_vm13, %v2617_v30  ;;  %v2590_v48 = vpop.permute.xlu0 %2589 }
 0xe70   :  { %v2599_v1 = vsel %vm10131_vm1, 0.0, %v2590_v48  ;;  %v2650_v11 = vpop.permute.xlu1 %2649  ;;  %5530 = vmatprep.subr.msk.mxu1 %vm6879_vm7, %v2660_v8  ;;  %vm10144_vm1 = vmmov %vm10142_vm2 }
 0xe71   :  { %v2659_v40 = vsel %vm10132_vm11, %v2650_v11, 0.0  ;;  %5531 = vmatpush3.msk.msra.mxu1 %vm10133_vm5, %v2600_v34  ;;  %vm10145_vm11 = vmmov %vm10140_vm0  ;;  %v55_v34 = vld [vmem:[%s9587_s1 + $0x128] sm:$0xff] }
 0xe72   :  { %5532 = vmatprep.subr.msk.mxu1 %vm6879_vm7, %v2659_v40  ;;  %vm10147_vm3 = vmmov %vm10144_vm1 }
 0xe73   :  { %5533 = vmatpush3.msk.msra.mxu1 %vm10133_vm5, %v2599_v1  ;;  %v2568_v7 = vpop.permute.xlu0 %2567 }
 0xe74   :  { %v2628_v17 = vpop.permute.xlu1 %2627  ;;  %5534 = vmatprep.subr.msk.mxu1 %vm6879_vm7, %v2658_v38  ;;  %v2578_v22 = vsel %vm10145_vm11, 0.0, %v2568_v7 }
 0xe75   :  { %5535 = vmatpush3.msk.msra.mxu1 %vm10133_vm5, %v2598_v52  ;;  %v2638_v21 = vsel %vm10144_vm1, %v2628_v17, 0.0  ;;  %vm10154_vm1 = vnez %v10016_v62  ;;  %v56_v17 = vld [vmem:[%s9587_s1 + $0x130] sm:$0xff]  ;;  %v8107_v62 = vld [vmem:[%s9592_s6 + $0x1c8] sm:$0xff] }
 0xe76   :  { %5536 = vmatprep.subr.msk.mxu1 %vm6879_vm7, %v2657_v57 }
 0xe77   :  { %5537 = vmatpush3.msk.msra.mxu1 %vm10133_vm5, %v2597_v9  ;;  %v2570_v26 = vpop.permute.xlu0 %2569 }
 0xe78   :  { %v2579_v58 = vsel %vm10140_vm0, 0.0, %v2570_v26  ;;  %v2630_v55 = vpop.permute.xlu1 %2629  ;;  %5538 = vmatprep.subr.msk.mxu1 %vm10141_vm15, %v2640_v24  ;;  %vm10152_vm0 = vmmov %vm10151_vm6  ;;  %v5958_v24 = vmov 16   ;;  %v5959_v26 = vmov 17  }
 0xe79   :  { %v2639_v16 = vsel %vm10142_vm2, %v2630_v55, 0.0  ;;  %5539 = vmatpush3.msk.msra.mxu1 %vm10143_vm12, %v2580_v14  ;;  %vm10153_vm2 = vcmask 973824   ;;  %5850 = vset.pattern.permute.xlu0 %v5958_v24 }
 0xe7a   :  { %5540 = vmatprep.subr.msk.mxu1 %vm10141_vm15, %v2639_v16  ;;  %vm10155_vm11 = vmmov %vm10153_vm2  ;;  %5851 = vset.pattern.permute.xlu1 %v5959_v26 }
 0xe7b   :  { %5541 = vmatpush3.msk.msra.mxu1 %vm10143_vm12, %v2579_v58  ;;  %v2566_v59 = vpop.permute.xlu0 %2565 }
 0xe7c   :  { %v2577_v37 = vsel %vm10146_vm4, 0.0, %v2566_v59  ;;  %v2626_v19 = vpop.permute.xlu1 %2625  ;;  %5542 = vmatprep.subr.msk.mxu1 %vm10141_vm15, %v2638_v21  ;;  %vm10156_vm4 = vmmov %vm10153_vm2 }
 0xe7d   :  { %v2637_v44 = vsel %vm10147_vm3, %v2626_v19, 0.0  ;;  %5543 = vmatpush3.msk.msra.mxu1 %vm10143_vm12, %v2578_v22  ;;  %vm10157_vm3 = vmmov %vm10153_vm2 }
 0xe7e   :  { %5544 = vmatprep.subr.msk.mxu1 %vm10141_vm15, %v2637_v44 }
 0xe7f   :  { %5545 = vmatpush3.msk.msra.mxu1 %vm10143_vm12, %v2577_v37  ;;  %v2550_v43 = vpop.permute.xlu0 %2549 }
 0xe80   :  { %v2552_v10 = vpop.permute.xlu1 %2551  ;;  %5546 = vmatprep.subr.mxu1 %v7667_v27  ;;  %v2559_v50 = vsel %vm10150_vm8, 0.0, %v2550_v43  ;;  %v51_v27 = vld [vmem:[%s9587_s1 + $0x108] sm:$0xff]  ;;  %vm10161_vm8 = vcmask 982016  }
 0xe81   :  { %v2560_v6 = vsel %vm10148_vm10, 0.0, %v2552_v10  ;;  %vm10158_vm10 = vcmask 261120  }
 0xe82   :  { %5547 = vmatpush3.msk.msra.mxu1 %vm10149_vm14, %v2560_v6  ;;  %v7860_v6 = vld [vmem:[%s9588_s2] sm:$0xff] }
 0xe83   :  { %5548 = vmatprep.subr.mxu1 %v7677_v32  ;;  %v2546_v2 = vpop.permute.xlu0 %2545 }
 0xe84   :  { %v2548_v30 = vpop.permute.xlu1 %2547  ;;  %5549 = vmatpush3.msk.msra.mxu1 %vm10149_vm14, %v2559_v50  ;;  %v2557_v48 = vsel %vm10152_vm0, 0.0, %v2546_v2  ;;  %v5960_v50 = vmov 9   ;;  %v5961_v2 = vmov 8   ;;  %vm10163_vm0 = vmmov %vm10161_vm8 }
 0xe85   :  { %v2558_v8 = vsel %vm10151_vm6, 0.0, %v2548_v30  ;;  %5550 = vmatprep.subr.mxu1 %v7636_v15  ;;  %vm10162_vm6 = vcmask 7168  }
 0xe86   :  { %5551 = vmatpush3.msk.msra.mxu1 %vm10149_vm14, %v2558_v8 }
 0xe87   :  { %5552 = vmatprep.subr.mxu1 %v7656_v3  ;;  %v2690_v32 = vpop.permute.xlu0 %2689  ;;  %v54_v3 = vld [vmem:[%s9587_s1 + $0x120] sm:$0xff] }
 0xe88   :  { %v2692_v1 = vpop.permute.xlu1 %2691  ;;  %5553 = vmatpush3.msk.msra.mxu1 %vm10149_vm14, %v2557_v48  ;;  %v2699_v11 = vsel %vm10155_vm11, %v2690_v32, 0.0  ;;  %vm10165_vm11 = vmmov %vm10158_vm10 }
 0xe89   :  { %v2700_v15 = vsel %vm10153_vm2, %v2692_v1, 0.0  ;;  %2776 = vmatmul.mubr.f32.vlgmr.msra.gmra.mxu1 %v51_v27  ;;  %vm10164_vm2 = vmmov %vm10162_vm6 }
 0xe8a   :  { %5723 = vmatprep.subr.msk.mxu0 %vm10154_vm1, %v2700_v15  ;;  %2780 = vmatprep.mubr.f32.mxu1 %v55_v34 }
 0xe8b   :  { %5724 = vmatpush3.msk.msra.mxu0 %vm10154_vm1, %v2700_v15  ;;  %v2686_v40 = vpop.permute.xlu0 %2685 }
 0xe8c   :  { %5725 = vmatprep.subr.msk.mxu0 %vm10154_vm1, %v2699_v11  ;;  %v2688_v38 = vpop.permute.xlu1 %2687  ;;  %v2697_v52 = vsel %vm10157_vm3, %v2686_v40, 0.0  ;;  %vm10167_vm3 = vmmov %vm10163_vm0 }
 0xe8d   :  { %v2698_v7 = vsel %vm10156_vm4, %v2688_v38, 0.0  ;;  %5726 = vmatpush3.msk.msra.mxu0 %vm10154_vm1, %v2699_v11  ;;  %2781 = vmatmul.mubr.f32.gmra.mxu1 %v54_v3  ;;  %vm10166_vm4 = vmmov %vm10164_vm2 }
 0xe8e   :  { %5727 = vmatprep.subr.msk.mxu0 %vm10154_vm1, %v2698_v7 }
 0xe8f   :  { %5728 = vmatpush3.msk.msra.mxu0 %vm10154_vm1, %v2698_v7 }
 0xe90   :  { %5729 = vmatprep.subr.msk.mxu0 %vm10154_vm1, %v2697_v52 }
 0xe91   :  { %5730 = vmatpush3.msk.msra.mxu0 %vm10154_vm1, %v2697_v52 }
 0xe92   :  { %5732 = vmatmul.mubr.msk.f32.vlgmr.msra.gmra.mxu0 %vm10158_vm10, %v56_v17  ;;  %vm10168_vm10 = vmmov %vm10163_vm0 }
 0xea5   :  { %v2415_v57 = vpop.f32.mrf.mxu1 }
 0xea7   :  { %v5708_v9 = vpop.f32.mrf.mxu1 }
 0xea8   :  { %v2419_v9 = vmax.f32 %v2415_v57, 0.0 }
 0xf49   :  { %v5554_v14 = vpop.f32.mrf.mxu1 }
 0xf4b   :  { %v5555_v58 = vpop.f32.mrf.mxu1 }
 0xf4c   :  { %v5556_v22 = vadd.f32 %v5555_v58, %v5554_v14 }
 0xf4d   :  { %v5557_v55 = vpop.f32.mrf.mxu1 }
 0xf4f   :  { %v5558_v16 = vpop.f32.mrf.mxu1 }
 0xf50   :  { %v5559_v21 = vadd.f32 %v5558_v16, %v5557_v55 }
 0xf52   :  { %v5733_v59 = vpop.f32.mrf.mxu0 }
 0xf53   :  { %v7847_v37 = vadd.f32 %v5733_v59, %v5559_v21 }
 0xf54   :  { %v2852_v19 = vpop.f32.mrf.mxu0 }
 0xf55   :  { %v7849_v44 = vadd.f32 %v5556_v22, %v2852_v19  ;;  %2865 = vadd.xlane.f32.xlu1 %v7847_v37  ;;  %v2862_v10 = vmul.f32 %v7847_v37, %v7847_v37 }
 0xf57   :  { %2863 = vadd.xlane.f32.xlu0 %v7849_v44  ;;  %v2861_v43 = vmul.f32 %v7849_v44, %v7849_v44 }
 0xf59   :  { %2867 = vadd.xlane.f32.xlu1 %v2861_v43 }
 0xf5b   :  { %2869 = vadd.xlane.f32.xlu0 %v2862_v10 }
 0xf6a   :  { %2432 = vperm.xlu1 %5851, %v7860_v6  }
 0xf6e   :  { %5852 = vset.pattern.permute.xlu1 %v5960_v50 }
 0xf6f   :  { %2906 = vperm.xlu1 %5852, %v7585_v28  }
 0xf71   :  { %2421 = vperm.xlu0 %5850, %v7860_v6  }
 0xf73   :  { %5853 = vset.pattern.permute.xlu1 %v5961_v2 }
 0xfde   :  { %v2866_v30 = vpop.xlane.xlu1 %2865 }
 0xfdf   :  { %v7865_v27 = vmul.f32 0.0078125, %v2866_v30 }
 0xfe0   :  { %v2864_v8 = vpop.xlane.xlu0 %2863 }
 0xfe1   :  { %v2871_v48 = vmul.f32 0.0078125, %v2864_v8  ;;  %v2876_v3 = vmul.f32 %v7865_v27, %v7865_v27 }
 0xfe2   :  { %v2868_v32 = vpop.xlane.xlu1 %2867 }
 0xfe3   :  { %v2875_v34 = vmul.f32 %v2871_v48, %v2871_v48  ;;  %v2873_v1 = vmul.f32 0.0078125, %v2868_v32 }
 0xfe4   :  { %v2870_v15 = vpop.xlane.xlu0 %2869 }
 0xfe5   :  { %v2877_v11 = vsub.f32 %v2873_v1, %v2875_v34  ;;  %v2874_v40 = vmul.f32 0.0078125, %v2870_v15  ;;  %v10159_v1 = vlaneseq }
 0xfe6   :  { %v2433_v19 = vpop.permute.xlu1 %2432 }
 0xfe7   :  { %v2879_v38 = vmax.f32 %v2877_v11, 0.0  ;;  %v2878_v7 = vsub.f32 %v2874_v40, %v2876_v3  ;;  %v2443_v15 = vshrl.u32 %v10159_v1, 7 }
 0xfe9   :  { %v2881_v52 = vadd.f32 1e-05, %v2879_v38  ;;  %v2880_v17 = vmax.f32 %v2878_v7, 0.0  ;;  %v7873_v3 = vsub.s32 0, %v2443_v15  ;;  %v2887_v7 = vsub.f32 %v7849_v44, %v2871_v48 }
 0xfeb   :  { %5891 = vrsqrt.f32 %v2881_v52  ;;  %v2882_v24 = vadd.f32 1e-05, %v2880_v17  ;;  %10160 = vst [vmem:[#allocation37_spill] sm:$0xff] %v7873_v3 }
 0xfec   :  { %v2422_v26 = vpop.permute.xlu0 %2421 }
 0xfed   :  { %5893 = vrsqrt.f32 %v2882_v24  ;;  %v2424_v14 = vmul.f32 %v2422_v26, %v2419_v9  ;;  %v2888_v9 = vsub.f32 %v7847_v37, %v7865_v27 }
 0xfef   :  { %v2425_v58 = vrot.slane %v2424_v14, 4 }
 0xff1   :  { %v2426_v55 = vadd.f32 %v2425_v58, %v2424_v14 }
 0xff3   :  { %v2427_v16 = vrot.slane %v2426_v55, 2 }
 0xff5   :  { %v2428_v21 = vadd.f32 %v2427_v16, %v2426_v55 }
 0xff7   :  { %v2429_v59 = vrot.slane %v2428_v21, 1 }
 0xff8   :  { %v5892_v22 = vpop.eup %5891 }
 0xff9   :  { %v2430_v43 = vadd.f32 %v2429_v59, %v2428_v21  ;;  %v2885_v10 = vmul.f32 %v7860_v6, %v5892_v22  ;;  %v58_v59 = vld [vmem:[%s9587_s1 + $0x140] sm:$0xff] }
 0xffa   :  { %v5894_v2 = vpop.eup %5893  ;;  %3147 = vmatprep.mubr.f32.mxu0 %v58_v59 }
 0xffb   :  { %v2435_v30 = vadd.f32 %v2433_v19, %v2430_v43  ;;  %2891 = vperm.xlu1 %5853, %v2885_v10   ;;  %v2886_v57 = vmul.f32 %v7585_v28, %v5894_v2  ;;  %v59_v43 = vld [vmem:[%s9587_s1 + $0x148] sm:$0xff] }
 0xffc   :  { %5742 = vmatprep.mubr.msk.f32.mxu1 %vm10165_vm11, %v59_v43 }
 0xffd   :  { %v5135_v8 = vmul.f32 -1.442695, %v2435_v30 }
 0xfff   :  { %5895 = vpow2.f32 %v5135_v8  ;;  %2896 = vperm.xlu1 %5853, %v2886_v57  }
0x1003   :  { %5854 = vset.pattern.permute.xlu1 %v5960_v50 }
0x1004   :  { %2902 = vperm.xlu1 %5854, %v7860_v6  }
0x100c   :  { %v5896_v32 = vpop.eup %5895 }
0x100d   :  { %v2439_v34 = vadd.f32 1.0, %v5896_v32 }
0x100f   :  { %5897 = vrcp.f32 %v2439_v34 }
0x101c   :  { %v5898_v11 = vpop.eup %5897 }
0x101d   :  { %v2445_v40 = vrot.slane %v5898_v11, %v7873_v3  ;;  %v8338_v3 = vld [vmem:[%s9592_s6 + $0xa0] sm:$0xff] }
0x101e   :  { %10197 = vst [vmem:[#allocation40_spill] sm:$0xff] %v8338_v3 }
0x101f   :  { %v7877_v38 = vmul.f32 %v2445_v40, %v7021_v4  ;;  %v7880_v28 = vmul.f32 %v2445_v40, %v7023_v33  ;;  %v2907_v4 = vpop.permute.xlu1 %2906 }
0x1021   :  { %3043 = vrot.lane.b32.xlu1 %v7880_v28, %s5939_s3  ;;  %2981 = vrot.lane.b32.xlu0 %v7877_v38, %s5932_s8 }
0x1025   :  { %2983 = vrot.lane.b32.xlu1 %v7880_v28, %s5932_s8  ;;  %2963 = vrot.lane.b32.xlu0 %v7880_v28, %s5942_s20 }
0x1029   :  { %2961 = vrot.lane.b32.xlu0 %v7877_v38, %s5942_s20  ;;  %3041 = vrot.lane.b32.xlu1 %v7877_v38, %s5939_s3 }
0x102d   :  { %2943 = vrot.lane.b32.xlu0 %v7880_v28, %s5944_s22  ;;  %3023 = vrot.lane.b32.xlu1 %v7880_v28, %s5941_s17 }
0x1031   :  { %2941 = vrot.lane.b32.xlu0 %v7877_v38, %s5944_s22  ;;  %3021 = vrot.lane.b32.xlu1 %v7877_v38, %s5941_s17 }
0x1035   :  { %3003 = vrot.lane.b32.xlu1 %v7880_v28, %s5930_s0 }
0x1039   :  { %3001 = vrot.lane.b32.xlu1 %v7877_v38, %s5930_s0 }
0x1076   :  { %v2892_v33 = vpop.permute.xlu1 %2891 }
0x1077   :  { %v2899_v52 = vmul.f32 %v2892_v33, %v2887_v7 }
0x107a   :  { %v2897_v50 = vpop.permute.xlu1 %2896 }
0x107b   :  { %v2900_v26 = vmul.f32 %v2897_v50, %v2888_v9 }
0x107d   :  { %v2910_v58 = vadd.f32 %v2907_v4, %v2900_v26 }
0x107f   :  { %v2903_v17 = vpop.permute.xlu1 %2902  ;;  %v7919_v44 = vmax.f32 %v2910_v58, 0.0 }
0x1080   :  { %v2909_v24 = vadd.f32 %v2903_v17, %v2899_v52 }
0x1082   :  { %v7909_v14 = vmax.f32 %v2909_v24, 0.0 }
0x1084   :  { %2977 = vrot.lane.b32.xlu0 %v7909_v14, %s5932_s8  ;;  %3037 = vrot.lane.b32.xlu1 %v7909_v14, %s5939_s3 }
0x1088   :  { %2957 = vrot.lane.b32.xlu0 %v7909_v14, %s5942_s20  ;;  %3017 = vrot.lane.b32.xlu1 %v7909_v14, %s5941_s17 }
0x108c   :  { %2979 = vrot.lane.b32.xlu0 %v7919_v44, %s5932_s8  ;;  %3039 = vrot.lane.b32.xlu1 %v7919_v44, %s5939_s3 }
0x1090   :  { %2937 = vrot.lane.b32.xlu0 %v7909_v14, %s5944_s22  ;;  %2997 = vrot.lane.b32.xlu1 %v7909_v14, %s5930_s0 }
0x1093   :  { %v3044_v37 = vpop.permute.xlu1 %3043  ;;  %v2982_v16 = vpop.permute.xlu0 %2981 }
0x1094   :  { %v3052_v27 = vsel %vm10161_vm8, %v3044_v37, 0.0  ;;  %2959 = vrot.lane.b32.xlu0 %v7919_v44, %s5942_s20  ;;  %3019 = vrot.lane.b32.xlu1 %v7919_v44, %s5941_s17  ;;  %v2991_v19 = vsel %vm10164_vm2, 0.0, %v2982_v16  ;;  %vm10169_vm8 = vmmov %vm10164_vm2 }
0x1095   :  { %5566 = vmatprep.subr.msk.mxu0 %vm6855_vm9, %v3052_v27 }
0x1097   :  { %v2984_v48 = vpop.permute.xlu1 %2983  ;;  %v2964_v10 = vpop.permute.xlu0 %2963 }
0x1098   :  { %v2992_v55 = vsel %vm10162_vm6, 0.0, %v2984_v48  ;;  %3063 = vrot.lane.b32.xlu0 %v7880_v28, %s5940_s16  ;;  %2923 = vrot.lane.b32.xlu1 %v7880_v28, %s5943_s21  ;;  %vm10170_vm6 = vcmask 990208  }
0x1099   :  { %5567 = vmatpush3.msk.msra.mxu0 %vm6911_vm13, %v2992_v55  ;;  %vm10172_vm2 = vmmov %vm10170_vm6 }
0x109b   :  { %v3042_v21 = vpop.permute.xlu1 %3041  ;;  %v2962_v30 = vpop.permute.xlu0 %2961 }
0x109c   :  { %v3051_v22 = vsel %vm10163_vm0, %v3042_v21, 0.0  ;;  %2939 = vrot.lane.b32.xlu0 %v7919_v44, %s5944_s22  ;;  %2999 = vrot.lane.b32.xlu1 %v7919_v44, %s5930_s0  ;;  %vm10171_vm0 = vcmask 56320  }
0x109d   :  { %5568 = vmatprep.subr.msk.mxu0 %vm6855_vm9, %v3051_v22  ;;  %v2972_v37 = vsel %vm10171_vm0, 0.0, %v2964_v10  ;;  %vm10173_vm11 = vmmov %vm10171_vm0 }
0x109e   :  { %5569 = vmatpush3.msk.msra.mxu0 %vm6911_vm13, %v2991_v19  ;;  %v2971_v48 = vsel %vm10173_vm11, 0.0, %v2962_v30 }
0x109f   :  { %v3024_v2 = vpop.permute.xlu1 %3023  ;;  %v2944_v57 = vpop.permute.xlu0 %2943 }
0x10a0   :  { %3061 = vrot.lane.b32.xlu0 %v7877_v38, %s5940_s16  ;;  %2921 = vrot.lane.b32.xlu1 %v7877_v38, %s5943_s21  ;;  %v3032_v58 = vsel %vm10170_vm6, %v3024_v2, 0.0  ;;  %vm10180_vm6 = vcmask 64512  }
0x10a1   :  { %v2952_v2 = vsel %vm10180_vm6, 0.0, %v2944_v57 }
0x10a3   :  { %v3022_v8 = vpop.permute.xlu1 %3021  ;;  %v2942_v34 = vpop.permute.xlu0 %2941 }
0x10a4   :  { %3059 = vrot.lane.b32.xlu0 %v7919_v44, %s5940_s16  ;;  %2919 = vrot.lane.b32.xlu1 %v7919_v44, %s5943_s21  ;;  %v3031_v27 = vsel %vm10172_vm2, %v3022_v8, 0.0 }
0x10a7   :  { %v3004_v32 = vpop.permute.xlu1 %3003 }
0x10a8   :  { %3057 = vrot.lane.b32.xlu0 %v7909_v14, %s5940_s16  ;;  %2917 = vrot.lane.b32.xlu1 %v7909_v14, %s5943_s21 }
0x10ab   :  { %v3002_v1 = vpop.permute.xlu1 %3001 }
0x10f6   :  { %v2978_v15 = vpop.permute.xlu0 %2977  ;;  %v3038_v11 = vpop.permute.xlu1 %3037 }
0x10f7   :  { %v3049_v17 = vsel %vm10168_vm10, %v3038_v11, 0.0  ;;  %v2989_v9 = vsel %vm10169_vm8, 0.0, %v2978_v15  ;;  %vm10178_vm10 = vcmask 1039360   ;;  %vm10179_vm8 = vcmask 973824  }
0x10f8   :  { %v3012_v43 = vsel %vm10178_vm10, %v3004_v32, 0.0 }
0x10fa   :  { %v2958_v40 = vpop.permute.xlu0 %2957  ;;  %v3018_v4 = vpop.permute.xlu1 %3017 }
0x10fe   :  { %v2980_v33 = vpop.permute.xlu0 %2979  ;;  %v3040_v50 = vpop.permute.xlu1 %3039 }
0x10ff   :  { %v2990_v7 = vsel %vm10166_vm4, 0.0, %v2980_v33  ;;  %v3050_v52 = vsel %vm10167_vm3, %v3040_v50, 0.0  ;;  %vm10176_vm4 = vmmov %vm10172_vm2 }
0x1100   :  { %5570 = vmatprep.subr.msk.mxu0 %vm6855_vm9, %v3050_v52  ;;  %v3029_v21 = vsel %vm10176_vm4, %v3018_v4, 0.0  ;;  %vm10177_vm3 = vmmov %vm10171_vm0  ;;  %vm10188_vm4 = vcmask 72704   ;;  %v57_v52 = vld [vmem:[%s9587_s1 + $0x138] sm:$0xff] }
0x1101   :  { %5571 = vmatpush3.msk.msra.mxu0 %vm6911_vm13, %v2990_v7  ;;  %v2969_v59 = vsel %vm10177_vm3, 0.0, %v2958_v40  ;;  %vm10191_vm3 = vmmov %vm10188_vm4 }
0x1102   :  { %v2938_v24 = vpop.permute.xlu0 %2937  ;;  %5572 = vmatprep.subr.msk.mxu0 %vm6855_vm9, %v3049_v17  ;;  %v2998_v26 = vpop.permute.xlu1 %2997  ;;  %vm10174_vm9 = vmmov %vm10171_vm0 }
0x1103   :  { %5573 = vmatpush3.msk.msra.mxu0 %vm6911_vm13, %v2989_v9  ;;  %vm10175_vm13 = vmmov %vm10172_vm2  ;;  %v8068_v9 = vld [vmem:[%s9592_s6 + $0x1f8] sm:$0xff] }
0x1104   :  { %5574 = vmatprep.subr.msk.mxu0 %vm6879_vm7, %v3032_v58  ;;  %vm10181_vm0 = vmmov %vm10178_vm10  ;;  %v8097_v58 = vld [vmem:[%s9592_s6 + $0x1d8] sm:$0xff] }
0x1105   :  { %5575 = vmatpush3.msk.msra.mxu0 %vm10133_vm5, %v2972_v37  ;;  %v3011_v30 = vsel %vm10181_vm0, %v3002_v1, 0.0  ;;  %vm10184_vm2 = vmmov %vm10181_vm0  ;;  %v61_v37 = vld [vmem:[%s9587_s1 + $0x158] sm:$0xff] }
0x1106   :  { %v2960_v61 = vpop.permute.xlu0 %2959  ;;  %5576 = vmatprep.subr.msk.mxu0 %vm6879_vm7, %v3031_v27  ;;  %v3020_v55 = vpop.permute.xlu1 %3019  ;;  %vm10185_vm11 = vmmov %vm10181_vm0  ;;  %v8114_v27 = vld [vmem:[%s9592_s6 + $0x1d0] sm:$0xff] }
0x1107   :  { %v2970_v20 = vsel %vm10174_vm9, 0.0, %v2960_v61  ;;  %v3030_v16 = vsel %vm10175_vm13, %v3020_v55, 0.0  ;;  %5577 = vmatpush3.msk.msra.mxu0 %vm10133_vm5, %v2971_v48  ;;  %v3009_v1 = vsel %vm10185_vm11, %v2998_v26, 0.0  ;;  %vm10187_vm13 = vmmov %vm10179_vm8  ;;  %v62_v26 = vld [vmem:[%s9587_s1 + $0x160] sm:$0xff]  ;;  %v60_v61 = vld [vmem:[%s9587_s1 + $0x150] sm:$0xff] }
0x1108   :  { %5578 = vmatprep.subr.msk.mxu0 %vm6879_vm7, %v3030_v16  ;;  %vm10192_vm10 = vmmov %vm10179_vm8  ;;  %v8119_v48 = vld [vmem:[%s9592_s6 + $0x1c0] sm:$0xff]  ;;  %v8129_v55 = vld [vmem:[%s9592_s6 + $0x1b8] sm:$0xff] }
0x1109   :  { %5579 = vmatpush3.msk.msra.mxu0 %vm10133_vm5, %v2970_v20  ;;  %v8135_v20 = vld [vmem:[%s9592_s6 + $0x1a8] sm:$0xff]  ;;  %v8140_v16 = vld [vmem:[%s9592_s6 + $0x1b0] sm:$0xff] }
0x110a   :  { %v3064_v22 = vpop.permute.xlu0 %3063  ;;  %5580 = vmatprep.subr.msk.mxu0 %vm6879_vm7, %v3029_v21  ;;  %v2924_v19 = vpop.permute.xlu1 %2923  ;;  %vm10182_vm7 = vmmov %vm10180_vm6  ;;  %v8147_v21 = vld [vmem:[%s9592_s6 + $0x1a0] sm:$0xff] }
0x110b   :  { %v3072_v10 = vsel %vm10179_vm8, %v3064_v22, 0.0  ;;  %5581 = vmatpush3.msk.msra.mxu0 %vm10133_vm5, %v2969_v59  ;;  %v2951_v12 = vsel %vm10182_vm7, 0.0, %v2942_v34  ;;  %vm10183_vm5 = vmmov %vm10180_vm6  ;;  %v2932_v4 = vsel %vm10188_vm4, 0.0, %v2924_v19  ;;  %v8152_v59 = vld [vmem:[%s9592_s6 + $0x198] sm:$0xff]  ;;  %v8158_v22 = vld [vmem:[%s9592_s6 + $0x188] sm:$0xff]  ;;  %vm10248_vm6 = vcmask 130048  }
0x110c   :  { %5582 = vmatprep.subr.msk.mxu0 %vm10141_vm15, %v3012_v43  ;;  %5734 = vmatprep.subr.msk.mxu1 %vm10154_vm1, %v3072_v10  ;;  %vm10186_vm9 = vmmov %vm10183_vm5  ;;  %v8163_v19 = vld [vmem:[%s9592_s6 + $0x190] sm:$0xff]  ;;  %v8170_v43 = vld [vmem:[%s9592_s6 + $0x180] sm:$0xff]  ;;  %vm10250_vm7 = vcmask 916480  }
0x110d   :  { %5583 = vmatpush3.msk.msra.mxu0 %vm10143_vm12, %v2952_v2  ;;  %5735 = vmatpush3.msk.msra.mxu1 %vm10154_vm1, %v3072_v10  ;;  %v2949_v34 = vsel %vm10186_vm9, 0.0, %v2938_v24  ;;  %v8073_v24 = vld [vmem:[%s9592_s6 + $0x1e8] sm:$0xff]  ;;  %v8175_v10 = vld [vmem:[%s9592_s6 + $0x178] sm:$0xff]  ;;  %vm10249_vm0 = vmmov %vm10248_vm6 }
0x110e   :  { %v2940_v5 = vpop.permute.xlu0 %2939  ;;  %5584 = vmatprep.subr.msk.mxu0 %vm10141_vm15, %v3011_v30  ;;  %v3000_v8 = vpop.permute.xlu1 %2999  ;;  %v8182_v2 = vld [vmem:[%s9592_s6 + $0x168] sm:$0xff]  ;;  %v8187_v30 = vld [vmem:[%s9592_s6 + $0x170] sm:$0xff] }
0x110f   :  { %v2950_v57 = vsel %vm10183_vm5, 0.0, %v2940_v5  ;;  %v3010_v32 = vsel %vm10184_vm2, %v3000_v8, 0.0  ;;  %5585 = vmatpush3.msk.msra.mxu0 %vm10143_vm12, %v2951_v12  ;;  %v8194_v12 = vld [vmem:[%s9592_s6 + $0x160] sm:$0xff]  ;;  %v8199_v5 = vld [vmem:[%s9592_s6 + $0x158] sm:$0xff]  ;;  %v8206_v8 = vld [vmem:[%s9592_s6 + $0x148] sm:$0xff] }
0x1110   :  { %5586 = vmatprep.subr.msk.mxu0 %vm10141_vm15, %v3010_v32  ;;  %v8218_v32 = vld [vmem:[%s9592_s6 + $0x140] sm:$0xff]  ;;  %vm10251_vm5 = vmmov %vm10250_vm7 }
0x1111   :  { %5587 = vmatpush3.msk.msra.mxu0 %vm10143_vm12, %v2950_v57  ;;  %v8211_v57 = vld [vmem:[%s9592_s6 + $0x150] sm:$0xff]  ;;  %vm10252_vm2 = vmmov %vm10251_vm5 }
0x1112   :  { %v3062_v15 = vpop.permute.xlu0 %3061  ;;  %5588 = vmatprep.subr.msk.mxu0 %vm10141_vm15, %v3009_v1  ;;  %v2922_v11 = vpop.permute.xlu1 %2921  ;;  %vm10189_vm15 = vmmov %vm10188_vm4  ;;  %v8223_v1 = vld [vmem:[%s9592_s6 + $0x138] sm:$0xff] }
0x1113   :  { %v3071_v40 = vsel %vm10187_vm13, %v3062_v15, 0.0  ;;  %5589 = vmatpush3.msk.msra.mxu0 %vm10143_vm12, %v2949_v34  ;;  %v2931_v35 = vsel %vm10189_vm15, 0.0, %v2922_v11  ;;  %vm10190_vm12 = vmmov %vm10179_vm8  ;;  %v8230_v34 = vld [vmem:[%s9592_s6 + $0x128] sm:$0xff]  ;;  %v8235_v15 = vld [vmem:[%s9592_s6 + $0x130] sm:$0xff] }
0x1114   :  { %5590 = vmatprep.subr.mxu0 %v7880_v28  ;;  %5736 = vmatprep.subr.msk.mxu1 %vm10154_vm1, %v3071_v40  ;;  %vm10193_vm8 = vmmov %vm10191_vm3  ;;  %v8242_v11 = vld [vmem:[%s9592_s6 + $0x120] sm:$0xff] }
0x1115   :  { %5591 = vmatpush3.msk.msra.mxu0 %vm10149_vm14, %v2932_v4  ;;  %5737 = vmatpush3.msk.msra.mxu1 %vm10154_vm1, %v3071_v40  ;;  %v8247_v40 = vld [vmem:[%s9592_s6 + $0x118] sm:$0xff]  ;;  %v8254_v4 = vld [vmem:[%s9592_s6 + $0x108] sm:$0xff]  ;;  %vm10253_vm11 = vmmov %vm10252_vm2 }
0x1116   :  { %v3060_v33 = vpop.permute.xlu0 %3059  ;;  %5592 = vmatprep.subr.mxu0 %v7877_v38  ;;  %v2920_v25 = vpop.permute.xlu1 %2919 }
0x1117   :  { %v3070_v50 = vsel %vm10190_vm12, %v3060_v33, 0.0  ;;  %v2930_v7 = vsel %vm10191_vm3, 0.0, %v2920_v25  ;;  %5593 = vmatpush3.msk.msra.mxu0 %vm10149_vm14, %v2931_v35  ;;  %v8259_v35 = vld [vmem:[%s9592_s6 + $0x110] sm:$0xff]  ;;  %v8266_v33 = vld [vmem:[%s9592_s6 + $0x100] sm:$0xff]  ;;  %v8271_v25 = vld [vmem:[%s9592_s6 + $0xf8] sm:$0xff] }
0x1118   :  { %5594 = vmatprep.subr.mxu0 %v7919_v44  ;;  %5738 = vmatprep.subr.msk.mxu1 %vm10154_vm1, %v3070_v50  ;;  %vm10262_vm12 = vmmov %vm10252_vm2 }
0x1119   :  { %5595 = vmatpush3.msk.msra.mxu0 %vm10149_vm14, %v2930_v7  ;;  %5739 = vmatpush3.msk.msra.mxu1 %vm10154_vm1, %v3070_v50  ;;  %v8278_v50 = vld [vmem:[%s9592_s6 + $0xe8] sm:$0xff]  ;;  %v8283_v7 = vld [vmem:[%s9592_s6 + $0xf0] sm:$0xff]  ;;  %vm10263_vm3 = vmmov %vm10252_vm2 }
0x111a   :  { %v3058_v38 = vpop.permute.xlu0 %3057  ;;  %5596 = vmatprep.subr.mxu0 %v7909_v14  ;;  %v2918_v28 = vpop.permute.xlu1 %2917  ;;  %v8082_v14 = vld [vmem:[%s9592_s6 + $0x1f0] sm:$0xff] }
0x111b   :  { %v3069_v17 = vsel %vm10192_vm10, %v3058_v38, 0.0  ;;  %v2929_v44 = vsel %vm10193_vm8, 0.0, %v2918_v28  ;;  %v8290_v38 = vld [vmem:[%s9592_s6 + $0xe0] sm:$0xff]  ;;  %v8295_v28 = vld [vmem:[%s9592_s6 + $0xd8] sm:$0xff]  ;;  %vm10264_vm10 = vmmov %vm10252_vm2 }
0x111c   :  { %5597 = vmatpush3.msk.msra.mxu0 %vm10149_vm14, %v2929_v44  ;;  %5740 = vmatprep.subr.msk.mxu1 %vm10154_vm1, %v3069_v17  ;;  %vm10194_vm14 = vcmask 261120   ;;  %v8314_v44 = vld [vmem:[%s9592_s6 + $0xc0] sm:$0xff]  ;;  %vm10265_vm8 = vmmov %vm10252_vm2 }
0x111d   :  { %3148 = vmatmul.mubr.f32.vlgmr.msra.gmra.mxu0 %v57_v52  ;;  %5741 = vmatpush3.msk.msra.mxu1 %vm10154_vm1, %v3069_v17  ;;  %v8302_v52 = vld [vmem:[%s9592_s6 + $0xc8] sm:$0xff]  ;;  %v8307_v17 = vld [vmem:[%s9592_s6 + $0xd0] sm:$0xff]  ;;  %vm3463_vm1 = vcmask 326656  }
0x111e   :  { %3374 = vmatprep.subr.mxu0 %v8068_v9  ;;  %3285 = vmatprep.subr.mxu1 %v8073_v24 }
0x111f   :  { %3375 = vmatpush1.msra.mxu0 %v8082_v14  ;;  %5743 = vmatmul.mubr.msk.f32.vlgmr.msra.gmra.mxu1 %vm10194_vm14, %v62_v26  ;;  %v8319_v26 = vld [vmem:[%s9592_s6 + $0xb8] sm:$0xff]  ;;  %vm10266_vm14 = vcmask 924672  }
0x1120   :  { %3286 = vmatpush1.msra.mxu1 %v8092_v49  ;;  %3376 = vmatprep.subr.mxu0 %v8097_v58  ;;  %10195 = vst [vmem:[#allocation38_spill] sm:$0xff] %v8319_v26 }
0x1121   :  { %3152 = vmatprep.mubr.f32.mxu0 %v61_v37  ;;  %3287 = vmatprep.subr.mxu1 %v8107_v62  ;;  %v8326_v37 = vld [vmem:[%s9592_s6 + $0xa8] sm:$0xff] }
0x1122   :  { %3377 = vmatpush1.msra.mxu0 %v8114_v27  ;;  %3288 = vmatpush1.msra.mxu1 %v8119_v48 }
0x1123   :  { %3153 = vmatmul.mubr.f32.gmra.mxu0 %v60_v61  ;;  %3378 = vmatprep.subr.mxu0 %v8129_v55  ;;  %v8331_v61 = vld [vmem:[%s9592_s6 + $0xb0] sm:$0xff] }
0x1124   :  { %3289 = vmatprep.subr.mxu1 %v8135_v20  ;;  %3379 = vmatpush1.msra.mxu0 %v8140_v16  ;;  %10196 = vst [vmem:[#allocation39_spill] sm:$0xff] %v8331_v61 }
0x1125   :  { %3290 = vmatpush1.msra.mxu1 %v8147_v21  ;;  %3380 = vmatprep.subr.mxu0 %v8152_v59 }
0x1126   :  { %3291 = vmatprep.subr.mxu1 %v8158_v22  ;;  %3381 = vmatpush1.msra.mxu0 %v8163_v19 }
0x1127   :  { %3292 = vmatpush1.msra.mxu1 %v8170_v43  ;;  %3382 = vmatprep.subr.mxu0 %v8175_v10 }
0x1128   :  { %3293 = vmatprep.subr.mxu1 %v8182_v2  ;;  %3383 = vmatpush1.msra.mxu0 %v8187_v30 }
0x1129   :  { %3294 = vmatpush1.msra.mxu1 %v8194_v12  ;;  %3384 = vmatprep.subr.mxu0 %v8199_v5 }
0x112a   :  { %3295 = vmatprep.subr.mxu1 %v8206_v8  ;;  %3385 = vmatpush1.msra.mxu0 %v8211_v57 }
0x112b   :  { %3296 = vmatpush1.msra.mxu1 %v8218_v32  ;;  %3386 = vmatprep.subr.mxu0 %v8223_v1 }
0x112c   :  { %3297 = vmatprep.subr.mxu1 %v8230_v34  ;;  %3387 = vmatpush1.msra.mxu0 %v8235_v15 }
0x112d   :  { %3298 = vmatpush1.msra.mxu1 %v8242_v11  ;;  %3388 = vmatprep.subr.mxu0 %v8247_v40 }
0x112e   :  { %3299 = vmatprep.subr.mxu1 %v8254_v4  ;;  %3389 = vmatpush1.msra.mxu0 %v8259_v35 }
0x112f   :  { %3300 = vmatpush1.msra.mxu1 %v8266_v33  ;;  %3390 = vmatprep.subr.mxu0 %v8271_v25 }
0x1130   :  { %3301 = vmatprep.subr.mxu1 %v8278_v50  ;;  %3391 = vmatpush1.msra.mxu0 %v8283_v7 }
0x1131   :  { %3302 = vmatpush1.msra.mxu1 %v8290_v38  ;;  %3392 = vmatprep.subr.mxu0 %v8295_v28 }
0x1132   :  { %3303 = vmatprep.subr.mxu1 %v8302_v52  ;;  %3393 = vmatpush1.msra.mxu0 %v8307_v17 }
0x1133   :  { %3304 = vmatpush1.msra.mxu1 %v8314_v44  ;;  %3394 = vmatprep.subr.mxu0 %v8319_v26 }
0x1134   :  { %3305 = vmatprep.subr.mxu1 %v8326_v37  ;;  %3395 = vmatpush1.msra.mxu0 %v8331_v61 }
0x1135   :  { %3306 = vmatpush1.msra.mxu1 %v8338_v3  ;;  %3396 = vmatprep.subr.mxu0 %v8343_v51 }
0x1136   :  { %3307 = vmatprep.subr.mxu1 %v8350_v63  ;;  %3397 = vmatpush1.msra.mxu0 %v8355_v45  ;;  %v8403_v45 = vld [vmem:[%s9592_s6 + $0x50] sm:$0xff] }
0x1137   :  { %3308 = vmatpush1.msra.mxu1 %v8362_v41  ;;  %3398 = vmatprep.subr.mxu0 %v8367_v60  ;;  %10208 = vst [vmem:[#allocation51_spill] sm:$0xff] %v8403_v45  ;;  %v8410_v41 = vld [vmem:[%s9592_s6 + $0x40] sm:$0xff]  ;;  %v8415_v60 = vld [vmem:[%s9592_s6 + $0x38] sm:$0xff] }
0x1138   :  { %3309 = vmatprep.subr.mxu1 %v8374_v46  ;;  %3399 = vmatpush1.msra.mxu0 %v8379_v42  ;;  %10209 = vst [vmem:[#allocation52_spill] sm:$0xff] %v8410_v41  ;;  %10210 = vst [vmem:[#allocation53_spill] sm:$0xff] %v8415_v60  ;;  %v8422_v46 = vld [vmem:[%s9592_s6 + $0x28] sm:$0xff]  ;;  %v8427_v42 = vld [vmem:[%s9592_s6 + $0x30] sm:$0xff] }
0x1139   :  { %3310 = vmatpush1.msra.mxu1 %v8386_v36  ;;  %3400 = vmatprep.subr.mxu0 %v8391_v31  ;;  %10211 = vst [vmem:[#allocation54_spill] sm:$0xff] %v8422_v46  ;;  %10212 = vst [vmem:[#allocation55_spill] sm:$0xff] %v8427_v42  ;;  %v8434_v36 = vld [vmem:[%s9592_s6 + $0x20] sm:$0xff]  ;;  %v8439_v31 = vld [vmem:[%s9592_s6 + $0x18] sm:$0xff] }
0x113a   :  { %3311 = vmatprep.subr.mxu1 %v8398_v23  ;;  %3401 = vmatpush1.msra.mxu0 %v8403_v45  ;;  %10213 = vst [vmem:[#allocation56_spill] sm:$0xff] %v8434_v36  ;;  %10214 = vst [vmem:[#allocation57_spill] sm:$0xff] %v8439_v31  ;;  %v8446_v23 = vld [vmem:[%s9592_s6 + $0x8] sm:$0xff]  ;;  %v8451_v45 = vld [vmem:[%s9592_s6 + $0x10] sm:$0xff] }
0x113b   :  { %3312 = vmatpush1.msra.mxu1 %v8410_v41  ;;  %3402 = vmatprep.subr.mxu0 %v8415_v60  ;;  %10215 = vst [vmem:[#allocation58_spill] sm:$0xff] %v8446_v23  ;;  %10216 = vst [vmem:[#allocation59_spill] sm:$0xff] %v8451_v45  ;;  %v8458_v41 = vld [vmem:[%s9592_s6] sm:$0xff] }
0x113c   :  { %3313 = vmatprep.subr.mxu1 %v8422_v46  ;;  %3403 = vmatpush1.msra.mxu0 %v8427_v42  ;;  %10217 = vst [vmem:[#allocation60_spill] sm:$0xff] %v8458_v41 }
0x113d   :  { %3314 = vmatpush1.msra.mxu1 %v8434_v36  ;;  %3404 = vmatprep.subr.mxu0 %v8439_v31 }
0x113e   :  { %3315 = vmatprep.subr.mxu1 %v8446_v23  ;;  %3405 = vmatpush1.msra.mxu0 %v8451_v45 }
0x113f   :  { %3438 = vmatprep.mubr.f32.mxu0 %v10037_v53  ;;  %3316 = vmatpush1.msra.mxu1 %v8458_v41 }
0x1140   :  { %3349 = vmatprep.mubr.f32.mxu1 %v10037_v53  ;;  %3439 = vmatmul.mubr.f32.vlgmr.msra.gmra.mxu0 %v7626_v13 }
0x1141   :  { %3350 = vmatmul.mubr.f32.vlgmr.msra.gmra.mxu1 %v7626_v13  ;;  %3444 = vmatprep.mubr.f32.mxu0 %v10037_v53 }
0x1142   :  { %3355 = vmatprep.mubr.f32.mxu1 %v10037_v53 }
0x1144   :  { %3445 = vmatmul.mubr.f32.gmra.mxu0 %v7624_v18 }
0x1145   :  { %3356 = vmatmul.mubr.f32.gmra.mxu1 %v7624_v18  ;;  %3450 = vmatprep.mubr.f32.mxu0 %v10037_v53 }
0x1146   :  { %3361 = vmatprep.mubr.f32.mxu1 %v10037_v53 }
0x1148   :  { %3451 = vmatmul.mubr.f32.gmra.mxu0 %v7631_v29 }
0x1149   :  { %3362 = vmatmul.mubr.f32.gmra.mxu1 %v7631_v29  ;;  %3456 = vmatprep.mubr.f32.mxu0 %v10037_v53 }
0x114a   :  { %3367 = vmatprep.mubr.f32.mxu1 %v10037_v53 }
0x114c   :  { %3457 = vmatmul.mubr.f32.gmra.mxu0 %v7628_v56 }
0x114d   :  { %3368 = vmatmul.mubr.f32.gmra.mxu1 %v7628_v56  ;;  %3602 = vmatprep.mubr.f32.mxu0 %v10037_v53 }
0x114e   :  { %3531 = vmatprep.mubr.f32.mxu1 %v10037_v53 }
0x11dd   :  { %v5598_v18 = vpop.f32.mrf.mxu0 }
0x11df   :  { %v5599_v13 = vpop.f32.mrf.mxu0  ;;  %v5744_v45 = vpop.f32.mrf.mxu1 }
0x11e0   :  { %v5600_v41 = vadd.f32 %v5599_v13, %v5598_v18  ;;  %v5962_v18 = vmov 10  }
0x11e1   :  { %v3224_v31 = vpop.f32.mrf.mxu1  ;;  %5855 = vset.pattern.permute.xlu0 %v5962_v18 }
0x11e2   :  { %v8483_v23 = vadd.f32 %v5600_v41, %v3224_v31  ;;  %v5963_v41 = vmov 11  }
0x11e3   :  { %v5601_v29 = vpop.f32.mrf.mxu0  ;;  %5856 = vset.pattern.permute.xlu1 %v5963_v41 }
0x11e4   :  { %10218 = vst [vmem:[#allocation61_spill] sm:$0xff] %v8483_v23  ;;  %3235 = vadd.xlane.f32.xlu1 %v8483_v23  ;;  %v3233_v42 = vmul.f32 %v8483_v23, %v8483_v23 }
0x11e5   :  { %v5602_v36 = vpop.f32.mrf.mxu0 }
0x11e6   :  { %v5603_v60 = vadd.f32 %v5602_v36, %v5601_v29  ;;  %3239 = vadd.xlane.f32.xlu0 %v3233_v42 }
0x11e8   :  { %v8488_v56 = vadd.f32 %v5744_v45, %v5603_v60 }
0x11ea   :  { %10219 = vst [vmem:[#allocation62_spill] sm:$0xff] %v8488_v56  ;;  %v3234_v53 = vmul.f32 %v8488_v56, %v8488_v56  ;;  %3237 = vadd.xlane.f32.xlu0 %v8488_v56 }
0x11ec   :  { %3241 = vadd.xlane.f32.xlu1 %v3234_v53 }
0x11fd   :  { %3274 = vperm.xlu1 %5856, %v7860_v6  }
0x1200   :  { %v3440_v31 = vpop.f32.mrf.mxu0 }
0x1201   :  { %v3351_v13 = vpop.f32.mrf.mxu1  ;;  %5857 = vset.pattern.permute.xlu1 %v5962_v18 }
0x1202   :  { %v3442_v23 = vpop.f32.mrf.mxu0 }
0x1203   :  { %v3353_v36 = vpop.f32.mrf.mxu1 }
0x1204   :  { %v3446_v42 = vpop.f32.mrf.mxu0 }
0x1205   :  { %v3357_v60 = vpop.f32.mrf.mxu1 }
0x1206   :  { %v3448_v45 = vpop.f32.mrf.mxu0 }
0x1207   :  { %v3359_v29 = vpop.f32.mrf.mxu1 }
0x1208   :  { %v3452_v46 = vpop.f32.mrf.mxu0 }
0x1209   :  { %v3363_v51 = vpop.f32.mrf.mxu1 }
0x120a   :  { %v3454_v56 = vpop.f32.mrf.mxu0 }
0x120b   :  { %v3365_v53 = vpop.f32.mrf.mxu1 }
0x120c   :  { %v3458_v63 = vpop.f32.mrf.mxu0 }
0x120d   :  { %v3369_v61 = vpop.f32.mrf.mxu1 }
0x120e   :  { %v3460_v3 = vpop.f32.mrf.mxu0 }
0x120f   :  { %v3371_v26 = vpop.f32.mrf.mxu1  ;;  %3560 = vmatprep.subr.mxu0 %v3460_v3  ;;  %v68_v3 = vld [vmem:[%s9587_s1 + $0x1b0] sm:$0xff] }
0x1210   :  { %3489 = vmatprep.subr.mxu1 %v3371_v26  ;;  %3561 = vmatpush1.msra.mxu0 %v3458_v63  ;;  %v10222_v63 = vld [vmem:[#allocation39_spill] sm:$0xff] }
0x1211   :  { %3490 = vmatpush1.msra.mxu1 %v3369_v61  ;;  %3562 = vmatprep.subr.mxu0 %v3454_v56 }
0x1212   :  { %3491 = vmatprep.subr.mxu1 %v3365_v53  ;;  %3563 = vmatpush1.msra.mxu0 %v3452_v46  ;;  %v10221_v46 = vld [vmem:[#allocation40_spill] sm:$0xff] }
0x1213   :  { %3492 = vmatpush1.msra.mxu1 %v3363_v51  ;;  %3564 = vmatprep.subr.mxu0 %v3448_v45  ;;  %v10223_v51 = vld [vmem:[#allocation42_spill] sm:$0xff] }
0x1214   :  { %3493 = vmatprep.subr.mxu1 %v3359_v29  ;;  %3565 = vmatpush1.msra.mxu0 %v3446_v42 }
0x1215   :  { %3494 = vmatpush1.msra.mxu1 %v3357_v60  ;;  %3566 = vmatprep.subr.mxu0 %v3442_v23  ;;  %v10220_v23 = vld [vmem:[#allocation38_spill] sm:$0xff] }
0x1216   :  { %3495 = vmatprep.subr.mxu1 %v3353_v36  ;;  %3567 = vmatpush1.msra.mxu0 %v3440_v31 }
0x1217   :  { %3496 = vmatpush1.msra.mxu1 %v3351_v13  ;;  %3568 = vmatprep.subr.mxu0 %v6699_v47  ;;  %v10260_v47 = vld [vmem:[#allocation11_spill] sm:$0xff] }
0x1218   :  { %3497 = vmatprep.subr.mxu1 %v6684_v54  ;;  %3569 = vmatpush1.msra.mxu0 %v6686_v39  ;;  %vm10261_vm15 = vnez %v10260_v47 }
0x1219   :  { %3498 = vmatpush1.msra.mxu1 %v6697_v0  ;;  %3778 = vmatprep.subr.mxu0 %v8068_v9  ;;  %v10224_v9 = vld [vmem:[#allocation41_spill] sm:$0xff]  ;;  %v10258_v0 = vld [vmem:[#allocation4_spill] sm:$0xff] }
0x121a   :  { %3701 = vmatprep.subr.mxu1 %v8073_v24  ;;  %5208 = vmatmul.mubr.msk.f32.vlgmr.msra.gmra.mxu1 %vm3463_vm1, %v68_v3  ;;  %v10225_v24 = vld [vmem:[#allocation44_spill] sm:$0xff]  ;;  %vm10259_vm4 = vnez %v10258_v0 }
0x121b   :  { %5209 = vmatmul.mubr.msk.f32.vlgmr.msra.gmra.mxu0 %vm3463_vm1, %v68_v3  ;;  %3702 = vmatpush1.msra.mxu1 %v8092_v49  ;;  %v10227_v49 = vld [vmem:[#allocation46_spill] sm:$0xff]  ;;  %vm10267_vm1 = vmmov %vm10266_vm14 }
0x121c   :  { %3779 = vmatpush1.msra.mxu0 %v8082_v14  ;;  %3703 = vmatprep.subr.mxu1 %v8107_v62  ;;  %v10226_v14 = vld [vmem:[#allocation43_spill] sm:$0xff]  ;;  %v10229_v62 = vld [vmem:[#allocation48_spill] sm:$0xff] }
0x121d   :  { %3780 = vmatprep.subr.mxu0 %v8097_v58  ;;  %3704 = vmatpush1.msra.mxu1 %v8119_v48  ;;  %v10228_v58 = vld [vmem:[#allocation45_spill] sm:$0xff]  ;;  %v10231_v48 = vld [vmem:[#allocation50_spill] sm:$0xff] }
0x121e   :  { %3781 = vmatpush1.msra.mxu0 %v8114_v27  ;;  %3705 = vmatprep.subr.mxu1 %v8135_v20  ;;  %v10230_v27 = vld [vmem:[#allocation47_spill] sm:$0xff]  ;;  %v10233_v20 = vld [vmem:[#allocation52_spill] sm:$0xff] }
0x121f   :  { %3782 = vmatprep.subr.mxu0 %v8129_v55  ;;  %3706 = vmatpush1.msra.mxu1 %v8147_v21  ;;  %v10232_v55 = vld [vmem:[#allocation49_spill] sm:$0xff]  ;;  %v10235_v21 = vld [vmem:[#allocation54_spill] sm:$0xff] }
0x1220   :  { %3783 = vmatpush1.msra.mxu0 %v8140_v16  ;;  %3707 = vmatprep.subr.mxu1 %v8158_v22  ;;  %v10234_v16 = vld [vmem:[#allocation51_spill] sm:$0xff]  ;;  %v10237_v22 = vld [vmem:[#allocation56_spill] sm:$0xff] }
0x1221   :  { %3784 = vmatprep.subr.mxu0 %v8152_v59  ;;  %3708 = vmatpush1.msra.mxu1 %v8170_v43  ;;  %v10236_v59 = vld [vmem:[#allocation53_spill] sm:$0xff]  ;;  %v10239_v43 = vld [vmem:[#allocation58_spill] sm:$0xff] }
0x1222   :  { %3785 = vmatpush1.msra.mxu0 %v8163_v19  ;;  %3709 = vmatprep.subr.mxu1 %v8182_v2  ;;  %v10238_v19 = vld [vmem:[#allocation55_spill] sm:$0xff]  ;;  %v10241_v2 = vld [vmem:[#allocation60_spill] sm:$0xff] }
0x1223   :  { %3786 = vmatprep.subr.mxu0 %v8175_v10  ;;  %3710 = vmatpush1.msra.mxu1 %v8194_v12  ;;  %v10240_v10 = vld [vmem:[#allocation57_spill] sm:$0xff]  ;;  %v10243_v12 = vld [vmem:[#allocation59_spill] sm:$0xff] }
0x1224   :  { %3787 = vmatpush1.msra.mxu0 %v8187_v30  ;;  %3711 = vmatprep.subr.mxu1 %v8206_v8  ;;  %v10242_v30 = vmov 0.0  }
0x1225   :  { %3788 = vmatprep.subr.mxu0 %v8199_v5  ;;  %3712 = vmatpush1.msra.mxu1 %v8218_v32 }
0x1226   :  { %3789 = vmatpush1.msra.mxu0 %v8211_v57  ;;  %3713 = vmatprep.subr.mxu1 %v8230_v34 }
0x1227   :  { %3790 = vmatprep.subr.mxu0 %v8223_v1  ;;  %3714 = vmatpush1.msra.mxu1 %v8242_v11 }
0x1228   :  { %3791 = vmatpush1.msra.mxu0 %v8235_v15  ;;  %3715 = vmatprep.subr.mxu1 %v8254_v4 }
0x1229   :  { %3792 = vmatprep.subr.mxu0 %v8247_v40  ;;  %3716 = vmatpush1.msra.mxu1 %v8266_v33 }
0x122a   :  { %3793 = vmatpush1.msra.mxu0 %v8259_v35  ;;  %3717 = vmatprep.subr.mxu1 %v8278_v50 }
0x122b   :  { %3794 = vmatprep.subr.mxu0 %v8271_v25  ;;  %3718 = vmatpush1.msra.mxu1 %v8290_v38 }
0x122c   :  { %3795 = vmatpush1.msra.mxu0 %v8283_v7  ;;  %3719 = vmatprep.subr.mxu1 %v8302_v52 }
0x122d   :  { %3796 = vmatprep.subr.mxu0 %v8295_v28  ;;  %3720 = vmatpush1.msra.mxu1 %v8314_v44  ;;  %v5926_v44 = vld [vmem:[%s9588_s2 + $0x8] sm:$0xff] }
0x122e   :  { %3797 = vmatpush1.msra.mxu0 %v8307_v17  ;;  %3721 = vmatprep.subr.mxu1 %v8326_v37  ;;  %v10244_v37 = vld [vmem:[#allocation61_spill] sm:$0xff] }
0x122f   :  { %3798 = vmatprep.subr.mxu0 %v10220_v23  ;;  %3722 = vmatpush1.msra.mxu1 %v10221_v46 }
0x1230   :  { %3799 = vmatpush1.msra.mxu0 %v10222_v63  ;;  %3723 = vmatprep.subr.mxu1 %v10223_v51 }
0x1231   :  { %3800 = vmatprep.subr.mxu0 %v10224_v9  ;;  %3724 = vmatpush1.msra.mxu1 %v10225_v24 }
0x1232   :  { %3801 = vmatpush1.msra.mxu0 %v10226_v14  ;;  %3725 = vmatprep.subr.mxu1 %v10227_v49 }
0x1233   :  { %3802 = vmatprep.subr.mxu0 %v10228_v58  ;;  %3726 = vmatpush1.msra.mxu1 %v10229_v62 }
0x1234   :  { %3803 = vmatpush1.msra.mxu0 %v10230_v27  ;;  %3727 = vmatprep.subr.mxu1 %v10231_v48 }
0x1235   :  { %3804 = vmatprep.subr.mxu0 %v10232_v55  ;;  %3728 = vmatpush1.msra.mxu1 %v10233_v20  ;;  %v64_v20 = vld [vmem:[%s9587_s1 + $0x170] sm:$0xff] }
0x1236   :  { %3805 = vmatpush1.msra.mxu0 %v10234_v16  ;;  %3729 = vmatprep.subr.mxu1 %v10235_v21 }
0x1237   :  { %3806 = vmatprep.subr.mxu0 %v10236_v59  ;;  %3730 = vmatpush1.msra.mxu1 %v10237_v22 }
0x1238   :  { %3807 = vmatpush1.msra.mxu0 %v10238_v19  ;;  %3731 = vmatprep.subr.mxu1 %v10239_v43 }
0x1239   :  { %3808 = vmatprep.subr.mxu0 %v10240_v10  ;;  %3732 = vmatpush1.msra.mxu1 %v10241_v2 }
0x123a   :  { %3765 = vmatprep.mubr.f32.mxu1 %v10242_v30  ;;  %3809 = vmatpush1.msra.mxu0 %v10243_v12 }
0x123b   :  { %3842 = vmatprep.mubr.f32.mxu0 %v10242_v30 }
0x126d   :  { %v3236_v5 = vpop.xlane.xlu1 %3235 }
0x126e   :  { %v3243_v8 = vmul.f32 0.0078125, %v3236_v5 }
0x126f   :  { %v3240_v57 = vpop.xlane.xlu0 %3239 }
0x1270   :  { %v3247_v32 = vmul.f32 %v3243_v8, %v3243_v8  ;;  %v3245_v1 = vmul.f32 0.0078125, %v3240_v57  ;;  %v3259_v61 = vsub.f32 %v10244_v37, %v3243_v8 }
0x1272   :  { %v3249_v34 = vsub.f32 %v3245_v1, %v3247_v32 }
0x1273   :  { %v3238_v15 = vpop.xlane.xlu0 %3237 }
0x1274   :  { %v3251_v11 = vmax.f32 %v3249_v34, 0.0  ;;  %v3244_v40 = vmul.f32 0.0078125, %v3238_v15 }
0x1275   :  { %v3242_v4 = vpop.xlane.xlu1 %3241 }
0x1276   :  { %v3253_v35 = vadd.f32 1e-05, %v3251_v11  ;;  %v3246_v33 = vmul.f32 0.0078125, %v3242_v4  ;;  %v3248_v25 = vmul.f32 %v3244_v40, %v3244_v40 }
0x1278   :  { %5899 = vrsqrt.f32 %v3253_v35  ;;  %v3250_v50 = vsub.f32 %v3246_v33, %v3248_v25 }
0x1279   :  { %v3275_v18 = vpop.permute.xlu1 %3274 }
0x127a   :  { %v3252_v7 = vmax.f32 %v3250_v50, 0.0 }
0x127c   :  { %v3254_v38 = vadd.f32 1e-05, %v3252_v7 }
0x127e   :  { %5901 = vrsqrt.f32 %v3254_v38 }
0x1285   :  { %v5900_v28 = vpop.eup %5899 }
0x1286   :  { %v3257_v52 = vmul.f32 %v7860_v6, %v5900_v28  ;;  %v10245_v6 = vld [vmem:[#allocation62_spill] sm:$0xff] }
0x1287   :  { %v3260_v60 = vsub.f32 %v10245_v6, %v3244_v40 }
0x1288   :  { %3263 = vperm.xlu0 %5855, %v3257_v52  }
0x128b   :  { %v5902_v17 = vpop.eup %5901 }
0x128c   :  { %v3258_v26 = vmul.f32 %v5926_v44, %v5902_v17 }
0x128e   :  { %3268 = vperm.xlu1 %5857, %v3258_v26  }
0x1292   :  { %5858 = vset.pattern.permute.xlu1 %v5963_v41 }
0x1293   :  { %3278 = vperm.xlu1 %5858, %v5926_v44  }
0x12da   :  { %v8577_v3 = vpop.f32.mrf.mxu1 }
0x12db   :  { %v8579_v23 = vpop.f32.mrf.mxu0 }
0x12dc   :  { %v8581_v46 = vpop.f32.mrf.mxu1 }
0x12dd   :  { %v8583_v63 = vpop.f32.mrf.mxu0 }
0x1303   :  { %v3264_v56 = vpop.permute.xlu0 %3263 }
0x1304   :  { %v3271_v31 = vmul.f32 %v3264_v56, %v3259_v61 }
0x1306   :  { %v3281_v13 = vadd.f32 %v3275_v18, %v3271_v31 }
0x1308   :  { %v3283_v36 = vmax.f32 %v3281_v13, 0.0 }
0x1309   :  { %v3269_v42 = vpop.permute.xlu1 %3268 }
0x130a   :  { %3766 = vmatmul.mubr.f32.vlgmr.msra.gmra.mxu1 %v3283_v36  ;;  %3843 = vmatmul.mubr.f32.vlgmr.msra.gmra.mxu0 %v3283_v36  ;;  %v3272_v45 = vmul.f32 %v3269_v42, %v3260_v60 }
0x130b   :  { %3771 = vmatprep.mubr.f32.mxu1 %v10242_v30  ;;  %3848 = vmatprep.mubr.f32.mxu0 %v10242_v30  ;;  %v10256_v30 = vld [vmem:[#allocation10_spill] sm:$0xff] }
0x130c   :  { %vm10257_vm13 = vnez %v10256_v30 }
0x130e   :  { %v3279_v29 = vpop.permute.xlu1 %3278 }
0x130f   :  { %v3282_v41 = vadd.f32 %v3279_v29, %v3272_v45 }
0x1311   :  { %v3284_v53 = vmax.f32 %v3282_v41, 0.0 }
0x1313   :  { %3772 = vmatmul.mubr.f32.gmra.mxu1 %v3284_v53  ;;  %3849 = vmatmul.mubr.f32.gmra.mxu0 %v3284_v53 }
0x1314   :  { %5246 = vmatprep.mubr.msk.f32.mxu1 %vm10248_vm6, %v64_v20  ;;  %5279 = vmatprep.mubr.msk.f32.mxu0 %vm10249_vm0, %v64_v20  ;;  %v10254_v20 = vld [vmem:[#allocation2_spill] sm:$0xff] }
0x1315   :  { %vm10255_vm9 = vnez %v10254_v20 }
0x13ca   :  { %v8585_v51 = vpop.f32.mrf.mxu1  ;;  %v8587_v9 = vpop.f32.mrf.mxu0 }
0x13cb   :  { %4107 = vrot.lane.b32.xlu0 %v8587_v9, %s5928_s28  ;;  %4103 = vrot.lane.b32.xlu1 %v8585_v51, %s5928_s28 }
0x13cc   :  { %v8609_v24 = vpop.f32.mrf.mxu1  ;;  %v8615_v14 = vpop.f32.mrf.mxu0 }
0x13cf   :  { %3983 = vrot.lane.b32.xlu0 %v8585_v51, %s5932_s8  ;;  %4067 = vrot.lane.b32.xlu1 %v8587_v9, %s5931_s30 }
0x13d3   :  { %3943 = vrot.lane.b32.xlu0 %v8585_v51, %s5934_s10  ;;  %4063 = vrot.lane.b32.xlu1 %v8585_v51, %s5931_s30  ;;  %v8641_v49 = vpop.f32.mrf.mxu1  ;;  %v8651_v58 = vpop.f32.mrf.mxu0 }
0x13d5   :  { %v8673_v62 = vpop.f32.mrf.mxu1  ;;  %v8679_v27 = vpop.f32.mrf.mxu0 }
0x13d7   :  { %3987 = vrot.lane.b32.xlu0 %v8587_v9, %s5932_s8  ;;  %4027 = vrot.lane.b32.xlu1 %v8587_v9, %s5930_s0 }
0x13db   :  { %3903 = vrot.lane.b32.xlu0 %v8585_v51, %s5933_s9  ;;  %4023 = vrot.lane.b32.xlu1 %v8585_v51, %s5930_s0 }
0x13df   :  { %3947 = vrot.lane.b32.xlu0 %v8587_v9, %s5934_s10  ;;  %4105 = vrot.lane.b32.xlu1 %v8609_v24, %s5928_s28 }
0x13e3   :  { %3863 = vrot.lane.b32.xlu0 %v8585_v51, %s10246_s15  ;;  %4029 = vrot.lane.b32.xlu1 %v8615_v14, %s5930_s0 }
0x13e7   :  { %3907 = vrot.lane.b32.xlu0 %v8587_v9, %s5933_s9  ;;  %3985 = vrot.lane.b32.xlu1 %v8609_v24, %s5932_s8 }
0x13eb   :  { %4065 = vrot.lane.b32.xlu0 %v8609_v24, %s5931_s30  ;;  %3945 = vrot.lane.b32.xlu1 %v8609_v24, %s5934_s10 }
0x13ef   :  { %4109 = vrot.lane.b32.xlu0 %v8615_v14, %s5928_s28  ;;  %3989 = vrot.lane.b32.xlu1 %v8615_v14, %s5932_s8 }
0x13f3   :  { %4025 = vrot.lane.b32.xlu0 %v8609_v24, %s5930_s0  ;;  %3905 = vrot.lane.b32.xlu1 %v8609_v24, %s5933_s9 }
0x13f7   :  { %4069 = vrot.lane.b32.xlu0 %v8615_v14, %s5931_s30  ;;  %3949 = vrot.lane.b32.xlu1 %v8615_v14, %s5934_s10 }
0x13fb   :  { %3865 = vrot.lane.b32.xlu1 %v8609_v24, %s10246_s15  ;;  %3991 = vrot.lane.b32.xlu0 %v8641_v49, %s5932_s8 }
0x13ff   :  { %3909 = vrot.lane.b32.xlu1 %v8615_v14, %s5933_s9  ;;  %3951 = vrot.lane.b32.xlu0 %v8641_v49, %s5934_s10 }
0x1403   :  { %4115 = vrot.lane.b32.xlu1 %v8651_v58, %s5928_s28  ;;  %3995 = vrot.lane.b32.xlu0 %v8651_v58, %s5932_s8 }
0x1407   :  { %3911 = vrot.lane.b32.xlu0 %v8641_v49, %s5933_s9  ;;  %4111 = vrot.lane.b32.xlu1 %v8641_v49, %s5928_s28 }
0x140b   :  { %3955 = vrot.lane.b32.xlu0 %v8651_v58, %s5934_s10  ;;  %4075 = vrot.lane.b32.xlu1 %v8651_v58, %s5931_s30 }
0x140f   :  { %3871 = vrot.lane.b32.xlu0 %v8641_v49, %s10246_s15  ;;  %4071 = vrot.lane.b32.xlu1 %v8641_v49, %s5931_s30 }
0x1413   :  { %3915 = vrot.lane.b32.xlu0 %v8651_v58, %s5933_s9  ;;  %4035 = vrot.lane.b32.xlu1 %v8651_v58, %s5930_s0 }
0x1417   :  { %4031 = vrot.lane.b32.xlu1 %v8641_v49, %s5930_s0  ;;  %4073 = vrot.lane.b32.xlu0 %v8673_v62, %s5931_s30 }
0x141b   :  { %4117 = vrot.lane.b32.xlu0 %v8679_v27, %s5928_s28  ;;  %4113 = vrot.lane.b32.xlu1 %v8673_v62, %s5928_s28 }
0x141f   :  { %4033 = vrot.lane.b32.xlu0 %v8673_v62, %s5930_s0  ;;  %4155 = vrot.lane.b32.xlu1 %v8651_v58, %s10247_s12 }
0x1423   :  { %4077 = vrot.lane.b32.xlu0 %v8679_v27, %s5931_s30  ;;  %3867 = vrot.lane.b32.xlu1 %v8587_v9, %s10246_s15 }
0x1427   :  { %4037 = vrot.lane.b32.xlu0 %v8679_v27, %s5930_s0  ;;  %4145 = vrot.lane.b32.xlu1 %v8609_v24, %s10247_s12 }
0x142b   :  { %3875 = vrot.lane.b32.xlu0 %v8651_v58, %s10246_s15  ;;  %3993 = vrot.lane.b32.xlu1 %v8673_v62, %s5932_s8 }
0x142f   :  { %4151 = vrot.lane.b32.xlu0 %v8641_v49, %s10247_s12  ;;  %3953 = vrot.lane.b32.xlu1 %v8673_v62, %s5934_s10 }
0x1433   :  { %3869 = vrot.lane.b32.xlu0 %v8615_v14, %s10246_s15  ;;  %3997 = vrot.lane.b32.xlu1 %v8679_v27, %s5932_s8 }
0x1437   :  { %4147 = vrot.lane.b32.xlu0 %v8587_v9, %s10247_s12  ;;  %3913 = vrot.lane.b32.xlu1 %v8673_v62, %s5933_s9 }
0x143b   :  { %4153 = vrot.lane.b32.xlu0 %v8673_v62, %s10247_s12  ;;  %3957 = vrot.lane.b32.xlu1 %v8679_v27, %s5934_s10 }
0x143d   :  { %v8717_v48 = vpop.permute.xlu0 %4107  ;;  %v4104_v55 = vpop.permute.xlu1 %4103 }
0x143f   :  { %4157 = vrot.lane.b32.xlu0 %v8679_v27, %s10247_s12  ;;  %3873 = vrot.lane.b32.xlu1 %v8673_v62, %s10246_s15 }
0x1441   :  { %v8728_v16 = vpop.permute.xlu0 %3983  ;;  %v8730_v21 = vpop.permute.xlu1 %4067 }
0x1443   :  { %3917 = vrot.lane.b32.xlu1 %v8679_v27, %s5933_s9 }
0x1445   :  { %v8734_v59 = vpop.permute.xlu0 %3943  ;;  %v8736_v22 = vpop.permute.xlu1 %4063 }
0x1447   :  { %3877 = vrot.lane.b32.xlu1 %v8679_v27, %s10246_s15 }
0x1449   :  { %v8740_v19 = vpop.permute.xlu0 %3987  ;;  %v8742_v43 = vpop.permute.xlu1 %4027 }
0x144b   :  { %4143 = vrot.lane.b32.xlu1 %v8585_v51, %s10247_s12 }
0x144d   :  { %v8746_v10 = vpop.permute.xlu0 %3903  ;;  %v8748_v2 = vpop.permute.xlu1 %4023 }
0x144f   :  { %4149 = vrot.lane.b32.xlu1 %v8615_v14, %s10247_s12 }
0x1451   :  { %v8752_v12 = vpop.permute.xlu0 %3947  ;;  %v4106_v5 = vpop.permute.xlu1 %4105 }
0x1455   :  { %v8754_v8 = vpop.permute.xlu0 %3863  ;;  %v8756_v57 = vpop.permute.xlu1 %4029 }
0x1459   :  { %v8758_v32 = vpop.permute.xlu0 %3907  ;;  %v8760_v1 = vpop.permute.xlu1 %3985 }
0x145d   :  { %v4066_v34 = vpop.permute.xlu0 %4065  ;;  %v8762_v15 = vpop.permute.xlu1 %3945 }
0x1461   :  { %v4110_v11 = vpop.permute.xlu0 %4109  ;;  %v8764_v40 = vpop.permute.xlu1 %3989 }
0x1462   :  { %v4133_v39 = vsel %vm10262_vm12, %v4110_v11, 0.0  ;;  %vm10276_vm12 = vmmov %vm10267_vm1 }
0x1465   :  { %v4026_v4 = vpop.permute.xlu0 %4025  ;;  %v8766_v35 = vpop.permute.xlu1 %3905 }
0x1469   :  { %v4070_v33 = vpop.permute.xlu0 %4069  ;;  %v8768_v25 = vpop.permute.xlu1 %3949 }
0x146d   :  { %v8770_v50 = vpop.permute.xlu1 %3865  ;;  %v8772_v7 = vpop.permute.xlu0 %3991 }
0x1471   :  { %v8774_v38 = vpop.permute.xlu1 %3909  ;;  %v8776_v28 = vpop.permute.xlu0 %3951 }
0x1475   :  { %v4116_v52 = vpop.permute.xlu1 %4115  ;;  %v8778_v17 = vpop.permute.xlu0 %3995 }
0x1479   :  { %v8780_v44 = vpop.permute.xlu0 %3911  ;;  %v4112_v26 = vpop.permute.xlu1 %4111 }
0x147d   :  { %v8782_v37 = vpop.permute.xlu0 %3955  ;;  %v4076_v61 = vpop.permute.xlu1 %4075 }
0x1481   :  { %v8784_v56 = vpop.permute.xlu0 %3871  ;;  %v4072_v18 = vpop.permute.xlu1 %4071 }
0x1485   :  { %v8786_v31 = vpop.permute.xlu0 %3915  ;;  %v4036_v13 = vpop.permute.xlu1 %4035 }
0x1489   :  { %v4032_v36 = vpop.permute.xlu1 %4031  ;;  %v4074_v42 = vpop.permute.xlu0 %4073 }
0x148d   :  { %v4118_v6 = vpop.permute.xlu0 %4117  ;;  %v4114_v60 = vpop.permute.xlu1 %4113 }
0x148e   :  { %v4124_v45 = vsel %vm10250_vm7, %v4116_v52, %v4118_v6  ;;  %v4134_v29 = vsel %vm10251_vm5, %v4118_v6, 0.0  ;;  %v4122_v41 = vsel %vm10252_vm2, %v4112_v26, %v4114_v60  ;;  %v4123_v53 = vsel %vm10253_vm11, %v4114_v60, %v4116_v52  ;;  %vm10272_vm7 = vmmov %vm10267_vm1 }
0x148f   :  { %5214 = vmatprep.subr.msk.mxu1 %vm10255_vm9, %v4123_v53  ;;  %5247 = vmatprep.subr.msk.mxu0 %vm10257_vm13, %v4134_v29  ;;  %v4120_v6 = vsel %vm10263_vm3, %v4106_v5, %v8717_v48  ;;  %v4119_v26 = vsel %vm10264_vm10, %v4104_v55, %v4106_v5  ;;  %v4121_v52 = vsel %vm10265_vm8, %v8717_v48, %v4110_v11  ;;  %v10268_v48 = vld [vmem:[#allocation7_spill] sm:$0xff]  ;;  %vm10273_vm5 = vmmov %vm10267_vm1  ;;  %vm10274_vm2 = vcmask 1039360  }
0x1490   :  { %5215 = vmatpush1.msk.msra.mxu1 %vm10259_vm4, %v4122_v41  ;;  %5248 = vmatpush1.msk.msra.mxu0 %vm10261_vm15, %v4124_v45  ;;  %v4083_v45 = vsel %vm10266_vm14, %v4074_v42, %v4076_v61  ;;  %v4082_v55 = vsel %vm10267_vm1, %v4072_v18, %v4074_v42  ;;  %vm10269_vm6 = vnez %v10268_v48  ;;  %v4080_v5 = vsel %vm10272_vm7, %v4066_v34, %v8730_v21  ;;  %vm10275_vm11 = vmmov %vm10267_vm1 }
0x1491   :  { %5249 = vmatprep.subr.msk.mxu0 %vm10257_vm13, %v4133_v39  ;;  %v4034_v60 = vpop.permute.xlu0 %4033  ;;  %5216 = vmatprep.subr.msk.mxu1 %vm10255_vm9, %v4120_v6  ;;  %v8810_v29 = vpop.permute.xlu1 %4155  ;;  %v10270_v39 = vld [vmem:[#allocation8_spill] sm:$0xff]  ;;  %v4079_v11 = vsel %vm10273_vm5, %v8736_v22, %v4066_v34  ;;  %vm10277_vm3 = vmmov %vm10274_vm2  ;;  %v10280_v22 = vld [vmem:[#allocation22_spill] sm:$0xff] }
0x1492   :  { %5217 = vmatpush1.msk.msra.mxu1 %vm10259_vm4, %v4119_v26  ;;  %5250 = vmatpush1.msk.msra.mxu0 %vm10261_vm15, %v4121_v52  ;;  %vm10271_vm0 = vnez %v10270_v39  ;;  %v4043_v18 = vsel %vm10274_vm2, %v4034_v60, %v4036_v13  ;;  %v4042_v26 = vsel %vm10277_vm3, %v4032_v36, %v4034_v60  ;;  %v10278_v52 = vld [vmem:[#allocation5_spill] sm:$0xff]  ;;  %vm10281_vm8 = vnez %v10280_v22  ;;  %vm10286_vm7 = vmmov %vm10273_vm5 }
0x1493   :  { %5218 = vmatprep.subr.msk.mxu1 %vm10269_vm6, %v4083_v45  ;;  %vm10279_vm10 = vnez %v10278_v52  ;;  %v10282_v34 = vld [vmem:[#allocation9_spill] sm:$0xff]  ;;  %v10284_v45 = vld [vmem:[#allocation23_spill] sm:$0xff]  ;;  %vm10287_vm5 = vmmov %vm10274_vm2  ;;  %v4039_v36 = vsel %vm10274_vm2, %v8748_v2, %v4026_v4 }
0x1494   :  { %5219 = vmatpush1.msk.msra.mxu1 %vm10271_vm0, %v4082_v55  ;;  %vm10283_vm14 = vnez %v10282_v34  ;;  %vm10285_vm1 = vnez %v10284_v45  ;;  %v4040_v55 = vsel %vm10287_vm5, %v4026_v4, %v8742_v43  ;;  %vm10290_vm3 = vmmov %vm10274_vm2  ;;  %v10293_v2 = vld [vmem:[#allocation20_spill] sm:$0xff]  ;;  %v4053_v4 = vsel %vm10274_vm2, %v8756_v57, 0.0 }
0x1495   :  { %v4078_v41 = vpop.permute.xlu0 %4077  ;;  %5220 = vmatprep.subr.msk.mxu1 %vm10269_vm6, %v4080_v5  ;;  %v8828_v53 = vpop.permute.xlu1 %3867  ;;  %vm10294_vm5 = vnez %v10293_v2 }
0x1496   :  { %v4084_v42 = vsel %vm10275_vm11, %v4076_v61, %v4078_v41  ;;  %v4094_v6 = vsel %vm10276_vm12, %v4078_v41, 0.0  ;;  %5221 = vmatpush1.msk.msra.mxu1 %vm10271_vm0, %v4079_v11  ;;  %v4093_v61 = vsel %vm10286_vm7, %v4070_v33, 0.0  ;;  %vm10288_vm11 = vmmov %vm10286_vm7 }
0x1497   :  { %5222 = vmatprep.subr.msk.mxu1 %vm10279_vm10, %v4043_v18  ;;  %5251 = vmatprep.subr.msk.mxu0 %vm10281_vm8, %v4094_v6  ;;  %v4081_v60 = vsel %vm10288_vm11, %v8730_v21, %v4070_v33  ;;  %vm10289_vm12 = vmmov %vm10274_vm2  ;;  %v10291_v21 = vld [vmem:[#allocation21_spill] sm:$0xff] }
0x1498   :  { %5223 = vmatpush1.msk.msra.mxu1 %vm10283_vm14, %v4042_v26  ;;  %5252 = vmatpush1.msk.msra.mxu0 %vm10285_vm1, %v4084_v42  ;;  %vm10292_vm7 = vnez %v10291_v21  ;;  %vm10295_vm11 = vmmov %vm10274_vm2  ;;  %v10306_v26 = vld [vmem:[#allocation18_spill] sm:$0xff] }
0x1499   :  { %5253 = vmatprep.subr.msk.mxu0 %vm10281_vm8, %v4093_v61  ;;  %v4038_v5 = vpop.permute.xlu0 %4037  ;;  %5224 = vmatprep.subr.msk.mxu1 %vm10279_vm10, %v4040_v55  ;;  %v8855_v11 = vpop.permute.xlu1 %4145  ;;  %v4041_v33 = vsel %vm10295_vm11, %v8742_v43, %v8756_v57  ;;  %v10298_v43 = vld [vmem:[#allocation15_spill] sm:$0xff]  ;;  %v10300_v57 = vld [vmem:[#allocation14_spill] sm:$0xff] }
0x149a   :  { %v4044_v41 = vsel %vm10289_vm12, %v4036_v13, %v4038_v5  ;;  %v4054_v18 = vsel %vm10290_vm3, %v4038_v5, 0.0  ;;  %5225 = vmatpush1.msk.msra.mxu1 %vm10283_vm14, %v4039_v36  ;;  %5254 = vmatpush1.msk.msra.mxu0 %vm10285_vm1, %v4081_v60  ;;  %vm10296_vm12 = vcmask 7168   ;;  %vm10299_vm2 = vnez %v10298_v43  ;;  %v10314_v60 = vld [vmem:[#allocation27_spill] sm:$0xff]  ;;  %v10317_v5 = vld [vmem:[#allocation26_spill] sm:$0xff] }
0x149b   :  { %4198 = vmatprep.subr.mxu1 %v8673_v62  ;;  %5255 = vmatprep.subr.msk.mxu0 %vm10292_vm7, %v4054_v18  ;;  %vm10297_vm3 = vmmov %vm10296_vm12  ;;  %vm10301_vm11 = vnez %v10300_v57  ;;  %vm10315_vm14 = vnez %v10314_v60 }
0x149c   :  { %4199 = vmatpush1.msra.mxu1 %v8641_v49  ;;  %5256 = vmatpush1.msk.msra.mxu0 %vm10294_vm5, %v4044_v41  ;;  %v4014_v42 = vsel %vm10297_vm3, 0.0, %v8772_v7 }
0x149d   :  { %5257 = vmatprep.subr.msk.mxu0 %vm10292_vm7, %v4053_v4  ;;  %v8876_v13 = vpop.permute.xlu0 %3875  ;;  %4200 = vmatprep.subr.mxu1 %v8609_v24  ;;  %v3994_v62 = vpop.permute.xlu1 %3993  ;;  %vm10302_vm7 = vmmov %vm10297_vm3  ;;  %v10322_v4 = vld [vmem:[#allocation17_spill] sm:$0xff] }
0x149e   :  { %4201 = vmatpush1.msra.mxu1 %v8585_v51  ;;  %5258 = vmatpush1.msk.msra.mxu0 %vm10294_vm5, %v4041_v33  ;;  %v4002_v49 = vsel %vm10296_vm12, %v8772_v7, %v3994_v62  ;;  %v3999_v51 = vsel %vm10302_vm7, %v8728_v16, %v8760_v1  ;;  %vm10303_vm5 = vmmov %vm10297_vm3  ;;  %vm10304_vm12 = vcmask 121856   ;;  %v10324_v33 = vld [vmem:[#allocation16_spill] sm:$0xff] }
0x149f   :  { %5226 = vmatprep.subr.msk.mxu1 %vm10299_vm2, %v4002_v49  ;;  %4269 = vmatprep.subr.mxu0 %v8679_v27  ;;  %v4013_v24 = vsel %vm10303_vm5, 0.0, %v8728_v16  ;;  %vm10305_vm7 = vmmov %vm10304_vm12  ;;  %vm10307_vm5 = vnez %v10306_v26 }
0x14a0   :  { %5227 = vmatpush1.msk.msra.mxu1 %vm10301_vm11, %v4014_v42  ;;  %4270 = vmatpush1.msra.mxu0 %v8651_v58  ;;  %v3974_v27 = vsel %vm10305_vm7, 0.0, %v8776_v28 }
0x14a1   :  { %4271 = vmatprep.subr.mxu0 %v8615_v14  ;;  %v4152_v7 = vpop.permute.xlu0 %4151  ;;  %5228 = vmatprep.subr.msk.mxu1 %vm10299_vm2, %v3999_v51  ;;  %v3954_v6 = vpop.permute.xlu1 %3953  ;;  %v10308_v14 = vld [vmem:[#allocation19_spill] sm:$0xff]  ;;  %vm10310_vm2 = vmmov %vm10305_vm7  ;;  %v10330_v51 = vld [vmem:[#allocation30_spill] sm:$0xff] }
0x14a2   :  { %5229 = vmatpush1.msk.msra.mxu1 %vm10301_vm11, %v4013_v24  ;;  %4272 = vmatpush1.msra.mxu0 %v8587_v9  ;;  %v3962_v58 = vsel %vm10304_vm12, %v8776_v28, %v3954_v6  ;;  %vm10309_vm3 = vnez %v10308_v14  ;;  %v3959_v16 = vsel %vm10310_vm2, %v8734_v59, %v8762_v15  ;;  %vm10311_vm11 = vmmov %vm10310_vm2  ;;  %vm10312_vm12 = vcmask 7168   ;;  %v10333_v24 = vld [vmem:[#allocation31_spill] sm:$0xff] }
0x14a3   :  { %5230 = vmatprep.subr.msk.mxu1 %vm10307_vm5, %v3962_v58  ;;  %v3973_v61 = vsel %vm10311_vm11, 0.0, %v8734_v59  ;;  %vm10313_vm7 = vmmov %vm10312_vm12  ;;  %vm10318_vm11 = vnez %v10317_v5 }
0x14a4   :  { %5231 = vmatpush1.msk.msra.mxu1 %vm10309_vm3, %v3974_v27  ;;  %v4003_v55 = vsel %vm10313_vm7, %v3994_v62, %v8778_v17  ;;  %vm10316_vm2 = vmmov %vm10313_vm7  ;;  %vm10320_vm7 = vcmask 130048  }
0x14a5   :  { %5232 = vmatprep.subr.msk.mxu1 %vm10307_vm5, %v3959_v16  ;;  %v3998_v9 = vpop.permute.xlu1 %3997  ;;  %v3870_v36 = vpop.permute.xlu0 %3869  ;;  %v4001_v59 = vsel %vm10316_vm2, %v8740_v19, %v8764_v40  ;;  %vm10325_vm5 = vnez %v10324_v33  ;;  %v10338_v16 = vld [vmem:[#allocation24_spill] sm:$0xff] }
0x14a6   :  { %v4004_v28 = vsel %vm10312_vm12, %v8778_v17, %v3998_v9  ;;  %5233 = vmatpush1.msk.msra.mxu1 %vm10309_vm3, %v3973_v61  ;;  %vm10319_vm12 = vmmov %vm10316_vm2  ;;  %vm10323_vm2 = vnez %v10322_v4  ;;  %v10340_v61 = vld [vmem:[#allocation25_spill] sm:$0xff] }
0x14a7   :  { %5259 = vmatprep.subr.msk.mxu0 %vm10315_vm14, %v4004_v28  ;;  %v4000_v41 = vsel %vm10319_vm12, %v8760_v1, %v8740_v19  ;;  %vm10321_vm3 = vmmov %vm10320_vm7 }
0x14a8   :  { %5260 = vmatpush1.msk.msra.mxu0 %vm10318_vm11, %v4003_v55  ;;  %v3934_v40 = vsel %vm10321_vm3, 0.0, %v8780_v44  ;;  %vm10326_vm12 = vmmov %vm10321_vm3 }
0x14a9   :  { %5261 = vmatprep.subr.msk.mxu0 %vm10315_vm14, %v4001_v59  ;;  %v3914_v18 = vpop.permute.xlu1 %3913  ;;  %v3919_v19 = vsel %vm10326_vm12, %v8746_v10, %v8766_v35  ;;  %vm10327_vm14 = vmmov %vm10321_vm3  ;;  %v4148_v62 = vpop.permute.xlu0 %4147  ;;  %vm10328_vm3 = vcmask 121856   ;;  %vm10334_vm12 = vnez %v10333_v24 }
0x14aa   :  { %v3922_v17 = vsel %vm10320_vm7, %v8780_v44, %v3914_v18  ;;  %5262 = vmatpush1.msk.msra.mxu0 %vm10318_vm11, %v4000_v41  ;;  %v3933_v1 = vsel %vm10327_vm14, 0.0, %v8746_v10  ;;  %vm10329_vm7 = vmmov %vm10328_vm3  ;;  %vm10331_vm11 = vnez %v10330_v51  ;;  %v10348_v41 = vld [vmem:[#allocation3_spill] sm:$0xff] }
0x14ab   :  { %5234 = vmatprep.subr.msk.mxu1 %vm10323_vm2, %v3922_v17  ;;  %v3963_v42 = vsel %vm10329_vm7, %v3954_v6, %v8782_v37  ;;  %vm10332_vm14 = vmmov %vm10328_vm3 }
0x14ac   :  { %5235 = vmatpush1.msk.msra.mxu1 %vm10325_vm5, %v3934_v40  ;;  %v3961_v10 = vsel %vm10332_vm14, %v8752_v12, %v8768_v25  ;;  %vm10339_vm14 = vnez %v10338_v16 }
0x14ad   :  { %5236 = vmatprep.subr.msk.mxu1 %vm10323_vm2, %v3919_v19  ;;  %v3958_v49 = vpop.permute.xlu1 %3957  ;;  %vm10335_vm2 = vmmov %vm10328_vm3  ;;  %v4154_v6 = vpop.permute.xlu0 %4153  ;;  %v10354_v19 = vld [vmem:[#allocation6_spill] sm:$0xff] }
0x14ae   :  { %v3964_v44 = vsel %vm10328_vm3, %v8782_v37, %v3958_v49  ;;  %5237 = vmatpush1.msk.msra.mxu1 %vm10325_vm5, %v3933_v1  ;;  %v3960_v58 = vsel %vm10335_vm2, %v8762_v15, %v8752_v12  ;;  %vm10336_vm3 = vcmask 138240   ;;  %vm10341_vm5 = vnez %v10340_v61  ;;  %v10356_v1 = vld [vmem:[#allocation28_spill] sm:$0xff] }
0x14af   :  { %5263 = vmatprep.subr.msk.mxu0 %vm10331_vm11, %v3964_v44  ;;  %vm10337_vm7 = vmmov %vm10336_vm3  ;;  %v10361_v44 = vld [vmem:[#allocation32_spill] sm:$0xff] }
0x14b0   :  { %5264 = vmatpush1.msk.msra.mxu0 %vm10334_vm12, %v3963_v42  ;;  %v3894_v25 = vsel %vm10337_vm7, 0.0, %v8784_v56  ;;  %vm10342_vm2 = vmmov %vm10336_vm3  ;;  %vm10345_vm7 = vcmask 130048   ;;  %vm10362_vm10 = vnez %v10361_v44 }
0x14b1   :  { %5265 = vmatprep.subr.msk.mxu0 %vm10331_vm11, %v3961_v10  ;;  %v3874_v27 = vpop.permute.xlu1 %3873  ;;  %v3879_v12 = vsel %vm10342_vm2, %v8754_v8, %v8770_v50  ;;  %vm10343_vm11 = vmmov %vm10342_vm2 }
0x14b2   :  { %v3882_v37 = vsel %vm10336_vm3, %v8784_v56, %v3874_v27  ;;  %5266 = vmatpush1.msk.msra.mxu0 %vm10334_vm12, %v3960_v58  ;;  %v3893_v15 = vsel %vm10343_vm11, 0.0, %v8754_v8  ;;  %vm10344_vm3 = vcmask 908288   ;;  %vm10346_vm12 = vmmov %vm10345_vm7  ;;  %vm10349_vm11 = vnez %v10348_v41  ;;  %v10350_v8 = vld [vmem:[#allocation29_spill] sm:$0xff] }
0x14b3   :  { %5238 = vmatprep.subr.msk.mxu1 %vm10339_vm14, %v3882_v37  ;;  %v4163_v56 = vsel %vm10344_vm3, %v4154_v6, %v8810_v29  ;;  %v3923_v55 = vsel %vm10346_vm12, %v3914_v18, %v8786_v31  ;;  %vm10347_vm2 = vmmov %vm10344_vm3  ;;  %vm10357_vm12 = vnez %v10356_v1  ;;  %v4158_v18 = vpop.permute.xlu0 %4157 }
0x14b4   :  { %5239 = vmatpush1.msk.msra.mxu1 %vm10341_vm5, %v3894_v25  ;;  %v4162_v59 = vsel %vm10347_vm2, %v4152_v7, %v4154_v6  ;;  %vm10352_vm3 = vmmov %vm10345_vm7  ;;  %v5965_v6 = vmov 19  }
0x14b5   :  { %5240 = vmatprep.subr.msk.mxu1 %vm10339_vm14, %v3879_v12  ;;  %v3918_v9 = vpop.permute.xlu1 %3917  ;;  %vm10351_vm14 = vnez %v10350_v8  ;;  %v3921_v17 = vsel %vm10352_vm3, %v8758_v32, %v8774_v38  ;;  %5860 = vset.pattern.permute.xlu1 %v5965_v6 }
0x14b6   :  { %v3924_v28 = vsel %vm10345_vm7, %v8786_v31, %v3918_v9  ;;  %5241 = vmatpush1.msk.msra.mxu1 %vm10341_vm5, %v3893_v15  ;;  %vm10353_vm7 = vmmov %vm10347_vm2  ;;  %vm10355_vm5 = vnez %v10354_v19 }
0x14b7   :  { %5242 = vmatprep.subr.msk.mxu1 %vm10349_vm11, %v4163_v56  ;;  %5267 = vmatprep.subr.msk.mxu0 %vm10351_vm14, %v3924_v28  ;;  %v4160_v40 = vsel %vm10353_vm7, %v8855_v11, %v4148_v62  ;;  %vm10358_vm2 = vmmov %vm10352_vm3  ;;  %vm10359_vm3 = vcmask 138240  }
0x14b8   :  { %5243 = vmatpush2.msk.msra.mxu1 %vm10355_vm5, %v4162_v59  ;;  %5268 = vmatpush1.msk.msra.mxu0 %vm10357_vm12, %v3923_v55  ;;  %v3920_v31 = vsel %vm10358_vm2, %v8766_v35, %v8758_v32  ;;  %vm10360_vm7 = vmmov %vm10359_vm3  ;;  %v10364_v35 = vld [vmem:[#allocation33_spill] sm:$0xff] }
0x14b9   :  { %5244 = vmatprep.subr.msk.mxu1 %vm10349_vm11, %v4160_v40  ;;  %5269 = vmatprep.subr.msk.mxu0 %vm10351_vm14, %v3921_v17  ;;  %v3878_v38 = vpop.permute.xlu1 %3877  ;;  %v3883_v49 = vsel %vm10360_vm7, %v3874_v27, %v8876_v13  ;;  %vm10363_vm2 = vmmov %vm10359_vm3  ;;  %vm10365_vm11 = vnez %v10364_v35 }
0x14ba   :  { %v3884_v7 = vsel %vm10359_vm3, %v8876_v13, %v3878_v38  ;;  %5270 = vmatpush1.msk.msra.mxu0 %vm10357_vm12, %v3920_v31  ;;  %v3881_v32 = vsel %vm10363_vm2, %v8828_v53, %v3870_v36  ;;  %vm10366_vm14 = vmmov %vm10363_vm2  ;;  %v63_v13 = vld [vmem:[%s9587_s1 + $0x168] sm:$0xff]  ;;  %vm10367_vm3 = vcmask 908288  }
0x14bb   :  { %5271 = vmatprep.subr.msk.mxu0 %vm10362_vm10, %v3884_v7  ;;  %v3880_v42 = vsel %vm10366_vm14, %v8770_v50, %v8828_v53  ;;  %v4174_v58 = vsel %vm10367_vm3, %v4158_v18, 0.0  ;;  %vm10368_vm7 = vmmov %vm10367_vm3  ;;  %v10370_v50 = vld [vmem:[#allocation12_spill] sm:$0xff]  ;;  %v10372_v53 = vld [vmem:[#allocation13_spill] sm:$0xff] }
0x14bc   :  { %5272 = vmatpush1.msk.msra.mxu0 %vm10365_vm11, %v3883_v49  ;;  %vm10369_vm2 = vmmov %vm10367_vm3  ;;  %vm10371_vm14 = vnez %v10370_v50  ;;  %v9079_v49 = vld [vmem:[%s9588_s2] sm:$0xff] }
0x14bd   :  { %5273 = vmatprep.subr.msk.mxu0 %vm10362_vm10, %v3881_v32  ;;  %v4144_v10 = vpop.permute.xlu1 %4143  ;;  %v4164_v27 = vsel %vm10369_vm2, %v8810_v29, %v4158_v18  ;;  %vm10373_vm10 = vnez %v10372_v53  ;;  %vm10374_vm3 = vmmov %vm10369_vm2  ;;  %v5964_v29 = vmov 18   ;;  %10376 = vst [vmem:[#allocation38_spill] sm:$0xff] %v9079_v49  ;;  %v5966_v32 = vmov 13  }
0x14be   :  { %v4159_v36 = vsel %vm10368_vm7, %v4144_v10, %v8855_v11  ;;  %5274 = vmatpush1.msk.msra.mxu0 %vm10365_vm11, %v3880_v42  ;;  %vm10375_vm7 = vmmov %vm10369_vm2  ;;  %5859 = vset.pattern.permute.xlu0 %v5964_v29  ;;  %v5967_v42 = vmov 12   ;;  %vm10377_vm2 = vcmask 1043456  }
0x14bf   :  { %5245 = vmatpush2.msk.msra.mxu1 %vm10355_vm5, %v4159_v36  ;;  %5275 = vmatprep.subr.msk.mxu0 %vm10371_vm14, %v4174_v58  ;;  %v3610_v58 = vmax.f32 %v8581_v46, 0.0  ;;  %v3611_v36 = vmax.f32 %v8579_v23, 0.0 }
0x14c0   :  { %5276 = vmatpush2.msk.msra.mxu0 %vm10373_vm10, %v4164_v27  ;;  %4251 = vmatmul.mubr.f32.vlgmr.msra.gmra.mxu1 %v63_v13  ;;  %v3612_v27 = vmax.f32 %v8583_v63, 0.0 }
0x14c1   :  { %v4150_v37 = vpop.permute.xlu1 %4149 }
0x14c2   :  { %v4161_v25 = vsel %vm10374_vm3, %v4148_v62, %v4150_v37  ;;  %v4173_v11 = vsel %vm10375_vm7, %v4150_v37, 0.0  ;;  %vm10378_vm3 = vmmov %vm10377_vm2 }
0x14c3   :  { %5277 = vmatprep.subr.msk.mxu0 %vm10371_vm14, %v4173_v11  ;;  %vm10379_vm7 = vmmov %vm10377_vm2 }
0x14c4   :  { %5278 = vmatpush2.msk.msra.mxu0 %vm10373_vm10, %v4161_v25  ;;  %vm10380_vm10 = vmmov %vm10377_vm2 }
0x14c5   :  { %4322 = vmatmul.mubr.f32.vlgmr.msra.gmra.mxu0 %v63_v13  ;;  %v3609_v13 = vmax.f32 %v8577_v3, 0.0 }
0x1580   :  { %v9056_v12 = vpop.f32.mrf.mxu1 }
0x1581   :  { %v4328_v15 = vmul.f32 %v9056_v12, %v9056_v12 }
0x1582   :  { %v9060_v9 = vpop.f32.mrf.mxu1 }
0x1583   :  { %v4329_v62 = vmul.f32 %v9060_v9, %v9060_v9  ;;  %v4332_v56 = vadd.f32 %v9060_v9, %v9056_v12 }
0x1585   :  { %v4337_v28 = vadd.f32 %v4329_v62, %v4328_v15  ;;  %v9066_v55 = vpop.f32.mrf.mxu0 }
0x1586   :  { %v4330_v59 = vmul.f32 %v9066_v55, %v9066_v55  ;;  %v4333_v17 = vadd.f32 %v4332_v56, %v9066_v55 }
0x1587   :  { %v9071_v40 = vpop.f32.mrf.mxu0 }
0x1588   :  { %v4338_v31 = vadd.f32 %v4337_v28, %v4330_v59  ;;  %v4331_v38 = vmul.f32 %v9071_v40, %v9071_v40  ;;  %v4334_v7 = vadd.f32 %v4333_v17, %v9071_v40 }
0x158a   :  { %4335 = vadd.xlane.f32.xlu0 %v4334_v7  ;;  %v4339_v18 = vadd.f32 %v4338_v31, %v4331_v38 }
0x158c   :  { %4340 = vadd.xlane.f32.xlu1 %v4339_v18 }
0x159d   :  { %3650 = vperm.xlu1 %5860, %v9079_v49  }
0x15a0   :  { %3614 = vperm.xlu0 %5859, %v9079_v49  }
0x15a1   :  { %5861 = vset.pattern.permute.xlu1 %v5966_v32 }
0x15a2   :  { %4364 = vperm.xlu1 %5861, %v9079_v49  }
0x15a6   :  { %5862 = vset.pattern.permute.xlu1 %v5967_v42 }
0x1613   :  { %v9084_v10 = vpop.xlane.xlu0 %4335 }
0x1615   :  { %v4341_v42 = vpop.xlane.xlu1 %4340 }
0x1619   :  { %v3651_v50 = vpop.permute.xlu1 %3650 }
0x161b   :  { %v3615_v37 = vpop.permute.xlu0 %3614 }
0x161c   :  { %v3617_v25 = vmul.f32 %v3615_v37, %v3609_v13  ;;  %v3618_v11 = vmul.f32 %v3615_v37, %v3610_v58  ;;  %v3619_v29 = vmul.f32 %v3615_v37, %v3611_v36  ;;  %v3620_v6 = vmul.f32 %v3615_v37, %v3612_v27 }
0x161e   :  { %v3621_v15 = vsel %vm10377_vm2, %v3617_v25, 0.0  ;;  %v3628_v62 = vsel %vm10378_vm3, %v3618_v11, 0.0  ;;  %v3635_v56 = vsel %vm10379_vm7, %v3619_v29, 0.0  ;;  %v3642_v46 = vsel %vm10380_vm10, %v3620_v6, 0.0 }
0x161f   :  { %v3622_v28 = vrot.slane %v3621_v15, 4  ;;  %v3629_v59 = vrot.slane %v3628_v62, 4  ;;  %v3636_v3 = vrot.slane %v3635_v56, 4  ;;  %v3643_v17 = vrot.slane %v3642_v46, 4 }
0x1620   :  { %vm10385_vm10 = vcmask 916480  }
0x1621   :  { %v3623_v23 = vadd.f32 %v3622_v28, %v3621_v15  ;;  %v3630_v31 = vadd.f32 %v3629_v59, %v3628_v62  ;;  %v3637_v63 = vadd.f32 %v3636_v3, %v3635_v56  ;;  %v3644_v38 = vadd.f32 %v3643_v17, %v3642_v46  ;;  %vm10386_vm2 = vmmov %vm10385_vm10 }
0x1622   :  { %vm10387_vm3 = vmmov %vm10386_vm2 }
0x1623   :  { %v3624_v7 = vrot.slane %v3623_v23, 2  ;;  %v3631_v18 = vrot.slane %v3630_v31, 2  ;;  %v3638_v32 = vrot.slane %v3637_v63, 2  ;;  %v3645_v13 = vrot.slane %v3644_v38, 2  ;;  %vm10388_vm7 = vmmov %vm10386_vm2 }
0x1625   :  { %v3625_v58 = vadd.f32 %v3624_v7, %v3623_v23  ;;  %v3632_v36 = vadd.f32 %v3631_v18, %v3630_v31  ;;  %v3639_v27 = vadd.f32 %v3638_v32, %v3637_v63  ;;  %v3646_v37 = vadd.f32 %v3645_v13, %v3644_v38 }
0x1627   :  { %v3626_v25 = vrot.slane %v3625_v58, 1  ;;  %v3633_v11 = vrot.slane %v3632_v36, 1  ;;  %v3640_v29 = vrot.slane %v3639_v27, 1  ;;  %v3647_v53 = vrot.slane %v3646_v37, 1 }
0x1629   :  { %v3627_v6 = vadd.f32 %v3626_v25, %v3625_v58  ;;  %v3634_v35 = vadd.f32 %v3633_v11, %v3632_v36  ;;  %v3641_v15 = vadd.f32 %v3640_v29, %v3639_v27  ;;  %v3648_v62 = vadd.f32 %v3647_v53, %v3646_v37  ;;  %v10381_v27 = vld [vmem:[#allocation37_spill] sm:$0xff] }
0x162b   :  { %v3653_v56 = vadd.f32 %v3651_v50, %v3627_v6  ;;  %v3654_v28 = vadd.f32 %v3651_v50, %v3634_v35  ;;  %v3655_v59 = vadd.f32 %v3651_v50, %v3641_v15  ;;  %v3656_v3 = vadd.f32 %v3651_v50, %v3648_v62 }
0x162c   :  { %v9095_v35 = vmul.f32 0.001953125, %v9084_v10 }
0x162d   :  { %v5210_v46 = vmul.f32 -1.442695, %v3653_v56  ;;  %v5211_v17 = vmul.f32 -1.442695, %v3654_v28  ;;  %v5212_v44 = vmul.f32 -1.442695, %v3655_v59 }
0x162e   :  { %v5213_v23 = vmul.f32 -1.442695, %v3656_v3  ;;  %v4344_v50 = vmul.f32 %v9095_v35, %v9095_v35  ;;  %v10382_v56 = vld [vmem:[#allocation34_spill] sm:$0xff]  ;;  %v10383_v59 = vld [vmem:[#allocation36_spill] sm:$0xff] }
0x162f   :  { %5903 = vpow2.f32 %v5210_v46  ;;  %v10384_v46 = vld [vmem:[#allocation35_spill] sm:$0xff] }
0x1630   :  { %5905 = vpow2.f32 %v5211_v17 }
0x1631   :  { %5907 = vpow2.f32 %v5212_v44  ;;  %v4343_v44 = vmul.f32 0.001953125, %v4341_v42 }
0x1632   :  { %5909 = vpow2.f32 %v5213_v23 }
0x1633   :  { %v4345_v11 = vsub.f32 %v4343_v44, %v4344_v50 }
0x1635   :  { %v4346_v10 = vmax.f32 %v4345_v11, 0.0 }
0x163c   :  { %v5904_v31 = vpop.eup %5903 }
0x163d   :  { %v5906_v63 = vpop.eup %5905  ;;  %v3669_v13 = vadd.f32 1.0, %v5904_v31 }
0x163e   :  { %v5908_v38 = vpop.eup %5907  ;;  %v3670_v7 = vadd.f32 1.0, %v5906_v63  ;;  %v4365_v63 = vpop.permute.xlu1 %4364 }
0x163f   :  { %v5910_v18 = vpop.eup %5909  ;;  %v3671_v32 = vadd.f32 1.0, %v5908_v38 }
0x1640   :  { %v3672_v53 = vadd.f32 1.0, %v5910_v18  ;;  %5911 = vrcp.f32 %v3670_v7 }
0x1641   :  { %5913 = vrcp.f32 %v3671_v32 }
0x1642   :  { %5915 = vrcp.f32 %v3672_v53 }
0x1643   :  { %5917 = vrcp.f32 %v3669_v13 }
0x164d   :  { %v5912_v58 = vpop.eup %5911 }
0x164e   :  { %v5914_v36 = vpop.eup %5913  ;;  %v3688_v37 = vrot.slane %v5912_v58, %v10381_v27 }
0x164f   :  { %v5916_v25 = vpop.eup %5915  ;;  %v3692_v29 = vrot.slane %v5914_v36, %v10381_v27 }
0x1650   :  { %v3696_v6 = vrot.slane %v5916_v25, %v10381_v27  ;;  %v9103_v15 = vmul.f32 %v3688_v37, %v6684_v54  ;;  %v5918_v62 = vpop.eup %5917  ;;  %v4347_v54 = vadd.f32 1e-05, %v4346_v10 }
0x1651   :  { %v3684_v42 = vrot.slane %v5918_v62, %v10381_v27  ;;  %v9111_v28 = vmul.f32 %v3692_v29, %v10382_v56 }
0x1652   :  { %4593 = vrot.lane.b32.xlu0 %v9103_v15, %s5931_s30  ;;  %4633 = vrot.lane.b32.xlu1 %v9103_v15, %s5928_s28  ;;  %v9114_v3 = vmul.f32 %v3696_v6, %v10383_v59  ;;  %5919 = vrsqrt.f32 %v4347_v54 }
0x1653   :  { %v9121_v17 = vmul.f32 %v3684_v42, %v10384_v46 }
0x1656   :  { %4637 = vrot.lane.b32.xlu0 %v9114_v3, %s5928_s28  ;;  %4635 = vrot.lane.b32.xlu1 %v9111_v28, %s5928_s28 }
0x165a   :  { %4553 = vrot.lane.b32.xlu0 %v9103_v15, %s5930_s0  ;;  %4631 = vrot.lane.b32.xlu1 %v9121_v17, %s5928_s28 }
0x165e   :  { %4597 = vrot.lane.b32.xlu0 %v9114_v3, %s5931_s30  ;;  %4595 = vrot.lane.b32.xlu1 %v9111_v28, %s5931_s30 }
0x165f   :  { %v5920_v23 = vpop.eup %5919 }
0x1660   :  { %v4349_v31 = vmul.f32 %v9079_v49, %v5920_v23  ;;  %v4350_v23 = vsub.f32 %v9056_v12, %v9095_v35 }
0x1662   :  { %4557 = vrot.lane.b32.xlu0 %v9114_v3, %s5930_s0  ;;  %4591 = vrot.lane.b32.xlu1 %v9121_v17, %s5931_s30 }
0x1666   :  { %4511 = vrot.lane.b32.xlu0 %v9121_v17, %s5932_s8  ;;  %4555 = vrot.lane.b32.xlu1 %v9111_v28, %s5930_s0 }
0x166a   :  { %4471 = vrot.lane.b32.xlu0 %v9121_v17, %s5934_s10  ;;  %4551 = vrot.lane.b32.xlu1 %v9121_v17, %s5930_s0 }
0x166e   :  { %4515 = vrot.lane.b32.xlu0 %v9111_v28, %s5932_s8  ;;  %4356 = vperm.xlu1 %5862, %v4349_v31   ;;  %v4351_v31 = vsub.f32 %v9060_v9, %v9095_v35 }
0x1672   :  { %4431 = vrot.lane.b32.xlu0 %v9121_v17, %s5933_s9  ;;  %4513 = vrot.lane.b32.xlu1 %v9103_v15, %s5932_s8 }
0x1676   :  { %4475 = vrot.lane.b32.xlu0 %v9111_v28, %s5934_s10  ;;  %4473 = vrot.lane.b32.xlu1 %v9103_v15, %s5934_s10 }
0x167a   :  { %4391 = vrot.lane.b32.xlu0 %v9121_v17, %s10246_s15  ;;  %4517 = vrot.lane.b32.xlu1 %v9114_v3, %s5932_s8 }
0x167e   :  { %4435 = vrot.lane.b32.xlu0 %v9111_v28, %s5933_s9  ;;  %4433 = vrot.lane.b32.xlu1 %v9103_v15, %s5933_s9 }
0x1682   :  { %4395 = vrot.lane.b32.xlu0 %v9111_v28, %s10246_s15  ;;  %4477 = vrot.lane.b32.xlu1 %v9114_v3, %s5934_s10 }
0x1686   :  { %4673 = vrot.lane.b32.xlu0 %v9103_v15, %s10247_s12  ;;  %4393 = vrot.lane.b32.xlu1 %v9103_v15, %s10246_s15 }
0x168a   :  { %4671 = vrot.lane.b32.xlu0 %v9121_v17, %s10247_s12  ;;  %4437 = vrot.lane.b32.xlu1 %v9114_v3, %s5933_s9 }
0x168e   :  { %4397 = vrot.lane.b32.xlu1 %v9114_v3, %s10246_s15 }
0x1692   :  { %4675 = vrot.lane.b32.xlu1 %v9111_v28, %s10247_s12 }
0x16c4   :  { %v4594_v38 = vpop.permute.xlu0 %4593  ;;  %v4634_v7 = vpop.permute.xlu1 %4633 }
0x16c8   :  { %v4638_v18 = vpop.permute.xlu0 %4637  ;;  %v4636_v32 = vpop.permute.xlu1 %4635 }
0x16c9   :  { %v4654_v13 = vsel %vm10385_vm10, %v4638_v18, 0.0  ;;  %v4643_v53 = vsel %vm10386_vm2, %v4634_v7, %v4636_v32  ;;  %v4644_v50 = vsel %vm10387_vm3, %v4636_v32, %v4638_v18  ;;  %vm10389_vm10 = vcmask 924672  }
0x16ca   :  { %5280 = vmatprep.subr.msk.mxu1 %vm10255_vm9, %v4643_v53  ;;  %5313 = vmatprep.subr.msk.mxu0 %vm10257_vm13, %v4654_v13  ;;  %vm10390_vm2 = vmmov %vm10389_vm10  ;;  %vm10391_vm3 = vcmask 1039360  }
0x16cb   :  { %5314 = vmatpush1.msk.msra.mxu0 %vm10261_vm15, %v4644_v50  ;;  %v4353_v50 = vsub.f32 %v9071_v40, %v9095_v35 }
0x16cc   :  { %v4554_v44 = vpop.permute.xlu0 %4553  ;;  %v4632_v58 = vpop.permute.xlu1 %4631 }
0x16cd   :  { %v4642_v36 = vsel %vm10388_vm7, %v4632_v58, %v4634_v7  ;;  %vm10392_vm7 = vmmov %vm10391_vm3 }
0x16ce   :  { %5281 = vmatpush1.msk.msra.mxu1 %vm10259_vm4, %v4642_v36 }
0x16d0   :  { %v9190_v27 = vpop.permute.xlu0 %4597  ;;  %v9192_v37 = vpop.permute.xlu1 %4595 }
0x16d1   :  { %v9196_v25 = vsel %vm10389_vm10, %v4594_v38, %v9192_v37  ;;  %vm10394_vm10 = vcmask 138240  }
0x16d4   :  { %v9198_v11 = vpop.permute.xlu0 %4557  ;;  %v4592_v29 = vpop.permute.xlu1 %4591 }
0x16d5   :  { %v9201_v6 = vsel %vm10390_vm2, %v4592_v29, %v4594_v38  ;;  %v4352_v38 = vsub.f32 %v9066_v55, %v9095_v35  ;;  %vm10396_vm2 = vcmask 130048  }
0x16d8   :  { %v9203_v62 = vpop.permute.xlu0 %4511  ;;  %v9205_v10 = vpop.permute.xlu1 %4555 }
0x16d9   :  { %v9209_v42 = vsel %vm10391_vm3, %v4554_v44, %v9205_v10  ;;  %vm10397_vm3 = vmmov %vm10396_vm2 }
0x16dc   :  { %v4552_v56 = vpop.permute.xlu1 %4551  ;;  %v9211_v59 = vpop.permute.xlu0 %4471 }
0x16dd   :  { %v9214_v54 = vsel %vm10392_vm7, %v4552_v56, %v4554_v44  ;;  %vm10401_vm7 = vcmask 916480  }
0x16e0   :  { %v9216_v46 = vpop.permute.xlu0 %4515 }
0x16e4   :  { %v9224_v7 = vpop.permute.xlu0 %4431 }
0x16e8   :  { %v9234_v55 = vpop.permute.xlu0 %4475 }
0x16e9   :  { %v4357_v18 = vpop.permute.xlu1 %4356 }
0x16ea   :  { %v4359_v32 = vmul.f32 %v4357_v18, %v4350_v23  ;;  %v4360_v13 = vmul.f32 %v4357_v18, %v4351_v31  ;;  %v4361_v53 = vmul.f32 %v4357_v18, %v4352_v38  ;;  %v4362_v12 = vmul.f32 %v4357_v18, %v4353_v50 }
0x16ec   :  { %v4368_v44 = vadd.f32 %v4365_v63, %v4360_v13  ;;  %v4369_v58 = vadd.f32 %v4365_v63, %v4361_v53  ;;  %v4367_v29 = vadd.f32 %v4365_v63, %v4359_v32  ;;  %v4370_v40 = vadd.f32 %v4365_v63, %v4362_v12  ;;  %v9248_v31 = vpop.permute.xlu0 %4391 }
0x16ed   :  { %v9228_v36 = vpop.permute.xlu1 %4513 }
0x16ee   :  { %v9230_v56 = vmax.f32 %v4368_v44, 0.0  ;;  %v9232_v9 = vmax.f32 %v4369_v58, 0.0  ;;  %v9242_v35 = vmax.f32 %v4367_v29, 0.0  ;;  %v9252_v18 = vmax.f32 %v4370_v40, 0.0  ;;  %v66_v58 = vld [vmem:[%s9587_s1 + $0x188] sm:$0xff] }
0x16ef   :  { %5312 = vmatprep.mubr.msk.f32.mxu1 %vm10396_vm2, %v66_v58  ;;  %5345 = vmatprep.mubr.msk.f32.mxu0 %vm10397_vm3, %v66_v58  ;;  %vm10403_vm2 = vmmov %vm10401_vm7  ;;  %vm10405_vm3 = vcmask 924672  }
0x16f0   :  { %4627 = vrot.lane.b32.xlu0 %v9232_v9, %s5928_s28  ;;  %4625 = vrot.lane.b32.xlu1 %v9230_v56, %s5928_s28  ;;  %v9260_v32 = vpop.permute.xlu0 %4435 }
0x16f1   :  { %v9240_v23 = vpop.permute.xlu1 %4473 }
0x16f4   :  { %4585 = vrot.lane.b32.xlu0 %v9230_v56, %s5931_s30  ;;  %4623 = vrot.lane.b32.xlu1 %v9242_v35, %s5928_s28  ;;  %v9272_v53 = vpop.permute.xlu0 %4395 }
0x16f5   :  { %v9250_v38 = vpop.permute.xlu1 %4517  ;;  %10393 = vst [vmem:[#allocation40_spill] sm:$0xff] %v9272_v53 }
0x16f8   :  { %4629 = vrot.lane.b32.xlu0 %v9252_v18, %s5928_s28  ;;  %4587 = vrot.lane.b32.xlu1 %v9232_v9, %s5931_s30  ;;  %v9334_v29 = vpop.permute.xlu0 %4673 }
0x16f9   :  { %v9258_v63 = vpop.permute.xlu1 %4433  ;;  %10398 = vst [vmem:[#allocation42_spill] sm:$0xff] %v9334_v29 }
0x16fc   :  { %4545 = vrot.lane.b32.xlu0 %v9230_v56, %s5930_s0  ;;  %4583 = vrot.lane.b32.xlu1 %v9242_v35, %s5931_s30  ;;  %v9338_v58 = vpop.permute.xlu0 %4671 }
0x16fd   :  { %v9266_v13 = vpop.permute.xlu1 %4477  ;;  %10400 = vst [vmem:[#allocation44_spill] sm:$0xff] %v9338_v58 }
0x1700   :  { %4589 = vrot.lane.b32.xlu0 %v9252_v18, %s5931_s30  ;;  %4547 = vrot.lane.b32.xlu1 %v9232_v9, %s5930_s0 }
0x1701   :  { %v9274_v50 = vpop.permute.xlu1 %4393 }
0x1702   :  { %v9279_v44 = vsel %vm10394_vm10, %v9274_v50, %v9272_v53  ;;  %vm10402_vm10 = vmmov %vm10401_vm7 }
0x1703   :  { %10395 = vst [vmem:[#allocation39_spill] sm:$0xff] %v9279_v44 }
0x1704   :  { %4503 = vrot.lane.b32.xlu0 %v9242_v35, %s5932_s8  ;;  %4543 = vrot.lane.b32.xlu1 %v9242_v35, %s5930_s0 }
0x1705   :  { %v9332_v12 = vpop.permute.xlu1 %4437 }
0x1708   :  { %4463 = vrot.lane.b32.xlu0 %v9242_v35, %s5934_s10  ;;  %4549 = vrot.lane.b32.xlu1 %v9252_v18, %s5930_s0 }
0x1709   :  { %v9336_v40 = vpop.permute.xlu1 %4397 }
0x170a   :  { %10399 = vst [vmem:[#allocation41_spill] sm:$0xff] %v9336_v40 }
0x170c   :  { %4507 = vrot.lane.b32.xlu0 %v9232_v9, %s5932_s8  ;;  %4505 = vrot.lane.b32.xlu1 %v9230_v56, %s5932_s8 }
0x170d   :  { %v9340_v49 = vpop.permute.xlu1 %4675 }
0x1710   :  { %4423 = vrot.lane.b32.xlu0 %v9242_v35, %s5933_s9  ;;  %4465 = vrot.lane.b32.xlu1 %v9230_v56, %s5934_s10 }
0x1714   :  { %4467 = vrot.lane.b32.xlu0 %v9232_v9, %s5934_s10  ;;  %4509 = vrot.lane.b32.xlu1 %v9252_v18, %s5932_s8 }
0x1718   :  { %4383 = vrot.lane.b32.xlu0 %v9242_v35, %s10246_s15  ;;  %4425 = vrot.lane.b32.xlu1 %v9230_v56, %s5933_s9 }
0x171c   :  { %4427 = vrot.lane.b32.xlu0 %v9232_v9, %s5933_s9  ;;  %4469 = vrot.lane.b32.xlu1 %v9252_v18, %s5934_s10 }
0x1720   :  { %4389 = vrot.lane.b32.xlu0 %v9252_v18, %s10246_s15  ;;  %4385 = vrot.lane.b32.xlu1 %v9230_v56, %s10246_s15 }
0x1724   :  { %4667 = vrot.lane.b32.xlu0 %v9232_v9, %s10247_s12  ;;  %4429 = vrot.lane.b32.xlu1 %v9252_v18, %s5933_s9 }
0x1728   :  { %4677 = vrot.lane.b32.xlu0 %v9114_v3, %s10247_s12  ;;  %4387 = vrot.lane.b32.xlu1 %v9232_v9, %s10246_s15 }
0x172c   :  { %4665 = vrot.lane.b32.xlu1 %v9230_v56, %s10247_s12 }
0x1730   :  { %4663 = vrot.lane.b32.xlu1 %v9242_v35, %s10247_s12 }
0x1734   :  { %4669 = vrot.lane.b32.xlu1 %v9252_v18, %s10247_s12 }
0x1762   :  { %v4628_v44 = vpop.permute.xlu0 %4627  ;;  %v4626_v53 = vpop.permute.xlu1 %4625 }
0x1763   :  { %v4640_v19 = vsel %vm10401_vm7, %v4626_v53, %v4628_v44  ;;  %vm10407_vm7 = vmmov %vm10405_vm3 }
0x1764   :  { %5282 = vmatprep.subr.msk.mxu1 %vm10255_vm9, %v4640_v19  ;;  %vm10404_vm9 = vmmov %vm10403_vm2 }
0x1766   :  { %v4586_v41 = vpop.permute.xlu0 %4585  ;;  %v4624_v1 = vpop.permute.xlu1 %4623 }
0x1767   :  { %v4639_v8 = vsel %vm10402_vm10, %v4624_v1, %v4626_v53  ;;  %vm10408_vm10 = vmmov %vm10405_vm3 }
0x1768   :  { %5283 = vmatpush1.msk.msra.mxu1 %vm10259_vm4, %v4639_v8  ;;  %vm10406_vm4 = vmmov %vm10405_vm3  ;;  %v4604_v8 = vsel %vm10407_vm7, %v9192_v37, %v9190_v27 }
0x1769   :  { %5284 = vmatprep.subr.msk.mxu1 %vm10269_vm6, %v9196_v25  ;;  %v4614_v0 = vsel %vm10406_vm4, %v9190_v27, 0.0  ;;  %vm10416_vm4 = vnez %v10291_v21 }
0x176a   :  { %v4630_v40 = vpop.permute.xlu0 %4629  ;;  %5285 = vmatpush1.msk.msra.mxu1 %vm10271_vm0, %v9201_v6  ;;  %v4588_v58 = vpop.permute.xlu1 %4587 }
0x176b   :  { %v4641_v20 = vsel %vm10403_vm2, %v4628_v44, %v4630_v40  ;;  %v4653_v19 = vsel %vm10404_vm9, %v4630_v40, 0.0  ;;  %v4600_v29 = vsel %vm10405_vm3, %v4586_v41, %v4588_v58  ;;  %vm10412_vm2 = vmmov %vm10405_vm3  ;;  %vm10413_vm9 = vcmask 1039360  }
0x176c   :  { %5286 = vmatprep.subr.msk.mxu1 %vm10269_vm6, %v4600_v29  ;;  %5315 = vmatprep.subr.msk.mxu0 %vm10257_vm13, %v4653_v19  ;;  %vm10409_vm13 = vnez %v10278_v52  ;;  %vm10411_vm6 = vmmov %vm10405_vm3 }
0x176d   :  { %5316 = vmatpush1.msk.msra.mxu0 %vm10261_vm15, %v4641_v20  ;;  %vm10410_vm15 = vnez %v10282_v34  ;;  %v10456_v20 = vld [vmem:[#allocation29_spill] sm:$0xff] }
0x176e   :  { %5317 = vmatprep.subr.msk.mxu0 %vm10281_vm8, %v4614_v0  ;;  %v4546_v1 = vpop.permute.xlu0 %4545  ;;  %v4584_v25 = vpop.permute.xlu1 %4583 }
0x176f   :  { %v4599_v48 = vsel %vm10408_vm10, %v4584_v25, %v4586_v41  ;;  %5318 = vmatpush1.msk.msra.mxu0 %vm10285_vm1, %v4604_v8  ;;  %vm10418_vm10 = vnez %v10293_v2  ;;  %v10465_v25 = vld [vmem:[#allocation3_spill] sm:$0xff] }
0x1770   :  { %5287 = vmatpush1.msk.msra.mxu1 %vm10271_vm0, %v4599_v48  ;;  %vm10414_vm0 = vmmov %vm10413_vm9 }
0x1771   :  { %5288 = vmatprep.subr.msk.mxu1 %vm10409_vm13, %v9209_v42  ;;  %v4574_v39 = vsel %vm10414_vm0, %v9198_v11, 0.0  ;;  %vm10415_vm3 = vmmov %vm10414_vm0 }
0x1772   :  { %v4590_v47 = vpop.permute.xlu0 %4589  ;;  %5289 = vmatpush1.msk.msra.mxu1 %vm10410_vm15, %v9214_v54  ;;  %v4548_v30 = vpop.permute.xlu1 %4547  ;;  %v4564_v6 = vsel %vm10415_vm3, %v9205_v10, %v9198_v11  ;;  %vm10417_vm7 = vmmov %vm10414_vm0  ;;  %vm10427_vm3 = vcmask 121856  }
0x1773   :  { %v4601_v27 = vsel %vm10411_vm6, %v4588_v58, %v4590_v47  ;;  %v4613_v41 = vsel %vm10412_vm2, %v4590_v47, 0.0  ;;  %v4560_v37 = vsel %vm10413_vm9, %v4546_v1, %v4548_v30  ;;  %vm10423_vm6 = vnez %v10298_v43 }
0x1774   :  { %5290 = vmatprep.subr.msk.mxu1 %vm10409_vm13, %v4560_v37  ;;  %5319 = vmatprep.subr.msk.mxu0 %vm10281_vm8, %v4613_v41  ;;  %vm10419_vm8 = vmmov %vm10414_vm0  ;;  %vm10421_vm13 = vcmask 7168   ;;  %vm10424_vm2 = vnez %v10300_v57  ;;  %v4482_v2 = vsel %vm10427_vm3, %v9211_v59, %v9240_v23 }
0x1775   :  { %5320 = vmatpush1.msk.msra.mxu0 %vm10285_vm1, %v4601_v27  ;;  %vm10420_vm1 = vmmov %vm10414_vm0  ;;  %v4522_v53 = vsel %vm10421_vm13, %v9203_v62, %v9228_v36  ;;  %v10471_v27 = vld [vmem:[#allocation40_spill] sm:$0xff] }
0x1776   :  { %v4504_v42 = vpop.permute.xlu0 %4503  ;;  %5321 = vmatprep.subr.msk.mxu0 %vm10416_vm4, %v4574_v39  ;;  %v4544_v54 = vpop.permute.xlu1 %4543  ;;  %vm10425_vm9 = vmmov %vm10421_vm13  ;;  %v10473_v39 = vld [vmem:[#allocation32_spill] sm:$0xff] }
0x1777   :  { %v4559_v52 = vsel %vm10417_vm7, %v4544_v54, %v4546_v1  ;;  %5322 = vmatpush1.msk.msra.mxu0 %vm10418_vm10, %v4564_v6  ;;  %vm10426_vm0 = vmmov %vm10425_vm9 }
0x1778   :  { %5291 = vmatpush1.msk.msra.mxu1 %vm10410_vm15, %v4559_v52  ;;  %vm10422_vm15 = vmmov %vm10421_vm13  ;;  %v4533_v21 = vsel %vm10426_vm0, 0.0, %v4504_v42  ;;  %v10477_v52 = vld [vmem:[#allocation39_spill] sm:$0xff] }
0x1779   :  { %4718 = vmatprep.subr.mxu1 %v9103_v15  ;;  %v4534_v34 = vsel %vm10422_vm15, 0.0, %v9203_v62  ;;  %vm10429_vm7 = vmmov %vm10427_vm3  ;;  %vm10434_vm15 = vnez %v10308_v14 }
0x177a   :  { %v4464_v22 = vpop.permute.xlu0 %4463  ;;  %4719 = vmatpush1.msra.mxu1 %v9121_v17  ;;  %v4550_v45 = vpop.permute.xlu1 %4549  ;;  %vm10433_vm13 = vmmov %vm10427_vm3 }
0x177b   :  { %v4561_v11 = vsel %vm10419_vm8, %v4548_v30, %v4550_v45  ;;  %v4573_v10 = vsel %vm10420_vm1, %v4550_v45, 0.0  ;;  %4720 = vmatprep.subr.mxu1 %v9230_v56  ;;  %vm10431_vm8 = vnez %v10306_v26  ;;  %vm10432_vm1 = vnez %v10314_v60 }
0x177c   :  { %4721 = vmatpush1.msra.mxu1 %v9242_v35  ;;  %5323 = vmatprep.subr.msk.mxu0 %vm10416_vm4, %v4573_v10  ;;  %vm10428_vm4 = vmmov %vm10426_vm0 }
0x177d   :  { %5292 = vmatprep.subr.msk.mxu1 %vm10423_vm6, %v4522_v53  ;;  %5324 = vmatpush1.msk.msra.mxu0 %vm10418_vm10, %v4561_v11  ;;  %vm10430_vm10 = vmmov %vm10426_vm0 }
0x177e   :  { %v4508_v15 = vpop.permute.xlu0 %4507  ;;  %5293 = vmatpush1.msk.msra.mxu1 %vm10424_vm2, %v4534_v34  ;;  %4789 = vmatprep.subr.mxu0 %v9114_v3  ;;  %v4506_v17 = vpop.permute.xlu1 %4505  ;;  %v4524_v3 = vsel %vm10428_vm4, %v9216_v46, %v9250_v38  ;;  %v4523_v43 = vsel %vm10430_vm10, %v9228_v36, %v9216_v46  ;;  %vm10441_vm10 = vmmov %vm10428_vm4 }
0x177f   :  { %v4519_v56 = vsel %vm10425_vm9, %v4504_v42, %v4506_v17  ;;  %4790 = vmatpush1.msra.mxu0 %v9111_v28  ;;  %v4494_v28 = vsel %vm10429_vm7, 0.0, %v9211_v59  ;;  %vm10437_vm9 = vcmask 130048   ;;  %vm10440_vm7 = vnez %v10324_v33 }
0x1780   :  { %5294 = vmatprep.subr.msk.mxu1 %vm10423_vm6, %v4519_v56  ;;  %4791 = vmatprep.subr.mxu0 %v9252_v18  ;;  %vm10435_vm6 = vnez %v10317_v5  ;;  %v4442_v46 = vsel %vm10437_vm9, %v9224_v7, %v9258_v63  ;;  %vm10438_vm0 = vmmov %vm10437_vm9  ;;  %v4520_v26 = vsel %vm10441_vm10, %v4506_v17, %v4508_v15  ;;  %v65_v56 = vld [vmem:[%s9587_s1 + $0x180] sm:$0xff] }
0x1781   :  { %5295 = vmatpush1.msk.msra.mxu1 %vm10424_vm2, %v4533_v21  ;;  %4792 = vmatpush1.msra.mxu0 %v9232_v9  ;;  %vm10436_vm2 = vmmov %vm10427_vm3  ;;  %v4454_v36 = vsel %vm10438_vm0, 0.0, %v9224_v7  ;;  %vm10439_vm3 = vnez %v10322_v4 }
0x1782   :  { %v4424_v62 = vpop.permute.xlu0 %4423  ;;  %5296 = vmatprep.subr.msk.mxu1 %vm10431_vm8, %v4482_v2  ;;  %5325 = vmatprep.subr.msk.mxu0 %vm10432_vm1, %v4524_v3  ;;  %v4466_v35 = vpop.permute.xlu1 %4465  ;;  %v4493_v59 = vsel %vm10436_vm2, 0.0, %v4464_v22  ;;  %vm10447_vm9 = vmmov %vm10438_vm0  ;;  %v10486_v2 = vmov 0.0  }
0x1783   :  { %v4479_v57 = vsel %vm10433_vm13, %v4464_v22, %v4466_v35  ;;  %5297 = vmatpush1.msk.msra.mxu1 %vm10434_vm15, %v4494_v28  ;;  %5326 = vmatpush1.msk.msra.mxu0 %vm10435_vm6, %v4523_v43  ;;  %vm10443_vm13 = vmmov %vm10436_vm2  ;;  %v4453_v60 = vsel %vm10447_vm9, 0.0, %v4424_v62 }
0x1784   :  { %5298 = vmatprep.subr.msk.mxu1 %vm10431_vm8, %v4479_v57  ;;  %vm10442_vm8 = vmmov %vm10436_vm2  ;;  %v4483_v7 = vsel %vm10443_vm13, %v9240_v23, %v9234_v55 }
0x1785   :  { %5299 = vmatpush1.msk.msra.mxu1 %vm10434_vm15, %v4493_v59  ;;  %v4484_v14 = vsel %vm10442_vm8, %v9234_v55, %v9266_v13  ;;  %vm10444_vm15 = vnez %v10330_v51  ;;  %vm10445_vm2 = vmmov %vm10438_vm0 }
0x1786   :  { %v4468_v9 = vpop.permute.xlu0 %4467  ;;  %5300 = vmatprep.subr.msk.mxu1 %vm10439_vm3, %v4442_v46  ;;  %v4510_v38 = vpop.permute.xlu1 %4509  ;;  %vm10451_vm10 = vmmov %vm10442_vm8  ;;  %vm10452_vm8 = vnez %v10340_v61  ;;  %v10470_v61 = vld [vmem:[#allocation41_spill] sm:$0xff] }
0x1787   :  { %v4521_v18 = vsel %vm10428_vm4, %v4508_v15, %v4510_v38  ;;  %5301 = vmatpush1.msk.msra.mxu1 %vm10440_vm7, %v4454_v36  ;;  %vm10450_vm4 = vnez %v10338_v16  ;;  %vm10455_vm13 = vmmov %vm10445_vm2  ;;  %v10483_v15 = vld [vmem:[#allocation13_spill] sm:$0xff] }
0x1788   :  { %5327 = vmatprep.subr.msk.mxu0 %vm10432_vm1, %v4521_v18  ;;  %vm10446_vm1 = vnez %v10333_v24  ;;  %v10461_v24 = vld [vmem:[#allocation42_spill] sm:$0xff] }
0x1789   :  { %5328 = vmatpush1.msk.msra.mxu0 %vm10435_vm6, %v4520_v26  ;;  %vm10448_vm6 = vcmask 138240  }
0x178a   :  { %v4384_v44 = vpop.permute.xlu0 %4383  ;;  %5329 = vmatprep.subr.msk.mxu0 %vm10444_vm15, %v4484_v14  ;;  %v4426_v29 = vpop.permute.xlu1 %4425  ;;  %v4402_v5 = vsel %vm10448_vm6, %v9248_v31, %v9274_v50  ;;  %vm10449_vm0 = vmmov %vm10448_vm6 }
0x178b   :  { %v4439_v40 = vsel %vm10445_vm2, %v4424_v62, %v4426_v29  ;;  %5330 = vmatpush1.msk.msra.mxu0 %vm10446_vm1, %v4483_v7  ;;  %v4414_v55 = vsel %vm10449_vm0, 0.0, %v9248_v31  ;;  %v4443_v31 = vsel %vm10455_vm13, %v9258_v63, %v9260_v32  ;;  %vm10458_vm9 = vmmov %vm10449_vm0  ;;  %v10463_v63 = vld [vmem:[#allocation44_spill] sm:$0xff] }
0x178c   :  { %5302 = vmatprep.subr.msk.mxu1 %vm10439_vm3, %v4439_v40  ;;  %vm10453_vm3 = vmmov %vm10451_vm10  ;;  %v5969_v40 = vmov 15  }
0x178d   :  { %5303 = vmatpush1.msk.msra.mxu1 %vm10440_vm7, %v4453_v60  ;;  %v4480_v4 = vsel %vm10453_vm3, %v4466_v35, %v4468_v9  ;;  %vm10454_vm7 = vmmov %vm10445_vm2  ;;  %vm10457_vm2 = vnez %v10456_v20  ;;  %vm10474_vm3 = vnez %v10473_v39  ;;  %5864 = vset.pattern.permute.xlu1 %v5969_v40  ;;  %v10488_v60 = vld [vmem:[#allocation38_spill] sm:$0xff] }
0x178e   :  { %v4428_v23 = vpop.permute.xlu0 %4427  ;;  %5304 = vmatprep.subr.msk.mxu1 %vm10450_vm4, %v4402_v5  ;;  %v4470_v13 = vpop.permute.xlu1 %4469  ;;  %v4444_v33 = vsel %vm10454_vm7, %v9260_v32, %v9332_v12 }
0x178f   :  { %v4481_v58 = vsel %vm10451_vm10, %v4468_v9, %v4470_v13  ;;  %5305 = vmatpush1.msk.msra.mxu1 %vm10452_vm8, %v4414_v55  ;;  %vm10467_vm10 = vmmov %vm10454_vm7 }
0x1790   :  { %5331 = vmatprep.subr.msk.mxu0 %vm10444_vm15, %v4481_v58  ;;  %vm10460_vm15 = vmmov %vm10449_vm0  ;;  %vm10466_vm0 = vnez %v10465_v25 }
0x1791   :  { %5332 = vmatpush1.msk.msra.mxu0 %vm10446_vm1, %v4480_v4  ;;  %v4413_v8 = vsel %vm10460_vm15, 0.0, %v4384_v44  ;;  %vm10462_vm1 = vcmask 908288   ;;  %vm10484_vm15 = vnez %v10483_v15 }
0x1792   :  { %v4390_v50 = vpop.permute.xlu0 %4389  ;;  %5333 = vmatprep.subr.msk.mxu0 %vm10457_vm2, %v4444_v33  ;;  %v4386_v19 = vpop.permute.xlu1 %4385  ;;  %v4683_v12 = vsel %vm10462_vm1, %v10461_v24, %v9340_v49  ;;  %vm10464_vm6 = vmmov %vm10462_vm1 }
0x1793   :  { %v4399_v0 = vsel %vm10458_vm9, %v4384_v44, %v4386_v19  ;;  %5334 = vmatpush1.msk.msra.mxu0 %vm10357_vm12, %v4443_v31  ;;  %v4682_v32 = vsel %vm10464_vm6, %v10463_v63, %v10461_v24  ;;  %vm10487_vm6 = vmmov %vm10462_vm1 }
0x1794   :  { %5306 = vmatprep.subr.msk.mxu1 %vm10450_vm4, %v4399_v0  ;;  %vm10469_vm4 = vmmov %vm10454_vm7 }
0x1795   :  { %5307 = vmatpush1.msk.msra.mxu1 %vm10452_vm8, %v4413_v8  ;;  %v4440_v30 = vsel %vm10469_vm4, %v4426_v29, %v4428_v23  ;;  %vm10472_vm8 = vmmov %vm10458_vm9  ;;  %v5968_v29 = vmov 14  }
0x1796   :  { %v4668_v1 = vpop.permute.xlu0 %4667  ;;  %5308 = vmatprep.subr.msk.mxu1 %vm10466_vm0, %v4683_v12  ;;  %v4430_v48 = vpop.permute.xlu1 %4429  ;;  %v4404_v41 = vsel %vm10472_vm8, %v10471_v27, %v10470_v61  ;;  %vm10475_vm7 = vmmov %vm10472_vm8  ;;  %5863 = vset.pattern.permute.xlu0 %v5968_v29 }
0x1797   :  { %v4441_v47 = vsel %vm10467_vm10, %v4428_v23, %v4430_v48  ;;  %5309 = vmatpush2.msk.msra.mxu1 %vm10355_vm5, %v4682_v32  ;;  %vm10476_vm13 = vmmov %vm10475_vm7 }
0x1798   :  { %5335 = vmatprep.subr.msk.mxu0 %vm10457_vm2, %v4441_v47  ;;  %vm10479_vm2 = vmmov %vm10462_vm1 }
0x1799   :  { %5336 = vmatpush1.msk.msra.mxu0 %vm10357_vm12, %v4440_v30  ;;  %vm10480_vm12 = vmmov %vm10462_vm1 }
0x179a   :  { %v4678_v37 = vpop.permute.xlu0 %4677  ;;  %5337 = vmatprep.subr.msk.mxu0 %vm10474_vm3, %v4404_v41  ;;  %v4388_v6 = vpop.permute.xlu1 %4387  ;;  %vm10482_vm9 = vmmov %vm10462_vm1 }
0x179b   :  { %v4400_v42 = vsel %vm10475_vm7, %v4386_v19, %v4388_v6  ;;  %v4401_v54 = vsel %vm10476_vm13, %v4388_v6, %v4390_v50  ;;  %5338 = vmatpush1.msk.msra.mxu0 %vm10365_vm11, %v10477_v52  ;;  %v4694_v45 = vsel %vm10479_vm2, %v4678_v37, 0.0  ;;  %v4684_v11 = vsel %vm10480_vm12, %v9340_v49, %v4678_v37  ;;  %v69_v37 = vld [vmem:[%s9587_s1 + $0x1c8] sm:$0xff] }
0x179c   :  { %5339 = vmatprep.subr.msk.mxu0 %vm10474_vm3, %v4401_v54  ;;  %v5970_v19 = vmov 20  }
0x179d   :  { %5340 = vmatpush1.msk.msra.mxu0 %vm10365_vm11, %v4400_v42  ;;  %vm10485_vm11 = vmmov %vm10462_vm1 }
0x179e   :  { %5341 = vmatprep.subr.msk.mxu0 %vm10371_vm14, %v4694_v45  ;;  %v4666_v53 = vpop.permute.xlu1 %4665 }
0x179f   :  { %v4680_v34 = vsel %vm10482_vm9, %v4666_v53, %v4668_v1  ;;  %5342 = vmatpush2.msk.msra.mxu0 %vm10484_vm15, %v4684_v11 }
0x17a0   :  { %5310 = vmatprep.subr.msk.mxu1 %vm10466_vm0, %v4680_v34 }
0x17a2   :  { %v4664_v17 = vpop.permute.xlu1 %4663 }
0x17a3   :  { %v4679_v21 = vsel %vm10485_vm11, %v4664_v17, %v4666_v53 }
0x17a4   :  { %5311 = vmatpush2.msk.msra.mxu1 %vm10355_vm5, %v4679_v21  ;;  %vm10489_vm5 = vcmask 64512  }
0x17a5   :  { %4771 = vmatmul.mubr.f32.vlgmr.msra.gmra.mxu1 %v65_v56 }
0x17a6   :  { %v4670_v49 = vpop.permute.xlu1 %4669  ;;  %4966 = vmatprep.mubr.f32.mxu1 %v10486_v2 }
0x17a7   :  { %v4681_v3 = vsel %vm10462_vm1, %v4668_v1, %v4670_v49  ;;  %v4693_v28 = vsel %vm10487_vm6, %v4670_v49, 0.0 }
0x17a8   :  { %5343 = vmatprep.subr.msk.mxu0 %vm10371_vm14, %v4693_v28  ;;  %vm10490_vm14 = vmmov %vm10489_vm5 }
0x17a9   :  { %5344 = vmatpush2.msk.msra.mxu0 %vm10484_vm15, %v4681_v3 }
0x17aa   :  { %4842 = vmatmul.mubr.f32.vlgmr.msra.gmra.mxu0 %v65_v56 }
0x1865   :  { %v4772_v43 = vpop.f32.mrf.mxu1 }
0x1866   :  { %v4848_v62 = vmul.f32 %v4772_v43, %v4772_v43 }
0x1867   :  { %v4774_v35 = vpop.f32.mrf.mxu1 }
0x1868   :  { %v4849_v57 = vmul.f32 %v4774_v35, %v4774_v35  ;;  %v4852_v59 = vadd.f32 %v4774_v35, %v4772_v43 }
0x186a   :  { %v4857_v46 = vadd.f32 %v4849_v57, %v4848_v62  ;;  %v4843_v36 = vpop.f32.mrf.mxu0 }
0x186b   :  { %v4850_v9 = vmul.f32 %v4843_v36, %v4843_v36  ;;  %v4853_v38 = vadd.f32 %v4852_v59, %v4843_v36 }
0x186c   :  { %v4845_v18 = vpop.f32.mrf.mxu0 }
0x186d   :  { %v4858_v26 = vadd.f32 %v4857_v46, %v4850_v9  ;;  %v4851_v14 = vmul.f32 %v4845_v18, %v4845_v18  ;;  %v4854_v7 = vadd.f32 %v4853_v38, %v4845_v18 }
0x186f   :  { %v4859_v44 = vadd.f32 %v4858_v26, %v4851_v14  ;;  %4855 = vadd.xlane.f32.xlu0 %v4854_v7 }
0x1871   :  { %4860 = vadd.xlane.f32.xlu1 %v4859_v44 }
0x1882   :  { %4884 = vperm.xlu1 %5864, %v10488_v60  }
0x1886   :  { %5865 = vset.pattern.permute.xlu1 %v5970_v19 }
0x1887   :  { %4896 = vperm.xlu1 %5865, %v10488_v60  }
0x18f8   :  { %v4856_v5 = vpop.xlane.xlu0 %4855 }
0x18f9   :  { %v4862_v55 = vmul.f32 0.001953125, %v4856_v5 }
0x18fa   :  { %v4861_v23 = vpop.xlane.xlu1 %4860 }
0x18fb   :  { %v4864_v13 = vmul.f32 %v4862_v55, %v4862_v55  ;;  %v4863_v58 = vmul.f32 0.001953125, %v4861_v23  ;;  %v4870_v0 = vsub.f32 %v4772_v43, %v4862_v55  ;;  %v4871_v51 = vsub.f32 %v4774_v35, %v4862_v55 }
0x18fc   :  { %v4872_v8 = vsub.f32 %v4843_v36, %v4862_v55  ;;  %v4873_v24 = vsub.f32 %v4845_v18, %v4862_v55 }
0x18fd   :  { %v4865_v4 = vsub.f32 %v4863_v58, %v4864_v13 }
0x18fe   :  { %v4885_v63 = vpop.permute.xlu1 %4884 }
0x18ff   :  { %v4866_v33 = vmax.f32 %v4865_v4, 0.0 }
0x1901   :  { %v4867_v31 = vadd.f32 1e-05, %v4866_v33 }
0x1902   :  { %v4897_v54 = vpop.permute.xlu1 %4896 }
0x1903   :  { %5921 = vrsqrt.f32 %v4867_v31 }
0x1910   :  { %v5922_v50 = vpop.eup %5921 }
0x1911   :  { %v4869_v20 = vmul.f32 %v10488_v60, %v5922_v50 }
0x1913   :  { %4876 = vperm.xlu0 %5863, %v4869_v20  }
0x1917   :  { %5866 = vset.pattern.permute.xlu0 %v5970_v19 }
0x198e   :  { %v4877_v12 = vpop.permute.xlu0 %4876 }
0x198f   :  { %v4879_v32 = vmul.f32 %v4877_v12, %v4870_v0  ;;  %v4880_v1 = vmul.f32 %v4877_v12, %v4871_v51  ;;  %v4881_v25 = vmul.f32 %v4877_v12, %v4872_v8  ;;  %v4882_v48 = vmul.f32 %v4877_v12, %v4873_v24 }
0x1991   :  { %v4887_v47 = vadd.f32 %v4885_v63, %v4879_v32  ;;  %v4888_v16 = vadd.f32 %v4885_v63, %v4880_v1  ;;  %v4890_v30 = vadd.f32 %v4885_v63, %v4882_v48  ;;  %v4889_v61 = vadd.f32 %v4885_v63, %v4881_v25 }
0x1993   :  { %v4891_v27 = vmax.f32 %v4887_v47, 0.0  ;;  %v4892_v41 = vmax.f32 %v4888_v16, 0.0  ;;  %v4894_v39 = vmax.f32 %v4890_v30, 0.0  ;;  %v4893_v6 = vmax.f32 %v4889_v61, 0.0 }
0x1995   :  { %4932 = vmatprep.subr.mxu1 %v4892_v41 }
0x1996   :  { %4933 = vmatpush1.msra.mxu1 %v4891_v27 }
0x1997   :  { %5003 = vmatprep.subr.mxu1 %v4894_v39  ;;  %5346 = vmatmul.mubr.msk.f32.vlgmr.msra.gmra.mxu1 %vm10489_vm5, %v69_v37 }
0x1998   :  { %5004 = vmatpush1.msra.mxu1 %v4893_v6  ;;  %5037 = vmatprep.mubr.f32.mxu1 %v10486_v2 }
0x199b   :  { %5347 = vmatmul.mubr.msk.f32.vlgmr.msra.gmra.mxu1 %vm10490_vm14, %v69_v37 }
0x1a57   :  { %v4968_v42 = vpop.f32.mrf.mxu1 }
0x1a58   :  { %v4969_v22 = vadd.f32 %v4968_v42, %v4897_v54 }
0x1a59   :  { %v4970_v52 = vpop.f32.mrf.mxu1 }
0x1a5a   :  { %v4971_v45 = vadd.f32 %v4970_v52, %v4897_v54 }
0x1a5b   :  { %v5039_v11 = vpop.f32.mrf.mxu1 }
0x1a5c   :  { %v5048_v10 = vcombine.low %v4969_v22, %v4971_v45  ;;  %v5040_v34 = vadd.f32 %v5039_v11, %v4897_v54 }
0x1a5d   :  { %v5041_v53 = vpop.f32.mrf.mxu1 }
0x1a5e   :  { %v5042_v15 = vadd.f32 %v5041_v53, %v4897_v54  ;;  %5052 = vst [vmem:[%s9593_s7] sm:$0x77] %v5048_v10 }
0x1a60   :  { %v5049_v17 = vcombine.low %v5040_v34, %v5042_v15 }
0x1a62   :  { %5053 = vst [vmem:[%s9593_s7 + $0x8] sm:$0x77] %v5049_v17 }

</bundles_post_ra>
